<compile_context>
chip_gen: v7x
topology: tpu7x:2x2x1
jax: 0.10.0
libtpu: 0.0.40
codegen_flags: <defaults>
</compile_context>

<pallas_src>
import functools

import jax
import jax.numpy as jnp
import numpy as np
from jax.experimental import pallas as pl
from jax.experimental.pallas import tpu as pltpu

LANES = 128  # pad all output-channel / hidden dims to the 128-lane width


# ----------------------------- Pallas kernels -----------------------------

def _conv_relu_pool_kernel(p_ref, w_ref, b_ref, o_ref):
    """Fused conv(im2col matmul) + bias + ReLU + 2x2 max-pool.

    p_ref: [4, Q, K] bf16 — im2col patches grouped by pool-window position.
    w_ref: [K, 128]  bf16 — conv weights, output channels zero-padded to 128.
    b_ref: [1, 128]  f32  — bias, zero-padded.
    o_ref: [Q, 128]  bf16 — pooled activations, Q = B*PH*PW, rows in (b,ph,pw) order.
    maxpool(relu(conv + b)) == relu(max_g(p[g] @ w) + b) since relu/+b are monotone.
    """
    w = w_ref[...]
    m = jnp.dot(p_ref[0], w, preferred_element_type=jnp.float32)
    for g in range(1, 4):
        m = jnp.maximum(m, jnp.dot(p_ref[g], w, preferred_element_type=jnp.float32))
    o_ref[...] = jnp.maximum(m + b_ref[...], 0.0).astype(o_ref.dtype)


def _fc_softmax_kernel(x_ref, w1_ref, b1_ref, w2_ref, b2_ref, w3_ref, b3_ref,
                       o_ref, *, n_classes):
    """Fused fc1 -> relu -> fc2 -> relu -> fc3 -> softmax.

    x:[B, K1] bf16; w*: [*, 128] bf16 (zero padded); b*: [1, 128] f32.
    o:[B, 128] f32 with softmax over the first n_classes columns, 0 elsewhere.
    """
    h = jnp.dot(x_ref[...], w1_ref[...], preferred_element_type=jnp.float32)
    h = jnp.maximum(h + b1_ref[...], 0.0)
    h = jnp.dot(h.astype(jnp.bfloat16), w2_ref[...],
                preferred_element_type=jnp.float32)
    h = jnp.maximum(h + b2_ref[...], 0.0)
    z = jnp.dot(h.astype(jnp.bfloat16), w3_ref[...],
                preferred_element_type=jnp.float32)
    z = z + b3_ref[...]
    # mask padded class columns so they contribute exp(...) == 0
    col = jax.lax.broadcasted_iota(jnp.int32, z.shape, 1)
    z = jnp.where(col < n_classes, z, -1e30)
    z = z - jnp.max(z, axis=-1, keepdims=True)
    e = jnp.exp(z)
    inv = pl.reciprocal(jnp.sum(e, axis=-1, keepdims=True), approx=True)
    o_ref[...] = (e * inv).astype(o_ref.dtype)


# ------------------------------ wrappers -----------------------------------

def _im2col_pool_grouped(x, kh, kw):
    """x: [B,H,W,C] -> patches [4, B*PH*PW, kh*kw*C] (bf16-friendly XLA glue).

    Group index g = 2*di + dj is the position inside the 2x2 pool window, so
    the pool reduces to a max over the leading axis of the conv matmul result.
    """
    B, H, W, C = x.shape
    OH, OW = H - kh + 1, W - kw + 1
    PH, PW = OH // 2, OW // 2
    groups = []
    for di in range(2):
        for dj in range(2):
            taps = []
            for i in range(kh):
                for j in range(kw):
                    taps.append(x[:, di + i:di + i + 2 * PH:2,
                                     dj + j:dj + j + 2 * PW:2, :])  # [B,PH,PW,C]
            g = jnp.stack(taps, axis=-2)                            # [B,PH,PW,kh*kw,C]
            groups.append(g.reshape(B * PH * PW, kh * kw * C))
    return jnp.stack(groups, axis=0), (B, PH, PW)


def _conv_relu_pool(x_nhwc, w_mat, b_row, kh, kw):
    """x_nhwc: [B,H,W,C]; w_mat: [kh*kw*C, 128] bf16; b_row: [1,128] f32."""
    p, (B, PH, PW) = _im2col_pool_grouped(x_nhwc.astype(jnp.bfloat16), kh, kw)
    _, Q, K = p.shape
    flops = 2 * 4 * Q * K * LANES
    bytes_accessed = p.size * 2 + w_mat.size * 2 + b_row.size * 4 + Q * LANES * 2
    out = pl.pallas_call(
        _conv_relu_pool_kernel,
        out_shape=jax.ShapeDtypeStruct((Q, LANES), jnp.bfloat16),
        cost_estimate=pl.CostEstimate(flops=flops, transcendentals=0,
                                      bytes_accessed=bytes_accessed),
        compiler_params=pltpu.CompilerParams(vmem_limit_bytes=32 * 1024 * 1024),
    )(p, w_mat, b_row)
    return out.reshape(B, PH, PW, LANES)


def _fc_softmax(x, kp, n_classes):
    """x: [B, 5*5*128] bf16 -> softmax probs [B, n_classes] f32."""
    B, K1 = x.shape
    flops = 2 * B * (K1 * LANES + LANES * LANES + LANES * LANES)
    bytes_accessed = (x.size * 2 + kp["fc1_w"].size * 2 + kp["fc2_w"].size * 2
                      + kp["fc3_w"].size * 2 + 3 * LANES * 4 + B * LANES * 4)
    kern = functools.partial(_fc_softmax_kernel, n_classes=n_classes)
    out = pl.pallas_call(
        kern,
        out_shape=jax.ShapeDtypeStruct((B, LANES), jnp.float32),
        cost_estimate=pl.CostEstimate(flops=flops, transcendentals=B * LANES,
                                      bytes_accessed=bytes_accessed),
        compiler_params=pltpu.CompilerParams(vmem_limit_bytes=32 * 1024 * 1024),
    )(x, kp["fc1_w"], kp["fc1_b"], kp["fc2_w"], kp["fc2_b"],
      kp["fc3_w"], kp["fc3_b"])
    return out[:, :n_classes]


def net_forward(kp, x_nchw):
    x = jnp.transpose(x_nchw, (0, 2, 3, 1))                        # NCHW -> NHWC
    x = _conv_relu_pool(x, kp["conv1_w"], kp["conv1_b"], 5, 5)     # [B,14,14,128]
    x = _conv_relu_pool(x, kp["conv2_w"], kp["conv2_b"], 5, 5)     # [B, 5, 5,128]
    B = x.shape[0]
    x = x.reshape(B, 5 * 5 * LANES)   # (h,w,c) flatten; fc1_w rows pre-permuted to match
    return _fc_softmax(x, kp, n_classes=10)


# ---------------------- one-time parameter preparation ----------------------

def prepare_kernel_params(params):
    """Convert torch-layout params into padded, lane-dense bf16 kernel operands.
    Done once outside the jitted hot path (the review's 'one-time weight prep')."""
    def conv_mat(w, c_pad):
        OC, C, kh, kw = w.shape
        wm = jnp.transpose(w, (2, 3, 1, 0))                        # [kh,kw,C,OC]
        wm = jnp.pad(wm, ((0, 0), (0, 0), (0, c_pad - C), (0, LANES - OC)))
        return wm.reshape(kh * kw * c_pad, LANES).astype(jnp.bfloat16)

    def pad_bias(b):
        return jnp.pad(b, (0, LANES - b.shape[0])).reshape(1, LANES).astype(jnp.float32)

    # fc1: reorder rows from torch (c,h,w) flatten to kernel (h,w,c-padded-128) flatten
    w1 = params["fc1_w"].reshape(16, 5, 5, 120)                    # [c,h,w,out]
    w1 = jnp.transpose(w1, (1, 2, 0, 3))                           # [h,w,c,out]
    w1 = jnp.pad(w1, ((0, 0), (0, 0), (0, LANES - 16), (0, LANES - 120)))
    w1 = w1.reshape(5 * 5 * LANES, LANES).astype(jnp.bfloat16)

    w2 = jnp.pad(params["fc2_w"], ((0, LANES - 120), (0, LANES - 84))).astype(jnp.bfloat16)
    w3 = jnp.pad(params["fc3_w"], ((0, LANES - 84), (0, LANES - 10))).astype(jnp.bfloat16)

    return {
        "conv1_w": conv_mat(params["conv1_w"], 3),       # [75, 128]
        "conv1_b": pad_bias(params["conv1_b"]),
        "conv2_w": conv_mat(params["conv2_w"], LANES),   # [3200, 128] (input ch padded)
        "conv2_b": pad_bias(params["conv2_b"]),
        "fc1_w": w1, "fc1_b": pad_bias(params["fc1_b"]),
        "fc2_w": w2, "fc2_b": pad_bias(params["fc2_b"]),
        "fc3_w": w3, "fc3_b": pad_bias(params["fc3_b"]),
    }


# ------------------------- pure-JAX reference (check) -----------------------

def net_forward_ref(params, x_nchw):
    def conv(x, w, b):
        y = jax.lax.conv_general_dilated(
            x, w, (1, 1), "VALID", dimension_numbers=("NCHW", "OIHW", "NCHW"))
        return jax.nn.relu(y + b[None, :, None, None])

    def pool(x):
        return jax.lax.reduce_window(x, -jnp.inf, jax.lax.max,
                                     (1, 1, 2, 2), (1, 1, 2, 2), "VALID")

    x = pool(conv(x_nchw, params["conv1_w"], params["conv1_b"]))
    x = pool(conv(x, params["conv2_w"], params["conv2_b"]))
    B = x.shape[0]
    x = x.reshape(B, 16 * 5 * 5)
    x = jax.nn.relu(x @ params["fc1_w"] + params["fc1_b"])
    x = jax.nn.relu(x @ params["fc2_w"] + params["fc2_b"])
    x = x @ params["fc3_w"] + params["fc3_b"]
    return jax.nn.softmax(x, axis=1)


# ------------------------------- params ------------------------------------

def init_params(key):
    def uni(k, shape, fan_in):
        bound = 1.0 / np.sqrt(fan_in)
        return jax.random.uniform(k, shape, jnp.float32, -bound, bound)

    ks = jax.random.split(key, 10)
    return {
        # conv weights kept in torch [OC, C, kh, kw] layout
        "conv1_w": uni(ks[0], (6, 3, 5, 5), 3 * 5 * 5),
        "conv1_b": uni(ks[1], (6,), 3 * 5 * 5),
        "conv2_w": uni(ks[2], (16, 6, 5, 5), 6 * 5 * 5),
        "conv2_b": uni(ks[3], (16,), 6 * 5 * 5),
        # fc weights stored [in, out] (== torch weight.T)
        "fc1_w": uni(ks[4], (400, 120), 400),
        "fc1_b": uni(ks[5], (120,), 400),
        "fc2_w": uni(ks[6], (120, 84), 120),
        "fc2_b": uni(ks[7], (84,), 120),
        "fc3_w": uni(ks[8], (84, 10), 84),
        "fc3_b": uni(ks[9], (10,), 84),
    }


# --------------------------------- main -------------------------------------

if __name__ == "__main__":
    key = jax.random.PRNGKey(0)
    k_param, k_x = jax.random.split(key)
    params = init_params(k_param)
    kparams = prepare_kernel_params(params)     # one-time padded/bf16 conversion

    # LeNet geometry requires 32x32x3 spatial input (-> 16*5*5 after conv+pool x2).
    x = jax.random.normal(k_x, (2, 3, 32, 32), jnp.float32)

    out = jax.block_until_ready(jax.jit(net_forward)(kparams, x))
    ref = jax.block_until_ready(jax.jit(net_forward_ref)(params, x))

    assert out.shape == (2, 10)
    # bf16 MXU inputs -> slightly looser elementwise tolerance than pure f32
    np.testing.assert_allclose(np.asarray(out), np.asarray(ref), rtol=5e-2, atol=1e-2)
    # approx-reciprocal softmax denominator -> sum-to-1 within ~1e-3
    np.testing.assert_allclose(np.asarray(out).sum(axis=1), np.ones(2), atol=5e-3)

    print("KERNEL_OK")
</pallas_src>

<mosaic_0001>
module attributes {stable_mosaic.version = 11 : i64} {
  func.func @_conv_relu_pool_kernel(%arg0: memref<4x392x75xbf16, #tpu.memory_space<vmem>>, %arg1: memref<75x128xbf16, #tpu.memory_space<vmem>>, %arg2: memref<1x128xf32, #tpu.memory_space<vmem>>, %arg3: memref<392x128xbf16, #tpu.memory_space<vmem>>) attributes {dimension_semantics = [], scalar_prefetch = 0 : i64, scratch_operands = 0 : i64, tpu.core_type = #tpu.core_type<tc>} {
    %c0 = arith.constant 0 : index
    %c0_0 = arith.constant 0 : index
    %0 = vector.load %arg1[%c0, %c0_0] : memref<75x128xbf16, #tpu.memory_space<vmem>>, vector<75x128xbf16>
    %c0_1 = arith.constant 0 : index
    %c0_2 = arith.constant 0 : index
    %c0_3 = arith.constant 0 : index
    %1 = vector.load %arg0[%c0_1, %c0_2, %c0_3] : memref<4x392x75xbf16, #tpu.memory_space<vmem>>, vector<1x392x75xbf16>
    %2 = vector.shape_cast %1 : vector<1x392x75xbf16> to vector<392x75xbf16>
    %cst = arith.constant dense<0.000000e+00> : vector<392x128xf32>
    %3 = tpu.matmul %2, %0, %cst {dimension_numbers = #tpu.dot_dimension_numbers<[1], [0], [0], [1], [0, 0, 1, 1], [], []>} : vector<392x75xbf16>, vector<75x128xbf16>, vector<392x128xf32> -> vector<392x128xf32>
    %c1 = arith.constant 1 : index
    %c0_4 = arith.constant 0 : index
    %c0_5 = arith.constant 0 : index
    %4 = vector.load %arg0[%c1, %c0_4, %c0_5] : memref<4x392x75xbf16, #tpu.memory_space<vmem>>, vector<1x392x75xbf16>
    %5 = vector.shape_cast %4 : vector<1x392x75xbf16> to vector<392x75xbf16>
    %cst_6 = arith.constant dense<0.000000e+00> : vector<392x128xf32>
    %6 = tpu.matmul %5, %0, %cst_6 {dimension_numbers = #tpu.dot_dimension_numbers<[1], [0], [0], [1], [0, 0, 1, 1], [], []>} : vector<392x75xbf16>, vector<75x128xbf16>, vector<392x128xf32> -> vector<392x128xf32>
    %7 = arith.maximumf %3, %6 : vector<392x128xf32>
    %c2 = arith.constant 2 : index
    %c0_7 = arith.constant 0 : index
    %c0_8 = arith.constant 0 : index
    %8 = vector.load %arg0[%c2, %c0_7, %c0_8] : memref<4x392x75xbf16, #tpu.memory_space<vmem>>, vector<1x392x75xbf16>
    %9 = vector.shape_cast %8 : vector<1x392x75xbf16> to vector<392x75xbf16>
    %cst_9 = arith.constant dense<0.000000e+00> : vector<392x128xf32>
    %10 = tpu.matmul %9, %0, %cst_9 {dimension_numbers = #tpu.dot_dimension_numbers<[1], [0], [0], [1], [0, 0, 1, 1], [], []>} : vector<392x75xbf16>, vector<75x128xbf16>, vector<392x128xf32> -> vector<392x128xf32>
    %11 = arith.maximumf %7, %10 : vector<392x128xf32>
    %c3 = arith.constant 3 : index
    %c0_10 = arith.constant 0 : index
    %c0_11 = arith.constant 0 : index
    %12 = vector.load %arg0[%c3, %c0_10, %c0_11] : memref<4x392x75xbf16, #tpu.memory_space<vmem>>, vector<1x392x75xbf16>
    %13 = vector.shape_cast %12 : vector<1x392x75xbf16> to vector<392x75xbf16>
    %cst_12 = arith.constant dense<0.000000e+00> : vector<392x128xf32>
    %14 = tpu.matmul %13, %0, %cst_12 {dimension_numbers = #tpu.dot_dimension_numbers<[1], [0], [0], [1], [0, 0, 1, 1], [], []>} : vector<392x75xbf16>, vector<75x128xbf16>, vector<392x128xf32> -> vector<392x128xf32>
    %15 = arith.maximumf %11, %14 : vector<392x128xf32>
    %c0_13 = arith.constant 0 : index
    %c0_14 = arith.constant 0 : index
    %16 = vector.load %arg2[%c0_13, %c0_14] : memref<1x128xf32, #tpu.memory_space<vmem>>, vector<1x128xf32>
    %17 = vector.broadcast %16 : vector<1x128xf32> to vector<392x128xf32>
    %18 = arith.addf %15, %17 : vector<392x128xf32>
    %cst_15 = arith.constant 0.000000e+00 : f32
    %19 = vector.broadcast %cst_15 : f32 to vector<392x128xf32>
    %20 = arith.maximumf %18, %19 : vector<392x128xf32>
    %21 = arith.truncf %20 : vector<392x128xf32> to vector<392x128xbf16>
    %c0_16 = arith.constant 0 : index
    %c0_17 = arith.constant 0 : index
    %22 = vector.load %arg3[%c0_16, %c0_17] : memref<392x128xbf16, #tpu.memory_space<vmem>>, vector<392x128xbf16>
    tpu.vector_store %arg3[%c0_16, %c0_17], %21 {strides = array<i32>} : memref<392x128xbf16, #tpu.memory_space<vmem>>, vector<392x128xbf16>,
    return
  }
}

module attributes {stable_mosaic.version = 11 : i64} {
  func.func @_conv_relu_pool_kernel(%arg0: memref<4x50x3200xbf16, #tpu.memory_space<vmem>>, %arg1: memref<3200x128xbf16, #tpu.memory_space<vmem>>, %arg2: memref<1x128xf32, #tpu.memory_space<vmem>>, %arg3: memref<50x128xbf16, #tpu.memory_space<vmem>>) attributes {dimension_semantics = [], scalar_prefetch = 0 : i64, scratch_operands = 0 : i64, tpu.core_type = #tpu.core_type<tc>} {
    %c0 = arith.constant 0 : index
    %c0_0 = arith.constant 0 : index
    %0 = vector.load %arg1[%c0, %c0_0] : memref<3200x128xbf16, #tpu.memory_space<vmem>>, vector<3200x128xbf16>
    %c0_1 = arith.constant 0 : index
    %c0_2 = arith.constant 0 : index
    %c0_3 = arith.constant 0 : index
    %1 = vector.load %arg0[%c0_1, %c0_2, %c0_3] : memref<4x50x3200xbf16, #tpu.memory_space<vmem>>, vector<1x50x3200xbf16>
    %2 = vector.shape_cast %1 : vector<1x50x3200xbf16> to vector<50x3200xbf16>
    %cst = arith.constant dense<0.000000e+00> : vector<50x128xf32>
    %3 = tpu.matmul %2, %0, %cst {dimension_numbers = #tpu.dot_dimension_numbers<[1], [0], [0], [1], [0, 0, 1, 1], [], []>} : vector<50x3200xbf16>, vector<3200x128xbf16>, vector<50x128xf32> -> vector<50x128xf32>
    %c1 = arith.constant 1 : index
    %c0_4 = arith.constant 0 : index
    %c0_5 = arith.constant 0 : index
    %4 = vector.load %arg0[%c1, %c0_4, %c0_5] : memref<4x50x3200xbf16, #tpu.memory_space<vmem>>, vector<1x50x3200xbf16>
    %5 = vector.shape_cast %4 : vector<1x50x3200xbf16> to vector<50x3200xbf16>
    %cst_6 = arith.constant dense<0.000000e+00> : vector<50x128xf32>
    %6 = tpu.matmul %5, %0, %cst_6 {dimension_numbers = #tpu.dot_dimension_numbers<[1], [0], [0], [1], [0, 0, 1, 1], [], []>} : vector<50x3200xbf16>, vector<3200x128xbf16>, vector<50x128xf32> -> vector<50x128xf32>
    %7 = arith.maximumf %3, %6 : vector<50x128xf32>
    %c2 = arith.constant 2 : index
    %c0_7 = arith.constant 0 : index
    %c0_8 = arith.constant 0 : index
    %8 = vector.load %arg0[%c2, %c0_7, %c0_8] : memref<4x50x3200xbf16, #tpu.memory_space<vmem>>, vector<1x50x3200xbf16>
    %9 = vector.shape_cast %8 : vector<1x50x3200xbf16> to vector<50x3200xbf16>
    %cst_9 = arith.constant dense<0.000000e+00> : vector<50x128xf32>
    %10 = tpu.matmul %9, %0, %cst_9 {dimension_numbers = #tpu.dot_dimension_numbers<[1], [0], [0], [1], [0, 0, 1, 1], [], []>} : vector<50x3200xbf16>, vector<3200x128xbf16>, vector<50x128xf32> -> vector<50x128xf32>
    %11 = arith.maximumf %7, %10 : vector<50x128xf32>
    %c3 = arith.constant 3 : index
    %c0_10 = arith.constant 0 : index
    %c0_11 = arith.constant 0 : index
    %12 = vector.load %arg0[%c3, %c0_10, %c0_11] : memref<4x50x3200xbf16, #tpu.memory_space<vmem>>, vector<1x50x3200xbf16>
    %13 = vector.shape_cast %12 : vector<1x50x3200xbf16> to vector<50x3200xbf16>
    %cst_12 = arith.constant dense<0.000000e+00> : vector<50x128xf32>
    %14 = tpu.matmul %13, %0, %cst_12 {dimension_numbers = #tpu.dot_dimension_numbers<[1], [0], [0], [1], [0, 0, 1, 1], [], []>} : vector<50x3200xbf16>, vector<3200x128xbf16>, vector<50x128xf32> -> vector<50x128xf32>
    %15 = arith.maximumf %11, %14 : vector<50x128xf32>
    %c0_13 = arith.constant 0 : index
    %c0_14 = arith.constant 0 : index
    %16 = vector.load %arg2[%c0_13, %c0_14] : memref<1x128xf32, #tpu.memory_space<vmem>>, vector<1x128xf32>
    %17 = vector.broadcast %16 : vector<1x128xf32> to vector<50x128xf32>
    %18 = arith.addf %15, %17 : vector<50x128xf32>
    %cst_15 = arith.constant 0.000000e+00 : f32
    %19 = vector.broadcast %cst_15 : f32 to vector<50x128xf32>
    %20 = arith.maximumf %18, %19 : vector<50x128xf32>
    %21 = arith.truncf %20 : vector<50x128xf32> to vector<50x128xbf16>
    %c0_16 = arith.constant 0 : index
    %c0_17 = arith.constant 0 : index
    %22 = vector.load %arg3[%c0_16, %c0_17] : memref<50x128xbf16, #tpu.memory_space<vmem>>, vector<50x128xbf16>
    tpu.vector_store %arg3[%c0_16, %c0_17], %21 {strides = array<i32>} : memref<50x128xbf16, #tpu.memory_space<vmem>>, vector<50x128xbf16>,
    return
  }
}

module attributes {stable_mosaic.version = 11 : i64} {
  func.func @_fc_softmax_kernel(%arg0: memref<2x3200xbf16, #tpu.memory_space<vmem>>, %arg1: memref<3200x128xbf16, #tpu.memory_space<vmem>>, %arg2: memref<1x128xf32, #tpu.memory_space<vmem>>, %arg3: memref<128x128xbf16, #tpu.memory_space<vmem>>, %arg4: memref<1x128xf32, #tpu.memory_space<vmem>>, %arg5: memref<128x128xbf16, #tpu.memory_space<vmem>>, %arg6: memref<1x128xf32, #tpu.memory_space<vmem>>, %arg7: memref<2x128xf32, #tpu.memory_space<vmem>>) attributes {dimension_semantics = [], scalar_prefetch = 0 : i64, scratch_operands = 0 : i64, tpu.core_type = #tpu.core_type<tc>} {
    %c0 = arith.constant 0 : index
    %c0_0 = arith.constant 0 : index
    %0 = vector.load %arg0[%c0, %c0_0] : memref<2x3200xbf16, #tpu.memory_space<vmem>>, vector<2x3200xbf16>
    %c0_1 = arith.constant 0 : index
    %c0_2 = arith.constant 0 : index
    %1 = vector.load %arg1[%c0_1, %c0_2] : memref<3200x128xbf16, #tpu.memory_space<vmem>>, vector<3200x128xbf16>
    %cst = arith.constant dense<0.000000e+00> : vector<2x128xf32>
    %2 = tpu.matmul %0, %1, %cst {dimension_numbers = #tpu.dot_dimension_numbers<[1], [0], [0], [1], [0, 0, 1, 1], [], []>} : vector<2x3200xbf16>, vector<3200x128xbf16>, vector<2x128xf32> -> vector<2x128xf32>
    %c0_3 = arith.constant 0 : index
    %c0_4 = arith.constant 0 : index
    %3 = vector.load %arg2[%c0_3, %c0_4] : memref<1x128xf32, #tpu.memory_space<vmem>>, vector<1x128xf32>
    %4 = vector.broadcast %3 : vector<1x128xf32> to vector<2x128xf32>
    %5 = arith.addf %2, %4 : vector<2x128xf32>
    %cst_5 = arith.constant 0.000000e+00 : f32
    %6 = vector.broadcast %cst_5 : f32 to vector<2x128xf32>
    %7 = arith.maximumf %5, %6 : vector<2x128xf32>
    %8 = arith.truncf %7 : vector<2x128xf32> to vector<2x128xbf16>
    %c0_6 = arith.constant 0 : index
    %c0_7 = arith.constant 0 : index
    %9 = vector.load %arg3[%c0_6, %c0_7] : memref<128x128xbf16, #tpu.memory_space<vmem>>, vector<128x128xbf16>
    %cst_8 = arith.constant dense<0.000000e+00> : vector<2x128xf32>
    %10 = tpu.matmul %8, %9, %cst_8 {dimension_numbers = #tpu.dot_dimension_numbers<[1], [0], [0], [1], [0, 0, 1, 1], [], []>} : vector<2x128xbf16>, vector<128x128xbf16>, vector<2x128xf32> -> vector<2x128xf32>
    %c0_9 = arith.constant 0 : index
    %c0_10 = arith.constant 0 : index
    %11 = vector.load %arg4[%c0_9, %c0_10] : memref<1x128xf32, #tpu.memory_space<vmem>>, vector<1x128xf32>
    %12 = vector.broadcast %11 : vector<1x128xf32> to vector<2x128xf32>
    %13 = arith.addf %10, %12 : vector<2x128xf32>
    %cst_11 = arith.constant 0.000000e+00 : f32
    %14 = vector.broadcast %cst_11 : f32 to vector<2x128xf32>
    %15 = arith.maximumf %13, %14 : vector<2x128xf32>
    %16 = arith.truncf %15 : vector<2x128xf32> to vector<2x128xbf16>
    %c0_12 = arith.constant 0 : index
    %c0_13 = arith.constant 0 : index
    %17 = vector.load %arg5[%c0_12, %c0_13] : memref<128x128xbf16, #tpu.memory_space<vmem>>, vector<128x128xbf16>
    %cst_14 = arith.constant dense<0.000000e+00> : vector<2x128xf32>
    %18 = tpu.matmul %16, %17, %cst_14 {dimension_numbers = #tpu.dot_dimension_numbers<[1], [0], [0], [1], [0, 0, 1, 1], [], []>} : vector<2x128xbf16>, vector<128x128xbf16>, vector<2x128xf32> -> vector<2x128xf32>
    %c0_15 = arith.constant 0 : index
    %c0_16 = arith.constant 0 : index
    %19 = vector.load %arg6[%c0_15, %c0_16] : memref<1x128xf32, #tpu.memory_space<vmem>>, vector<1x128xf32>
    %20 = vector.broadcast %19 : vector<1x128xf32> to vector<2x128xf32>
    %21 = arith.addf %18, %20 : vector<2x128xf32>
    %22 = tpu.iota {dimensions = array<i32: 1>} : vector<2x128xi32>
    %c10_i32 = arith.constant 10 : i32
    %23 = vector.broadcast %c10_i32 : i32 to vector<2x128xi32>
    %24 = arith.cmpi slt, %22, %23 : vector<2x128xi32>
    %cst_17 = arith.constant -1.000000e+30 : f32
    %25 = vector.broadcast %cst_17 : f32 to vector<2x128xf32>
    %26 = arith.select %24, %21, %25 : vector<2x128xi1>, vector<2x128xf32>
    %cst_18 = arith.constant dense<0xFF800000> : vector<2xf32>
    %27 = vector.multi_reduction <maximumf>, %26, %cst_18 [1] : vector<2x128xf32> to vector<2xf32>
    %28 = vector.shape_cast %27 : vector<2xf32> to vector<2x1xf32>
    %29 = vector.broadcast %28 : vector<2x1xf32> to vector<2x128xf32>
    %30 = arith.subf %26, %29 : vector<2x128xf32>
    %31 = math.exp %30 : vector<2x128xf32>
    %cst_19 = arith.constant dense<0.000000e+00> : vector<2xf32>
    %32 = vector.multi_reduction <add>, %31, %cst_19 [1] : vector<2x128xf32> to vector<2xf32>
    %33 = vector.shape_cast %32 : vector<2xf32> to vector<2x1xf32>
    %34 = tpu.reciprocal %33 {approx = true} : vector<2x1xf32> -> vector<2x1xf32>
    %35 = vector.broadcast %34 : vector<2x1xf32> to vector<2x128xf32>
    %36 = arith.mulf %31, %35 : vector<2x128xf32>
    %c0_20 = arith.constant 0 : index
    %c0_21 = arith.constant 0 : index
    %37 = vector.load %arg7[%c0_20, %c0_21] : memref<2x128xf32, #tpu.memory_space<vmem>>, vector<2x128xf32>
    tpu.vector_store %arg7[%c0_20, %c0_21], %36 {strides = array<i32>} : memref<2x128xf32, #tpu.memory_space<vmem>>, vector<2x128xf32>,
    return
  }
}

</mosaic_0001>

<bundles_post_ra>
// kernel: net_forward.3
= control target key start
LH: loop header
LB: loop body
LE: loop exit
PB: predicated region body
PF: predicated region fallthrough
CT: control target
= control target key end

     0   :  { %v4977_v0 = vmov 0.0   ;;  %vm3746_vm0 = vmmov 0   ;;  %vm302_vm1 = vcmask 1044480   ;;  %vm303_vm2 = vcmask 1045504   ;;  %s4973_s1 = inlined_call_operand.vmem [shape: bf16[75,128], index: 1, kind: input, shape index: {}]   ;;  %s4974_s0 = inlined_call_operand.vmem [shape: bf16[4,392,75], index: 0, kind: input, shape index: {}]   ;;  %s4975_s2 = inlined_call_operand.vmem [shape: f32[1,128], index: 2, kind: input, shape index: {}]   ;;  %s4976_s3 = inlined_call_operand.vmem [shape: bf16[392,128], index: 3, kind: output, shape index: {}]  }
   0x1   :  { %3197 = vmatprep.subr.bf16.mxu0 %v4977_v0  ;;  %3307 = vmatprep.subr.bf16.mxu1 %v4977_v0  ;;  %v3640_v1 = vld [vmem:[%s4973_s1] sm:$0xff]   ;;  %v3641_v2 = vld [vmem:[%s4973_s1 + $0x8] sm:$0xff]   ;;  %v3642_v3 = vld [vmem:[%s4973_s1 + $0x10] sm:$0xff]   ;;  %v3747_v4 = vmov 65535   ;;  %vm226_vm3 = vcmask 613376  }
   0x2   :  { %3198 = vmatpush3.bf16.msra.mxu0 %v3640_v1  ;;  %3308 = vmatpush3.bf16.msra.mxu1 %v3640_v1  ;;  %v304_v5 = vsel %vm302_vm1, 4294967295, %v3747_v4  ;;  %v3643_v6 = vld [vmem:[%s4973_s1 + $0x18] sm:$0xff]   ;;  %v3644_v7 = vld [vmem:[%s4973_s1 + $0x20] sm:$0x3f]   ;;  %v3647_v12 = vld [vmem:[%s4974_s0 + $0x8] sm:$0xff]  }
   0x3   :  { %3199 = vmatprep.subr.bf16.mxu0 %v4977_v0  ;;  %3309 = vmatprep.subr.bf16.mxu1 %v4977_v0  ;;  %v305_v8 = vsel %vm303_vm2, %v304_v5, 0  ;;  %v3645_v10 = vld [vmem:[%s4974_s0] sm:$0xff]   ;;  %v3648_v13 = vld [vmem:[%s4974_s0 + $0xcc] sm:$0xff]   ;;  %v3650_v15 = vld [vmem:[%s4974_s0 + $0xd4] sm:$0xff]  }
   0x4   :  { %3207 = vmatprep.mubr.msk.bf16.mxu0 %vm3746_vm0, %v4977_v0  ;;  %3317 = vmatprep.mubr.msk.bf16.mxu1 %vm3746_vm0, %v4977_v0  ;;  %v307_v9 = vand.u32 %v3644_v7, %v305_v8  ;;  %v3646_v11 = vld [vmem:[%s4974_s0 + $0xc4] sm:$0xff]   ;;  %v3649_v14 = vld [vmem:[%s4974_s0 + $0x10] sm:$0xff]   ;;  %v3651_v16 = vld [vmem:[%s4974_s0 + $0x18] sm:$0xff]  }
   0x5   :  { %v3652_v17 = vld [vmem:[%s4974_s0 + $0xdc] sm:$0xff]   ;;  %v3654_v19 = vld [vmem:[%s4974_s0 + $0xe4] sm:$0xff]   ;;  %v3656_v21 = vld [vmem:[%s4974_s0 + $0xec] sm:$0xff]  }
   0x6   :  { %3200 = vmatpush3.bf16.msra.mxu0 %v3641_v2  ;;  %3310 = vmatpush3.bf16.msra.mxu1 %v3641_v2  ;;  %v3653_v18 = vld [vmem:[%s4974_s0 + $0x20] sm:$0xff]   ;;  %v3655_v20 = vld [vmem:[%s4974_s0 + $0x28] sm:$0xff]   ;;  %v3657_v22 = vld [vmem:[%s4974_s0 + $0x30] sm:$0xff]  }
   0x7   :  { %3201 = vmatprep.subr.bf16.mxu0 %v4977_v0  ;;  %3311 = vmatprep.subr.bf16.mxu1 %v4977_v0  ;;  %v3658_v23 = vld [vmem:[%s4974_s0 + $0xf4] sm:$0xff]   ;;  %v3660_v25 = vld [vmem:[%s4974_s0 + $0xfc] sm:$0xff]   ;;  %v3662_v27 = vld [vmem:[%s4974_s0 + $0x104] sm:$0xff]  }
   0x8   :  { %v3659_v24 = vld [vmem:[%s4974_s0 + $0x38] sm:$0xff]   ;;  %v3661_v26 = vld [vmem:[%s4974_s0 + $0x40] sm:$0xff]   ;;  %v3663_v28 = vld [vmem:[%s4974_s0 + $0x48] sm:$0xff]  }
   0x9   :  { %v3664_v29 = vld [vmem:[%s4974_s0 + $0x10c] sm:$0xff]   ;;  %v3666_v31 = vld [vmem:[%s4974_s0 + $0x114] sm:$0xff]   ;;  %v3668_v33 = vld [vmem:[%s4974_s0 + $0x11c] sm:$0xff]  }
   0xa   :  { %3202 = vmatpush3.bf16.msra.mxu0 %v3642_v3  ;;  %3312 = vmatpush3.bf16.msra.mxu1 %v3642_v3  ;;  %v3665_v30 = vld [vmem:[%s4974_s0 + $0x50] sm:$0xff]   ;;  %v3667_v32 = vld [vmem:[%s4974_s0 + $0x58] sm:$0xff]   ;;  %v3669_v34 = vld [vmem:[%s4974_s0 + $0x60] sm:$0xff]  }
   0xb   :  { %3203 = vmatprep.subr.bf16.mxu0 %v4977_v0  ;;  %3313 = vmatprep.subr.bf16.mxu1 %v4977_v0  ;;  %v3670_v35 = vld [vmem:[%s4974_s0 + $0x124] sm:$0xff]   ;;  %v3672_v37 = vld [vmem:[%s4974_s0 + $0x12c] sm:$0xff]   ;;  %v3674_v39 = vld [vmem:[%s4974_s0 + $0x134] sm:$0xff]  }
   0xc   :  { %v3671_v36 = vld [vmem:[%s4974_s0 + $0x68] sm:$0xff]   ;;  %v3673_v38 = vld [vmem:[%s4974_s0 + $0x70] sm:$0xff]   ;;  %v3675_v40 = vld [vmem:[%s4974_s0 + $0x78] sm:$0xff]  }
   0xd   :  { %v3676_v41 = vld [vmem:[%s4974_s0 + $0x13c] sm:$0xff]   ;;  %v3678_v43 = vld [vmem:[%s4974_s0 + $0x144] sm:$0xff]   ;;  %v3680_v45 = vld [vmem:[%s4974_s0 + $0x14c] sm:$0xff]  }
   0xe   :  { %3204 = vmatpush3.bf16.msra.mxu0 %v3643_v6  ;;  %3314 = vmatpush3.bf16.msra.mxu1 %v3643_v6  ;;  %v3677_v42 = vld [vmem:[%s4974_s0 + $0x80] sm:$0xff]   ;;  %v3679_v44 = vld [vmem:[%s4974_s0 + $0x88] sm:$0xff]   ;;  %v3681_v46 = vld [vmem:[%s4974_s0 + $0x90] sm:$0xff]  }
   0xf   :  { %3205 = vmatprep.subr.bf16.mxu0 %v4977_v0  ;;  %3315 = vmatprep.subr.bf16.mxu1 %v4977_v0  ;;  %v3682_v47 = vld [vmem:[%s4974_s0 + $0x154] sm:$0xff]   ;;  %v3684_v49 = vld [vmem:[%s4974_s0 + $0x15c] sm:$0xff]   ;;  %v3686_v51 = vld [vmem:[%s4974_s0 + $0x164] sm:$0xff]  }
  0x10   :  { %v3683_v48 = vld [vmem:[%s4974_s0 + $0x98] sm:$0xff]   ;;  %v3685_v50 = vld [vmem:[%s4974_s0 + $0xa0] sm:$0xff]   ;;  %v3687_v52 = vld [vmem:[%s4974_s0 + $0xa8] sm:$0xff]  }
  0x11   :  { %v3688_v53 = vld [vmem:[%s4974_s0 + $0x16c] sm:$0xff]   ;;  %v3690_v55 = vld [vmem:[%s4974_s0 + $0x174] sm:$0xff]   ;;  %v3692_v57 = vld [vmem:[%s4974_s0 + $0x17c] sm:$0xff]  }
  0x12   :  { %3206 = vmatpush3.bf16.msra.mxu0 %v307_v9  ;;  %3316 = vmatpush3.bf16.msra.mxu1 %v307_v9  ;;  %v3689_v54 = vld [vmem:[%s4974_s0 + $0xb0] sm:$0xff]   ;;  %v3691_v56 = vld [vmem:[%s4974_s0 + $0xb8] sm:$0xff]   ;;  %v3693_v58 = vld [vmem:[%s4974_s0 + $0xc0] ss:$0 sps:$4 sm:$0xff]  }
  0x13   :  { %3417 = vmatprep.subr.bf16.mxu0 %v4977_v0  ;;  %3527 = vmatprep.subr.bf16.mxu1 %v4977_v0  ;;  %v3694_v59 = vld [vmem:[%s4974_s0 + $0x184] ss:$0 sps:$4 sm:$0xff]   ;;  %v3695_v60 = vld [vmem:[%s4974_s0 + $0x188] sm:$0xff]   ;;  %v3697_v62 = vld [vmem:[%s4974_s0 + $0x190] sm:$0xff]  }
  0x14   :  { %v3696_v61 = vld [vmem:[%s4974_s0 + $0x24c] sm:$0xff]   ;;  %v3698_v63 = vld [vmem:[%s4974_s0 + $0x254] sm:$0xff]   ;;  %v3700_v7 = vld [vmem:[%s4974_s0 + $0x25c] sm:$0xff]  }
  0x15   :  { %3208 = vmatmul.mubr.msk.bf16.vlgmr.msra.gmra.mrb[0].mxu0 %vm226_vm3, %v3645_v10  ;;  %3318 = vmatmul.mubr.msk.bf16.vlgmr.msra.gmra.mrb[0].mxu1 %vm226_vm3, %v3646_v11 }
  0x16   :  { %3418 = vmatpush3.bf16.msra.mxu0 %v3640_v1  ;;  %3528 = vmatpush3.bf16.msra.mxu1 %v3640_v1 }
  0x17   :  { %3211 = vmatprep.mubr.msk.bf16.mxu0 %vm3746_vm0, %v4977_v0  ;;  %3321 = vmatprep.mubr.msk.bf16.mxu1 %vm3746_vm0, %v4977_v0 }
  0x18   :  { %3419 = vmatprep.subr.bf16.mxu0 %v4977_v0  ;;  %3529 = vmatprep.subr.bf16.mxu1 %v4977_v0 }
  0x1a   :  { %3420 = vmatpush3.bf16.msra.mxu0 %v3641_v2  ;;  %3530 = vmatpush3.bf16.msra.mxu1 %v3641_v2 }
  0x1b   :  { %3421 = vmatprep.subr.bf16.mxu0 %v4977_v0  ;;  %3531 = vmatprep.subr.bf16.mxu1 %v4977_v0 }
  0x1d   :  { %3212 = vmatmul.mubr.msk.bf16.gmra.mrb[4].mxu0 %vm226_vm3, %v3647_v12  ;;  %3322 = vmatmul.mubr.msk.bf16.gmra.mrb[4].mxu1 %vm226_vm3, %v3648_v13 }
  0x1e   :  { %3215 = vmatprep.mubr.msk.bf16.mxu0 %vm3746_vm0, %v4977_v0  ;;  %3325 = vmatprep.mubr.msk.bf16.mxu1 %vm3746_vm0, %v4977_v0 }
  0x1f   :  { %3422 = vmatpush3.bf16.msra.mxu0 %v3642_v3  ;;  %3532 = vmatpush3.bf16.msra.mxu1 %v3642_v3 }
  0x20   :  { %3423 = vmatprep.subr.bf16.mxu0 %v4977_v0  ;;  %3533 = vmatprep.subr.bf16.mxu1 %v4977_v0 }
  0x23   :  { %3424 = vmatpush3.bf16.msra.mxu0 %v3643_v6  ;;  %3534 = vmatpush3.bf16.msra.mxu1 %v3643_v6  ;;  %v3699_v6 = vld [vmem:[%s4974_s0 + $0x198] sm:$0xff]  }
  0x24   :  { %3425 = vmatprep.subr.bf16.mxu0 %v4977_v0  ;;  %3535 = vmatprep.subr.bf16.mxu1 %v4977_v0 }
  0x25   :  { %3216 = vmatmul.mubr.msk.bf16.gmra.mrb[8].mxu0 %vm226_vm3, %v3649_v14  ;;  %3326 = vmatmul.mubr.msk.bf16.gmra.mrb[8].mxu1 %vm226_vm3, %v3650_v15 }
  0x26   :  { %3219 = vmatprep.mubr.msk.bf16.mxu0 %vm3746_vm0, %v4977_v0  ;;  %3329 = vmatprep.mubr.msk.bf16.mxu1 %vm3746_vm0, %v4977_v0 }
  0x27   :  { %3426 = vmatpush3.bf16.msra.mxu0 %v307_v9  ;;  %3536 = vmatpush3.bf16.msra.mxu1 %v307_v9 }
  0x2d   :  { %3220 = vmatmul.mubr.msk.bf16.gmra.mrb[12].mxu0 %vm226_vm3, %v3651_v16  ;;  %3330 = vmatmul.mubr.msk.bf16.gmra.mrb[12].mxu1 %vm226_vm3, %v3652_v17 }
  0x2e   :  { %3223 = vmatprep.mubr.msk.bf16.mxu0 %vm3746_vm0, %v4977_v0  ;;  %3333 = vmatprep.mubr.msk.bf16.mxu1 %vm3746_vm0, %v4977_v0 }
  0x35   :  { %3224 = vmatmul.mubr.msk.bf16.gmra.mrb[16].mxu0 %vm226_vm3, %v3653_v18  ;;  %3334 = vmatmul.mubr.msk.bf16.gmra.mrb[16].mxu1 %vm226_vm3, %v3654_v19  ;;  %v3701_v18 = vld [vmem:[%s4974_s0 + $0x1a0] sm:$0xff]  }
  0x36   :  { %3227 = vmatprep.mubr.msk.bf16.mxu0 %vm3746_vm0, %v4977_v0  ;;  %3337 = vmatprep.mubr.msk.bf16.mxu1 %vm3746_vm0, %v4977_v0  ;;  %v3702_v19 = vld [vmem:[%s4974_s0 + $0x264] sm:$0xff]  }
  0x3d   :  { %3228 = vmatmul.mubr.msk.bf16.gmra.mrb[20].mxu0 %vm226_vm3, %v3655_v20  ;;  %3338 = vmatmul.mubr.msk.bf16.gmra.mrb[20].mxu1 %vm226_vm3, %v3656_v21 }
  0x3e   :  { %3231 = vmatprep.mubr.msk.bf16.mxu0 %vm3746_vm0, %v4977_v0  ;;  %3341 = vmatprep.mubr.msk.bf16.mxu1 %vm3746_vm0, %v4977_v0 }
  0x45   :  { %3232 = vmatmul.mubr.msk.bf16.gmra.mrb[24].mxu0 %vm226_vm3, %v3657_v22  ;;  %3342 = vmatmul.mubr.msk.bf16.gmra.mrb[24].mxu1 %vm226_vm3, %v3658_v23 }
  0x46   :  { %3235 = vmatprep.mubr.msk.bf16.mxu0 %vm3746_vm0, %v4977_v0  ;;  %3345 = vmatprep.mubr.msk.bf16.mxu1 %vm3746_vm0, %v4977_v0 }
  0x4d   :  { %3236 = vmatmul.mubr.msk.bf16.gmra.mrb[28].mxu0 %vm226_vm3, %v3659_v24  ;;  %3346 = vmatmul.mubr.msk.bf16.gmra.mrb[28].mxu1 %vm226_vm3, %v3660_v25 }
  0x4e   :  { %3239 = vmatprep.mubr.msk.bf16.mxu0 %vm3746_vm0, %v4977_v0  ;;  %3349 = vmatprep.mubr.msk.bf16.mxu1 %vm3746_vm0, %v4977_v0 }
  0x55   :  { %3240 = vmatmul.mubr.msk.bf16.gmra.mrb[32].mxu0 %vm226_vm3, %v3661_v26  ;;  %3350 = vmatmul.mubr.msk.bf16.gmra.mrb[32].mxu1 %vm226_vm3, %v3662_v27 }
  0x56   :  { %3243 = vmatprep.mubr.msk.bf16.mxu0 %vm3746_vm0, %v4977_v0  ;;  %3353 = vmatprep.mubr.msk.bf16.mxu1 %vm3746_vm0, %v4977_v0 }
  0x5d   :  { %3244 = vmatmul.mubr.msk.bf16.gmra.mrb[36].mxu0 %vm226_vm3, %v3663_v28  ;;  %3354 = vmatmul.mubr.msk.bf16.gmra.mrb[36].mxu1 %vm226_vm3, %v3664_v29 }
  0x5e   :  { %3247 = vmatprep.mubr.msk.bf16.mxu0 %vm3746_vm0, %v4977_v0  ;;  %3357 = vmatprep.mubr.msk.bf16.mxu1 %vm3746_vm0, %v4977_v0 }
  0x65   :  { %3248 = vmatmul.mubr.msk.bf16.gmra.mrb[40].mxu0 %vm226_vm3, %v3665_v30  ;;  %3358 = vmatmul.mubr.msk.bf16.gmra.mrb[40].mxu1 %vm226_vm3, %v3666_v31  ;;  %v3703_v30 = vld [vmem:[%s4974_s0 + $0x1a8] sm:$0xff]  }
  0x66   :  { %3251 = vmatprep.mubr.msk.bf16.mxu0 %vm3746_vm0, %v4977_v0  ;;  %3361 = vmatprep.mubr.msk.bf16.mxu1 %vm3746_vm0, %v4977_v0  ;;  %v3704_v31 = vld [vmem:[%s4974_s0 + $0x26c] sm:$0xff]  }
  0x6d   :  { %3252 = vmatmul.mubr.msk.bf16.gmra.mrb[44].mxu0 %vm226_vm3, %v3667_v32  ;;  %3362 = vmatmul.mubr.msk.bf16.gmra.mrb[44].mxu1 %vm226_vm3, %v3668_v33 }
  0x6e   :  { %3255 = vmatprep.mubr.msk.bf16.mxu0 %vm3746_vm0, %v4977_v0  ;;  %3365 = vmatprep.mubr.msk.bf16.mxu1 %vm3746_vm0, %v4977_v0 }
  0x75   :  { %3256 = vmatmul.mubr.msk.bf16.gmra.mrb[48].mxu0 %vm226_vm3, %v3669_v34  ;;  %3366 = vmatmul.mubr.msk.bf16.gmra.mrb[48].mxu1 %vm226_vm3, %v3670_v35 }
  0x76   :  { %3259 = vmatprep.mubr.msk.bf16.mxu0 %vm3746_vm0, %v4977_v0  ;;  %3369 = vmatprep.mubr.msk.bf16.mxu1 %vm3746_vm0, %v4977_v0 }
  0x7d   :  { %3260 = vmatmul.mubr.msk.bf16.gmra.mrb[52].mxu0 %vm226_vm3, %v3671_v36  ;;  %3370 = vmatmul.mubr.msk.bf16.gmra.mrb[52].mxu1 %vm226_vm3, %v3672_v37 }
  0x7e   :  { %3263 = vmatprep.mubr.msk.bf16.mxu0 %vm3746_vm0, %v4977_v0  ;;  %3373 = vmatprep.mubr.msk.bf16.mxu1 %vm3746_vm0, %v4977_v0 }
  0x85   :  { %3264 = vmatmul.mubr.msk.bf16.gmra.mrb[56].mxu0 %vm226_vm3, %v3673_v38  ;;  %3374 = vmatmul.mubr.msk.bf16.gmra.mrb[56].mxu1 %vm226_vm3, %v3674_v39 }
  0x86   :  { %3267 = vmatprep.mubr.msk.bf16.mxu0 %vm3746_vm0, %v4977_v0  ;;  %3377 = vmatprep.mubr.msk.bf16.mxu1 %vm3746_vm0, %v4977_v0 }
  0x8d   :  { %3268 = vmatmul.mubr.msk.bf16.gmra.mrb[60].mxu0 %vm226_vm3, %v3675_v40  ;;  %3378 = vmatmul.mubr.msk.bf16.gmra.mrb[60].mxu1 %vm226_vm3, %v3676_v41 }
  0x8e   :  { %3271 = vmatprep.mubr.msk.bf16.mxu0 %vm3746_vm0, %v4977_v0  ;;  %3381 = vmatprep.mubr.msk.bf16.mxu1 %vm3746_vm0, %v4977_v0 }
  0x95   :  { %3272 = vmatmul.mubr.msk.bf16.gmra.mrb[64].mxu0 %vm226_vm3, %v3677_v42  ;;  %3382 = vmatmul.mubr.msk.bf16.gmra.mrb[64].mxu1 %vm226_vm3, %v3678_v43  ;;  %v3705_v42 = vld [vmem:[%s4974_s0 + $0x1b0] sm:$0xff]  }
  0x96   :  { %3275 = vmatprep.mubr.msk.bf16.mxu0 %vm3746_vm0, %v4977_v0  ;;  %3385 = vmatprep.mubr.msk.bf16.mxu1 %vm3746_vm0, %v4977_v0  ;;  %v3706_v43 = vld [vmem:[%s4974_s0 + $0x274] sm:$0xff]  }
  0x9d   :  { %3276 = vmatmul.mubr.msk.bf16.gmra.mrb[68].mxu0 %vm226_vm3, %v3679_v44  ;;  %3386 = vmatmul.mubr.msk.bf16.gmra.mrb[68].mxu1 %vm226_vm3, %v3680_v45 }
  0x9e   :  { %3279 = vmatprep.mubr.msk.bf16.mxu0 %vm3746_vm0, %v4977_v0  ;;  %3389 = vmatprep.mubr.msk.bf16.mxu1 %vm3746_vm0, %v4977_v0 }
  0xa5   :  { %3280 = vmatmul.mubr.msk.bf16.gmra.mrb[72].mxu0 %vm226_vm3, %v3681_v46  ;;  %3390 = vmatmul.mubr.msk.bf16.gmra.mrb[72].mxu1 %vm226_vm3, %v3682_v47 }
  0xa6   :  { %3283 = vmatprep.mubr.msk.bf16.mxu0 %vm3746_vm0, %v4977_v0  ;;  %3393 = vmatprep.mubr.msk.bf16.mxu1 %vm3746_vm0, %v4977_v0 }
  0xad   :  { %3284 = vmatmul.mubr.msk.bf16.gmra.mrb[76].mxu0 %vm226_vm3, %v3683_v48  ;;  %3394 = vmatmul.mubr.msk.bf16.gmra.mrb[76].mxu1 %vm226_vm3, %v3684_v49 }
  0xae   :  { %3287 = vmatprep.mubr.msk.bf16.mxu0 %vm3746_vm0, %v4977_v0  ;;  %3397 = vmatprep.mubr.msk.bf16.mxu1 %vm3746_vm0, %v4977_v0 }
  0xb5   :  { %3288 = vmatmul.mubr.msk.bf16.gmra.mrb[80].mxu0 %vm226_vm3, %v3685_v50  ;;  %3398 = vmatmul.mubr.msk.bf16.gmra.mrb[80].mxu1 %vm226_vm3, %v3686_v51 }
  0xb6   :  { %3291 = vmatprep.mubr.msk.bf16.mxu0 %vm3746_vm0, %v4977_v0  ;;  %3401 = vmatprep.mubr.msk.bf16.mxu1 %vm3746_vm0, %v4977_v0 }
  0xbd   :  { %3292 = vmatmul.mubr.msk.bf16.gmra.mrb[84].mxu0 %vm226_vm3, %v3687_v52  ;;  %3402 = vmatmul.mubr.msk.bf16.gmra.mrb[84].mxu1 %vm226_vm3, %v3688_v53 }
  0xbe   :  { %3295 = vmatprep.mubr.msk.bf16.mxu0 %vm3746_vm0, %v4977_v0  ;;  %3405 = vmatprep.mubr.msk.bf16.mxu1 %vm3746_vm0, %v4977_v0 }
  0xc5   :  { %3296 = vmatmul.mubr.msk.bf16.gmra.mrb[88].mxu0 %vm226_vm3, %v3689_v54  ;;  %3406 = vmatmul.mubr.msk.bf16.gmra.mrb[88].mxu1 %vm226_vm3, %v3690_v55  ;;  %v3707_v54 = vld [vmem:[%s4974_s0 + $0x1b8] sm:$0xff]  }
  0xc6   :  { %3299 = vmatprep.mubr.msk.bf16.mxu0 %vm3746_vm0, %v4977_v0  ;;  %3409 = vmatprep.mubr.msk.bf16.mxu1 %vm3746_vm0, %v4977_v0  ;;  %v3708_v55 = vld [vmem:[%s4974_s0 + $0x27c] sm:$0xff]  }
  0xcd   :  { %3300 = vmatmul.mubr.msk.bf16.gmra.mrb[92].mxu0 %vm226_vm3, %v3691_v56  ;;  %3410 = vmatmul.mubr.msk.bf16.gmra.mrb[92].mxu1 %vm226_vm3, %v3692_v57 }
  0xce   :  { %3303 = vmatprep.mubr.msk.bf16.mxu0 %vm3746_vm0, %v4977_v0  ;;  %3413 = vmatprep.mubr.msk.bf16.mxu1 %vm3746_vm0, %v4977_v0 }
  0xd5   :  { %3304 = vmatmul.mubr.msk.bf16.gmra.mrb[96].mxu0 %vm226_vm3, %v3693_v58  ;;  %3414 = vmatmul.mubr.msk.bf16.gmra.mrb[96].mxu1 %vm226_vm3, %v3694_v59 }
  0xd6   :  { %3427 = vmatprep.mubr.msk.bf16.mxu0 %vm3746_vm0, %v4977_v0  ;;  %3537 = vmatprep.mubr.msk.bf16.mxu1 %vm3746_vm0, %v4977_v0 }
  0xdd   :  { %3428 = vmatmul.mubr.msk.bf16.vlgmr.msra.gmra.mrb[100].mxu0 %vm226_vm3, %v3695_v60  ;;  %3538 = vmatmul.mubr.msk.bf16.vlgmr.msra.gmra.mrb[100].mxu1 %vm226_vm3, %v3696_v61 }
  0xde   :  { %3431 = vmatprep.mubr.msk.bf16.mxu0 %vm3746_vm0, %v4977_v0  ;;  %3541 = vmatprep.mubr.msk.bf16.mxu1 %vm3746_vm0, %v4977_v0 }
  0xe5   :  { %3432 = vmatmul.mubr.msk.bf16.gmra.mrb[104].mxu0 %vm226_vm3, %v3697_v62  ;;  %3542 = vmatmul.mubr.msk.bf16.gmra.mrb[104].mxu1 %vm226_vm3, %v3698_v63 }
  0xe6   :  { %3435 = vmatprep.mubr.msk.bf16.mxu0 %vm3746_vm0, %v4977_v0  ;;  %3545 = vmatprep.mubr.msk.bf16.mxu1 %vm3746_vm0, %v4977_v0 }
  0xe8   :  { %v4131_v1 = vpop.f32.mrb[0].mxu0  ;;  %v4133_v2 = vpop.f32.mrb[0].mxu1 }
  0xe9   :  { %v3209_v4 = vpop.f32.mrb[1].mxu0  ;;  %v3319_v5 = vpop.f32.mrb[1].mxu1 }
  0xea   :  { %v4143_v8 = vpop.f32.mrb[2].mxu0  ;;  %v4145_v9 = vpop.f32.mrb[2].mxu1 }
  0xeb   :  { %v3210_v11 = vpop.f32.mrb[3].mxu0  ;;  %v3320_v12 = vpop.f32.mrb[3].mxu1 }
  0xed   :  { %3436 = vmatmul.mubr.msk.bf16.gmra.mrb[108].mxu0 %vm226_vm3, %v3699_v6  ;;  %3546 = vmatmul.mubr.msk.bf16.gmra.mrb[108].mxu1 %vm226_vm3, %v3700_v7  ;;  %v3709_v6 = vld [vmem:[%s4974_s0 + $0x1c0] sm:$0xff]  }
  0xee   :  { %3439 = vmatprep.mubr.msk.bf16.mxu0 %vm3746_vm0, %v4977_v0  ;;  %3549 = vmatprep.mubr.msk.bf16.mxu1 %vm3746_vm0, %v4977_v0  ;;  %v3710_v7 = vld [vmem:[%s4974_s0 + $0x284] sm:$0xff]  }
  0xf0   :  { %v4155_v13 = vpop.f32.mrb[4].mxu0  ;;  %v4157_v14 = vpop.f32.mrb[4].mxu1 }
  0xf1   :  { %v3213_v16 = vpop.f32.mrb[5].mxu0  ;;  %v3323_v17 = vpop.f32.mrb[5].mxu1 }
  0xf2   :  { %v4167_v20 = vpop.f32.mrb[6].mxu0  ;;  %v4169_v21 = vpop.f32.mrb[6].mxu1 }
  0xf3   :  { %v3214_v23 = vpop.f32.mrb[7].mxu0  ;;  %v3324_v24 = vpop.f32.mrb[7].mxu1 }
  0xf5   :  { %3440 = vmatmul.mubr.msk.bf16.gmra.mrb[112].mxu0 %vm226_vm3, %v3701_v18  ;;  %3550 = vmatmul.mubr.msk.bf16.gmra.mrb[112].mxu1 %vm226_vm3, %v3702_v19 }
  0xf6   :  { %3443 = vmatprep.mubr.msk.bf16.mxu0 %vm3746_vm0, %v4977_v0  ;;  %3553 = vmatprep.mubr.msk.bf16.mxu1 %vm3746_vm0, %v4977_v0 }
  0xf8   :  { %v4179_v25 = vpop.f32.mrb[8].mxu0  ;;  %v4181_v26 = vpop.f32.mrb[8].mxu1 }
  0xf9   :  { %v3217_v28 = vpop.f32.mrb[9].mxu0  ;;  %v3327_v29 = vpop.f32.mrb[9].mxu1 }
  0xfa   :  { %v4191_v32 = vpop.f32.mrb[10].mxu0  ;;  %v4193_v33 = vpop.f32.mrb[10].mxu1 }
  0xfb   :  { %v3218_v35 = vpop.f32.mrb[11].mxu0  ;;  %v3328_v36 = vpop.f32.mrb[11].mxu1 }
  0xfd   :  { %3444 = vmatmul.mubr.msk.bf16.gmra.mrb[116].mxu0 %vm226_vm3, %v3703_v30  ;;  %3554 = vmatmul.mubr.msk.bf16.gmra.mrb[116].mxu1 %vm226_vm3, %v3704_v31  ;;  %v3711_v30 = vld [vmem:[%s4974_s0 + $0x1c8] sm:$0xff]  }
  0xfe   :  { %3447 = vmatprep.mubr.msk.bf16.mxu0 %vm3746_vm0, %v4977_v0  ;;  %3557 = vmatprep.mubr.msk.bf16.mxu1 %vm3746_vm0, %v4977_v0  ;;  %v3712_v31 = vld [vmem:[%s4974_s0 + $0x28c] sm:$0xff]  }
 0x100   :  { %v4203_v37 = vpop.f32.mrb[12].mxu0  ;;  %v4205_v38 = vpop.f32.mrb[12].mxu1 }
 0x101   :  { %v3221_v40 = vpop.f32.mrb[13].mxu0  ;;  %v3331_v41 = vpop.f32.mrb[13].mxu1 }
 0x102   :  { %v4215_v44 = vpop.f32.mrb[14].mxu0  ;;  %v4217_v45 = vpop.f32.mrb[14].mxu1 }
 0x103   :  { %v3222_v47 = vpop.f32.mrb[15].mxu0  ;;  %v3332_v48 = vpop.f32.mrb[15].mxu1 }
 0x105   :  { %3448 = vmatmul.mubr.msk.bf16.gmra.mrb[120].mxu0 %vm226_vm3, %v3705_v42  ;;  %3558 = vmatmul.mubr.msk.bf16.gmra.mrb[120].mxu1 %vm226_vm3, %v3706_v43 }
 0x106   :  { %3451 = vmatprep.mubr.msk.bf16.mxu0 %vm3746_vm0, %v4977_v0  ;;  %3561 = vmatprep.mubr.msk.bf16.mxu1 %vm3746_vm0, %v4977_v0 }
 0x108   :  { %v4227_v49 = vpop.f32.mrb[16].mxu0  ;;  %v4229_v50 = vpop.f32.mrb[16].mxu1 }
 0x109   :  { %v3225_v52 = vpop.f32.mrb[17].mxu0  ;;  %v3335_v53 = vpop.f32.mrb[17].mxu1 }
 0x10a   :  { %v4239_v56 = vpop.f32.mrb[18].mxu0  ;;  %v4241_v57 = vpop.f32.mrb[18].mxu1 }
 0x10b   :  { %v3226_v59 = vpop.f32.mrb[19].mxu0  ;;  %v3336_v60 = vpop.f32.mrb[19].mxu1 }
 0x10d   :  { %3452 = vmatmul.mubr.msk.bf16.gmra.mrb[124].mxu0 %vm226_vm3, %v3707_v54  ;;  %3562 = vmatmul.mubr.msk.bf16.gmra.mrb[124].mxu1 %vm226_vm3, %v3708_v55  ;;  %v3713_v54 = vld [vmem:[%s4974_s0 + $0x1d0] sm:$0xff]  }
 0x10e   :  { %3455 = vmatprep.mubr.msk.bf16.mxu0 %vm3746_vm0, %v4977_v0  ;;  %3565 = vmatprep.mubr.msk.bf16.mxu1 %vm3746_vm0, %v4977_v0  ;;  %v3714_v55 = vld [vmem:[%s4974_s0 + $0x294] sm:$0xff]  }
 0x110   :  { %v4251_v61 = vpop.f32.mrb[20].mxu0  ;;  %v4253_v62 = vpop.f32.mrb[20].mxu1 }
 0x111   :  { %v3229_v4 = vpop.f32.mrb[21].mxu0  ;;  %v3339_v5 = vpop.f32.mrb[21].mxu1 }
 0x112   :  { %v4263_v11 = vpop.f32.mrb[22].mxu0  ;;  %v4265_v12 = vpop.f32.mrb[22].mxu1 }
 0x113   :  { %v3230_v17 = vpop.f32.mrb[23].mxu0  ;;  %v3340_v18 = vpop.f32.mrb[23].mxu1 }
 0x115   :  { %3456 = vmatmul.mubr.msk.bf16.gmra.mrb[128].mxu0 %vm226_vm3, %v3709_v6  ;;  %3566 = vmatmul.mubr.msk.bf16.gmra.mrb[128].mxu1 %vm226_vm3, %v3710_v7 }
 0x116   :  { %3459 = vmatprep.mubr.msk.bf16.mxu0 %vm3746_vm0, %v4977_v0  ;;  %3569 = vmatprep.mubr.msk.bf16.mxu1 %vm3746_vm0, %v4977_v0 }
 0x118   :  { %v4275_v19 = vpop.f32.mrb[24].mxu0  ;;  %v4277_v23 = vpop.f32.mrb[24].mxu1 }
 0x119   :  { %v3233_v28 = vpop.f32.mrb[25].mxu0  ;;  %v3343_v29 = vpop.f32.mrb[25].mxu1 }
 0x11a   :  { %v4287_v35 = vpop.f32.mrb[26].mxu0  ;;  %v4289_v36 = vpop.f32.mrb[26].mxu1 }
 0x11b   :  { %v3234_v41 = vpop.f32.mrb[27].mxu0  ;;  %v3344_v42 = vpop.f32.mrb[27].mxu1 }
 0x11d   :  { %3460 = vmatmul.mubr.msk.bf16.gmra.mrb[132].mxu0 %vm226_vm3, %v3711_v30  ;;  %3570 = vmatmul.mubr.msk.bf16.gmra.mrb[132].mxu1 %vm226_vm3, %v3712_v31  ;;  %v3715_v30 = vld [vmem:[%s4974_s0 + $0x1d8] sm:$0xff]  }
 0x11e   :  { %3463 = vmatprep.mubr.msk.bf16.mxu0 %vm3746_vm0, %v4977_v0  ;;  %3573 = vmatprep.mubr.msk.bf16.mxu1 %vm3746_vm0, %v4977_v0  ;;  %v3716_v31 = vld [vmem:[%s4974_s0 + $0x29c] sm:$0xff]  }
 0x120   :  { %v4299_v43 = vpop.f32.mrb[28].mxu0  ;;  %v4301_v47 = vpop.f32.mrb[28].mxu1 }
 0x121   :  { %v3237_v52 = vpop.f32.mrb[29].mxu0  ;;  %v3347_v53 = vpop.f32.mrb[29].mxu1 }
 0x122   :  { %v4311_v59 = vpop.f32.mrb[30].mxu0  ;;  %v4313_v60 = vpop.f32.mrb[30].mxu1 }
 0x123   :  { %v3238_v5 = vpop.f32.mrb[31].mxu0  ;;  %v3348_v6 = vpop.f32.mrb[31].mxu1 }
 0x125   :  { %3464 = vmatmul.mubr.msk.bf16.gmra.mrb[136].mxu0 %vm226_vm3, %v3713_v54  ;;  %3574 = vmatmul.mubr.msk.bf16.gmra.mrb[136].mxu1 %vm226_vm3, %v3714_v55 }
 0x126   :  { %3467 = vmatprep.mubr.msk.bf16.mxu0 %vm3746_vm0, %v4977_v0  ;;  %3577 = vmatprep.mubr.msk.bf16.mxu1 %vm3746_vm0, %v4977_v0 }
 0x128   :  { %v4323_v7 = vpop.f32.mrb[32].mxu0  ;;  %v4325_v17 = vpop.f32.mrb[32].mxu1 }
 0x129   :  { %v3241_v28 = vpop.f32.mrb[33].mxu0  ;;  %v3351_v29 = vpop.f32.mrb[33].mxu1 }
 0x12a   :  { %v4335_v41 = vpop.f32.mrb[34].mxu0  ;;  %v4337_v42 = vpop.f32.mrb[34].mxu1 }
 0x12b   :  { %v3242_v53 = vpop.f32.mrb[35].mxu0  ;;  %v3352_v54 = vpop.f32.mrb[35].mxu1 }
 0x12d   :  { %3468 = vmatmul.mubr.msk.bf16.gmra.mrb[140].mxu0 %vm226_vm3, %v3715_v30  ;;  %3578 = vmatmul.mubr.msk.bf16.gmra.mrb[140].mxu1 %vm226_vm3, %v3716_v31  ;;  %v3717_v30 = vld [vmem:[%s4974_s0 + $0x1e0] sm:$0xff]  }
 0x12e   :  { %3471 = vmatprep.mubr.msk.bf16.mxu0 %vm3746_vm0, %v4977_v0  ;;  %3581 = vmatprep.mubr.msk.bf16.mxu1 %vm3746_vm0, %v4977_v0  ;;  %v3718_v31 = vld [vmem:[%s4974_s0 + $0x2a4] sm:$0xff]  }
 0x130   :  { %v4347_v55 = vpop.f32.mrb[36].mxu0  ;;  %v4349_v5 = vpop.f32.mrb[36].mxu1 }
 0x131   :  { %v3245_v28 = vpop.f32.mrb[37].mxu0  ;;  %v3355_v29 = vpop.f32.mrb[37].mxu1 }
 0x132   :  { %v4359_v53 = vpop.f32.mrb[38].mxu0  ;;  %v4361_v54 = vpop.f32.mrb[38].mxu1 }
 0x133   :  { %v3246_v18 = vpop.f32.mrb[39].mxu0  ;;  %v3356_v4 = vpop.f32.mrb[39].mxu1 }
 0x134   :  { %v3719_v4 = vld [vmem:[%s4974_s0 + $0x1e8] sm:$0xff]  }
 0x135   :  { %3472 = vmatmul.mubr.msk.bf16.gmra.mrb[144].mxu0 %vm226_vm3, %v3717_v30  ;;  %3582 = vmatmul.mubr.msk.bf16.gmra.mrb[144].mxu1 %vm226_vm3, %v3718_v31  ;;  %v3720_v30 = vld [vmem:[%s4974_s0 + $0x2ac] sm:$0xff]  }
 0x136   :  { %3475 = vmatprep.mubr.msk.bf16.mxu0 %vm3746_vm0, %v4977_v0  ;;  %3585 = vmatprep.mubr.msk.bf16.mxu1 %vm3746_vm0, %v4977_v0 }
 0x138   :  { %v4371_v28 = vpop.f32.mrb[40].mxu0  ;;  %v4373_v29 = vpop.f32.mrb[40].mxu1 }
 0x139   :  { %v3249_v52 = vpop.f32.mrb[41].mxu0  ;;  %v3359_v18 = vpop.f32.mrb[41].mxu1 }
 0x13a   :  { %v4383_v31 = vpop.f32.mrb[42].mxu0  ;;  %v4385_v48 = vpop.f32.mrb[42].mxu1 }
 0x13b   :  { %v3250_v24 = vpop.f32.mrb[43].mxu0  ;;  %v3360_v16 = vpop.f32.mrb[43].mxu1 }
 0x13c   :  { %v3721_v16 = vld [vmem:[%s4974_s0 + $0x1f0] sm:$0xff]  }
 0x13d   :  { %3476 = vmatmul.mubr.msk.bf16.gmra.mrb[148].mxu0 %vm226_vm3, %v3719_v4  ;;  %3586 = vmatmul.mubr.msk.bf16.gmra.mrb[148].mxu1 %vm226_vm3, %v3720_v30  ;;  %v3722_v4 = vld [vmem:[%s4974_s0 + $0x2b4] sm:$0xff]  }
 0x13e   :  { %3479 = vmatprep.mubr.msk.bf16.mxu0 %vm3746_vm0, %v4977_v0  ;;  %3589 = vmatprep.mubr.msk.bf16.mxu1 %vm3746_vm0, %v4977_v0 }
 0x140   :  { %v4395_v52 = vpop.f32.mrb[44].mxu0  ;;  %v4397_v18 = vpop.f32.mrb[44].mxu1 }
 0x141   :  { %v3253_v40 = vpop.f32.mrb[45].mxu0  ;;  %v3363_v24 = vpop.f32.mrb[45].mxu1 }
 0x142   :  { %v4407_v30 = vpop.f32.mrb[46].mxu0  ;;  %v4409_v63 = vpop.f32.mrb[46].mxu1 }
 0x143   :  { %5031 = vst [vmem:[#allocation2_spill] sm:$0xff] %v4407_v30  ;;  %5032 = vst [vmem:[#allocation3_spill] sm:$0xff] %v4409_v63  ;;  %v3254_v51 = vpop.f32.mrb[47].mxu0  ;;  %v3364_v46 = vpop.f32.mrb[47].mxu1 }
 0x144   :  { %v3723_v46 = vld [vmem:[%s4974_s0 + $0x1f8] sm:$0xff]  }
 0x145   :  { %3480 = vmatmul.mubr.msk.bf16.gmra.mrb[152].mxu0 %vm226_vm3, %v3721_v16  ;;  %3590 = vmatmul.mubr.msk.bf16.gmra.mrb[152].mxu1 %vm226_vm3, %v3722_v4  ;;  %v3724_v16 = vld [vmem:[%s4974_s0 + $0x2bc] sm:$0xff]  }
 0x146   :  { %3483 = vmatprep.mubr.msk.bf16.mxu0 %vm3746_vm0, %v4977_v0  ;;  %3593 = vmatprep.mubr.msk.bf16.mxu1 %vm3746_vm0, %v4977_v0 }
 0x148   :  { %v4419_v40 = vpop.f32.mrb[48].mxu0  ;;  %v4421_v24 = vpop.f32.mrb[48].mxu1 }
 0x149   :  { %5033 = vst [vmem:[#allocation4_spill] sm:$0xff] %v4419_v40  ;;  %5034 = vst [vmem:[#allocation5_spill] sm:$0xff] %v4421_v24  ;;  %v3257_v58 = vpop.f32.mrb[49].mxu0  ;;  %v3367_v51 = vpop.f32.mrb[49].mxu1 }
 0x14a   :  { %v4431_v4 = vpop.f32.mrb[50].mxu0  ;;  %v4433_v39 = vpop.f32.mrb[50].mxu1 }
 0x14b   :  { %5035 = vst [vmem:[#allocation6_spill] sm:$0xff] %v4431_v4  ;;  %5036 = vst [vmem:[#allocation7_spill] sm:$0xff] %v4433_v39  ;;  %v3258_v27 = vpop.f32.mrb[51].mxu0  ;;  %v3368_v22 = vpop.f32.mrb[51].mxu1 }
 0x14c   :  { %v3725_v22 = vld [vmem:[%s4974_s0 + $0x200] sm:$0xff]  }
 0x14d   :  { %3484 = vmatmul.mubr.msk.bf16.gmra.mrb[156].mxu0 %vm226_vm3, %v3723_v46  ;;  %3594 = vmatmul.mubr.msk.bf16.gmra.mrb[156].mxu1 %vm226_vm3, %v3724_v16  ;;  %v3726_v46 = vld [vmem:[%s4974_s0 + $0x2c4] sm:$0xff]  }
 0x14e   :  { %3487 = vmatprep.mubr.msk.bf16.mxu0 %vm3746_vm0, %v4977_v0  ;;  %3597 = vmatprep.mubr.msk.bf16.mxu1 %vm3746_vm0, %v4977_v0 }
 0x150   :  { %v4443_v58 = vpop.f32.mrb[52].mxu0  ;;  %v4445_v51 = vpop.f32.mrb[52].mxu1 }
 0x151   :  { %5037 = vst [vmem:[#allocation8_spill] sm:$0xff] %v4443_v58  ;;  %5038 = vst [vmem:[#allocation9_spill] sm:$0xff] %v4445_v51  ;;  %v3261_v34 = vpop.f32.mrb[53].mxu0  ;;  %v3371_v27 = vpop.f32.mrb[53].mxu1 }
 0x152   :  { %v4455_v16 = vpop.f32.mrb[54].mxu0  ;;  %v4457_v15 = vpop.f32.mrb[54].mxu1  ;;  %v5041_v34 = vmov 0.0  }
 0x153   :  { %5039 = vst [vmem:[#allocation10_spill] sm:$0xff] %v4455_v16  ;;  %5040 = vst [vmem:[#allocation11_spill] sm:$0xff] %v4457_v15  ;;  %v3262_v3 = vpop.f32.mrb[55].mxu0  ;;  %v3372_v0 = vpop.f32.mrb[55].mxu1 }
 0x154   :  { %v3727_v0 = vld [vmem:[%s4974_s0 + $0x208] sm:$0xff]  }
 0x155   :  { %3488 = vmatmul.mubr.msk.bf16.gmra.mrb[160].mxu0 %vm226_vm3, %v3725_v22  ;;  %3598 = vmatmul.mubr.msk.bf16.gmra.mrb[160].mxu1 %vm226_vm3, %v3726_v46  ;;  %v3728_v22 = vld [vmem:[%s4974_s0 + $0x2cc] sm:$0xff]  }
 0x156   :  { %3491 = vmatprep.mubr.msk.bf16.mxu0 %vm3746_vm0, %v5041_v34  ;;  %3601 = vmatprep.mubr.msk.bf16.mxu1 %vm3746_vm0, %v5041_v34 }
 0x158   :  { %v4467_v27 = vpop.f32.mrb[56].mxu0  ;;  %v4469_v6 = vpop.f32.mrb[56].mxu1 }
 0x159   :  { %5042 = vst [vmem:[#allocation12_spill] sm:$0xff] %v4467_v27  ;;  %5043 = vst [vmem:[#allocation13_spill] sm:$0xff] %v4469_v6  ;;  %v3265_v10 = vpop.f32.mrb[57].mxu0  ;;  %v3375_v3 = vpop.f32.mrb[57].mxu1 }
 0x15a   :  { %v4479_v46 = vpop.f32.mrb[58].mxu0  ;;  %v4481_v15 = vpop.f32.mrb[58].mxu1 }
 0x15b   :  { %5044 = vst [vmem:[#allocation14_spill] sm:$0xff] %v4479_v46  ;;  %5045 = vst [vmem:[#allocation15_spill] sm:$0xff] %v4481_v15  ;;  %v3266_v58 = vpop.f32.mrb[59].mxu0  ;;  %v3376_v39 = vpop.f32.mrb[59].mxu1 }
 0x15c   :  { %v3729_v39 = vld [vmem:[%s4974_s0 + $0x210] sm:$0xff]  }
 0x15d   :  { %3492 = vmatmul.mubr.msk.bf16.gmra.mrb[164].mxu0 %vm226_vm3, %v3727_v0  ;;  %3602 = vmatmul.mubr.msk.bf16.gmra.mrb[164].mxu1 %vm226_vm3, %v3728_v22  ;;  %v3730_v0 = vld [vmem:[%s4974_s0 + $0x2d4] sm:$0xff]  }
 0x15e   :  { %3495 = vmatprep.mubr.msk.bf16.mxu0 %vm3746_vm0, %v5041_v34  ;;  %3605 = vmatprep.mubr.msk.bf16.mxu1 %vm3746_vm0, %v5041_v34 }
 0x160   :  { %v4491_v10 = vpop.f32.mrb[60].mxu0  ;;  %v4493_v3 = vpop.f32.mrb[60].mxu1 }
 0x161   :  { %5046 = vst [vmem:[#allocation16_spill] sm:$0xff] %v4491_v10  ;;  %5047 = vst [vmem:[#allocation17_spill] sm:$0xff] %v4493_v3  ;;  %v3269_v16 = vpop.f32.mrb[61].mxu0  ;;  %v3379_v58 = vpop.f32.mrb[61].mxu1 }
 0x162   :  { %v4503_v22 = vpop.f32.mrb[62].mxu0  ;;  %v4505_v15 = vpop.f32.mrb[62].mxu1 }
 0x163   :  { %5048 = vst [vmem:[#allocation18_spill] sm:$0xff] %v4503_v22  ;;  %5049 = vst [vmem:[#allocation19_spill] sm:$0xff] %v4505_v15  ;;  %v3270_v6 = vpop.f32.mrb[63].mxu0  ;;  %v3380_v27 = vpop.f32.mrb[63].mxu1 }
 0x164   :  { %v3731_v27 = vld [vmem:[%s4974_s0 + $0x218] sm:$0xff]  }
 0x165   :  { %3496 = vmatmul.mubr.msk.bf16.gmra.mrb[168].mxu0 %vm226_vm3, %v3729_v39  ;;  %3606 = vmatmul.mubr.msk.bf16.gmra.mrb[168].mxu1 %vm226_vm3, %v3730_v0  ;;  %v3732_v39 = vld [vmem:[%s4974_s0 + $0x2dc] sm:$0xff]  }
 0x166   :  { %3499 = vmatprep.mubr.msk.bf16.mxu0 %vm3746_vm0, %v5041_v34  ;;  %3609 = vmatprep.mubr.msk.bf16.mxu1 %vm3746_vm0, %v5041_v34 }
 0x168   :  { %v4515_v16 = vpop.f32.mrb[64].mxu0  ;;  %v4517_v58 = vpop.f32.mrb[64].mxu1 }
 0x169   :  { %5050 = vst [vmem:[#allocation20_spill] sm:$0xff] %v4515_v16  ;;  %5051 = vst [vmem:[#allocation21_spill] sm:$0xff] %v4517_v58  ;;  %v3273_v46 = vpop.f32.mrb[65].mxu0  ;;  %v3383_v6 = vpop.f32.mrb[65].mxu1 }
 0x16a   :  { %v4527_v0 = vpop.f32.mrb[66].mxu0  ;;  %v4529_v15 = vpop.f32.mrb[66].mxu1 }
 0x16b   :  { %5052 = vst [vmem:[#allocation22_spill] sm:$0xff] %v4527_v0  ;;  %5053 = vst [vmem:[#allocation23_spill] sm:$0xff] %v4529_v15  ;;  %v3274_v3 = vpop.f32.mrb[67].mxu0  ;;  %v3384_v10 = vpop.f32.mrb[67].mxu1 }
 0x16c   :  { %v3733_v10 = vld [vmem:[%s4974_s0 + $0x220] sm:$0xff]  }
 0x16d   :  { %3500 = vmatmul.mubr.msk.bf16.gmra.mrb[172].mxu0 %vm226_vm3, %v3731_v27  ;;  %3610 = vmatmul.mubr.msk.bf16.gmra.mrb[172].mxu1 %vm226_vm3, %v3732_v39  ;;  %v3734_v27 = vld [vmem:[%s4974_s0 + $0x2e4] sm:$0xff]  }
 0x16e   :  { %3503 = vmatprep.mubr.msk.bf16.mxu0 %vm3746_vm0, %v5041_v34  ;;  %3613 = vmatprep.mubr.msk.bf16.mxu1 %vm3746_vm0, %v5041_v34 }
 0x170   :  { %v4539_v46 = vpop.f32.mrb[68].mxu0  ;;  %v4541_v6 = vpop.f32.mrb[68].mxu1 }
 0x171   :  { %5054 = vst [vmem:[#allocation24_spill] sm:$0xff] %v4539_v46  ;;  %5055 = vst [vmem:[#allocation25_spill] sm:$0xff] %v4541_v6  ;;  %v3277_v22 = vpop.f32.mrb[69].mxu0  ;;  %v3387_v3 = vpop.f32.mrb[69].mxu1 }
 0x172   :  { %v4551_v39 = vpop.f32.mrb[70].mxu0  ;;  %v4553_v15 = vpop.f32.mrb[70].mxu1 }
 0x173   :  { %5056 = vst [vmem:[#allocation26_spill] sm:$0xff] %v4551_v39  ;;  %5057 = vst [vmem:[#allocation27_spill] sm:$0xff] %v4553_v15  ;;  %v3278_v58 = vpop.f32.mrb[71].mxu0  ;;  %v3388_v16 = vpop.f32.mrb[71].mxu1 }
 0x174   :  { %v3735_v16 = vld [vmem:[%s4974_s0 + $0x228] sm:$0xff]  }
 0x175   :  { %3504 = vmatmul.mubr.msk.bf16.gmra.mrb[176].mxu0 %vm226_vm3, %v3733_v10  ;;  %3614 = vmatmul.mubr.msk.bf16.gmra.mrb[176].mxu1 %vm226_vm3, %v3734_v27  ;;  %v3736_v10 = vld [vmem:[%s4974_s0 + $0x2ec] sm:$0xff]  }
 0x176   :  { %3507 = vmatprep.mubr.msk.bf16.mxu0 %vm3746_vm0, %v5041_v34  ;;  %3617 = vmatprep.mubr.msk.bf16.mxu1 %vm3746_vm0, %v5041_v34 }
 0x178   :  { %v4563_v22 = vpop.f32.mrb[72].mxu0  ;;  %v4565_v3 = vpop.f32.mrb[72].mxu1 }
 0x179   :  { %5058 = vst [vmem:[#allocation28_spill] sm:$0xff] %v4563_v22  ;;  %5059 = vst [vmem:[#allocation29_spill] sm:$0xff] %v4565_v3  ;;  %v3281_v0 = vpop.f32.mrb[73].mxu0  ;;  %v3391_v58 = vpop.f32.mrb[73].mxu1 }
 0x17a   :  { %v4575_v27 = vpop.f32.mrb[74].mxu0  ;;  %v4577_v15 = vpop.f32.mrb[74].mxu1 }
 0x17b   :  { %5060 = vst [vmem:[#allocation30_spill] sm:$0xff] %v4575_v27  ;;  %5061 = vst [vmem:[#allocation31_spill] sm:$0xff] %v4577_v15  ;;  %v3282_v6 = vpop.f32.mrb[75].mxu0  ;;  %v3392_v46 = vpop.f32.mrb[75].mxu1 }
 0x17c   :  { %v3737_v46 = vld [vmem:[%s4974_s0 + $0x230] sm:$0xff]  }
 0x17d   :  { %3508 = vmatmul.mubr.msk.bf16.gmra.mrb[180].mxu0 %vm226_vm3, %v3735_v16  ;;  %3618 = vmatmul.mubr.msk.bf16.gmra.mrb[180].mxu1 %vm226_vm3, %v3736_v10  ;;  %v3738_v16 = vld [vmem:[%s4974_s0 + $0x2f4] sm:$0xff]  }
 0x17e   :  { %3511 = vmatprep.mubr.msk.bf16.mxu0 %vm3746_vm0, %v5041_v34  ;;  %3621 = vmatprep.mubr.msk.bf16.mxu1 %vm3746_vm0, %v5041_v34 }
 0x180   :  { %v4587_v0 = vpop.f32.mrb[76].mxu0  ;;  %v4589_v58 = vpop.f32.mrb[76].mxu1 }
 0x181   :  { %5062 = vst [vmem:[#allocation32_spill] sm:$0xff] %v4587_v0  ;;  %5063 = vst [vmem:[#allocation33_spill] sm:$0xff] %v4589_v58  ;;  %v3285_v39 = vpop.f32.mrb[77].mxu0  ;;  %v3395_v6 = vpop.f32.mrb[77].mxu1 }
 0x182   :  { %v4599_v10 = vpop.f32.mrb[78].mxu0  ;;  %v4601_v15 = vpop.f32.mrb[78].mxu1 }
 0x183   :  { %5064 = vst [vmem:[#allocation34_spill] sm:$0xff] %v4599_v10  ;;  %5065 = vst [vmem:[#allocation35_spill] sm:$0xff] %v4601_v15  ;;  %v3286_v3 = vpop.f32.mrb[79].mxu0  ;;  %v3396_v22 = vpop.f32.mrb[79].mxu1 }
 0x184   :  { %v3739_v22 = vld [vmem:[%s4974_s0 + $0x238] sm:$0xff]  }
 0x185   :  { %3512 = vmatmul.mubr.msk.bf16.gmra.mrb[184].mxu0 %vm226_vm3, %v3737_v46  ;;  %3622 = vmatmul.mubr.msk.bf16.gmra.mrb[184].mxu1 %vm226_vm3, %v3738_v16  ;;  %v3740_v46 = vld [vmem:[%s4974_s0 + $0x2fc] sm:$0xff]  }
 0x186   :  { %3515 = vmatprep.mubr.msk.bf16.mxu0 %vm3746_vm0, %v5041_v34  ;;  %3625 = vmatprep.mubr.msk.bf16.mxu1 %vm3746_vm0, %v5041_v34 }
 0x188   :  { %v4611_v39 = vpop.f32.mrb[80].mxu0  ;;  %v4613_v6 = vpop.f32.mrb[80].mxu1 }
 0x189   :  { %5066 = vst [vmem:[#allocation36_spill] sm:$0xff] %v4611_v39  ;;  %5067 = vst [vmem:[#allocation37_spill] sm:$0xff] %v4613_v6  ;;  %v3289_v27 = vpop.f32.mrb[81].mxu0  ;;  %v3399_v3 = vpop.f32.mrb[81].mxu1 }
 0x18a   :  { %v4623_v16 = vpop.f32.mrb[82].mxu0  ;;  %v4625_v15 = vpop.f32.mrb[82].mxu1 }
 0x18b   :  { %5068 = vst [vmem:[#allocation38_spill] sm:$0xff] %v4623_v16  ;;  %5069 = vst [vmem:[#allocation39_spill] sm:$0xff] %v4625_v15  ;;  %v3290_v58 = vpop.f32.mrb[83].mxu0  ;;  %v3400_v0 = vpop.f32.mrb[83].mxu1 }
 0x18c   :  { %v3741_v0 = vld [vmem:[%s4974_s0 + $0x240] sm:$0xff]  }
 0x18d   :  { %3516 = vmatmul.mubr.msk.bf16.gmra.mrb[188].mxu0 %vm226_vm3, %v3739_v22  ;;  %3626 = vmatmul.mubr.msk.bf16.gmra.mrb[188].mxu1 %vm226_vm3, %v3740_v46  ;;  %v3742_v22 = vld [vmem:[%s4974_s0 + $0x304] sm:$0xff]  }
 0x18e   :  { %3519 = vmatprep.mubr.msk.bf16.mxu0 %vm3746_vm0, %v5041_v34  ;;  %3629 = vmatprep.mubr.msk.bf16.mxu1 %vm3746_vm0, %v5041_v34 }
 0x190   :  { %v4635_v27 = vpop.f32.mrb[84].mxu0  ;;  %v4637_v3 = vpop.f32.mrb[84].mxu1 }
 0x191   :  { %5070 = vst [vmem:[#allocation40_spill] sm:$0xff] %v4635_v27  ;;  %5071 = vst [vmem:[#allocation41_spill] sm:$0xff] %v4637_v3  ;;  %v3293_v10 = vpop.f32.mrb[85].mxu0  ;;  %v3403_v58 = vpop.f32.mrb[85].mxu1 }
 0x192   :  { %v4647_v46 = vpop.f32.mrb[86].mxu0  ;;  %v4649_v15 = vpop.f32.mrb[86].mxu1 }
 0x193   :  { %5072 = vst [vmem:[#allocation42_spill] sm:$0xff] %v4647_v46  ;;  %5073 = vst [vmem:[#allocation43_spill] sm:$0xff] %v4649_v15  ;;  %v3294_v6 = vpop.f32.mrb[87].mxu0  ;;  %v3404_v39 = vpop.f32.mrb[87].mxu1 }
 0x194   :  { %v3743_v39 = vld [vmem:[%s4974_s0 + $0x248] ss:$0 sps:$4 sm:$0xff]  }
 0x195   :  { %3520 = vmatmul.mubr.msk.bf16.gmra.mrb[192].mxu0 %vm226_vm3, %v3741_v0  ;;  %3630 = vmatmul.mubr.msk.bf16.gmra.mrb[192].mxu1 %vm226_vm3, %v3742_v22  ;;  %v3744_v0 = vld [vmem:[%s4974_s0 + $0x30c] ss:$0 sps:$4 sm:$0xff]  }
 0x196   :  { %3523 = vmatprep.mubr.msk.bf16.mxu0 %vm3746_vm0, %v5041_v34  ;;  %3633 = vmatprep.mubr.msk.bf16.mxu1 %vm3746_vm0, %v5041_v34 }
 0x198   :  { %v4659_v10 = vpop.f32.mrb[88].mxu0  ;;  %v4661_v58 = vpop.f32.mrb[88].mxu1 }
 0x199   :  { %5074 = vst [vmem:[#allocation44_spill] sm:$0xff] %v4659_v10  ;;  %5075 = vst [vmem:[#allocation45_spill] sm:$0xff] %v4661_v58  ;;  %v3297_v16 = vpop.f32.mrb[89].mxu0  ;;  %v3407_v6 = vpop.f32.mrb[89].mxu1 }
 0x19a   :  { %v4671_v22 = vpop.f32.mrb[90].mxu0  ;;  %v4673_v34 = vpop.f32.mrb[90].mxu1 }
 0x19b   :  { %5076 = vst [vmem:[#allocation46_spill] sm:$0xff] %v4671_v22  ;;  %5077 = vst [vmem:[#allocation47_spill] sm:$0xff] %v4673_v34  ;;  %v3298_v46 = vpop.f32.mrb[91].mxu0  ;;  %v3408_v3 = vpop.f32.mrb[91].mxu1 }
 0x19c   :  { %v5084_v3 = vmax.f32 %v4131_v1, %v4133_v2 }
 0x19d   :  { %3524 = vmatmul.mubr.msk.bf16.gmra.mrb[196].mxu0 %vm226_vm3, %v3743_v39  ;;  %3634 = vmatmul.mubr.msk.bf16.gmra.mrb[196].mxu1 %vm226_vm3, %v3744_v0 }
 0x1a0   :  { %v4679_v16 = vpop.f32.mrb[92].mxu0  ;;  %v4681_v6 = vpop.f32.mrb[92].mxu1 }
 0x1a1   :  { %5078 = vst [vmem:[#allocation48_spill] sm:$0xff] %v4679_v16  ;;  %5079 = vst [vmem:[#allocation49_spill] sm:$0xff] %v4681_v6  ;;  %v3301_v58 = vpop.f32.mrb[93].mxu0  ;;  %v3411_v10 = vpop.f32.mrb[93].mxu1 }
 0x1a2   :  { %v4685_v27 = vpop.f32.mrb[94].mxu0  ;;  %v4687_v4 = vpop.f32.mrb[94].mxu1 }
 0x1a3   :  { %5080 = vst [vmem:[#allocation50_spill] sm:$0xff] %v4685_v27  ;;  %5081 = vst [vmem:[#allocation51_spill] sm:$0xff] %v4687_v4  ;;  %v3302_v46 = vpop.f32.mrb[95].mxu0  ;;  %v3412_v39 = vpop.f32.mrb[95].mxu1  ;;  %v4703_v27 = vld [vmem:[%s4975_s2] ss:$0 sm:$0xff] }
 0x1a8   :  { %v4691_v15 = vpop.f32.mrb[96].mxu0  ;;  %v4693_v0 = vpop.f32.mrb[96].mxu1 }
 0x1a9   :  { %5082 = vst [vmem:[#allocation52_spill] sm:$0xff] %v4691_v15  ;;  %5083 = vst [vmem:[#allocation53_spill] sm:$0xff] %v4693_v0  ;;  %v3305_v22 = vpop.f32.mrb[97].mxu0  ;;  %v3415_v51 = vpop.f32.mrb[97].mxu1  ;;  %v5086_v15 = vmax.f32 %v4155_v13, %v4157_v14 }
 0x1aa   :  { %v538_v58 = vpop.f32.mrb[98].mxu0  ;;  %v1018_v10 = vpop.f32.mrb[98].mxu1 }
 0x1ab   :  { %v3306_v6 = vpop.f32.mrb[99].mxu0  ;;  %v3416_v16 = vpop.f32.mrb[99].mxu1 }
 0x1ac   :  { %v5085_v6 = vmax.f32 %v4143_v8, %v4145_v9 }
 0x1b0   :  { %v1352_v24 = vpop.f32.mrb[100].mxu0  ;;  %v1881_v40 = vpop.f32.mrb[100].mxu1 }
 0x1b1   :  { %v1550_v46 = vmax.f32 %v5084_v3, %v1352_v24  ;;  %v3429_v39 = vpop.f32.mrb[101].mxu0  ;;  %v3539_v4 = vpop.f32.mrb[101].mxu1 }
 0x1b2   :  { %v1355_v34 = vpop.f32.mrb[102].mxu0  ;;  %v1884_v22 = vpop.f32.mrb[102].mxu1 }
 0x1b3   :  { %v2079_v51 = vmax.f32 %v1550_v46, %v1881_v40  ;;  %v1551_v16 = vmax.f32 %v5085_v6, %v1355_v34  ;;  %v3430_v58 = vpop.f32.mrb[103].mxu0  ;;  %v3540_v10 = vpop.f32.mrb[103].mxu1 }
 0x1b5   :  { %v2135_v0 = vadd.f32 %v4703_v27, %v2079_v51  ;;  %v2080_v1 = vmax.f32 %v1551_v16, %v1884_v22  ;;  %v5087_v51 = vmax.f32 %v4167_v20, %v4169_v21 }
 0x1b7   :  { %v2136_v2 = vadd.f32 %v4703_v27, %v2080_v1  ;;  %v2184_v3 = vmax.f32 %v2135_v0, 0.0 }
 0x1b8   :  { %v1360_v24 = vpop.f32.mrb[104].mxu0  ;;  %v1889_v4 = vpop.f32.mrb[104].mxu1 }
 0x1b9   :  { %v2185_v39 = vmax.f32 %v2136_v2, 0.0  ;;  %v1552_v63 = vmax.f32 %v5086_v15, %v1360_v24  ;;  %v3433_v40 = vpop.f32.mrb[105].mxu0  ;;  %v3543_v46 = vpop.f32.mrb[105].mxu1 }
 0x1ba   :  { %v1363_v30 = vpop.f32.mrb[106].mxu0  ;;  %v1892_v8 = vpop.f32.mrb[106].mxu1 }
 0x1bb   :  { %v2937_v9 = vpack.c.bf16 %v2185_v39, %v2184_v3  ;;  %v2081_v34 = vmax.f32 %v1552_v63, %v1889_v4  ;;  %v1553_v22 = vmax.f32 %v5087_v51, %v1363_v30  ;;  %v3434_v6 = vpop.f32.mrb[107].mxu0  ;;  %v3544_v16 = vpop.f32.mrb[107].mxu1  ;;  %v5088_v63 = vmax.f32 %v4179_v25, %v4181_v26 }
 0x1bc   :  { %v5089_v39 = vmax.f32 %v4191_v32, %v4193_v33  ;;  %v5090_v16 = vmax.f32 %v4203_v37, %v4205_v38 }
 0x1bd   :  { %2938 = vst [vmem:[%s4976_s3] sm:$0xff] %v2937_v9   ;;  %v2137_v0 = vadd.f32 %v4703_v27, %v2081_v34  ;;  %v2082_v13 = vmax.f32 %v1553_v22, %v1892_v8 }
 0x1bf   :  { %v2138_v14 = vadd.f32 %v4703_v27, %v2082_v13  ;;  %v2186_v10 = vmax.f32 %v2137_v0, 0.0 }
 0x1c0   :  { %v1368_v15 = vpop.f32.mrb[108].mxu0  ;;  %v1897_v58 = vpop.f32.mrb[108].mxu1 }
 0x1c1   :  { %v2187_v1 = vmax.f32 %v2138_v14, 0.0  ;;  %v1554_v20 = vmax.f32 %v5088_v63, %v1368_v15  ;;  %v3437_v21 = vpop.f32.mrb[109].mxu0  ;;  %v3547_v30 = vpop.f32.mrb[109].mxu1 }
 0x1c2   :  { %v1371_v2 = vpop.f32.mrb[110].mxu0  ;;  %v1900_v24 = vpop.f32.mrb[110].mxu1 }
 0x1c3   :  { %v2942_v4 = vpack.c.bf16 %v2187_v1, %v2186_v10  ;;  %v2083_v3 = vmax.f32 %v1554_v20, %v1897_v58  ;;  %v1555_v40 = vmax.f32 %v5089_v39, %v1371_v2  ;;  %v3438_v46 = vpop.f32.mrb[111].mxu0  ;;  %v3548_v8 = vpop.f32.mrb[111].mxu1  ;;  %v5091_v10 = vmax.f32 %v4215_v44, %v4217_v45 }
 0x1c5   :  { %3054 = vst [vmem:[%s4976_s3 + $0x8] sm:$0xff] %v2942_v4   ;;  %v2139_v9 = vadd.f32 %v4703_v27, %v2083_v3  ;;  %v2084_v25 = vmax.f32 %v1555_v40, %v1900_v24  ;;  %v5092_v3 = vmax.f32 %v4227_v49, %v4229_v50 }
 0x1c7   :  { %v2140_v26 = vadd.f32 %v4703_v27, %v2084_v25  ;;  %v2188_v22 = vmax.f32 %v2139_v9, 0.0  ;;  %v5093_v25 = vmax.f32 %v4239_v56, %v4241_v57 }
 0x1c8   :  { %v1376_v34 = vpop.f32.mrb[112].mxu0  ;;  %v1905_v51 = vpop.f32.mrb[112].mxu1 }
 0x1c9   :  { %v2189_v6 = vmax.f32 %v2140_v26, 0.0  ;;  %v1556_v32 = vmax.f32 %v5090_v16, %v1376_v34  ;;  %v3441_v33 = vpop.f32.mrb[113].mxu0  ;;  %v3551_v0 = vpop.f32.mrb[113].mxu1 }
 0x1ca   :  { %v1379_v13 = vpop.f32.mrb[114].mxu0  ;;  %v1908_v14 = vpop.f32.mrb[114].mxu1  ;;  %v5094_v0 = vmax.f32 %v4251_v61, %v4253_v62 }
 0x1cb   :  { %v2947_v15 = vpack.c.bf16 %v2189_v6, %v2188_v22  ;;  %v2085_v58 = vmax.f32 %v1556_v32, %v1905_v51  ;;  %v1557_v1 = vmax.f32 %v5091_v10, %v1379_v13  ;;  %v3442_v63 = vpop.f32.mrb[115].mxu0  ;;  %v3552_v20 = vpop.f32.mrb[115].mxu1 }
 0x1cd   :  { %3055 = vst [vmem:[%s4976_s3 + $0x10] sm:$0xff] %v2947_v15   ;;  %v2141_v21 = vadd.f32 %v4703_v27, %v2085_v58  ;;  %v2086_v37 = vmax.f32 %v1557_v1, %v1908_v14  ;;  %v5095_v1 = vmax.f32 %v4263_v11, %v4265_v12 }
 0x1cf   :  { %v2142_v38 = vadd.f32 %v4703_v27, %v2086_v37  ;;  %v2190_v24 = vmax.f32 %v2141_v21, 0.0 }
 0x1d0   :  { %v1384_v30 = vpop.f32.mrb[116].mxu0  ;;  %v1913_v2 = vpop.f32.mrb[116].mxu1 }
 0x1d1   :  { %v2191_v4 = vmax.f32 %v2142_v38, 0.0  ;;  %v1558_v44 = vmax.f32 %v5092_v3, %v1384_v30  ;;  %v3445_v45 = vpop.f32.mrb[117].mxu0  ;;  %v3555_v39 = vpop.f32.mrb[117].mxu1 }
 0x1d2   :  { %v1387_v40 = vpop.f32.mrb[118].mxu0  ;;  %v1916_v46 = vpop.f32.mrb[118].mxu1 }
 0x1d3   :  { %v2952_v8 = vpack.c.bf16 %v2191_v4, %v2190_v24  ;;  %v2087_v9 = vmax.f32 %v1558_v44, %v1913_v2  ;;  %v1559_v26 = vmax.f32 %v5093_v25, %v1387_v40  ;;  %v3446_v34 = vpop.f32.mrb[119].mxu0  ;;  %v3556_v51 = vpop.f32.mrb[119].mxu1  ;;  %v5096_v4 = vmax.f32 %v4275_v19, %v4277_v23 }
 0x1d5   :  { %3056 = vst [vmem:[%s4976_s3 + $0x18] sm:$0xff] %v2952_v8   ;;  %v2143_v22 = vadd.f32 %v4703_v27, %v2087_v9  ;;  %v2088_v49 = vmax.f32 %v1559_v26, %v1916_v46  ;;  %v5097_v46 = vmax.f32 %v4287_v35, %v4289_v36 }
 0x1d7   :  { %v2144_v50 = vadd.f32 %v4703_v27, %v2088_v49  ;;  %v2192_v32 = vmax.f32 %v2143_v22, 0.0 }
 0x1d8   :  { %v1392_v6 = vpop.f32.mrb[120].mxu0  ;;  %v1921_v16 = vpop.f32.mrb[120].mxu1 }
 0x1d9   :  { %v2193_v33 = vmax.f32 %v2144_v50, 0.0  ;;  %v1560_v56 = vmax.f32 %v5094_v0, %v1392_v6  ;;  %v3449_v57 = vpop.f32.mrb[121].mxu0  ;;  %v3559_v13 = vpop.f32.mrb[121].mxu1  ;;  %v5098_v50 = vmax.f32 %v4299_v43, %v4301_v47 }
 0x1da   :  { %v1395_v14 = vpop.f32.mrb[122].mxu0  ;;  %v1924_v15 = vpop.f32.mrb[122].mxu1 }
 0x1db   :  { %v2957_v58 = vpack.c.bf16 %v2193_v33, %v2192_v32  ;;  %v2089_v10 = vmax.f32 %v1560_v56, %v1921_v16  ;;  %v1561_v63 = vmax.f32 %v5095_v1, %v1395_v14  ;;  %v3450_v20 = vpop.f32.mrb[123].mxu0  ;;  %v3560_v21 = vpop.f32.mrb[123].mxu1  ;;  %v5099_v56 = vmax.f32 %v4311_v59, %v4313_v60 }
 0x1dc   :  { %v5100_v20 = vmax.f32 %v4323_v7, %v4325_v17 }
 0x1dd   :  { %3057 = vst [vmem:[%s4976_s3 + $0x20] sm:$0xff] %v2957_v58   ;;  %v2145_v37 = vadd.f32 %v4703_v27, %v2089_v10  ;;  %v2090_v61 = vmax.f32 %v1561_v63, %v1924_v15 }
 0x1df   :  { %v2146_v62 = vadd.f32 %v4703_v27, %v2090_v61  ;;  %v2194_v2 = vmax.f32 %v2145_v37, 0.0 }
 0x1e0   :  { %v1400_v38 = vpop.f32.mrb[124].mxu0  ;;  %v1929_v30 = vpop.f32.mrb[124].mxu1 }
 0x1e1   :  { %v2195_v24 = vmax.f32 %v2146_v62, 0.0  ;;  %v1562_v11 = vmax.f32 %v5096_v4, %v1400_v38  ;;  %v3453_v12 = vpop.f32.mrb[125].mxu0  ;;  %v3563_v3 = vpop.f32.mrb[125].mxu1 }
 0x1e2   :  { %v1403_v44 = vpop.f32.mrb[126].mxu0  ;;  %v1932_v45 = vpop.f32.mrb[126].mxu1 }
 0x1e3   :  { %v2962_v39 = vpack.c.bf16 %v2195_v24, %v2194_v2  ;;  %v2091_v40 = vmax.f32 %v1562_v11, %v1929_v30  ;;  %v1563_v8 = vmax.f32 %v5097_v46, %v1403_v44  ;;  %v3454_v9 = vpop.f32.mrb[127].mxu0  ;;  %v3564_v25 = vpop.f32.mrb[127].mxu1  ;;  %v5101_v30 = vmax.f32 %v4335_v41, %v4337_v42 }
 0x1e5   :  { %3058 = vst [vmem:[%s4976_s3 + $0x28] sm:$0xff] %v2962_v39   ;;  %v2147_v26 = vadd.f32 %v4703_v27, %v2091_v40  ;;  %v2092_v19 = vmax.f32 %v1563_v8, %v1932_v45  ;;  %v5102_v39 = vmax.f32 %v4347_v55, %v4349_v5 }
 0x1e7   :  { %v2148_v23 = vadd.f32 %v4703_v27, %v2092_v19  ;;  %v2196_v22 = vmax.f32 %v2147_v26, 0.0  ;;  %v5103_v26 = vmax.f32 %v4359_v53, %v4361_v54 }
 0x1e8   :  { %v1408_v34 = vpop.f32.mrb[128].mxu0  ;;  %v1937_v51 = vpop.f32.mrb[128].mxu1 }
 0x1e9   :  { %v2197_v49 = vmax.f32 %v2148_v23, 0.0  ;;  %v1564_v35 = vmax.f32 %v5098_v50, %v1408_v34  ;;  %v3457_v36 = vpop.f32.mrb[129].mxu0  ;;  %v3567_v6 = vpop.f32.mrb[129].mxu1 }
 0x1ea   :  { %v1411_v16 = vpop.f32.mrb[130].mxu0  ;;  %v1940_v32 = vpop.f32.mrb[130].mxu1  ;;  %v5104_v36 = vmax.f32 %v4371_v28, %v4373_v29 }
 0x1eb   :  { %v2967_v33 = vpack.c.bf16 %v2197_v49, %v2196_v22  ;;  %v2093_v0 = vmax.f32 %v1564_v35, %v1937_v51  ;;  %v1565_v57 = vmax.f32 %v5099_v56, %v1411_v16  ;;  %v3458_v13 = vpop.f32.mrb[131].mxu0  ;;  %v3568_v14 = vpop.f32.mrb[131].mxu1  ;;  %v5105_v56 = vmax.f32 %v4383_v31, %v4385_v48 }
 0x1ed   :  { %3059 = vst [vmem:[%s4976_s3 + $0x30] sm:$0xff] %v2967_v33   ;;  %v2149_v15 = vadd.f32 %v4703_v27, %v2093_v0  ;;  %v2094_v43 = vmax.f32 %v1565_v57, %v1940_v32 }
 0x1ef   :  { %v2150_v47 = vadd.f32 %v4703_v27, %v2094_v43  ;;  %v2198_v1 = vmax.f32 %v2149_v15, 0.0 }
 0x1f0   :  { %v1416_v58 = vpop.f32.mrb[132].mxu0  ;;  %v1945_v10 = vpop.f32.mrb[132].mxu1 }
 0x1f1   :  { %v2199_v63 = vmax.f32 %v2150_v47, 0.0  ;;  %v1566_v59 = vmax.f32 %v5100_v20, %v1416_v58  ;;  %v3461_v60 = vpop.f32.mrb[133].mxu0  ;;  %v3571_v21 = vpop.f32.mrb[133].mxu1 }
 0x1f2   :  { %v1419_v37 = vpop.f32.mrb[134].mxu0  ;;  %v1948_v61 = vpop.f32.mrb[134].mxu1 }
 0x1f3   :  { %v2972_v62 = vpack.c.bf16 %v2199_v63, %v2198_v1  ;;  %v2095_v38 = vmax.f32 %v1566_v59, %v1945_v10  ;;  %v1567_v2 = vmax.f32 %v5101_v30, %v1419_v37  ;;  %v3462_v24 = vpop.f32.mrb[135].mxu0  ;;  %v3572_v4 = vpop.f32.mrb[135].mxu1  ;;  %v5106_v1 = vmax.f32 %v4395_v52, %v4397_v18  ;;  %v5107_v37 = vld [vmem:[#allocation2_spill] sm:$0xff] }
 0x1f5   :  { %3060 = vst [vmem:[%s4976_s3 + $0x38] sm:$0xff] %v2972_v62   ;;  %v2151_v11 = vadd.f32 %v4703_v27, %v2095_v38  ;;  %v2096_v7 = vmax.f32 %v1567_v2, %v1948_v61  ;;  %v5108_v61 = vld [vmem:[#allocation3_spill] sm:$0xff] }
 0x1f6   :  { %v5109_v62 = vmax.f32 %v5107_v37, %v5108_v61 }
 0x1f7   :  { %v2152_v17 = vadd.f32 %v4703_v27, %v2096_v7  ;;  %v2200_v44 = vmax.f32 %v2151_v11, 0.0 }
 0x1f8   :  { %v1424_v12 = vpop.f32.mrb[136].mxu0  ;;  %v1953_v3 = vpop.f32.mrb[136].mxu1 }
 0x1f9   :  { %v2201_v45 = vmax.f32 %v2152_v17, 0.0  ;;  %v1568_v41 = vmax.f32 %v5102_v39, %v1424_v12  ;;  %v3465_v42 = vpop.f32.mrb[137].mxu0  ;;  %v3575_v40 = vpop.f32.mrb[137].mxu1  ;;  %v5110_v12 = vld [vmem:[#allocation4_spill] sm:$0xff] }
 0x1fa   :  { %v1427_v46 = vpop.f32.mrb[138].mxu0  ;;  %v1956_v8 = vpop.f32.mrb[138].mxu1 }
 0x1fb   :  { %v2977_v9 = vpack.c.bf16 %v2201_v45, %v2200_v44  ;;  %v2097_v25 = vmax.f32 %v1568_v41, %v1953_v3  ;;  %v1569_v19 = vmax.f32 %v5103_v26, %v1427_v46  ;;  %v3466_v23 = vpop.f32.mrb[139].mxu0  ;;  %v3576_v34 = vpop.f32.mrb[139].mxu1  ;;  %v5111_v3 = vld [vmem:[#allocation5_spill] sm:$0xff] }
 0x1fc   :  { %v5112_v44 = vmax.f32 %v5110_v12, %v5111_v3 }
 0x1fd   :  { %3061 = vst [vmem:[%s4976_s3 + $0x40] sm:$0xff] %v2977_v9   ;;  %v2153_v51 = vadd.f32 %v4703_v27, %v2097_v25  ;;  %v2098_v55 = vmax.f32 %v1569_v19, %v1956_v8  ;;  %v5113_v9 = vld [vmem:[#allocation6_spill] sm:$0xff]  ;;  %v5114_v25 = vld [vmem:[#allocation7_spill] sm:$0xff] }
 0x1fe   :  { %v5115_v26 = vmax.f32 %v5113_v9, %v5114_v25 }
 0x1ff   :  { %v2154_v5 = vadd.f32 %v4703_v27, %v2098_v55  ;;  %v2202_v50 = vmax.f32 %v2153_v51, 0.0 }
 0x200   :  { %v1432_v22 = vpop.f32.mrb[140].mxu0  ;;  %v1961_v49 = vpop.f32.mrb[140].mxu1 }
 0x201   :  { %v2203_v35 = vmax.f32 %v2154_v5, 0.0  ;;  %v1570_v53 = vmax.f32 %v5104_v36, %v1432_v22  ;;  %v3469_v54 = vpop.f32.mrb[141].mxu0  ;;  %v3579_v6 = vpop.f32.mrb[141].mxu1  ;;  %v5116_v36 = vld [vmem:[#allocation8_spill] sm:$0xff] }
 0x202   :  { %v1435_v16 = vpop.f32.mrb[142].mxu0  ;;  %v1964_v32 = vpop.f32.mrb[142].mxu1 }
 0x203   :  { %v2982_v33 = vpack.c.bf16 %v2203_v35, %v2202_v50  ;;  %v2099_v0 = vmax.f32 %v1570_v53, %v1961_v49  ;;  %v1571_v57 = vmax.f32 %v5105_v56, %v1435_v16  ;;  %v3470_v13 = vpop.f32.mrb[143].mxu0  ;;  %v3580_v14 = vpop.f32.mrb[143].mxu1  ;;  %v5117_v53 = vld [vmem:[#allocation9_spill] sm:$0xff] }
 0x204   :  { %v5118_v54 = vmax.f32 %v5116_v36, %v5117_v53  ;;  %v5119_v13 = vld [vmem:[#allocation10_spill] sm:$0xff]  ;;  %v5120_v14 = vld [vmem:[#allocation11_spill] sm:$0xff] }
 0x205   :  { %3062 = vst [vmem:[%s4976_s3 + $0x48] sm:$0xff] %v2982_v33   ;;  %v2155_v15 = vadd.f32 %v4703_v27, %v2099_v0  ;;  %v2100_v28 = vmax.f32 %v1571_v57, %v1964_v32 }
 0x207   :  { %v2156_v29 = vadd.f32 %v4703_v27, %v2100_v28  ;;  %v2204_v58 = vmax.f32 %v2155_v15, 0.0  ;;  %v5121_v15 = vmax.f32 %v5119_v13, %v5120_v14 }
 0x208   :  { %v1440_v43 = vpop.f32.mrb[144].mxu0  ;;  %v1969_v47 = vpop.f32.mrb[144].mxu1 }
 0x209   :  { %v2205_v10 = vmax.f32 %v2156_v29, 0.0  ;;  %v1572_v48 = vmax.f32 %v5106_v1, %v1440_v43  ;;  %v3473_v31 = vpop.f32.mrb[145].mxu0  ;;  %v3583_v63 = vpop.f32.mrb[145].mxu1 }
 0x20a   :  { %v1443_v20 = vpop.f32.mrb[146].mxu0  ;;  %v1972_v59 = vpop.f32.mrb[146].mxu1 }
 0x20b   :  { %v2987_v60 = vpack.c.bf16 %v2205_v10, %v2204_v58  ;;  %v2101_v21 = vmax.f32 %v1572_v48, %v1969_v47  ;;  %v1573_v38 = vmax.f32 %v5109_v62, %v1443_v20  ;;  %v3474_v30 = vpop.f32.mrb[147].mxu0  ;;  %v3584_v2 = vpop.f32.mrb[147].mxu1  ;;  %v5122_v20 = vld [vmem:[#allocation12_spill] sm:$0xff] }
 0x20d   :  { %3063 = vst [vmem:[%s4976_s3 + $0x50] sm:$0xff] %v2987_v60   ;;  %v2157_v24 = vadd.f32 %v4703_v27, %v2101_v21  ;;  %v2102_v52 = vmax.f32 %v1573_v38, %v1972_v59  ;;  %v5123_v59 = vld [vmem:[#allocation13_spill] sm:$0xff] }
 0x20e   :  { %v5124_v60 = vmax.f32 %v5122_v20, %v5123_v59 }
 0x20f   :  { %v2158_v18 = vadd.f32 %v4703_v27, %v2102_v52  ;;  %v2206_v7 = vmax.f32 %v2157_v24, 0.0  ;;  %v5125_v24 = vld [vmem:[#allocation14_spill] sm:$0xff]  ;;  %v5126_v52 = vld [vmem:[#allocation15_spill] sm:$0xff] }
 0x210   :  { %v1448_v4 = vpop.f32.mrb[148].mxu0  ;;  %v1977_v11 = vpop.f32.mrb[148].mxu1 }
 0x211   :  { %v2207_v17 = vmax.f32 %v2158_v18, 0.0  ;;  %v1574_v45 = vmax.f32 %v5112_v44, %v1448_v4  ;;  %v3477_v39 = vpop.f32.mrb[149].mxu0  ;;  %v3587_v41 = vpop.f32.mrb[149].mxu1  ;;  %v5127_v18 = vmax.f32 %v5125_v24, %v5126_v52 }
 0x212   :  { %v1451_v42 = vpop.f32.mrb[150].mxu0  ;;  %v1980_v40 = vpop.f32.mrb[150].mxu1 }
 0x213   :  { %v2992_v46 = vpack.c.bf16 %v2207_v17, %v2206_v7  ;;  %v2103_v8 = vmax.f32 %v1574_v45, %v1977_v11  ;;  %v1575_v19 = vmax.f32 %v5115_v26, %v1451_v42  ;;  %v3478_v23 = vpop.f32.mrb[151].mxu0  ;;  %v3588_v34 = vpop.f32.mrb[151].mxu1  ;;  %v5128_v42 = vld [vmem:[#allocation16_spill] sm:$0xff] }
 0x215   :  { %3064 = vst [vmem:[%s4976_s3 + $0x58] sm:$0xff] %v2992_v46   ;;  %v2159_v51 = vadd.f32 %v4703_v27, %v2103_v8  ;;  %v2104_v55 = vmax.f32 %v1575_v19, %v1980_v40  ;;  %v5129_v40 = vld [vmem:[#allocation17_spill] sm:$0xff] }
 0x216   :  { %v5130_v46 = vmax.f32 %v5128_v42, %v5129_v40 }
 0x217   :  { %v2160_v5 = vadd.f32 %v4703_v27, %v2104_v55  ;;  %v2208_v50 = vmax.f32 %v2159_v51, 0.0  ;;  %v5131_v51 = vld [vmem:[#allocation18_spill] sm:$0xff]  ;;  %v5132_v55 = vld [vmem:[#allocation19_spill] sm:$0xff] }
 0x218   :  { %v1456_v22 = vpop.f32.mrb[152].mxu0  ;;  %v1985_v49 = vpop.f32.mrb[152].mxu1 }
 0x219   :  { %v2209_v35 = vmax.f32 %v2160_v5, 0.0  ;;  %v1576_v6 = vmax.f32 %v5118_v54, %v1456_v22  ;;  %v3481_v16 = vpop.f32.mrb[153].mxu0  ;;  %v3591_v32 = vpop.f32.mrb[153].mxu1  ;;  %v5133_v5 = vmax.f32 %v5131_v51, %v5132_v55 }
 0x21a   :  { %v1459_v33 = vpop.f32.mrb[154].mxu0  ;;  %v1988_v0 = vpop.f32.mrb[154].mxu1 }
 0x21b   :  { %v2997_v56 = vpack.c.bf16 %v2209_v35, %v2208_v50  ;;  %v2105_v57 = vmax.f32 %v1576_v6, %v1985_v49  ;;  %v1577_v28 = vmax.f32 %v5121_v15, %v1459_v33  ;;  %v3482_v29 = vpop.f32.mrb[155].mxu0  ;;  %v3592_v43 = vpop.f32.mrb[155].mxu1  ;;  %v5134_v33 = vld [vmem:[#allocation20_spill] sm:$0xff] }
 0x21d   :  { %3065 = vst [vmem:[%s4976_s3 + $0x60] sm:$0xff] %v2997_v56   ;;  %v2161_v47 = vadd.f32 %v4703_v27, %v2105_v57  ;;  %v2106_v58 = vmax.f32 %v1577_v28, %v1988_v0  ;;  %v5135_v0 = vld [vmem:[#allocation21_spill] sm:$0xff] }
 0x21e   :  { %v5136_v56 = vmax.f32 %v5134_v33, %v5135_v0 }
 0x21f   :  { %v2162_v10 = vadd.f32 %v4703_v27, %v2106_v58  ;;  %v2210_v31 = vmax.f32 %v2161_v47, 0.0  ;;  %v5137_v47 = vld [vmem:[#allocation22_spill] sm:$0xff]  ;;  %v5138_v58 = vld [vmem:[#allocation23_spill] sm:$0xff] }
 0x220   :  { %v1464_v1 = vpop.f32.mrb[156].mxu0  ;;  %v1993_v48 = vpop.f32.mrb[156].mxu1 }
 0x221   :  { %v2211_v63 = vmax.f32 %v2162_v10, 0.0  ;;  %v1578_v21 = vmax.f32 %v5124_v60, %v1464_v1  ;;  %v3485_v37 = vpop.f32.mrb[157].mxu0  ;;  %v3595_v61 = vpop.f32.mrb[157].mxu1  ;;  %v5139_v10 = vmax.f32 %v5137_v47, %v5138_v58 }
 0x222   :  { %v1467_v62 = vpop.f32.mrb[158].mxu0  ;;  %v1996_v38 = vpop.f32.mrb[158].mxu1 }
 0x223   :  { %v3002_v30 = vpack.c.bf16 %v2211_v63, %v2210_v31  ;;  %v2107_v2 = vmax.f32 %v1578_v21, %v1993_v48  ;;  %v1579_v4 = vmax.f32 %v5127_v18, %v1467_v62  ;;  %v3486_v11 = vpop.f32.mrb[159].mxu0  ;;  %v3596_v7 = vpop.f32.mrb[159].mxu1  ;;  %v5140_v62 = vld [vmem:[#allocation24_spill] sm:$0xff] }
 0x225   :  { %3066 = vst [vmem:[%s4976_s3 + $0x68] sm:$0xff] %v3002_v30   ;;  %v2163_v17 = vadd.f32 %v4703_v27, %v2107_v2  ;;  %v2108_v12 = vmax.f32 %v1579_v4, %v1996_v38  ;;  %v5141_v38 = vld [vmem:[#allocation25_spill] sm:$0xff] }
 0x226   :  { %v5142_v30 = vmax.f32 %v5140_v62, %v5141_v38 }
 0x227   :  { %v2164_v3 = vadd.f32 %v4703_v27, %v2108_v12  ;;  %v2212_v39 = vmax.f32 %v2163_v17, 0.0  ;;  %v5143_v17 = vld [vmem:[#allocation26_spill] sm:$0xff]  ;;  %v5144_v12 = vld [vmem:[#allocation27_spill] sm:$0xff] }
 0x228   :  { %v1472_v44 = vpop.f32.mrb[160].mxu0  ;;  %v2001_v45 = vpop.f32.mrb[160].mxu1 }
 0x229   :  { %v2213_v41 = vmax.f32 %v2164_v3, 0.0  ;;  %v1580_v8 = vmax.f32 %v5130_v46, %v1472_v44  ;;  %v3489_v9 = vpop.f32.mrb[161].mxu0  ;;  %v3599_v25 = vpop.f32.mrb[161].mxu1  ;;  %v5145_v3 = vmax.f32 %v5143_v17, %v5144_v12 }
 0x22a   :  { %v1475_v26 = vpop.f32.mrb[162].mxu0  ;;  %v2004_v19 = vpop.f32.mrb[162].mxu1 }
 0x22b   :  { %v3007_v23 = vpack.c.bf16 %v2213_v41, %v2212_v39  ;;  %v2109_v34 = vmax.f32 %v1580_v8, %v2001_v45  ;;  %v1581_v22 = vmax.f32 %v5133_v5, %v1475_v26  ;;  %v3490_v49 = vpop.f32.mrb[163].mxu0  ;;  %v3600_v50 = vpop.f32.mrb[163].mxu1  ;;  %v5146_v26 = vld [vmem:[#allocation28_spill] sm:$0xff] }
 0x22d   :  { %3067 = vst [vmem:[%s4976_s3 + $0x70] sm:$0xff] %v3007_v23   ;;  %v2165_v35 = vadd.f32 %v4703_v27, %v2109_v34  ;;  %v2110_v36 = vmax.f32 %v1581_v22, %v2004_v19  ;;  %v5147_v19 = vld [vmem:[#allocation29_spill] sm:$0xff] }
 0x22e   :  { %v5148_v23 = vmax.f32 %v5146_v26, %v5147_v19 }
 0x22f   :  { %v2166_v53 = vadd.f32 %v4703_v27, %v2110_v36  ;;  %v2214_v16 = vmax.f32 %v2165_v35, 0.0  ;;  %v5149_v35 = vld [vmem:[#allocation30_spill] sm:$0xff]  ;;  %v5150_v36 = vld [vmem:[#allocation31_spill] sm:$0xff] }
 0x230   :  { %v1480_v54 = vpop.f32.mrb[164].mxu0  ;;  %v2009_v6 = vpop.f32.mrb[164].mxu1 }
 0x231   :  { %v2215_v32 = vmax.f32 %v2166_v53, 0.0  ;;  %v1582_v57 = vmax.f32 %v5136_v56, %v1480_v54  ;;  %v3493_v13 = vpop.f32.mrb[165].mxu0  ;;  %v3603_v14 = vpop.f32.mrb[165].mxu1  ;;  %v5151_v53 = vmax.f32 %v5149_v35, %v5150_v36 }
 0x232   :  { %v1483_v15 = vpop.f32.mrb[166].mxu0  ;;  %v2012_v28 = vpop.f32.mrb[166].mxu1 }
 0x233   :  { %v3012_v29 = vpack.c.bf16 %v2215_v32, %v2214_v16  ;;  %v2111_v43 = vmax.f32 %v1582_v57, %v2009_v6  ;;  %v1583_v1 = vmax.f32 %v5139_v10, %v1483_v15  ;;  %v3494_v48 = vpop.f32.mrb[167].mxu0  ;;  %v3604_v31 = vpop.f32.mrb[167].mxu1  ;;  %v5152_v15 = vld [vmem:[#allocation32_spill] sm:$0xff] }
 0x235   :  { %3068 = vst [vmem:[%s4976_s3 + $0x78] sm:$0xff] %v3012_v29   ;;  %v2167_v63 = vadd.f32 %v4703_v27, %v2111_v43  ;;  %v2112_v20 = vmax.f32 %v1583_v1, %v2012_v28  ;;  %v5153_v28 = vld [vmem:[#allocation33_spill] sm:$0xff] }
 0x236   :  { %v5154_v29 = vmax.f32 %v5152_v15, %v5153_v28 }
 0x237   :  { %v2168_v59 = vadd.f32 %v4703_v27, %v2112_v20  ;;  %v2216_v37 = vmax.f32 %v2167_v63, 0.0  ;;  %v5155_v63 = vld [vmem:[#allocation34_spill] sm:$0xff]  ;;  %v5156_v20 = vld [vmem:[#allocation35_spill] sm:$0xff] }
 0x238   :  { %v1488_v60 = vpop.f32.mrb[168].mxu0  ;;  %v2017_v21 = vpop.f32.mrb[168].mxu1 }
 0x239   :  { %v2217_v61 = vmax.f32 %v2168_v59, 0.0  ;;  %v1584_v2 = vmax.f32 %v5142_v30, %v1488_v60  ;;  %v3497_v24 = vpop.f32.mrb[169].mxu0  ;;  %v3607_v52 = vpop.f32.mrb[169].mxu1  ;;  %v5157_v59 = vmax.f32 %v5155_v63, %v5156_v20 }
 0x23a   :  { %v1491_v18 = vpop.f32.mrb[170].mxu0  ;;  %v2020_v4 = vpop.f32.mrb[170].mxu1 }
 0x23b   :  { %v3017_v11 = vpack.c.bf16 %v2217_v61, %v2216_v37  ;;  %v2113_v7 = vmax.f32 %v1584_v2, %v2017_v21  ;;  %v1585_v44 = vmax.f32 %v5145_v3, %v1491_v18  ;;  %v3498_v45 = vpop.f32.mrb[171].mxu0  ;;  %v3608_v39 = vpop.f32.mrb[171].mxu1  ;;  %v5158_v18 = vld [vmem:[#allocation36_spill] sm:$0xff] }
 0x23d   :  { %3069 = vst [vmem:[%s4976_s3 + $0x80] sm:$0xff] %v3017_v11   ;;  %v2169_v41 = vadd.f32 %v4703_v27, %v2113_v7  ;;  %v2114_v42 = vmax.f32 %v1585_v44, %v2020_v4  ;;  %v5159_v4 = vld [vmem:[#allocation37_spill] sm:$0xff] }
 0x23e   :  { %v5160_v11 = vmax.f32 %v5158_v18, %v5159_v4 }
 0x23f   :  { %v2170_v40 = vadd.f32 %v4703_v27, %v2114_v42  ;;  %v2218_v9 = vmax.f32 %v2169_v41, 0.0  ;;  %v5161_v41 = vld [vmem:[#allocation38_spill] sm:$0xff]  ;;  %v5162_v42 = vld [vmem:[#allocation39_spill] sm:$0xff] }
 0x240   :  { %v1496_v46 = vpop.f32.mrb[172].mxu0  ;;  %v2025_v8 = vpop.f32.mrb[172].mxu1 }
 0x241   :  { %v2219_v25 = vmax.f32 %v2170_v40, 0.0  ;;  %v1586_v34 = vmax.f32 %v5148_v23, %v1496_v46  ;;  %v3501_v51 = vpop.f32.mrb[173].mxu0  ;;  %v3611_v55 = vpop.f32.mrb[173].mxu1  ;;  %v5163_v40 = vmax.f32 %v5161_v41, %v5162_v42 }
 0x242   :  { %v1499_v5 = vpop.f32.mrb[174].mxu0  ;;  %v2028_v22 = vpop.f32.mrb[174].mxu1 }
 0x243   :  { %v3022_v49 = vpack.c.bf16 %v2219_v25, %v2218_v9  ;;  %v2115_v50 = vmax.f32 %v1586_v34, %v2025_v8  ;;  %v1587_v54 = vmax.f32 %v5151_v53, %v1499_v5  ;;  %v3502_v6 = vpop.f32.mrb[175].mxu0  ;;  %v3612_v16 = vpop.f32.mrb[175].mxu1  ;;  %v5164_v5 = vld [vmem:[#allocation40_spill] sm:$0xff] }
 0x245   :  { %3070 = vst [vmem:[%s4976_s3 + $0x88] sm:$0xff] %v3022_v49   ;;  %v2171_v32 = vadd.f32 %v4703_v27, %v2115_v50  ;;  %v2116_v33 = vmax.f32 %v1587_v54, %v2028_v22  ;;  %v5165_v22 = vld [vmem:[#allocation41_spill] sm:$0xff] }
 0x246   :  { %v5166_v49 = vmax.f32 %v5164_v5, %v5165_v22 }
 0x247   :  { %v2172_v0 = vadd.f32 %v4703_v27, %v2116_v33  ;;  %v2220_v13 = vmax.f32 %v2171_v32, 0.0  ;;  %v5167_v32 = vld [vmem:[#allocation42_spill] sm:$0xff]  ;;  %v5168_v33 = vld [vmem:[#allocation43_spill] sm:$0xff] }
 0x248   :  { %v1504_v56 = vpop.f32.mrb[176].mxu0  ;;  %v2033_v57 = vpop.f32.mrb[176].mxu1 }
 0x249   :  { %v2221_v14 = vmax.f32 %v2172_v0, 0.0  ;;  %v1588_v43 = vmax.f32 %v5154_v29, %v1504_v56  ;;  %v3505_v47 = vpop.f32.mrb[177].mxu0  ;;  %v3615_v58 = vpop.f32.mrb[177].mxu1  ;;  %v5169_v0 = vmax.f32 %v5167_v32, %v5168_v33 }
 0x24a   :  { %v1507_v10 = vpop.f32.mrb[178].mxu0  ;;  %v2036_v1 = vpop.f32.mrb[178].mxu1 }
 0x24b   :  { %v3027_v48 = vpack.c.bf16 %v2221_v14, %v2220_v13  ;;  %v2117_v31 = vmax.f32 %v1588_v43, %v2033_v57  ;;  %v1589_v60 = vmax.f32 %v5157_v59, %v1507_v10  ;;  %v3506_v21 = vpop.f32.mrb[179].mxu0  ;;  %v3616_v37 = vpop.f32.mrb[179].mxu1  ;;  %v5170_v10 = vld [vmem:[#allocation44_spill] sm:$0xff] }
 0x24d   :  { %3071 = vst [vmem:[%s4976_s3 + $0x90] sm:$0xff] %v3027_v48   ;;  %v2173_v61 = vadd.f32 %v4703_v27, %v2117_v31  ;;  %v2118_v62 = vmax.f32 %v1589_v60, %v2036_v1  ;;  %v5171_v1 = vld [vmem:[#allocation45_spill] sm:$0xff] }
 0x24e   :  { %v5172_v48 = vmax.f32 %v5170_v10, %v5171_v1 }
 0x24f   :  { %v2174_v38 = vadd.f32 %v4703_v27, %v2118_v62  ;;  %v2222_v24 = vmax.f32 %v2173_v61, 0.0  ;;  %v5173_v61 = vld [vmem:[#allocation46_spill] sm:$0xff]  ;;  %v5174_v62 = vld [vmem:[#allocation47_spill] sm:$0xff] }
 0x250   :  { %v1512_v30 = vpop.f32.mrb[180].mxu0  ;;  %v2041_v2 = vpop.f32.mrb[180].mxu1 }
 0x251   :  { %v2223_v52 = vmax.f32 %v2174_v38, 0.0  ;;  %v1590_v7 = vmax.f32 %v5160_v11, %v1512_v30  ;;  %v3509_v17 = vpop.f32.mrb[181].mxu0  ;;  %v3619_v12 = vpop.f32.mrb[181].mxu1  ;;  %v5175_v38 = vmax.f32 %v5173_v61, %v5174_v62 }
 0x252   :  { %v1515_v3 = vpop.f32.mrb[182].mxu0  ;;  %v2044_v44 = vpop.f32.mrb[182].mxu1 }
 0x253   :  { %v3032_v45 = vpack.c.bf16 %v2223_v52, %v2222_v24  ;;  %v2119_v39 = vmax.f32 %v1590_v7, %v2041_v2  ;;  %v1591_v46 = vmax.f32 %v5163_v40, %v1515_v3  ;;  %v3510_v8 = vpop.f32.mrb[183].mxu0  ;;  %v3620_v9 = vpop.f32.mrb[183].mxu1  ;;  %v5176_v3 = vld [vmem:[#allocation48_spill] sm:$0xff] }
 0x255   :  { %3072 = vst [vmem:[%s4976_s3 + $0x98] sm:$0xff] %v3032_v45   ;;  %v2175_v25 = vadd.f32 %v4703_v27, %v2119_v39  ;;  %v2120_v26 = vmax.f32 %v1591_v46, %v2044_v44  ;;  %v5177_v44 = vld [vmem:[#allocation49_spill] sm:$0xff] }
 0x256   :  { %v5178_v45 = vmax.f32 %v5176_v3, %v5177_v44 }
 0x257   :  { %v2176_v19 = vadd.f32 %v4703_v27, %v2120_v26  ;;  %v2224_v51 = vmax.f32 %v2175_v25, 0.0  ;;  %v5179_v25 = vld [vmem:[#allocation50_spill] sm:$0xff]  ;;  %v5180_v26 = vld [vmem:[#allocation51_spill] sm:$0xff] }
 0x258   :  { %v1520_v23 = vpop.f32.mrb[184].mxu0  ;;  %v2049_v34 = vpop.f32.mrb[184].mxu1 }
 0x259   :  { %v2225_v55 = vmax.f32 %v2176_v19, 0.0  ;;  %v1592_v50 = vmax.f32 %v5166_v49, %v1520_v23  ;;  %v3513_v35 = vpop.f32.mrb[185].mxu0  ;;  %v3623_v36 = vpop.f32.mrb[185].mxu1  ;;  %v5181_v19 = vmax.f32 %v5179_v25, %v5180_v26 }
 0x25a   :  { %v1523_v53 = vpop.f32.mrb[186].mxu0  ;;  %v2052_v54 = vpop.f32.mrb[186].mxu1 }
 0x25b   :  { %v3037_v6 = vpack.c.bf16 %v2225_v55, %v2224_v51  ;;  %v2121_v16 = vmax.f32 %v1592_v50, %v2049_v34  ;;  %v1593_v56 = vmax.f32 %v5169_v0, %v1523_v53  ;;  %v3514_v57 = vpop.f32.mrb[187].mxu0  ;;  %v3624_v13 = vpop.f32.mrb[187].mxu1  ;;  %v5182_v53 = vld [vmem:[#allocation52_spill] sm:$0xff] }
 0x25d   :  { %3073 = vst [vmem:[%s4976_s3 + $0xa0] sm:$0xff] %v3037_v6   ;;  %v2177_v14 = vadd.f32 %v4703_v27, %v2121_v16  ;;  %v2122_v15 = vmax.f32 %v1593_v56, %v2052_v54  ;;  %v5183_v54 = vld [vmem:[#allocation53_spill] sm:$0xff] }
 0x25e   :  { %v5184_v6 = vmax.f32 %v5182_v53, %v5183_v54 }
 0x25f   :  { %v2178_v28 = vadd.f32 %v4703_v27, %v2122_v15  ;;  %v2226_v47 = vmax.f32 %v2177_v14, 0.0 }
 0x260   :  { %v1528_v29 = vpop.f32.mrb[188].mxu0  ;;  %v2057_v43 = vpop.f32.mrb[188].mxu1 }
 0x261   :  { %v2227_v58 = vmax.f32 %v2178_v28, 0.0  ;;  %v1594_v31 = vmax.f32 %v5172_v48, %v1528_v29  ;;  %v3517_v63 = vpop.f32.mrb[189].mxu0  ;;  %v3627_v20 = vpop.f32.mrb[189].mxu1 }
 0x262   :  { %v1531_v59 = vpop.f32.mrb[190].mxu0  ;;  %v2060_v60 = vpop.f32.mrb[190].mxu1 }
 0x263   :  { %v3042_v21 = vpack.c.bf16 %v2227_v58, %v2226_v47  ;;  %v2123_v37 = vmax.f32 %v1594_v31, %v2057_v43  ;;  %v1595_v30 = vmax.f32 %v5175_v38, %v1531_v59  ;;  %v3518_v2 = vpop.f32.mrb[191].mxu0  ;;  %v3628_v24 = vpop.f32.mrb[191].mxu1 }
 0x265   :  { %3074 = vst [vmem:[%s4976_s3 + $0xa8] sm:$0xff] %v3042_v21   ;;  %v2179_v52 = vadd.f32 %v4703_v27, %v2123_v37  ;;  %v2124_v18 = vmax.f32 %v1595_v30, %v2060_v60 }
 0x267   :  { %v2180_v4 = vadd.f32 %v4703_v27, %v2124_v18  ;;  %v2228_v17 = vmax.f32 %v2179_v52, 0.0 }
 0x268   :  { %v1536_v11 = vpop.f32.mrb[192].mxu0  ;;  %v2065_v7 = vpop.f32.mrb[192].mxu1 }
 0x269   :  { %v2229_v12 = vmax.f32 %v2180_v4, 0.0  ;;  %v1596_v39 = vmax.f32 %v5178_v45, %v1536_v11  ;;  %v3521_v41 = vpop.f32.mrb[193].mxu0  ;;  %v3631_v42 = vpop.f32.mrb[193].mxu1 }
 0x26a   :  { %v1539_v40 = vpop.f32.mrb[194].mxu0  ;;  %v2068_v46 = vpop.f32.mrb[194].mxu1 }
 0x26b   :  { %v3047_v8 = vpack.c.bf16 %v2229_v12, %v2228_v17  ;;  %v2125_v9 = vmax.f32 %v1596_v39, %v2065_v7  ;;  %v1597_v23 = vmax.f32 %v5181_v19, %v1539_v40  ;;  %v3522_v34 = vpop.f32.mrb[195].mxu0  ;;  %v3632_v51 = vpop.f32.mrb[195].mxu1 }
 0x26d   :  { %3075 = vst [vmem:[%s4976_s3 + $0xb0] sm:$0xff] %v3047_v8   ;;  %v2181_v55 = vadd.f32 %v4703_v27, %v2125_v9  ;;  %v2126_v5 = vmax.f32 %v1597_v23, %v2068_v46 }
 0x26f   :  { %v2182_v22 = vadd.f32 %v4703_v27, %v2126_v5  ;;  %v2230_v35 = vmax.f32 %v2181_v55, 0.0 }
 0x270   :  { %v1544_v49 = vpop.f32.mrb[196].mxu0  ;;  %v2073_v50 = vpop.f32.mrb[196].mxu1 }
 0x271   :  { %v2231_v36 = vmax.f32 %v2182_v22, 0.0  ;;  %v1598_v16 = vmax.f32 %v5184_v6, %v1544_v49  ;;  %v3525_v32 = vpop.f32.mrb[197].mxu0  ;;  %v3635_v33 = vpop.f32.mrb[197].mxu1 }
 0x272   :  { %v1547_v0 = vpop.f32.mrb[198].mxu0  ;;  %v2076_v56 = vpop.f32.mrb[198].mxu1 }
 0x273   :  { %v3052_v57 = vpack.c.bf16 %v2231_v36, %v2230_v35  ;;  %v2127_v13 = vmax.f32 %v1598_v16, %v2073_v50  ;;  %v3526_v14 = vpop.f32.mrb[199].mxu0  ;;  %v3636_v15 = vpop.f32.mrb[199].mxu1 }
 0x275   :  { %3076 = vst [vmem:[%s4976_s3 + $0xb8] sm:$0xff] %v3052_v57   ;;  %v2183_v28 = vadd.f32 %v4703_v27, %v2127_v13 }
 0x277   :  { %v2232_v29 = vmax.f32 %v2183_v28, 0.0 }
 0x279   :  { %v2933_v43 = vpack.c.bf16 %v2232_v29, %v2232_v29 }
 0x27b   :  { %2478 = vst [vmem:[%s4976_s3 + $0xc0] sm:$0xf] %v2933_v43 }

// kernel: net_forward.5
= control target key start
LH: loop header
LB: loop body
LE: loop exit
PB: predicated region body
PF: predicated region fallthrough
CT: control target
= control target key end

     0   :  { %v447_v27 = vlaneseq  ;;  %v3428_v35 = vmov 1966171168   ;;  %vm3430_vm0 = vmmov 0   ;;  %s4221_s0 = inlined_call_operand.vmem [shape: bf16[2,3200], index: 0, kind: input, shape index: {}]   ;;  %s4222_s1 = inlined_call_operand.vmem [shape: bf16[3200,128], index: 1, kind: input, shape index: {}]   ;;  %s4223_s2 = inlined_call_operand.vmem [shape: f32[1,128], index: 2, kind: input, shape index: {}]   ;;  %s4224_s3 = inlined_call_operand.vmem [shape: bf16[128,128], index: 3, kind: input, shape index: {}]   ;;  %s4225_s4 = inlined_call_operand.vmem [shape: f32[1,128], index: 4, kind: input, shape index: {}]   ;;  %s4226_s5 = inlined_call_operand.vmem [shape: bf16[128,128], index: 5, kind: input, shape index: {}]   ;;  %s4227_s6 = inlined_call_operand.vmem [shape: f32[1,128], index: 6, kind: input, shape index: {}]   ;;  %s4228_s7 = inlined_call_operand.hbm [shape: f32[2,128], index: 7, kind: output, shape index: {}]  }
   0x1   :  { %v3181_v0 = vld [vmem:[%s4222_s1 + $0x40] sm:$0xff]   ;;  %v3185_v4 = vld [vmem:[%s4222_s1 + $0x48] sm:$0xff]   ;;  %v3189_v8 = vld [vmem:[%s4222_s1 + $0x50] sm:$0xff]   ;;  %v445_v36 = vunpack.c.l.s4 %v3428_v35 }
   0x2   :  { %v3182_v1 = vld [vmem:[%s4222_s1] sm:$0xff]   ;;  %2826 = vmatprep.subr.bf16.mxu0 %v3181_v0  ;;  %v3186_v5 = vld [vmem:[%s4222_s1 + $0x8] sm:$0xff]   ;;  %v3190_v9 = vld [vmem:[%s4222_s1 + $0x10] sm:$0xff]   ;;  %v448_v32 = vshrl.u32 %v447_v27, 7 }
   0x3   :  { %v3183_v2 = vld [vmem:[%s4222_s1 + $0xc0] sm:$0xff]   ;;  %2827 = vmatpush3.bf16.msra.mxu0 %v3182_v1  ;;  %v3187_v6 = vld [vmem:[%s4222_s1 + $0xc8] sm:$0xff]   ;;  %v3191_v10 = vld [vmem:[%s4222_s1 + $0xd0] sm:$0xff]   ;;  %v446_v39 = vunpack.c.0.s8 %v445_v36 }
   0x4   :  { %v3184_v3 = vld [vmem:[%s4222_s1 + $0x80] sm:$0xff]   ;;  %2848 = vmatprep.subr.bf16.mxu1 %v3183_v2  ;;  %2828 = vmatprep.subr.bf16.mxu0 %v3185_v4  ;;  %v3188_v7 = vld [vmem:[%s4222_s1 + $0x88] sm:$0xff]   ;;  %v3192_v11 = vld [vmem:[%s4222_s1 + $0x90] sm:$0xff]  }
   0x5   :  { %2849 = vmatpush3.bf16.msra.mxu1 %v3184_v3  ;;  %v3193_v12 = vld [vmem:[%s4222_s1 + $0x58] sm:$0xff]   ;;  %v3197_v16 = vld [vmem:[%s4222_s1 + $0x60] sm:$0xff]   ;;  %v3201_v20 = vld [vmem:[%s4222_s1 + $0x68] sm:$0xff]   ;;  %v3578_v41 = vsub.s32 %v446_v39, %v448_v32 }
   0x6   :  { %2850 = vmatprep.subr.bf16.mxu1 %v3187_v6  ;;  %v3194_v13 = vld [vmem:[%s4222_s1 + $0x18] sm:$0xff]   ;;  %v3198_v17 = vld [vmem:[%s4222_s1 + $0x20] sm:$0xff]   ;;  %v3202_v21 = vld [vmem:[%s4222_s1 + $0x28] sm:$0xff]  }
   0x7   :  { %2829 = vmatpush3.bf16.msra.mxu0 %v3186_v5  ;;  %v3195_v14 = vld [vmem:[%s4222_s1 + $0xd8] sm:$0xff]   ;;  %v3199_v18 = vld [vmem:[%s4222_s1 + $0xe0] sm:$0xff]   ;;  %v3203_v22 = vld [vmem:[%s4222_s1 + $0xe8] sm:$0xff]  }
   0x8   :  { %2830 = vmatprep.subr.bf16.mxu0 %v3189_v8  ;;  %v3196_v15 = vld [vmem:[%s4222_s1 + $0x98] sm:$0xff]   ;;  %v3200_v19 = vld [vmem:[%s4222_s1 + $0xa0] sm:$0xff]   ;;  %v3204_v23 = vld [vmem:[%s4222_s1 + $0xa8] sm:$0xff]  }
   0x9   :  { %2851 = vmatpush3.bf16.msra.mxu1 %v3188_v7  ;;  %v3205_v24 = vld [vmem:[%s4222_s1 + $0x70] sm:$0xff]   ;;  %v3209_v29 = vld [vmem:[%s4222_s1 + $0x78] sm:$0xff]   ;;  %v28_v33 = vld [vmem:[%s4221_s0] sm:$0xff] }
   0xa   :  { %2852 = vmatprep.subr.bf16.mxu1 %v3191_v10  ;;  %v3206_v25 = vld [vmem:[%s4222_s1 + $0x30] sm:$0xff]   ;;  %v3210_v30 = vld [vmem:[%s4222_s1 + $0x38] sm:$0xff]   ;;  %v3214_v37 = vld [vmem:[%s4222_s1 + $0x140] sm:$0xff]   ;;  %v443_v38 = vcombine.high %v28_v33, %v28_v33  ;;  %v450_v42 = vrot.slane %v28_v33, %v3578_v41 }
   0xb   :  { %2831 = vmatpush3.bf16.msra.mxu0 %v3190_v9  ;;  %v3207_v26 = vld [vmem:[%s4222_s1 + $0xf0] sm:$0xff]   ;;  %v3211_v31 = vld [vmem:[%s4222_s1 + $0xf8] sm:$0xff]   ;;  %v3216_v40 = vld [vmem:[%s4222_s1 + $0x1c0] sm:$0xff]  }
   0xc   :  { %2832 = vmatprep.subr.bf16.mxu0 %v3193_v12  ;;  %v3208_v28 = vld [vmem:[%s4222_s1 + $0xb0] sm:$0xff]   ;;  %v3213_v34 = vld [vmem:[%s4222_s1 + $0xb8] sm:$0xff]   ;;  %v3582_v43 = vrot.slane %v443_v38, %v3578_v41  ;;  %v458_v44 = vcombine.high %v450_v42, %v450_v42  ;;  %v466_v45 = vrot.slane %v450_v42, %v3578_v41  ;;  %v3215_v48 = vld [vmem:[%s4222_s1 + $0x100] sm:$0xff]  }
   0xd   :  { %2853 = vmatpush3.bf16.msra.mxu1 %v3192_v11  ;;  %v3218_v51 = vld [vmem:[%s4222_s1 + $0x148] sm:$0xff]   ;;  %v3217_v53 = vld [vmem:[%s4222_s1 + $0x180] sm:$0xff]   ;;  %v3222_v57 = vld [vmem:[%s4222_s1 + $0x150] sm:$0xff]  }
   0xe   :  { %2854 = vmatprep.subr.bf16.mxu1 %v3195_v14  ;;  %v459_v46 = vcombine.high %v3582_v43, %v3582_v43  ;;  %v480_v47 = vrot.slane %v458_v44, %v3578_v41  ;;  %v488_v50 = vcombine.high %v466_v45, %v466_v45  ;;  %v3220_v54 = vld [vmem:[%s4222_s1 + $0x1c8] sm:$0xff]   ;;  %v3224_v59 = vld [vmem:[%s4222_s1 + $0x1d0] sm:$0xff]   ;;  %v3226_v61 = vld [vmem:[%s4222_s1 + $0x158] sm:$0xff]  }
   0xf   :  { %2833 = vmatpush3.bf16.msra.mxu0 %v3194_v13  ;;  %v3219_v56 = vld [vmem:[%s4222_s1 + $0x108] sm:$0xff]   ;;  %v3223_v60 = vld [vmem:[%s4222_s1 + $0x110] sm:$0xff]   ;;  %v3228_v63 = vld [vmem:[%s4222_s1 + $0x1d8] sm:$0xff]  }
  0x10   :  { %2834 = vmatprep.subr.bf16.mxu0 %v3197_v16  ;;  %v487_v49 = vrot.slane %v459_v46, %v3578_v41  ;;  %1861 = vmatprep.mubr.bf16.mxu0 %v480_v47  ;;  %v490_v52 = vcombine.high %v480_v47, %v480_v47  ;;  %v3221_v58 = vld [vmem:[%s4222_s1 + $0x188] sm:$0xff]   ;;  %v3225_v62 = vld [vmem:[%s4222_s1 + $0x190] sm:$0xff]   ;;  %v3227_v0 = vld [vmem:[%s4222_s1 + $0x118] sm:$0xff]  }
  0x11   :  { %2855 = vmatpush3.bf16.msra.mxu1 %v3196_v15  ;;  %v3230_v1 = vld [vmem:[%s4222_s1 + $0x160] sm:$0xff]   ;;  %v3229_v2 = vld [vmem:[%s4222_s1 + $0x198] sm:$0xff]   ;;  %v3234_v5 = vld [vmem:[%s4222_s1 + $0x168] sm:$0xff]  }
  0x12   :  { %2856 = vmatprep.subr.bf16.mxu1 %v3199_v18  ;;  %v491_v55 = vcombine.high %v487_v49, %v487_v49  ;;  %1901 = vmatprep.mubr.bf16.mxu1 %v490_v52  ;;  %v3232_v3 = vld [vmem:[%s4222_s1 + $0x1e0] sm:$0xff]   ;;  %v3236_v7 = vld [vmem:[%s4222_s1 + $0x1e8] sm:$0xff]   ;;  %v3238_v9 = vld [vmem:[%s4222_s1 + $0x170] sm:$0xff]  }
  0x13   :  { %2835 = vmatpush3.bf16.msra.mxu0 %v3198_v17  ;;  %v3231_v4 = vld [vmem:[%s4222_s1 + $0x120] sm:$0xff]   ;;  %v3235_v8 = vld [vmem:[%s4222_s1 + $0x128] sm:$0xff]   ;;  %v3240_v11 = vld [vmem:[%s4222_s1 + $0x1f0] sm:$0xff]   ;;  %v473_v17 = vrot.slane %v3582_v43, %v3578_v41 }
  0x14   :  { %2836 = vmatprep.subr.bf16.mxu0 %v3201_v20  ;;  %v3233_v6 = vld [vmem:[%s4222_s1 + $0x1a0] sm:$0xff]   ;;  %v3237_v10 = vld [vmem:[%s4222_s1 + $0x1a8] sm:$0xff]   ;;  %v3239_v12 = vld [vmem:[%s4222_s1 + $0x130] sm:$0xff]  }
  0x15   :  { %2857 = vmatpush3.bf16.msra.mxu1 %v3200_v19  ;;  %v3242_v13 = vld [vmem:[%s4222_s1 + $0x178] sm:$0xff]   ;;  %v3241_v14 = vld [vmem:[%s4222_s1 + $0x1b0] sm:$0xff]   ;;  %v3246_v18 = vld [vmem:[%s4222_s1 + $0x240] sm:$0xff]  }
  0x16   :  { %2858 = vmatprep.subr.bf16.mxu1 %v3203_v22  ;;  %v3244_v15 = vld [vmem:[%s4222_s1 + $0x1f8] sm:$0xff]   ;;  %v3248_v20 = vld [vmem:[%s4222_s1 + $0x2c0] sm:$0xff]   ;;  %v489_v22 = vcombine.high %v473_v17, %v473_v17  ;;  %v3257_v33 = vld [vmem:[%s4222_s1 + $0x290] sm:$0xff]  }
  0x17   :  { %2837 = vmatpush3.bf16.msra.mxu0 %v3202_v21  ;;  %v3243_v16 = vld [vmem:[%s4222_s1 + $0x138] sm:$0xff]   ;;  %v3247_v21 = vld [vmem:[%s4222_s1 + $0x200] sm:$0xff]   ;;  %v3268_v43 = vld [vmem:[%s4222_s1 + $0x2e8] sm:$0xff]  }
  0x18   :  { %2838 = vmatprep.subr.bf16.mxu0 %v3205_v24  ;;  %v3245_v19 = vld [vmem:[%s4222_s1 + $0x1b8] sm:$0xff]   ;;  %v3249_v24 = vld [vmem:[%s4222_s1 + $0x280] sm:$0xff]   ;;  %v3267_v44 = vld [vmem:[%s4222_s1 + $0x228] sm:$0xff]  }
  0x19   :  { %2859 = vmatpush3.bf16.msra.mxu1 %v3204_v23  ;;  %v3250_v23 = vld [vmem:[%s4222_s1 + $0x248] sm:$0xff]   ;;  %v3258_v32 = vld [vmem:[%s4222_s1 + $0x258] sm:$0xff]   ;;  %v3262_v36 = vld [vmem:[%s4222_s1 + $0x260] sm:$0xff]  }
  0x1a   :  { %2860 = vmatprep.subr.bf16.mxu1 %v3207_v26  ;;  %v3251_v26 = vld [vmem:[%s4222_s1 + $0x208] sm:$0xff]   ;;  %v3259_v35 = vld [vmem:[%s4222_s1 + $0x218] sm:$0xff]   ;;  %v3264_v38 = vld [vmem:[%s4222_s1 + $0x2e0] sm:$0xff]  }
  0x1b   :  { %2839 = vmatpush3.bf16.msra.mxu0 %v3206_v25  ;;  %v3252_v25 = vld [vmem:[%s4222_s1 + $0x2c8] sm:$0xff]   ;;  %v3263_v39 = vld [vmem:[%s4222_s1 + $0x220] sm:$0xff]  }
  0x1c   :  { %2840 = vmatprep.subr.bf16.mxu0 %v3209_v29  ;;  %v3253_v29 = vld [vmem:[%s4222_s1 + $0x288] sm:$0xff]   ;;  %v3265_v42 = vld [vmem:[%s4222_s1 + $0x2a0] sm:$0xff]  }
  0x1d   :  { %2861 = vmatpush3.bf16.msra.mxu1 %v3208_v28  ;;  %v3254_v28 = vld [vmem:[%s4222_s1 + $0x250] sm:$0xff]   ;;  %v29_v46 = vld [vmem:[%s4221_s0 + $0x8] sm:$0xff] }
  0x1e   :  { %2862 = vmatprep.subr.bf16.mxu1 %v3211_v31  ;;  %v3255_v31 = vld [vmem:[%s4222_s1 + $0x210] sm:$0xff]   ;;  %v3269_v47 = vld [vmem:[%s4222_s1 + $0x2a8] sm:$0xff]  }
  0x1f   :  { %2841 = vmatpush3.bf16.msra.mxu0 %v3210_v30  ;;  %v3256_v30 = vld [vmem:[%s4222_s1 + $0x2d0] sm:$0xff]  }
  0x20   :  { %2870 = vmatprep.subr.bf16.mxu0 %v3214_v37  ;;  %v3261_v37 = vld [vmem:[%s4222_s1 + $0x298] sm:$0xff]  }
  0x21   :  { %2863 = vmatpush3.bf16.msra.mxu1 %v3213_v34  ;;  %v3260_v34 = vld [vmem:[%s4222_s1 + $0x2d8] sm:$0xff]  }
  0x22   :  { %2892 = vmatprep.subr.bf16.mxu1 %v3216_v40  ;;  %1862 = vmatmul.mubr.bf16.vlgmr.msra.gmra.mrb[0].mxu0 %v466_v45  ;;  %v3266_v40 = vld [vmem:[%s4222_s1 + $0x268] sm:$0xff]   ;;  %v3270_v45 = vld [vmem:[%s4222_s1 + $0x270] sm:$0xff]  }
  0x23   :  { %2871 = vmatpush3.bf16.msra.mxu0 %v3215_v48  ;;  %1941 = vmatprep.mubr.bf16.mxu0 %v487_v49  ;;  %v499_v48 = vrot.slane %v29_v46, %v3578_v41  ;;  %v492_v49 = vcombine.high %v29_v46, %v29_v46  ;;  %v3318_v46 = vld [vmem:[%s4222_s1 + $0x488] sm:$0xff]  }
  0x24   :  { %1902 = vmatmul.mubr.bf16.vlgmr.msra.gmra.mrb[0].mxu1 %v488_v50  ;;  %2872 = vmatprep.subr.bf16.mxu0 %v3218_v51  ;;  %v3272_v50 = vld [vmem:[%s4222_s1 + $0x2f0] sm:$0xff]  }
  0x25   :  { %2893 = vmatpush3.bf16.msra.mxu1 %v3217_v53  ;;  %1981 = vmatprep.mubr.bf16.mxu1 %v491_v55  ;;  %v3271_v51 = vld [vmem:[%s4222_s1 + $0x230] sm:$0xff]   ;;  %v507_v52 = vcombine.high %v499_v48, %v499_v48  ;;  %v3767_v53 = vrot.slane %v492_v49, %v3578_v41  ;;  %v3323_v49 = vld [vmem:[%s4222_s1 + $0x458] sm:$0xff]  }
  0x26   :  { %2894 = vmatprep.subr.bf16.mxu1 %v3220_v54  ;;  %v3274_v54 = vld [vmem:[%s4222_s1 + $0x278] sm:$0xff]   ;;  %v3273_v55 = vld [vmem:[%s4222_s1 + $0x2b0] sm:$0xff]  }
  0x27   :  { %2873 = vmatpush3.bf16.msra.mxu0 %v3219_v56  ;;  %v529_v56 = vrot.slane %v507_v52, %v3578_v41  ;;  %v3324_v52 = vld [vmem:[%s4222_s1 + $0x418] sm:$0xff]  }
  0x28   :  { %2874 = vmatprep.subr.bf16.mxu0 %v3222_v57  ;;  %v508_v57 = vcombine.high %v3767_v53, %v3767_v53 }
  0x29   :  { %2895 = vmatpush3.bf16.msra.mxu1 %v3221_v58  ;;  %v3276_v58 = vld [vmem:[%s4222_s1 + $0x2f8] sm:$0xff]  }
  0x2a   :  { %2896 = vmatprep.subr.bf16.mxu1 %v3224_v59  ;;  %v3275_v59 = vld [vmem:[%s4222_s1 + $0x238] sm:$0xff]  }
  0x2b   :  { %2875 = vmatpush3.bf16.msra.mxu0 %v3223_v60  ;;  %v539_v60 = vcombine.high %v529_v56, %v529_v56 }
  0x2c   :  { %2876 = vmatprep.subr.bf16.mxu0 %v3226_v61  ;;  %v515_v61 = vrot.slane %v499_v48, %v3578_v41  ;;  %v3320_v48 = vld [vmem:[%s4222_s1 + $0x410] sm:$0xff]  }
  0x2d   :  { %2897 = vmatpush3.bf16.msra.mxu1 %v3225_v62  ;;  %v3278_v62 = vld [vmem:[%s4222_s1 + $0x340] sm:$0xff]  }
  0x2e   :  { %2898 = vmatprep.subr.bf16.mxu1 %v3228_v63  ;;  %v3277_v63 = vld [vmem:[%s4222_s1 + $0x2b8] sm:$0xff]  }
  0x2f   :  { %2877 = vmatpush3.bf16.msra.mxu0 %v3227_v0  ;;  %v536_v0 = vrot.slane %v508_v57, %v3578_v41  ;;  %v3331_v57 = vld [vmem:[%s4222_s1 + $0x468] sm:$0xff]  }
  0x30   :  { %2878 = vmatprep.subr.bf16.mxu0 %v3230_v1  ;;  %v3280_v1 = vld [vmem:[%s4222_s1 + $0x3c0] sm:$0xff]  }
  0x31   :  { %2899 = vmatpush3.bf16.msra.mxu1 %v3229_v2  ;;  %v3279_v2 = vld [vmem:[%s4222_s1 + $0x300] sm:$0xff]  }
  0x32   :  { %2900 = vmatprep.subr.bf16.mxu1 %v3232_v3  ;;  %v537_v3 = vcombine.high %v515_v61, %v515_v61 }
  0x33   :  { %2879 = vmatpush3.bf16.msra.mxu0 %v3231_v4  ;;  %v3282_v4 = vld [vmem:[%s4222_s1 + $0x348] sm:$0xff]  }
  0x34   :  { %2880 = vmatprep.subr.bf16.mxu0 %v3234_v5  ;;  %v3281_v5 = vld [vmem:[%s4222_s1 + $0x380] sm:$0xff]  }
  0x35   :  { %2901 = vmatpush3.bf16.msra.mxu1 %v3233_v6  ;;  %v540_v6 = vcombine.high %v536_v0, %v536_v0 }
  0x36   :  { %2902 = vmatprep.subr.bf16.mxu1 %v3236_v7  ;;  %v3284_v7 = vld [vmem:[%s4222_s1 + $0x3c8] sm:$0xff]  }
  0x37   :  { %2881 = vmatpush3.bf16.msra.mxu0 %v3235_v8  ;;  %v3283_v8 = vld [vmem:[%s4222_s1 + $0x308] sm:$0xff]  }
  0x38   :  { %2882 = vmatprep.subr.bf16.mxu0 %v3238_v9  ;;  %v3286_v9 = vld [vmem:[%s4222_s1 + $0x350] sm:$0xff]  }
  0x39   :  { %2903 = vmatpush3.bf16.msra.mxu1 %v3237_v10  ;;  %v3285_v10 = vld [vmem:[%s4222_s1 + $0x388] sm:$0xff]  }
  0x3a   :  { %2904 = vmatprep.subr.bf16.mxu1 %v3240_v11  ;;  %v3288_v11 = vld [vmem:[%s4222_s1 + $0x3d0] sm:$0xff]  }
  0x3b   :  { %2883 = vmatpush3.bf16.msra.mxu0 %v3239_v12  ;;  %v3287_v12 = vld [vmem:[%s4222_s1 + $0x310] sm:$0xff]  }
  0x3c   :  { %2884 = vmatprep.subr.bf16.mxu0 %v3242_v13  ;;  %v3290_v13 = vld [vmem:[%s4222_s1 + $0x358] sm:$0xff]  }
  0x3d   :  { %2905 = vmatpush3.bf16.msra.mxu1 %v3241_v14  ;;  %v3289_v14 = vld [vmem:[%s4222_s1 + $0x390] sm:$0xff]  }
  0x3e   :  { %2906 = vmatprep.subr.bf16.mxu1 %v3244_v15  ;;  %v3292_v15 = vld [vmem:[%s4222_s1 + $0x3d8] sm:$0xff]  }
  0x3f   :  { %2885 = vmatpush3.bf16.msra.mxu0 %v3243_v16  ;;  %v3291_v16 = vld [vmem:[%s4222_s1 + $0x318] sm:$0xff]  }
  0x40   :  { %2914 = vmatprep.subr.bf16.mxu0 %v3246_v18  ;;  %v3293_v18 = vld [vmem:[%s4222_s1 + $0x398] sm:$0xff]  }
  0x41   :  { %2907 = vmatpush3.bf16.msra.mxu1 %v3245_v19  ;;  %v3296_v19 = vld [vmem:[%s4222_s1 + $0x3e0] sm:$0xff]  }
  0x42   :  { %1942 = vmatmul.mubr.bf16.vlgmr.msra.gmra.mrb[4].mxu0 %v473_v17  ;;  %2936 = vmatprep.subr.bf16.mxu1 %v3248_v20  ;;  %v3294_v17 = vld [vmem:[%s4222_s1 + $0x360] sm:$0xff]  }
  0x43   :  { %2915 = vmatpush3.bf16.msra.mxu0 %v3247_v21  ;;  %2021 = vmatprep.mubr.bf16.mxu0 %v529_v56  ;;  %v3295_v20 = vld [vmem:[%s4222_s1 + $0x320] sm:$0xff]   ;;  %v3298_v21 = vld [vmem:[%s4222_s1 + $0x368] sm:$0xff]  }
  0x44   :  { %1982 = vmatmul.mubr.bf16.vlgmr.msra.gmra.mrb[4].mxu1 %v489_v22  ;;  %2916 = vmatprep.subr.bf16.mxu0 %v3250_v23  ;;  %v3297_v22 = vld [vmem:[%s4222_s1 + $0x3a0] sm:$0xff]   ;;  %v3300_v23 = vld [vmem:[%s4222_s1 + $0x3e8] sm:$0xff]  }
  0x45   :  { %2937 = vmatpush3.bf16.msra.mxu1 %v3249_v24  ;;  %2061 = vmatprep.mubr.bf16.mxu1 %v539_v60  ;;  %v3299_v24 = vld [vmem:[%s4222_s1 + $0x328] sm:$0xff]   ;;  %v3328_v56 = vld [vmem:[%s4222_s1 + $0x420] sm:$0xff]  }
  0x46   :  { %2938 = vmatprep.subr.bf16.mxu1 %v3252_v25  ;;  %v3302_v25 = vld [vmem:[%s4222_s1 + $0x370] sm:$0xff]   ;;  %v3332_v60 = vld [vmem:[%s4222_s1 + $0x428] sm:$0xff]  }
  0x47   :  { %2917 = vmatpush3.bf16.msra.mxu0 %v3251_v26  ;;  %v3301_v26 = vld [vmem:[%s4222_s1 + $0x3a8] sm:$0xff]  }
  0x48   :  { %2918 = vmatprep.subr.bf16.mxu0 %v3254_v28  ;;  %v3304_v28 = vld [vmem:[%s4222_s1 + $0x3f0] sm:$0xff]  }
  0x49   :  { %2939 = vmatpush3.bf16.msra.mxu1 %v3253_v29  ;;  %v3303_v29 = vld [vmem:[%s4222_s1 + $0x330] sm:$0xff]  }
  0x4a   :  { %2940 = vmatprep.subr.bf16.mxu1 %v3256_v30  ;;  %v3306_v30 = vld [vmem:[%s4222_s1 + $0x378] sm:$0xff]  }
  0x4b   :  { %2919 = vmatpush3.bf16.msra.mxu0 %v3255_v31  ;;  %v3305_v31 = vld [vmem:[%s4222_s1 + $0x3b0] sm:$0xff]  }
  0x4c   :  { %2920 = vmatprep.subr.bf16.mxu0 %v3258_v32  ;;  %v3308_v32 = vld [vmem:[%s4222_s1 + $0x3f8] sm:$0xff]  }
  0x4d   :  { %2941 = vmatpush3.bf16.msra.mxu1 %v3257_v33  ;;  %v3307_v33 = vld [vmem:[%s4222_s1 + $0x338] sm:$0xff]  }
  0x4e   :  { %2942 = vmatprep.subr.bf16.mxu1 %v3260_v34  ;;  %v522_v34 = vrot.slane %v3767_v53, %v3578_v41  ;;  %v3327_v53 = vld [vmem:[%s4222_s1 + $0x460] sm:$0xff]  }
  0x4f   :  { %2921 = vmatpush3.bf16.msra.mxu0 %v3259_v35  ;;  %v3311_v35 = vld [vmem:[%s4222_s1 + $0x440] sm:$0xff]  }
  0x50   :  { %2922 = vmatprep.subr.bf16.mxu0 %v3262_v36  ;;  %v3310_v36 = vld [vmem:[%s4222_s1 + $0x3b8] sm:$0xff]  }
  0x51   :  { %2943 = vmatpush3.bf16.msra.mxu1 %v3261_v37  ;;  %v3313_v37 = vld [vmem:[%s4222_s1 + $0x4c0] sm:$0xff]  }
  0x52   :  { %2944 = vmatprep.subr.bf16.mxu1 %v3264_v38  ;;  %v3312_v38 = vld [vmem:[%s4222_s1 + $0x400] sm:$0xff]  }
  0x53   :  { %2923 = vmatpush3.bf16.msra.mxu0 %v3263_v39  ;;  %v538_v39 = vcombine.high %v522_v34, %v522_v34 }
  0x54   :  { %2924 = vmatprep.subr.bf16.mxu0 %v3266_v40  ;;  %v3315_v40 = vld [vmem:[%s4222_s1 + $0x448] sm:$0xff]  }
  0x55   :  { %2945 = vmatpush3.bf16.msra.mxu1 %v3265_v42  ;;  %v3314_v42 = vld [vmem:[%s4222_s1 + $0x480] sm:$0xff]  }
  0x56   :  { %2946 = vmatprep.subr.bf16.mxu1 %v3268_v43  ;;  %v3317_v43 = vld [vmem:[%s4222_s1 + $0x4c8] sm:$0xff]  }
  0x57   :  { %2925 = vmatpush3.bf16.msra.mxu0 %v3267_v44  ;;  %v3316_v44 = vld [vmem:[%s4222_s1 + $0x408] sm:$0xff]  }
  0x58   :  { %2926 = vmatprep.subr.bf16.mxu0 %v3270_v45  ;;  %v3319_v45 = vld [vmem:[%s4222_s1 + $0x450] sm:$0xff]  }
  0x59   :  { %2947 = vmatpush3.bf16.msra.mxu1 %v3269_v47  ;;  %v3321_v47 = vld [vmem:[%s4222_s1 + $0x4d0] sm:$0xff]  }
  0x5a   :  { %2948 = vmatprep.subr.bf16.mxu1 %v3272_v50  ;;  %v3322_v50 = vld [vmem:[%s4222_s1 + $0x490] sm:$0xff]  }
  0x5b   :  { %2927 = vmatpush3.bf16.msra.mxu0 %v3271_v51  ;;  %v3325_v51 = vld [vmem:[%s4222_s1 + $0x4d8] sm:$0xff]  }
  0x5c   :  { %2928 = vmatprep.subr.bf16.mxu0 %v3274_v54  ;;  %v3326_v54 = vld [vmem:[%s4222_s1 + $0x498] sm:$0xff]  }
  0x5d   :  { %2949 = vmatpush3.bf16.msra.mxu1 %v3273_v55  ;;  %v3329_v55 = vld [vmem:[%s4222_s1 + $0x4e0] sm:$0xff]  }
  0x5e   :  { %2950 = vmatprep.subr.bf16.mxu1 %v3276_v58  ;;  %v3330_v58 = vld [vmem:[%s4222_s1 + $0x4a0] sm:$0xff]  }
  0x5f   :  { %2929 = vmatpush3.bf16.msra.mxu0 %v3275_v59  ;;  %v3333_v59 = vld [vmem:[%s4222_s1 + $0x4e8] sm:$0xff]  }
  0x60   :  { %2958 = vmatprep.subr.bf16.mxu0 %v3278_v62  ;;  %v30_v62 = vld [vmem:[%s4221_s0 + $0x10] sm:$0xff] }
  0x61   :  { %2951 = vmatpush3.bf16.msra.mxu1 %v3277_v63  ;;  %v3334_v63 = vld [vmem:[%s4222_s1 + $0x4a8] sm:$0xff]  }
  0x62   :  { %2022 = vmatmul.mubr.bf16.vlgmr.msra.gmra.mrb[8].mxu0 %v515_v61  ;;  %2980 = vmatprep.subr.bf16.mxu1 %v3280_v1  ;;  %v3335_v61 = vld [vmem:[%s4222_s1 + $0x470] sm:$0xff]   ;;  %v541_v1 = vcombine.high %v30_v62, %v30_v62 }
  0x63   :  { %2959 = vmatpush3.bf16.msra.mxu0 %v3279_v2  ;;  %2101 = vmatprep.mubr.bf16.mxu0 %v536_v0  ;;  %v548_v0 = vrot.slane %v30_v62, %v3578_v41  ;;  %v3337_v2 = vld [vmem:[%s4222_s1 + $0x4f0] sm:$0xff]  }
  0x64   :  { %2062 = vmatmul.mubr.bf16.vlgmr.msra.gmra.mrb[8].mxu1 %v537_v3  ;;  %2960 = vmatprep.subr.bf16.mxu0 %v3282_v4  ;;  %v3336_v3 = vld [vmem:[%s4222_s1 + $0x430] sm:$0xff]  }
  0x65   :  { %2981 = vmatpush3.bf16.msra.mxu1 %v3281_v5  ;;  %2141 = vmatprep.mubr.bf16.mxu1 %v540_v6  ;;  %v556_v4 = vcombine.high %v548_v0, %v548_v0  ;;  %v3973_v5 = vrot.slane %v541_v1, %v3578_v41  ;;  %v3339_v6 = vld [vmem:[%s4222_s1 + $0x478] sm:$0xff]  }
  0x66   :  { %2982 = vmatprep.subr.bf16.mxu1 %v3284_v7  ;;  %v3338_v7 = vld [vmem:[%s4222_s1 + $0x4b0] sm:$0xff]  }
  0x67   :  { %2961 = vmatpush3.bf16.msra.mxu0 %v3283_v8  ;;  %v578_v8 = vrot.slane %v556_v4, %v3578_v41 }
  0x68   :  { %2962 = vmatprep.subr.bf16.mxu0 %v3286_v9  ;;  %v557_v9 = vcombine.high %v3973_v5, %v3973_v5 }
  0x69   :  { %2983 = vmatpush3.bf16.msra.mxu1 %v3285_v10  ;;  %v3341_v10 = vld [vmem:[%s4222_s1 + $0x4f8] sm:$0xff]  }
  0x6a   :  { %2984 = vmatprep.subr.bf16.mxu1 %v3288_v11  ;;  %v3340_v11 = vld [vmem:[%s4222_s1 + $0x438] sm:$0xff]  }
  0x6b   :  { %2963 = vmatpush3.bf16.msra.mxu0 %v3287_v12  ;;  %v588_v12 = vcombine.high %v578_v8, %v578_v8 }
  0x6c   :  { %2964 = vmatprep.subr.bf16.mxu0 %v3290_v13  ;;  %v564_v13 = vrot.slane %v548_v0, %v3578_v41 }
  0x6d   :  { %2985 = vmatpush3.bf16.msra.mxu1 %v3289_v14  ;;  %v3343_v14 = vld [vmem:[%s4222_s1 + $0x540] sm:$0xff]  }
  0x6e   :  { %2986 = vmatprep.subr.bf16.mxu1 %v3292_v15  ;;  %v3342_v15 = vld [vmem:[%s4222_s1 + $0x4b8] sm:$0xff]  }
  0x6f   :  { %2965 = vmatpush3.bf16.msra.mxu0 %v3291_v16  ;;  %v585_v16 = vrot.slane %v557_v9, %v3578_v41 }
  0x70   :  { %2966 = vmatprep.subr.bf16.mxu0 %v3294_v17  ;;  %v3345_v17 = vld [vmem:[%s4222_s1 + $0x5c0] sm:$0xff]  }
  0x71   :  { %2987 = vmatpush3.bf16.msra.mxu1 %v3293_v18  ;;  %v3344_v18 = vld [vmem:[%s4222_s1 + $0x500] sm:$0xff]  }
  0x72   :  { %2988 = vmatprep.subr.bf16.mxu1 %v3296_v19  ;;  %v586_v19 = vcombine.high %v564_v13, %v564_v13 }
  0x73   :  { %2967 = vmatpush3.bf16.msra.mxu0 %v3295_v20  ;;  %v3347_v20 = vld [vmem:[%s4222_s1 + $0x548] sm:$0xff]  }
  0x74   :  { %2968 = vmatprep.subr.bf16.mxu0 %v3298_v21  ;;  %v3346_v21 = vld [vmem:[%s4222_s1 + $0x580] sm:$0xff]  }
  0x75   :  { %2989 = vmatpush3.bf16.msra.mxu1 %v3297_v22  ;;  %v589_v22 = vcombine.high %v585_v16, %v585_v16 }
  0x76   :  { %2990 = vmatprep.subr.bf16.mxu1 %v3300_v23  ;;  %v3349_v23 = vld [vmem:[%s4222_s1 + $0x5c8] sm:$0xff]  }
  0x77   :  { %2969 = vmatpush3.bf16.msra.mxu0 %v3299_v24  ;;  %v3348_v24 = vld [vmem:[%s4222_s1 + $0x508] sm:$0xff]  }
  0x78   :  { %2970 = vmatprep.subr.bf16.mxu0 %v3302_v25  ;;  %v3351_v25 = vld [vmem:[%s4222_s1 + $0x550] sm:$0xff]  }
  0x79   :  { %2991 = vmatpush3.bf16.msra.mxu1 %v3301_v26  ;;  %v3350_v26 = vld [vmem:[%s4222_s1 + $0x588] sm:$0xff]  }
  0x7a   :  { %2992 = vmatprep.subr.bf16.mxu1 %v3304_v28  ;;  %v3353_v28 = vld [vmem:[%s4222_s1 + $0x5d0] sm:$0xff]  }
  0x7b   :  { %2971 = vmatpush3.bf16.msra.mxu0 %v3303_v29  ;;  %v3352_v29 = vld [vmem:[%s4222_s1 + $0x510] sm:$0xff]  }
  0x7c   :  { %2972 = vmatprep.subr.bf16.mxu0 %v3306_v30  ;;  %v3355_v30 = vld [vmem:[%s4222_s1 + $0x558] sm:$0xff]  }
  0x7d   :  { %2993 = vmatpush3.bf16.msra.mxu1 %v3305_v31  ;;  %v3354_v31 = vld [vmem:[%s4222_s1 + $0x590] sm:$0xff]  }
  0x7e   :  { %2994 = vmatprep.subr.bf16.mxu1 %v3308_v32  ;;  %v3357_v32 = vld [vmem:[%s4222_s1 + $0x5d8] sm:$0xff]  }
  0x7f   :  { %2973 = vmatpush3.bf16.msra.mxu0 %v3307_v33  ;;  %v3356_v33 = vld [vmem:[%s4222_s1 + $0x518] sm:$0xff]  }
  0x80   :  { %3002 = vmatprep.subr.bf16.mxu0 %v3311_v35  ;;  %v3358_v35 = vld [vmem:[%s4222_s1 + $0x598] sm:$0xff]  }
  0x81   :  { %2995 = vmatpush3.bf16.msra.mxu1 %v3310_v36  ;;  %v3361_v36 = vld [vmem:[%s4222_s1 + $0x5e0] sm:$0xff]  }
  0x82   :  { %2102 = vmatmul.mubr.bf16.vlgmr.msra.gmra.mrb[12].mxu0 %v522_v34  ;;  %3024 = vmatprep.subr.bf16.mxu1 %v3313_v37  ;;  %v3359_v34 = vld [vmem:[%s4222_s1 + $0x560] sm:$0xff]  }
  0x83   :  { %3003 = vmatpush3.bf16.msra.mxu0 %v3312_v38  ;;  %2181 = vmatprep.mubr.bf16.mxu0 %v578_v8  ;;  %v3360_v37 = vld [vmem:[%s4222_s1 + $0x520] sm:$0xff]   ;;  %v3363_v38 = vld [vmem:[%s4222_s1 + $0x568] sm:$0xff]  }
  0x84   :  { %2142 = vmatmul.mubr.bf16.vlgmr.msra.gmra.mrb[12].mxu1 %v538_v39  ;;  %3004 = vmatprep.subr.bf16.mxu0 %v3315_v40  ;;  %v3362_v39 = vld [vmem:[%s4222_s1 + $0x5a0] sm:$0xff]   ;;  %v3365_v40 = vld [vmem:[%s4222_s1 + $0x5e8] sm:$0xff]  }
  0x85   :  { %3025 = vmatpush3.bf16.msra.mxu1 %v3314_v42  ;;  %2221 = vmatprep.mubr.bf16.mxu1 %v588_v12  ;;  %v3364_v42 = vld [vmem:[%s4222_s1 + $0x528] sm:$0xff]  }
  0x86   :  { %3026 = vmatprep.subr.bf16.mxu1 %v3317_v43  ;;  %v3367_v43 = vld [vmem:[%s4222_s1 + $0x570] sm:$0xff]  }
  0x87   :  { %3005 = vmatpush3.bf16.msra.mxu0 %v3316_v44  ;;  %v3366_v44 = vld [vmem:[%s4222_s1 + $0x5a8] sm:$0xff]  }
  0x88   :  { %3006 = vmatprep.subr.bf16.mxu0 %v3319_v45  ;;  %v3369_v45 = vld [vmem:[%s4222_s1 + $0x5f0] sm:$0xff]  }
  0x89   :  { %3027 = vmatpush3.bf16.msra.mxu1 %v3318_v46  ;;  %v3368_v46 = vld [vmem:[%s4222_s1 + $0x530] sm:$0xff]  }
  0x8a   :  { %3028 = vmatprep.subr.bf16.mxu1 %v3321_v47  ;;  %v3371_v47 = vld [vmem:[%s4222_s1 + $0x578] sm:$0xff]  }
  0x8b   :  { %3007 = vmatpush3.bf16.msra.mxu0 %v3320_v48  ;;  %v3370_v48 = vld [vmem:[%s4222_s1 + $0x5b0] sm:$0xff]  }
  0x8c   :  { %3008 = vmatprep.subr.bf16.mxu0 %v3323_v49  ;;  %v3373_v49 = vld [vmem:[%s4222_s1 + $0x5f8] sm:$0xff]  }
  0x8d   :  { %3029 = vmatpush3.bf16.msra.mxu1 %v3322_v50  ;;  %v3372_v50 = vld [vmem:[%s4222_s1 + $0x538] sm:$0xff]  }
  0x8e   :  { %3030 = vmatprep.subr.bf16.mxu1 %v3325_v51  ;;  %v571_v51 = vrot.slane %v3973_v5, %v3578_v41 }
  0x8f   :  { %3009 = vmatpush3.bf16.msra.mxu0 %v3324_v52  ;;  %v3375_v52 = vld [vmem:[%s4222_s1 + $0x5b8] sm:$0xff]  }
  0x90   :  { %3010 = vmatprep.subr.bf16.mxu0 %v3327_v53  ;;  %v3376_v53 = vld [vmem:[%s4222_s1 + $0x600] sm:$0xff]  }
  0x91   :  { %3031 = vmatpush3.bf16.msra.mxu1 %v3326_v54  ;;  %v3429_v54 = vmov 0.0  }
  0x92   :  { %3032 = vmatprep.subr.bf16.mxu1 %v3329_v55  ;;  %v587_v55 = vcombine.high %v571_v51, %v571_v51 }
  0x93   :  { %3011 = vmatpush3.bf16.msra.mxu0 %v3328_v56  ;;  %v3377_v56 = vld [vmem:[%s4222_s1 + $0x608] sm:$0xff]  }
  0x94   :  { %3012 = vmatprep.subr.bf16.mxu0 %v3331_v57  ;;  %v3378_v57 = vld [vmem:[%s4222_s1 + $0x610] sm:$0xff]  }
  0x95   :  { %3033 = vmatpush3.bf16.msra.mxu1 %v3330_v58 }
  0x96   :  { %3034 = vmatprep.subr.bf16.mxu1 %v3333_v59 }
  0x97   :  { %3013 = vmatpush3.bf16.msra.mxu0 %v3332_v60 }
  0x98   :  { %3014 = vmatprep.subr.bf16.mxu0 %v3335_v61 }
  0x99   :  { %3035 = vmatpush3.bf16.msra.mxu1 %v3334_v63 }
  0x9a   :  { %3036 = vmatprep.subr.bf16.mxu1 %v3337_v2 }
  0x9b   :  { %3015 = vmatpush3.bf16.msra.mxu0 %v3336_v3 }
  0x9c   :  { %3016 = vmatprep.subr.bf16.mxu0 %v3339_v6 }
  0x9d   :  { %3037 = vmatpush3.bf16.msra.mxu1 %v3338_v7 }
  0x9e   :  { %3038 = vmatprep.subr.bf16.mxu1 %v3341_v10 }
  0x9f   :  { %3017 = vmatpush3.bf16.msra.mxu0 %v3340_v11 }
  0xa0   :  { %3046 = vmatprep.subr.bf16.mxu0 %v3343_v14 }
  0xa1   :  { %3039 = vmatpush3.bf16.msra.mxu1 %v3342_v15 }
  0xa2   :  { %2182 = vmatmul.mubr.bf16.vlgmr.msra.gmra.mrb[16].mxu0 %v564_v13  ;;  %3068 = vmatprep.subr.bf16.mxu1 %v3345_v17 }
  0xa3   :  { %3047 = vmatpush3.bf16.msra.mxu0 %v3344_v18  ;;  %2261 = vmatprep.mubr.bf16.mxu0 %v585_v16 }
  0xa4   :  { %2222 = vmatmul.mubr.bf16.vlgmr.msra.gmra.mrb[16].mxu1 %v586_v19  ;;  %3048 = vmatprep.subr.bf16.mxu0 %v3347_v20 }
  0xa5   :  { %3069 = vmatpush3.bf16.msra.mxu1 %v3346_v21  ;;  %2301 = vmatprep.mubr.bf16.mxu1 %v589_v22 }
  0xa6   :  { %3070 = vmatprep.subr.bf16.mxu1 %v3349_v23 }
  0xa7   :  { %3049 = vmatpush3.bf16.msra.mxu0 %v3348_v24 }
  0xa8   :  { %3050 = vmatprep.subr.bf16.mxu0 %v3351_v25 }
  0xa9   :  { %3071 = vmatpush3.bf16.msra.mxu1 %v3350_v26 }
  0xaa   :  { %3072 = vmatprep.subr.bf16.mxu1 %v3353_v28 }
  0xab   :  { %3051 = vmatpush3.bf16.msra.mxu0 %v3352_v29 }
  0xac   :  { %3052 = vmatprep.subr.bf16.mxu0 %v3355_v30 }
  0xad   :  { %3073 = vmatpush3.bf16.msra.mxu1 %v3354_v31 }
  0xae   :  { %3074 = vmatprep.subr.bf16.mxu1 %v3357_v32 }
  0xaf   :  { %3053 = vmatpush3.bf16.msra.mxu0 %v3356_v33 }
  0xb0   :  { %3054 = vmatprep.subr.bf16.mxu0 %v3359_v34 }
  0xb1   :  { %3075 = vmatpush3.bf16.msra.mxu1 %v3358_v35 }
  0xb2   :  { %3076 = vmatprep.subr.bf16.mxu1 %v3361_v36 }
  0xb3   :  { %3055 = vmatpush3.bf16.msra.mxu0 %v3360_v37 }
  0xb4   :  { %3056 = vmatprep.subr.bf16.mxu0 %v3363_v38 }
  0xb5   :  { %3077 = vmatpush3.bf16.msra.mxu1 %v3362_v39 }
  0xb6   :  { %3078 = vmatprep.subr.bf16.mxu1 %v3365_v40 }
  0xb7   :  { %3057 = vmatpush3.bf16.msra.mxu0 %v3364_v42 }
  0xb8   :  { %3058 = vmatprep.subr.bf16.mxu0 %v3367_v43 }
  0xb9   :  { %3079 = vmatpush3.bf16.msra.mxu1 %v3366_v44 }
  0xba   :  { %3080 = vmatprep.subr.bf16.mxu1 %v3369_v45 }
  0xbb   :  { %3059 = vmatpush3.bf16.msra.mxu0 %v3368_v46 }
  0xbc   :  { %3060 = vmatprep.subr.bf16.mxu0 %v3371_v47 }
  0xbd   :  { %3081 = vmatpush3.bf16.msra.mxu1 %v3370_v48 }
  0xbe   :  { %3082 = vmatprep.subr.bf16.mxu1 %v3373_v49 }
  0xbf   :  { %3061 = vmatpush3.bf16.msra.mxu0 %v3372_v50 }
  0xc0   :  { %3117 = vmatprep.subr.bf16.mxu0 %v3429_v54 }
  0xc1   :  { %3083 = vmatpush3.bf16.msra.mxu1 %v3375_v52 }
  0xc2   :  { %2262 = vmatmul.mubr.bf16.vlgmr.msra.gmra.mrb[20].mxu0 %v571_v51  ;;  %3137 = vmatprep.subr.bf16.mxu1 %v3429_v54 }
  0xc3   :  { %3118 = vmatpush3.bf16.msra.mxu0 %v3376_v53  ;;  %3133 = vmatprep.mubr.msk.bf16.mxu0 %vm3430_vm0, %v3429_v54 }
  0xc4   :  { %2302 = vmatmul.mubr.bf16.vlgmr.msra.gmra.mrb[20].mxu1 %v587_v55  ;;  %3119 = vmatprep.subr.bf16.mxu0 %v3429_v54 }
  0xc5   :  { %3153 = vmatprep.mubr.msk.bf16.mxu1 %vm3430_vm0, %v3429_v54 }
  0xc7   :  { %3120 = vmatpush3.bf16.msra.mxu0 %v3377_v56 }
  0xc8   :  { %3121 = vmatprep.subr.bf16.mxu0 %v3429_v54 }
  0xc9   :  { %12 = vsyncpa [#allocation3], 0  ;;  %v3379_v58 = vld [vmem:[%s4222_s1 + $0x618] sm:$0xff]   ;;  %v3380_v59 = vld [vmem:[%s4222_s1 + $0x620] sm:$0xff]   ;;  %vm2579_vm2 = vcmask 1041408  }
  0xca   :  { %v3381_v60 = vld [vmem:[%s4222_s1 + $0x628] sm:$0xff]   ;;  %v3382_v61 = vld [vmem:[%s4222_s1 + $0x630] sm:$0xff]   ;;  %v3383_v62 = vld [vmem:[%s4222_s1 + $0x638] sm:$0xff]  }
  0xcb   :  { %3122 = vmatpush3.bf16.msra.mxu0 %v3378_v57  ;;  %v2607_v63 = vld.sshfl [vmem:[%s4221_s0 + $0x18] sm:$0x1 pattern:$0x75316420]  ;;  %v2606_v2 = vld [vmem:[%s4223_s2] ss:$0 sm:$0xff] }
  0xcc   :  { %3123 = vmatprep.subr.bf16.mxu0 %v3429_v54  ;;  %v603_v0 = vrot.slane %v2607_v63, %v3578_v41  ;;  %v3384_v23 = vld [vmem:[%s4224_s3] sm:$0xff]   ;;  %v3385_v26 = vld [vmem:[%s4224_s3 + $0x8] sm:$0xff]   ;;  %v3386_v28 = vld [vmem:[%s4224_s3 + $0x10] sm:$0xff]  }
  0xcd   :  { %3138 = vmatpush3.bf16.msra.mxu1 %v3384_v23  ;;  %v3387_v29 = vld [vmem:[%s4224_s3 + $0x18] sm:$0xff]   ;;  %v3388_v30 = vld [vmem:[%s4224_s3 + $0x20] sm:$0xff]   ;;  %v3389_v31 = vld [vmem:[%s4224_s3 + $0x28] sm:$0xff]  }
  0xce   :  { %3139 = vmatprep.subr.bf16.mxu1 %v3429_v54  ;;  %v3390_v32 = vld [vmem:[%s4224_s3 + $0x30] sm:$0xff]   ;;  %v3391_v38 = vld [vmem:[%s4224_s3 + $0x38] sm:$0xff]   ;;  %v3392_v47 = vld [vmem:[%s4226_s5] sm:$0xff]  }
  0xcf   :  { %3124 = vmatpush3.bf16.msra.mxu0 %v3379_v58  ;;  %v3393_v48 = vld [vmem:[%s4226_s5 + $0x8] sm:$0xff]   ;;  %v3394_v49 = vld [vmem:[%s4226_s5 + $0x10] sm:$0xff]   ;;  %v3395_v50 = vld [vmem:[%s4226_s5 + $0x18] sm:$0xff]  }
  0xd0   :  { %3125 = vmatprep.subr.bf16.mxu0 %v3429_v54  ;;  %v3396_v51 = vld [vmem:[%s4226_s5 + $0x20] sm:$0xff]   ;;  %v3397_v52 = vld [vmem:[%s4226_s5 + $0x28] sm:$0xff]  }
  0xd1   :  { %3140 = vmatpush3.bf16.msra.mxu1 %v3385_v26 }
  0xd2   :  { %3141 = vmatprep.subr.bf16.mxu1 %v3429_v54 }
  0xd3   :  { %3126 = vmatpush3.bf16.msra.mxu0 %v3380_v59 }
  0xd4   :  { %3127 = vmatprep.subr.bf16.mxu0 %v3429_v54 }
  0xd5   :  { %3142 = vmatpush3.bf16.msra.mxu1 %v3386_v28 }
  0xd6   :  { %3143 = vmatprep.subr.bf16.mxu1 %v3429_v54 }
  0xd7   :  { %3128 = vmatpush3.bf16.msra.mxu0 %v3381_v60 }
  0xd8   :  { %3129 = vmatprep.subr.bf16.mxu0 %v3429_v54 }
  0xd9   :  { %3144 = vmatpush3.bf16.msra.mxu1 %v3387_v29 }
  0xda   :  { %3145 = vmatprep.subr.bf16.mxu1 %v3429_v54 }
  0xdb   :  { %3130 = vmatpush3.bf16.msra.mxu0 %v3382_v61 }
  0xdc   :  { %3131 = vmatprep.subr.bf16.mxu0 %v3429_v54 }
  0xdd   :  { %3146 = vmatpush3.bf16.msra.mxu1 %v3388_v30 }
  0xde   :  { %3147 = vmatprep.subr.bf16.mxu1 %v3429_v54 }
  0xdf   :  { %3132 = vmatpush3.bf16.msra.mxu0 %v3383_v62 }
  0xe0   :  { %3157 = vmatprep.subr.bf16.mxu0 %v3429_v54 }
  0xe1   :  { %3148 = vmatpush3.bf16.msra.mxu1 %v3389_v31 }
  0xe2   :  { %3134 = vmatmul.mubr.bf16.vlgmr.msra.gmra.mrb[24].mxu0 %v603_v0  ;;  %3149 = vmatprep.subr.bf16.mxu1 %v3429_v54 }
  0xe3   :  { %3173 = vmatprep.mubr.msk.bf16.mxu0 %vm3430_vm0, %v3429_v54  ;;  %3158 = vmatpush3.bf16.msra.mxu0 %v3392_v47 }
  0xe4   :  { %3159 = vmatprep.subr.bf16.mxu0 %v3429_v54 }
  0xe5   :  { %3150 = vmatpush3.bf16.msra.mxu1 %v3390_v32 }
  0xe6   :  { %3151 = vmatprep.subr.bf16.mxu1 %v3429_v54 }
  0xe7   :  { %3160 = vmatpush3.bf16.msra.mxu0 %v3393_v48 }
  0xe8   :  { %3161 = vmatprep.subr.bf16.mxu0 %v3429_v54 }
  0xe9   :  { %3152 = vmatpush3.bf16.msra.mxu1 %v3391_v38 }
  0xeb   :  { %3162 = vmatpush3.bf16.msra.mxu0 %v3394_v49 }
  0xec   :  { %3163 = vmatprep.subr.bf16.mxu0 %v3429_v54 }
  0xef   :  { %3164 = vmatpush3.bf16.msra.mxu0 %v3395_v50 }
  0xf0   :  { %3165 = vmatprep.subr.bf16.mxu0 %v3429_v54 }
  0xf3   :  { %3166 = vmatpush3.bf16.msra.mxu0 %v3396_v51 }
  0xf4   :  { %3167 = vmatprep.subr.bf16.mxu0 %v3429_v54 }
  0xf5   :  { %v2842_v1 = vpop.f32.mrb[0].mxu0 }
  0xf6   :  { %v2843_v3 = vpop.f32.mrb[1].mxu0 }
  0xf7   :  { %v2844_v4 = vadd.f32 %v2843_v3, %v2842_v1  ;;  %v2845_v5 = vpop.f32.mrb[2].mxu0  ;;  %v2864_v6 = vpop.f32.mrb[0].mxu1  ;;  %3168 = vmatpush3.bf16.msra.mxu0 %v3397_v52 }
  0xf8   :  { %v2846_v7 = vpop.f32.mrb[3].mxu0  ;;  %v2865_v8 = vpop.f32.mrb[1].mxu1  ;;  %3169 = vmatprep.subr.bf16.mxu0 %v3429_v54 }
  0xf9   :  { %v1864_v9 = vadd.f32 %v2844_v4, %v2606_v2  ;;  %v2866_v41 = vadd.f32 %v2865_v8, %v2864_v6  ;;  %v2867_v10 = vpop.f32.mrb[2].mxu1 }
  0xfa   :  { %v2868_v11 = vpop.f32.mrb[3].mxu1 }
  0xfb   :  { %v1904_v12 = vadd.f32 %v2866_v41, %v1864_v9 }
 0x115   :  { %v2886_v13 = vpop.f32.mrb[4].mxu0 }
 0x116   :  { %v2887_v14 = vpop.f32.mrb[5].mxu0 }
 0x117   :  { %v2888_v15 = vadd.f32 %v2887_v14, %v2886_v13  ;;  %v2889_v16 = vpop.f32.mrb[6].mxu0  ;;  %v2908_v17 = vpop.f32.mrb[4].mxu1 }
 0x118   :  { %v2890_v18 = vpop.f32.mrb[7].mxu0  ;;  %v2909_v19 = vpop.f32.mrb[5].mxu1 }
 0x119   :  { %v1944_v20 = vadd.f32 %v2888_v15, %v1904_v12  ;;  %v2910_v21 = vadd.f32 %v2909_v19, %v2908_v17  ;;  %v2911_v22 = vpop.f32.mrb[6].mxu1 }
 0x11a   :  { %v2912_v24 = vpop.f32.mrb[7].mxu1 }
 0x11b   :  { %v1984_v25 = vadd.f32 %v2910_v21, %v1944_v20 }
 0x135   :  { %v2930_v33 = vpop.f32.mrb[8].mxu0 }
 0x136   :  { %v2931_v34 = vpop.f32.mrb[9].mxu0 }
 0x137   :  { %v2932_v35 = vadd.f32 %v2931_v34, %v2930_v33  ;;  %v2933_v36 = vpop.f32.mrb[10].mxu0  ;;  %v2952_v37 = vpop.f32.mrb[8].mxu1  ;;  %v3398_v33 = vld [vmem:[%s4226_s5 + $0x30] sm:$0xff]   ;;  %v3399_v34 = vld [vmem:[%s4226_s5 + $0x38] sm:$0xff]  }
 0x138   :  { %v2934_v39 = vpop.f32.mrb[11].mxu0  ;;  %v2953_v40 = vpop.f32.mrb[9].mxu1  ;;  %3170 = vmatpush3.bf16.msra.mxu0 %v3398_v33 }
 0x139   :  { %v2024_v42 = vadd.f32 %v2932_v35, %v1984_v25  ;;  %v2954_v43 = vadd.f32 %v2953_v40, %v2952_v37  ;;  %v2955_v44 = vpop.f32.mrb[10].mxu1  ;;  %3171 = vmatprep.subr.bf16.mxu0 %v3429_v54  ;;  %v2808_v35 = vld [vmem:[%s4225_s4] ss:$0 sm:$0xff]  ;;  %s3431_s4 = smov [#allocation2]  }
 0x13a   :  { %v2956_v45 = vpop.f32.mrb[11].mxu1  ;;  %v2576_v44 = vand.u32 127, %v447_v27  ;;  %v2817_v54 = vld [vmem:[%s4227_s6] ss:$0 sm:$0xff]  ;;  %s2598_s5 = sshll.u32 %s3431_s4, 4  ;;  %s2599_s5 = int_to_ptr.vmem [resolvable:$true] %s2598_s5 }
 0x13b   :  { %v2064_v46 = vadd.f32 %v2954_v43, %v2024_v42  ;;  %s3404_s6 = scalar_lea.vmem %s2599_s5, 32  ;;  %p3409_p1 = scmp.lt.s32.totalorder %s2599_s5, %s2599_s5 }
 0x13c   :  { %3172 = vmatpush3.bf16.msra.mxu0 %v3399_v34  ;;  %vm2577_vm1 = vcmp.lt.s32.totalorder %v2576_v44, 10  ;;  %p3405_p0 = scmp.ne.s32.totalorder %s2599_s5, %s3404_s6  ;;  %p3410_p2 = scmp.lt.s32.totalorder %s3404_s6, %s3404_s6 }
 0x13e   :  { %p3411_p3 = por %p3410_p2, %p3409_p1 }
 0x140   :  { %p3412_p4 = pnand %p3411_p3, %p3405_p0 }
 0x155   :  { %v2974_v53 = vpop.f32.mrb[12].mxu0 }
 0x156   :  { %v2975_v55 = vpop.f32.mrb[13].mxu0 }
 0x157   :  { %v2976_v56 = vadd.f32 %v2975_v55, %v2974_v53  ;;  %v2977_v57 = vpop.f32.mrb[14].mxu0  ;;  %v2996_v58 = vpop.f32.mrb[12].mxu1 }
 0x158   :  { %v2978_v59 = vpop.f32.mrb[15].mxu0  ;;  %v2997_v60 = vpop.f32.mrb[13].mxu1 }
 0x159   :  { %v2104_v61 = vadd.f32 %v2976_v56, %v2064_v46  ;;  %v2998_v62 = vadd.f32 %v2997_v60, %v2996_v58  ;;  %v2999_v63 = vpop.f32.mrb[14].mxu1 }
 0x15a   :  { %v3000_v0 = vpop.f32.mrb[15].mxu1 }
 0x15b   :  { %v2144_v1 = vadd.f32 %v2998_v62, %v2104_v61 }
 0x175   :  { %v3018_v2 = vpop.f32.mrb[16].mxu0 }
 0x176   :  { %v3019_v3 = vpop.f32.mrb[17].mxu0 }
 0x177   :  { %v3020_v4 = vadd.f32 %v3019_v3, %v3018_v2  ;;  %v3021_v5 = vpop.f32.mrb[18].mxu0  ;;  %v3040_v6 = vpop.f32.mrb[16].mxu1 }
 0x178   :  { %v3022_v7 = vpop.f32.mrb[19].mxu0  ;;  %v3041_v8 = vpop.f32.mrb[17].mxu1 }
 0x179   :  { %v2184_v9 = vadd.f32 %v3020_v4, %v2144_v1  ;;  %v3042_v41 = vadd.f32 %v3041_v8, %v3040_v6  ;;  %v3043_v10 = vpop.f32.mrb[18].mxu1 }
 0x17a   :  { %v3044_v11 = vpop.f32.mrb[19].mxu1 }
 0x17b   :  { %v2224_v12 = vadd.f32 %v3042_v41, %v2184_v9 }
 0x195   :  { %v3062_v13 = vpop.f32.mrb[20].mxu0 }
 0x196   :  { %v3063_v14 = vpop.f32.mrb[21].mxu0 }
 0x197   :  { %v3064_v15 = vadd.f32 %v3063_v14, %v3062_v13  ;;  %v3065_v16 = vpop.f32.mrb[22].mxu0  ;;  %v3084_v17 = vpop.f32.mrb[20].mxu1 }
 0x198   :  { %v3066_v18 = vpop.f32.mrb[23].mxu0  ;;  %v3085_v19 = vpop.f32.mrb[21].mxu1 }
 0x199   :  { %v2264_v20 = vadd.f32 %v3064_v15, %v2224_v12  ;;  %v3086_v21 = vadd.f32 %v3085_v19, %v3084_v17  ;;  %v3087_v22 = vpop.f32.mrb[22].mxu1 }
 0x19a   :  { %v3088_v23 = vpop.f32.mrb[23].mxu1 }
 0x19b   :  { %v2304_v24 = vadd.f32 %v3086_v21, %v2264_v20 }
 0x1b5   :  { %v2343_v25 = vpop.f32.mrb[24].mxu0 }
 0x1b6   :  { %v2344_v26 = vadd.f32 %v2343_v25, %v2304_v24  ;;  %v3135_v28 = vpop.f32.mrb[25].mxu0 }
 0x1b7   :  { %v2346_v29 = vpop.f32.mrb[26].mxu0 }
 0x1b8   :  { %v2349_v30 = vmax.f32 %v2344_v26, 0.0  ;;  %v3136_v31 = vpop.f32.mrb[27].mxu0 }
 0x1ba   :  { %v2350_v32 = vpack.c.bf16 %v2349_v30, %v2349_v30 }
 0x1bc   :  { %3154 = vmatmul.mubr.bf16.vlgmr.msra.gmra.mrb[24].mxu1 %v2350_v32 }
 0x28f   :  { %v2456_v36 = vpop.f32.mrb[24].mxu1 }
 0x290   :  { %v2457_v37 = vadd.f32 %v2808_v35, %v2456_v36  ;;  %v3155_v38 = vpop.f32.mrb[25].mxu1 }
 0x291   :  { %v2459_v39 = vpop.f32.mrb[26].mxu1 }
 0x292   :  { %v2462_v40 = vmax.f32 %v2457_v37, 0.0  ;;  %v3156_v42 = vpop.f32.mrb[27].mxu1 }
 0x294   :  { %v2463_v43 = vpack.c.bf16 %v2462_v40, %v2462_v40 }
 0x296   :  { %3174 = vmatmul.mubr.bf16.vlgmr.msra.gmra.mrb[28].mxu0 %v2463_v43 }
 0x369   :  { %v2569_v45 = vpop.f32.mrb[28].mxu0 }
 0x36a   :  { %v2570_v46 = vadd.f32 %v2817_v54, %v2569_v45  ;;  %v3175_v47 = vpop.f32.mrb[29].mxu0 }
 0x36b   :  { %v2572_v48 = vpop.f32.mrb[30].mxu0 }
 0x36c   :  { %v3176_v49 = vpop.f32.mrb[31].mxu0  ;;  %v2578_v50 = vsel %vm2577_vm1, %v2570_v46, -1e+30 }
 0x36d   :  { %v2580_v51 = vsel %vm2579_vm2, %v2578_v50, -inf }
 0x36e   :  { %2581 = vmax.xlane.f32.xlu0 %v2580_v51 }
 0x3fb   :  { %v2582_v52 = vpop.xlane.xlu0 %2581 }
 0x3fc   :  { %v2583_v53 = vsub.f32 %v2578_v50, %v2582_v52 }
 0x3fe   :  { %v2584_v55 = vmul.f32 1.442695, %v2583_v53 }
 0x400   :  { %3400 = vpow2.f32 %v2584_v55 }
 0x40a   :  { %v3401_v56 = vpop.eup %3400 }
 0x40b   :  { %v2586_v27 = vsel %vm2579_vm2, %v3401_v56, 0.0 }
 0x40c   :  { %2587 = vadd.xlane.f32.xlu0 %v2586_v27 }
 0x499   :  { %v2588_v57 = vpop.xlane.xlu0 %2587 }
 0x49a   :  { %3402 = vrcp.f32 %v2588_v57 }
 0x4a4   :  { %v3403_v58 = vpop.eup %3402 }
 0x4a5   :  { %v2590_v59 = vmul.f32 %v3403_v58, %v3401_v56 }
 0x4a7   :  { %2591 = vst [vmem:[#allocation2] sm:$0x3] %v2590_v59 }
 0x4a8   :  { %3415 = shalt.err (!%p3412_p4)
}
 0x4a9   :  { %s3416_s28 = scalar_lea.hbm %s4228_s7, 32 }
 0x4aa   :  { %p3417_p5 = scmp.ne.s32.totalorder %s4228_s7, %s3416_s28  ;;  %p3420_p6 = scmp.lt.u32.totalorder %s3416_s28, %s4228_s7 }
 0x4ac   :  { %p3422_p7 = pnand %p3420_p6, %p3417_p5 }
 0x4ae   :  { %3425 = shalt.err (!%p3422_p7)
}
 0x4af   :  { %2601 = dma.vmem_to_hbm [thread:$0]  %s2599_s5, 32, %s4228_s7, [#allocation3]  }
 0x4b0   :  { %3426 = dma.done.wait [#allocation3], 32  }
 0x4b1   :  { %3427 = vsyncadd [#allocation3], 4294967264 }
 0x4b2   :  { %2605 = vsyncpa [#allocation3], 1 }

// kernel: net_forward.4
= control target key start
LH: loop header
LB: loop body
LE: loop exit
PB: predicated region body
PF: predicated region fallthrough
CT: control target
= control target key end

     0   :  { %s15522_s1 = inlined_call_operand.vmem [shape: bf16[3200,128], index: 1, kind: input, shape index: {}]   ;;  %s15523_s0 = inlined_call_operand.vmem [shape: bf16[4,50,3200], index: 0, kind: input, shape index: {}]   ;;  %s15524_s2 = inlined_call_operand.vmem [shape: f32[1,128], index: 2, kind: input, shape index: {}]   ;;  %s15525_s3 = inlined_call_operand.vmem [shape: bf16[50,128], index: 3, kind: output, shape index: {}]  }
   0x1   :  { %v10225_v0 = vld [vmem:[%s15522_s1 + $0x40] sm:$0xff]   ;;  %v10229_v4 = vld [vmem:[%s15522_s1 + $0x48] sm:$0xff]   ;;  %v10233_v8 = vld [vmem:[%s15522_s1 + $0x50] sm:$0xff]  }
   0x2   :  { %v10226_v1 = vld [vmem:[%s15522_s1 + $0xc0] sm:$0xff]   ;;  %8161 = vmatprep.subr.bf16.mxu0 %v10225_v0  ;;  %v10230_v5 = vld [vmem:[%s15522_s1 + $0xc8] sm:$0xff]   ;;  %v10234_v9 = vld [vmem:[%s15522_s1 + $0xd0] sm:$0xff]  }
   0x3   :  { %v10227_v2 = vld [vmem:[%s15522_s1] sm:$0xff]   ;;  %8201 = vmatprep.subr.bf16.mxu1 %v10226_v1  ;;  %v10231_v6 = vld [vmem:[%s15522_s1 + $0x8] sm:$0xff]   ;;  %v10235_v10 = vld [vmem:[%s15522_s1 + $0x10] sm:$0xff]  }
   0x4   :  { %v10228_v3 = vld [vmem:[%s15522_s1 + $0x80] sm:$0xff]   ;;  %8162 = vmatpush3.bf16.msra.mxu0 %v10227_v2  ;;  %v10232_v7 = vld [vmem:[%s15522_s1 + $0x88] sm:$0xff]   ;;  %v10236_v11 = vld [vmem:[%s15522_s1 + $0x90] sm:$0xff]  }
   0x5   :  { %8202 = vmatpush3.bf16.msra.mxu1 %v10228_v3  ;;  %8163 = vmatprep.subr.bf16.mxu0 %v10229_v4  ;;  %v10237_v12 = vld [vmem:[%s15522_s1 + $0x58] sm:$0xff]   ;;  %v10241_v16 = vld [vmem:[%s15522_s1 + $0x60] sm:$0xff]   ;;  %v10245_v20 = vld [vmem:[%s15522_s1 + $0x68] sm:$0xff]  }
   0x6   :  { %8203 = vmatprep.subr.bf16.mxu1 %v10230_v5  ;;  %v10238_v13 = vld [vmem:[%s15522_s1 + $0xd8] sm:$0xff]   ;;  %v10242_v17 = vld [vmem:[%s15522_s1 + $0xe0] sm:$0xff]   ;;  %v10246_v21 = vld [vmem:[%s15522_s1 + $0xe8] sm:$0xff]  }
   0x7   :  { %v10239_v14 = vld [vmem:[%s15522_s1 + $0x18] sm:$0xff]   ;;  %v10243_v18 = vld [vmem:[%s15522_s1 + $0x20] sm:$0xff]   ;;  %v10247_v22 = vld [vmem:[%s15522_s1 + $0x28] sm:$0xff]  }
   0x8   :  { %8164 = vmatpush3.bf16.msra.mxu0 %v10231_v6  ;;  %v10240_v15 = vld [vmem:[%s15522_s1 + $0x98] sm:$0xff]   ;;  %v10244_v19 = vld [vmem:[%s15522_s1 + $0xa0] sm:$0xff]   ;;  %v10248_v23 = vld [vmem:[%s15522_s1 + $0xa8] sm:$0xff]  }
   0x9   :  { %8204 = vmatpush3.bf16.msra.mxu1 %v10232_v7  ;;  %8165 = vmatprep.subr.bf16.mxu0 %v10233_v8  ;;  %v10249_v24 = vld [vmem:[%s15522_s1 + $0x70] sm:$0xff]   ;;  %v10253_v28 = vld [vmem:[%s15522_s1 + $0x78] sm:$0xff]   ;;  %v10257_v32 = vld [vmem:[%s15523_s0] ss:$100 sps:$4 sm:$0xff]  }
   0xa   :  { %8205 = vmatprep.subr.bf16.mxu1 %v10234_v9  ;;  %v10250_v25 = vld [vmem:[%s15522_s1 + $0xf0] sm:$0xff]   ;;  %v10254_v29 = vld [vmem:[%s15522_s1 + $0xf8] sm:$0xff]   ;;  %v10259_v33 = vld [vmem:[%s15523_s0 + $0x4] ss:$100 sps:$4 sm:$0xff]  }
   0xb   :  { %v10251_v26 = vld [vmem:[%s15522_s1 + $0x30] sm:$0xff]   ;;  %v10255_v30 = vld [vmem:[%s15522_s1 + $0x38] sm:$0xff]   ;;  %v10260_v34 = vld [vmem:[%s15523_s0 + $0x8] ss:$100 sps:$4 sm:$0xff]   ;;  %2204 = vmatprep.mubr.bf16.mxu0 %v10259_v33 }
   0xc   :  { %8166 = vmatpush3.bf16.msra.mxu0 %v10235_v10  ;;  %v10252_v27 = vld [vmem:[%s15522_s1 + $0xb0] sm:$0xff]   ;;  %v10256_v31 = vld [vmem:[%s15522_s1 + $0xb8] sm:$0xff]   ;;  %v10263_v36 = vld [vmem:[%s15522_s1 + $0x140] sm:$0xff]  }
   0xd   :  { %8206 = vmatpush3.bf16.msra.mxu1 %v10236_v11  ;;  %8167 = vmatprep.subr.bf16.mxu0 %v10237_v12  ;;  %v10262_v35 = vld [vmem:[%s15523_s0 + $0xc] ss:$100 sps:$4 sm:$0xff]   ;;  %v10264_v37 = vld [vmem:[%s15522_s1 + $0x1c0] sm:$0xff]   ;;  %v10273_v45 = vld [vmem:[%s15523_s0 + $0xd4] ss:$100 sps:$4 sm:$0xff]  }
   0xe   :  { %8207 = vmatprep.subr.bf16.mxu1 %v10238_v13  ;;  %2268 = vmatprep.mubr.bf16.mxu1 %v10262_v35  ;;  %v10265_v38 = vld [vmem:[%s15522_s1 + $0x100] sm:$0xff]   ;;  %v10267_v40 = vld [vmem:[%s15522_s1 + $0x148] sm:$0xff]   ;;  %v10276_v47 = vld [vmem:[%s15523_s0 + $0xd0] ss:$100 sps:$4 sm:$0xff]  }
   0xf   :  { %v10266_v39 = vld [vmem:[%s15522_s1 + $0x180] sm:$0xff]   ;;  %v10268_v41 = vld [vmem:[%s15522_s1 + $0x1c8] sm:$0xff]   ;;  %v10277_v48 = vld [vmem:[%s15522_s1 + $0x150] sm:$0xff]  }
  0x10   :  { %8168 = vmatpush3.bf16.msra.mxu0 %v10239_v14  ;;  %v10269_v42 = vld [vmem:[%s15522_s1 + $0x108] sm:$0xff]   ;;  %v10278_v49 = vld [vmem:[%s15522_s1 + $0x1d0] sm:$0xff]   ;;  %v10281_v52 = vld [vmem:[%s15522_s1 + $0x158] sm:$0xff]  }
  0x11   :  { %8208 = vmatpush3.bf16.msra.mxu1 %v10240_v15  ;;  %8169 = vmatprep.subr.bf16.mxu0 %v10241_v16  ;;  %v10270_v43 = vld [vmem:[%s15522_s1 + $0x188] sm:$0xff]   ;;  %v10279_v50 = vld [vmem:[%s15522_s1 + $0x110] sm:$0xff]   ;;  %v10282_v53 = vld [vmem:[%s15522_s1 + $0x1d8] sm:$0xff]  }
  0x12   :  { %8209 = vmatprep.subr.bf16.mxu1 %v10242_v17  ;;  %v10271_v44 = vld [vmem:[%s15523_s0 + $0xcc] ss:$100 sps:$4 sm:$0xff]   ;;  %v10283_v54 = vld [vmem:[%s15522_s1 + $0x118] sm:$0xff]   ;;  %v10291_v60 = vld [vmem:[%s15522_s1 + $0x160] sm:$0xff]  }
  0x13   :  { %v10275_v46 = vld [vmem:[%s15523_s0 + $0xc8] ss:$100 sps:$4 sm:$0xff]   ;;  %v10280_v51 = vld [vmem:[%s15522_s1 + $0x190] sm:$0xff]   ;;  %v10284_v55 = vld [vmem:[%s15522_s1 + $0x198] sm:$0xff]  }
  0x14   :  { %8170 = vmatpush3.bf16.msra.mxu0 %v10243_v18  ;;  %v10285_v56 = vld [vmem:[%s15523_s0 + $0x194] ss:$100 sps:$4 sm:$0xff]   ;;  %v10287_v57 = vld [vmem:[%s15523_s0 + $0x19c] ss:$100 sps:$4 sm:$0xff]   ;;  %v10295_v0 = vld [vmem:[%s15522_s1 + $0x168] sm:$0xff]  }
  0x15   :  { %8210 = vmatpush3.bf16.msra.mxu1 %v10244_v19  ;;  %8171 = vmatprep.subr.bf16.mxu0 %v10245_v20  ;;  %v10289_v58 = vld [vmem:[%s15523_s0 + $0x190] ss:$100 sps:$4 sm:$0xff]   ;;  %v10290_v59 = vld [vmem:[%s15523_s0 + $0x198] ss:$100 sps:$4 sm:$0xff]   ;;  %v10292_v61 = vld [vmem:[%s15522_s1 + $0x1e0] sm:$0xff]  }
  0x16   :  { %8211 = vmatprep.subr.bf16.mxu1 %v10246_v21  ;;  %v10293_v62 = vld [vmem:[%s15522_s1 + $0x120] sm:$0xff]   ;;  %v10296_v1 = vld [vmem:[%s15522_s1 + $0x1e8] sm:$0xff]   ;;  %v493_v4 = vld [vmem:[%s15523_s0 + $0x258] sm:$0x11] }
  0x17   :  { %v10294_v63 = vld [vmem:[%s15522_s1 + $0x1a0] sm:$0xff]   ;;  %v10297_v2 = vld [vmem:[%s15522_s1 + $0x128] sm:$0xff]   ;;  %v7332_v6 = vcombine.high %v493_v4, %v493_v4  ;;  %v7331_v8 = vcombine.low %v493_v4, %v493_v4  ;;  %v10303_v10 = vld [vmem:[%s15522_s1 + $0x170] sm:$0xff]  }
  0x18   :  { %8172 = vmatpush3.bf16.msra.mxu0 %v10247_v22  ;;  %v10298_v3 = vld [vmem:[%s15522_s1 + $0x1a8] sm:$0xff]   ;;  %v494_v5 = vld [vmem:[%s15523_s0 + $0x260] sm:$0x11]  ;;  %v10304_v11 = vld [vmem:[%s15522_s1 + $0x1f0] sm:$0xff]  }
  0x19   :  { %8212 = vmatpush3.bf16.msra.mxu1 %v10248_v23  ;;  %8173 = vmatprep.subr.bf16.mxu0 %v10249_v24  ;;  %v7334_v7 = vcombine.high %v494_v5, %v494_v5  ;;  %v7333_v9 = vcombine.low %v494_v5, %v494_v5  ;;  %v10305_v12 = vld [vmem:[%s15522_s1 + $0x130] sm:$0xff]   ;;  %v10307_v14 = vld [vmem:[%s15522_s1 + $0x178] sm:$0xff]   ;;  %v10317_v22 = vld [vmem:[%s15522_s1 + $0x240] sm:$0xff]  }
  0x1a   :  { %8213 = vmatprep.subr.bf16.mxu1 %v10250_v25  ;;  %v10306_v13 = vld [vmem:[%s15522_s1 + $0x1b0] sm:$0xff]   ;;  %v10308_v15 = vld [vmem:[%s15522_s1 + $0x1f8] sm:$0xff]   ;;  %v10318_v23 = vld [vmem:[%s15522_s1 + $0x2c0] sm:$0xff]  }
  0x1b   :  { %v10309_v16 = vld [vmem:[%s15522_s1 + $0x138] sm:$0xff]   ;;  %v10311_v18 = vld [vmem:[%s15523_s0 + $0x10] ss:$100 sps:$4 sm:$0xff]   ;;  %v10319_v24 = vld [vmem:[%s15522_s1 + $0x200] sm:$0xff]  }
  0x1c   :  { %8174 = vmatpush3.bf16.msra.mxu0 %v10251_v26  ;;  %v10310_v17 = vld [vmem:[%s15522_s1 + $0x1b8] sm:$0xff]   ;;  %v10320_v25 = vld [vmem:[%s15522_s1 + $0x280] sm:$0xff]   ;;  %v10321_v26 = vld [vmem:[%s15522_s1 + $0x248] sm:$0xff]  }
  0x1d   :  { %8214 = vmatpush3.bf16.msra.mxu1 %v10252_v27  ;;  %8175 = vmatprep.subr.bf16.mxu0 %v10253_v28  ;;  %v10313_v19 = vld [vmem:[%s15523_s0 + $0x14] ss:$100 sps:$4 sm:$0xff]   ;;  %v10316_v21 = vld [vmem:[%s15523_s0 + $0x1c] ss:$100 sps:$4 sm:$0xff]   ;;  %v10322_v27 = vld [vmem:[%s15522_s1 + $0x2c8] sm:$0xff]  }
  0x1e   :  { %8215 = vmatprep.subr.bf16.mxu1 %v10254_v29  ;;  %v10314_v20 = vld [vmem:[%s15523_s0 + $0x18] ss:$100 sps:$4 sm:$0xff]   ;;  %v10323_v28 = vld [vmem:[%s15522_s1 + $0x208] sm:$0xff]   ;;  %v10330_v33 = vld [vmem:[%s15522_s1 + $0x250] sm:$0xff]  }
  0x1f   :  { %v10324_v29 = vld [vmem:[%s15522_s1 + $0x288] sm:$0xff]   ;;  %v10332_v35 = vld [vmem:[%s15523_s0 + $0xe0] ss:$100 sps:$4 sm:$0xff]  }
  0x20   :  { %8176 = vmatpush3.bf16.msra.mxu0 %v10255_v30  ;;  %v10325_v30 = vld [vmem:[%s15523_s0 + $0xdc] ss:$100 sps:$4 sm:$0xff]   ;;  %v10367_v5 = vld [vmem:[%s15523_s0 + $0x24] ss:$100 sps:$4 sm:$0xff]  }
  0x21   :  { %8216 = vmatpush3.bf16.msra.mxu1 %v10256_v31  ;;  %8241 = vmatprep.subr.bf16.mxu0 %v10263_v36  ;;  %v10327_v31 = vld [vmem:[%s15523_s0 + $0xd8] ss:$100 sps:$4 sm:$0xff]   ;;  %v10333_v36 = vld [vmem:[%s15522_s1 + $0x210] sm:$0xff]   ;;  %v10365_v4 = vld [vmem:[%s15523_s0 + $0x20] ss:$100 sps:$4 sm:$0xff]  }
  0x22   :  { %8281 = vmatprep.subr.bf16.mxu1 %v10264_v37  ;;  %v10334_v37 = vld [vmem:[%s15522_s1 + $0x290] sm:$0xff]  }
  0x23   :  { %2205 = vmatmul.mubr.bf16.vlgmr.msra.gmra.mrb[0].mxu0 %v10257_v32  ;;  %v10328_v32 = vld [vmem:[%s15523_s0 + $0xe4] ss:$100 sps:$4 sm:$0xff]  }
  0x24   :  { %2269 = vmatmul.mubr.bf16.vlgmr.msra.gmra.mrb[0].mxu1 %v10260_v34  ;;  %8242 = vmatpush3.bf16.msra.mxu0 %v10265_v38  ;;  %v10331_v34 = vld [vmem:[%s15522_s1 + $0x2d0] sm:$0xff]   ;;  %v10335_v38 = vld [vmem:[%s15522_s1 + $0x258] sm:$0xff]  }
  0x25   :  { %8282 = vmatpush3.bf16.msra.mxu1 %v10266_v39  ;;  %8243 = vmatprep.subr.bf16.mxu0 %v10267_v40  ;;  %v10336_v39 = vld [vmem:[%s15522_s1 + $0x2d8] sm:$0xff]  }
  0x26   :  { %8283 = vmatprep.subr.bf16.mxu1 %v10268_v41  ;;  %2212 = vmatprep.mubr.bf16.mxu0 %v10271_v44  ;;  %v10337_v40 = vld [vmem:[%s15522_s1 + $0x218] sm:$0xff]   ;;  %v10342_v44 = vld [vmem:[%s15523_s0 + $0x1ac] ss:$100 sps:$4 sm:$0xff]  }
  0x27   :  { %2276 = vmatprep.mubr.bf16.mxu1 %v10273_v45  ;;  %v10338_v41 = vld [vmem:[%s15522_s1 + $0x298] sm:$0xff]   ;;  %v10344_v45 = vld [vmem:[%s15522_s1 + $0x260] sm:$0xff]  }
  0x28   :  { %8244 = vmatpush3.bf16.msra.mxu0 %v10269_v42  ;;  %v10339_v42 = vld [vmem:[%s15523_s0 + $0x1a4] ss:$100 sps:$4 sm:$0xff]  }
  0x29   :  { %8284 = vmatpush3.bf16.msra.mxu1 %v10270_v43  ;;  %8245 = vmatprep.subr.bf16.mxu0 %v10277_v48  ;;  %v10341_v43 = vld [vmem:[%s15523_s0 + $0x1a0] ss:$100 sps:$4 sm:$0xff]  }
  0x2a   :  { %8285 = vmatprep.subr.bf16.mxu1 %v10278_v49  ;;  %v10347_v48 = vld [vmem:[%s15522_s1 + $0x220] sm:$0xff]  }
  0x2b   :  { %2213 = vmatmul.mubr.bf16.gmra.mrb[4].mxu0 %v10275_v46  ;;  %v10345_v46 = vld [vmem:[%s15522_s1 + $0x2e0] sm:$0xff]  }
  0x2c   :  { %2277 = vmatmul.mubr.bf16.gmra.mrb[4].mxu1 %v10276_v47  ;;  %8246 = vmatpush3.bf16.msra.mxu0 %v10279_v50  ;;  %v10346_v47 = vld [vmem:[%s15523_s0 + $0x1a8] ss:$100 sps:$4 sm:$0xff]   ;;  %v10348_v49 = vld [vmem:[%s15522_s1 + $0x2a0] sm:$0xff]  }
  0x2d   :  { %8286 = vmatpush3.bf16.msra.mxu1 %v10280_v51  ;;  %8247 = vmatprep.subr.bf16.mxu0 %v10281_v52  ;;  %v10349_v50 = vld [vmem:[%s15522_s1 + $0x268] sm:$0xff]  }
  0x2e   :  { %8287 = vmatprep.subr.bf16.mxu1 %v10282_v53  ;;  %2220 = vmatprep.mubr.bf16.mxu0 %v10285_v56  ;;  %v10350_v51 = vld [vmem:[%s15522_s1 + $0x2e8] sm:$0xff]  }
  0x2f   :  { %2284 = vmatprep.mubr.bf16.mxu1 %v10287_v57  ;;  %v10351_v52 = vld [vmem:[%s15522_s1 + $0x228] sm:$0xff]   ;;  %v496_v57 = vld [vmem:[%s15523_s0 + $0x270] sm:$0x11] }
  0x30   :  { %8248 = vmatpush3.bf16.msra.mxu0 %v10283_v54  ;;  %v10352_v53 = vld [vmem:[%s15522_s1 + $0x2a8] sm:$0xff]  }
  0x31   :  { %8288 = vmatpush3.bf16.msra.mxu1 %v10284_v55  ;;  %8249 = vmatprep.subr.bf16.mxu0 %v10291_v60  ;;  %v495_v54 = vld [vmem:[%s15523_s0 + $0x268] sm:$0x11]  ;;  %v7337_v60 = vcombine.low %v496_v57, %v496_v57 }
  0x32   :  { %8289 = vmatprep.subr.bf16.mxu1 %v10292_v61  ;;  %v7336_v55 = vcombine.high %v495_v54, %v495_v54  ;;  %v7335_v56 = vcombine.low %v495_v54, %v495_v54  ;;  %v10357_v61 = vld [vmem:[%s15522_s1 + $0x2f0] sm:$0xff]  }
  0x33   :  { %2221 = vmatmul.mubr.bf16.gmra.mrb[8].mxu0 %v10289_v58  ;;  %v7338_v58 = vcombine.high %v496_v57, %v496_v57  ;;  %v10419_v54 = vld [vmem:[%s15523_s0 + $0x30] ss:$100 sps:$4 sm:$0xff]   ;;  %v10424_v57 = vld [vmem:[%s15523_s0 + $0x3c] ss:$100 sps:$4 sm:$0xff]  }
  0x34   :  { %2285 = vmatmul.mubr.bf16.gmra.mrb[8].mxu1 %v10290_v59  ;;  %8250 = vmatpush3.bf16.msra.mxu0 %v10293_v62  ;;  %v10356_v59 = vld [vmem:[%s15522_s1 + $0x270] sm:$0xff]  }
  0x35   :  { %8290 = vmatpush3.bf16.msra.mxu1 %v10294_v63  ;;  %8251 = vmatprep.subr.bf16.mxu0 %v10295_v0  ;;  %v10359_v62 = vld [vmem:[%s15522_s1 + $0x230] sm:$0xff]   ;;  %v10361_v0 = vld [vmem:[%s15522_s1 + $0x278] sm:$0xff]  }
  0x36   :  { %8291 = vmatprep.subr.bf16.mxu1 %v10296_v1  ;;  %2228 = vmatprep.mubr.bf16.mxu0 %v7332_v6  ;;  %v10360_v63 = vld [vmem:[%s15522_s1 + $0x2b0] sm:$0xff]   ;;  %v10362_v1 = vld [vmem:[%s15522_s1 + $0x2f8] sm:$0xff]   ;;  %v10368_v6 = vld [vmem:[%s15523_s0 + $0x28] ss:$100 sps:$4 sm:$0xff]  }
  0x37   :  { %2292 = vmatprep.mubr.bf16.mxu1 %v7334_v7  ;;  %v10370_v7 = vld [vmem:[%s15523_s0 + $0x2c] ss:$100 sps:$4 sm:$0xff]  }
  0x38   :  { %8252 = vmatpush3.bf16.msra.mxu0 %v10297_v2  ;;  %v10363_v2 = vld [vmem:[%s15522_s1 + $0x238] sm:$0xff]  }
  0x39   :  { %8292 = vmatpush3.bf16.msra.mxu1 %v10298_v3  ;;  %8253 = vmatprep.subr.bf16.mxu0 %v10303_v10  ;;  %v10364_v3 = vld [vmem:[%s15522_s1 + $0x2b8] sm:$0xff]   ;;  %v10373_v10 = vld [vmem:[%s15522_s1 + $0x300] sm:$0xff]  }
  0x3a   :  { %8293 = vmatprep.subr.bf16.mxu1 %v10304_v11  ;;  %v10374_v11 = vld [vmem:[%s15522_s1 + $0x380] sm:$0xff]  }
  0x3b   :  { %2229 = vmatmul.mubr.bf16.gmra.mrb[12].mxu0 %v7331_v8  ;;  %v10371_v8 = vld [vmem:[%s15522_s1 + $0x340] sm:$0xff]  }
  0x3c   :  { %2293 = vmatmul.mubr.bf16.gmra.mrb[12].mxu1 %v7333_v9  ;;  %8254 = vmatpush3.bf16.msra.mxu0 %v10305_v12  ;;  %v10372_v9 = vld [vmem:[%s15522_s1 + $0x3c0] sm:$0xff]   ;;  %v10375_v12 = vld [vmem:[%s15522_s1 + $0x348] sm:$0xff]  }
  0x3d   :  { %8294 = vmatpush3.bf16.msra.mxu1 %v10306_v13  ;;  %8255 = vmatprep.subr.bf16.mxu0 %v10307_v14  ;;  %v10376_v13 = vld [vmem:[%s15522_s1 + $0x3c8] sm:$0xff]  }
  0x3e   :  { %8295 = vmatprep.subr.bf16.mxu1 %v10308_v15  ;;  %2332 = vmatprep.mubr.bf16.mxu0 %v10313_v19  ;;  %v10377_v14 = vld [vmem:[%s15522_s1 + $0x308] sm:$0xff]   ;;  %v10384_v19 = vld [vmem:[%s15522_s1 + $0x350] sm:$0xff]  }
  0x3f   :  { %2396 = vmatprep.mubr.bf16.mxu1 %v10316_v21  ;;  %v10378_v15 = vld [vmem:[%s15522_s1 + $0x388] sm:$0xff]   ;;  %v10386_v21 = vld [vmem:[%s15523_s0 + $0xf0] ss:$100 sps:$4 sm:$0xff]  }
  0x40   :  { %8256 = vmatpush3.bf16.msra.mxu0 %v10309_v16  ;;  %v10379_v16 = vld [vmem:[%s15523_s0 + $0xec] ss:$100 sps:$4 sm:$0xff]  }
  0x41   :  { %8296 = vmatpush3.bf16.msra.mxu1 %v10310_v17  ;;  %8321 = vmatprep.subr.bf16.mxu0 %v10317_v22  ;;  %v10381_v17 = vld [vmem:[%s15523_s0 + $0xe8] ss:$100 sps:$4 sm:$0xff]   ;;  %v10387_v22 = vld [vmem:[%s15522_s1 + $0x310] sm:$0xff]  }
  0x42   :  { %8361 = vmatprep.subr.bf16.mxu1 %v10318_v23  ;;  %v10388_v23 = vld [vmem:[%s15522_s1 + $0x390] sm:$0xff]  }
  0x43   :  { %2333 = vmatmul.mubr.bf16.vlgmr.msra.gmra.mrb[16].mxu0 %v10311_v18  ;;  %v10382_v18 = vld [vmem:[%s15523_s0 + $0xf4] ss:$100 sps:$4 sm:$0xff]  }
  0x44   :  { %2397 = vmatmul.mubr.bf16.vlgmr.msra.gmra.mrb[16].mxu1 %v10314_v20  ;;  %8322 = vmatpush3.bf16.msra.mxu0 %v10319_v24  ;;  %v10385_v20 = vld [vmem:[%s15522_s1 + $0x3d0] sm:$0xff]   ;;  %v10389_v24 = vld [vmem:[%s15522_s1 + $0x358] sm:$0xff]  }
  0x45   :  { %8362 = vmatpush3.bf16.msra.mxu1 %v10320_v25  ;;  %8323 = vmatprep.subr.bf16.mxu0 %v10321_v26  ;;  %v10390_v25 = vld [vmem:[%s15522_s1 + $0x3d8] sm:$0xff]  }
  0x46   :  { %8363 = vmatprep.subr.bf16.mxu1 %v10322_v27  ;;  %2340 = vmatprep.mubr.bf16.mxu0 %v10325_v30  ;;  %v10391_v26 = vld [vmem:[%s15522_s1 + $0x318] sm:$0xff]  }
  0x47   :  { %2404 = vmatprep.mubr.bf16.mxu1 %v10328_v32  ;;  %v10392_v27 = vld [vmem:[%s15522_s1 + $0x398] sm:$0xff]   ;;  %v10399_v32 = vld [vmem:[%s15522_s1 + $0x3e0] sm:$0xff]  }
  0x48   :  { %8324 = vmatpush3.bf16.msra.mxu0 %v10323_v28  ;;  %v10393_v28 = vld [vmem:[%s15523_s0 + $0x1b4] ss:$100 sps:$4 sm:$0xff]   ;;  %v10396_v30 = vld [vmem:[%s15523_s0 + $0x1bc] ss:$100 sps:$4 sm:$0xff]  }
  0x49   :  { %8364 = vmatpush3.bf16.msra.mxu1 %v10324_v29  ;;  %8325 = vmatprep.subr.bf16.mxu0 %v10330_v33  ;;  %v10395_v29 = vld [vmem:[%s15523_s0 + $0x1b0] ss:$100 sps:$4 sm:$0xff]   ;;  %v10400_v33 = vld [vmem:[%s15523_s0 + $0x1b8] ss:$100 sps:$4 sm:$0xff]  }
  0x4a   :  { %8365 = vmatprep.subr.bf16.mxu1 %v10331_v34  ;;  %v10401_v34 = vld [vmem:[%s15522_s1 + $0x320] sm:$0xff]  }
  0x4b   :  { %2341 = vmatmul.mubr.bf16.gmra.mrb[20].mxu0 %v10327_v31  ;;  %v10398_v31 = vld [vmem:[%s15522_s1 + $0x360] sm:$0xff]  }
  0x4c   :  { %2405 = vmatmul.mubr.bf16.gmra.mrb[20].mxu1 %v10332_v35  ;;  %8326 = vmatpush3.bf16.msra.mxu0 %v10333_v36  ;;  %v10402_v35 = vld [vmem:[%s15522_s1 + $0x3a0] sm:$0xff]   ;;  %v10403_v36 = vld [vmem:[%s15522_s1 + $0x368] sm:$0xff]  }
  0x4d   :  { %8366 = vmatpush3.bf16.msra.mxu1 %v10334_v37  ;;  %8327 = vmatprep.subr.bf16.mxu0 %v10335_v38  ;;  %v10404_v37 = vld [vmem:[%s15522_s1 + $0x3e8] sm:$0xff]  }
  0x4e   :  { %8367 = vmatprep.subr.bf16.mxu1 %v10336_v39  ;;  %2348 = vmatprep.mubr.bf16.mxu0 %v10339_v42  ;;  %v10405_v38 = vld [vmem:[%s15522_s1 + $0x328] sm:$0xff]  }
  0x4f   :  { %2412 = vmatprep.mubr.bf16.mxu1 %v10342_v44  ;;  %v10406_v39 = vld [vmem:[%s15522_s1 + $0x3a8] sm:$0xff]  }
  0x50   :  { %8328 = vmatpush3.bf16.msra.mxu0 %v10337_v40  ;;  %v497_v40 = vld [vmem:[%s15523_s0 + $0x278] sm:$0x11] }
  0x51   :  { %8368 = vmatpush3.bf16.msra.mxu1 %v10338_v41  ;;  %8329 = vmatprep.subr.bf16.mxu0 %v10344_v45  ;;  %v498_v41 = vld [vmem:[%s15523_s0 + $0x280] sm:$0x11]  ;;  %v7340_v42 = vcombine.high %v497_v40, %v497_v40  ;;  %v10410_v45 = vld [vmem:[%s15522_s1 + $0x370] sm:$0xff]  }
  0x52   :  { %8369 = vmatprep.subr.bf16.mxu1 %v10345_v46  ;;  %v7342_v44 = vcombine.high %v498_v41, %v498_v41  ;;  %v7341_v46 = vcombine.low %v498_v41, %v498_v41  ;;  %v10475_v41 = vld [vmem:[%s15523_s0 + $0x44] ss:$100 sps:$4 sm:$0xff]  }
  0x53   :  { %2349 = vmatmul.mubr.bf16.gmra.mrb[24].mxu0 %v10341_v43  ;;  %v7339_v43 = vcombine.low %v497_v40, %v497_v40  ;;  %v10473_v40 = vld [vmem:[%s15523_s0 + $0x40] ss:$100 sps:$4 sm:$0xff]  }
  0x54   :  { %2413 = vmatmul.mubr.bf16.gmra.mrb[24].mxu1 %v10346_v47  ;;  %8330 = vmatpush3.bf16.msra.mxu0 %v10347_v48  ;;  %v10411_v47 = vld [vmem:[%s15522_s1 + $0x3f0] sm:$0xff]  }
  0x55   :  { %8370 = vmatpush3.bf16.msra.mxu1 %v10348_v49  ;;  %8331 = vmatprep.subr.bf16.mxu0 %v10349_v50  ;;  %v10413_v48 = vld [vmem:[%s15522_s1 + $0x330] sm:$0xff]   ;;  %v10415_v50 = vld [vmem:[%s15522_s1 + $0x378] sm:$0xff]  }
  0x56   :  { %8371 = vmatprep.subr.bf16.mxu1 %v10350_v51  ;;  %2356 = vmatprep.mubr.bf16.mxu0 %v7336_v55  ;;  %v10414_v49 = vld [vmem:[%s15522_s1 + $0x3b0] sm:$0xff]   ;;  %v10416_v51 = vld [vmem:[%s15522_s1 + $0x3f8] sm:$0xff]  }
  0x57   :  { %2420 = vmatprep.mubr.bf16.mxu1 %v7338_v58  ;;  %v10421_v55 = vld [vmem:[%s15523_s0 + $0x34] ss:$100 sps:$4 sm:$0xff]   ;;  %v10425_v58 = vld [vmem:[%s15522_s1 + $0x440] sm:$0xff]  }
  0x58   :  { %8332 = vmatpush3.bf16.msra.mxu0 %v10351_v52  ;;  %v10417_v52 = vld [vmem:[%s15522_s1 + $0x338] sm:$0xff]  }
  0x59   :  { %8372 = vmatpush3.bf16.msra.mxu1 %v10352_v53  ;;  %8333 = vmatprep.subr.bf16.mxu0 %v10356_v59  ;;  %v10418_v53 = vld [vmem:[%s15522_s1 + $0x3b8] sm:$0xff]   ;;  %v10426_v59 = vld [vmem:[%s15522_s1 + $0x4c0] sm:$0xff]  }
  0x5a   :  { %8373 = vmatprep.subr.bf16.mxu1 %v10357_v61  ;;  %v10428_v61 = vld [vmem:[%s15522_s1 + $0x480] sm:$0xff]  }
  0x5b   :  { %2357 = vmatmul.mubr.bf16.gmra.mrb[28].mxu0 %v7335_v56  ;;  %v10422_v56 = vld [vmem:[%s15523_s0 + $0x38] ss:$100 sps:$4 sm:$0xff]  }
  0x5c   :  { %2421 = vmatmul.mubr.bf16.gmra.mrb[28].mxu1 %v7337_v60  ;;  %8334 = vmatpush3.bf16.msra.mxu0 %v10359_v62  ;;  %v10427_v60 = vld [vmem:[%s15522_s1 + $0x400] sm:$0xff]   ;;  %v10429_v62 = vld [vmem:[%s15522_s1 + $0x448] sm:$0xff]  }
  0x5d   :  { %8374 = vmatpush3.bf16.msra.mxu1 %v10360_v63  ;;  %8335 = vmatprep.subr.bf16.mxu0 %v10361_v0  ;;  %v10430_v63 = vld [vmem:[%s15522_s1 + $0x4c8] sm:$0xff]  }
  0x5e   :  { %8375 = vmatprep.subr.bf16.mxu1 %v10362_v1  ;;  %2460 = vmatprep.mubr.bf16.mxu0 %v10367_v5  ;;  %v10431_v0 = vld [vmem:[%s15522_s1 + $0x408] sm:$0xff]   ;;  %v10438_v5 = vld [vmem:[%s15522_s1 + $0x450] sm:$0xff]  }
  0x5f   :  { %2524 = vmatprep.mubr.bf16.mxu1 %v10370_v7  ;;  %v10432_v1 = vld [vmem:[%s15522_s1 + $0x488] sm:$0xff]   ;;  %v10440_v7 = vld [vmem:[%s15523_s0 + $0x100] ss:$100 sps:$4 sm:$0xff]  }
  0x60   :  { %8336 = vmatpush3.bf16.msra.mxu0 %v10363_v2  ;;  %v10433_v2 = vld [vmem:[%s15523_s0 + $0xfc] ss:$100 sps:$4 sm:$0xff]  }
  0x61   :  { %8376 = vmatpush3.bf16.msra.mxu1 %v10364_v3  ;;  %8401 = vmatprep.subr.bf16.mxu0 %v10371_v8  ;;  %v10435_v3 = vld [vmem:[%s15523_s0 + $0xf8] ss:$100 sps:$4 sm:$0xff]   ;;  %v10441_v8 = vld [vmem:[%s15522_s1 + $0x410] sm:$0xff]  }
  0x62   :  { %8441 = vmatprep.subr.bf16.mxu1 %v10372_v9  ;;  %v10442_v9 = vld [vmem:[%s15522_s1 + $0x490] sm:$0xff]  }
  0x63   :  { %2461 = vmatmul.mubr.bf16.vlgmr.msra.gmra.mrb[32].mxu0 %v10365_v4  ;;  %v10436_v4 = vld [vmem:[%s15523_s0 + $0x104] ss:$100 sps:$4 sm:$0xff]  }
  0x64   :  { %2525 = vmatmul.mubr.bf16.vlgmr.msra.gmra.mrb[32].mxu1 %v10368_v6  ;;  %8402 = vmatpush3.bf16.msra.mxu0 %v10373_v10  ;;  %v10439_v6 = vld [vmem:[%s15522_s1 + $0x4d0] sm:$0xff]   ;;  %v10443_v10 = vld [vmem:[%s15522_s1 + $0x458] sm:$0xff]  }
  0x65   :  { %8442 = vmatpush3.bf16.msra.mxu1 %v10374_v11  ;;  %8403 = vmatprep.subr.bf16.mxu0 %v10375_v12  ;;  %v10444_v11 = vld [vmem:[%s15522_s1 + $0x4d8] sm:$0xff]  }
  0x66   :  { %8443 = vmatprep.subr.bf16.mxu1 %v10376_v13  ;;  %2468 = vmatprep.mubr.bf16.mxu0 %v10379_v16  ;;  %v10445_v12 = vld [vmem:[%s15522_s1 + $0x418] sm:$0xff]   ;;  %v10450_v16 = vld [vmem:[%s15523_s0 + $0x1cc] ss:$100 sps:$4 sm:$0xff]  }
  0x67   :  { %2532 = vmatprep.mubr.bf16.mxu1 %v10382_v18  ;;  %v10446_v13 = vld [vmem:[%s15522_s1 + $0x498] sm:$0xff]   ;;  %v10453_v18 = vld [vmem:[%s15522_s1 + $0x4e0] sm:$0xff]  }
  0x68   :  { %8404 = vmatpush3.bf16.msra.mxu0 %v10377_v14  ;;  %v10447_v14 = vld [vmem:[%s15523_s0 + $0x1c4] ss:$100 sps:$4 sm:$0xff]  }
  0x69   :  { %8444 = vmatpush3.bf16.msra.mxu1 %v10378_v15  ;;  %8405 = vmatprep.subr.bf16.mxu0 %v10384_v19  ;;  %v10449_v15 = vld [vmem:[%s15523_s0 + $0x1c0] ss:$100 sps:$4 sm:$0xff]   ;;  %v10454_v19 = vld [vmem:[%s15523_s0 + $0x1c8] ss:$100 sps:$4 sm:$0xff]  }
  0x6a   :  { %8445 = vmatprep.subr.bf16.mxu1 %v10385_v20  ;;  %v10455_v20 = vld [vmem:[%s15522_s1 + $0x420] sm:$0xff]  }
  0x6b   :  { %2469 = vmatmul.mubr.bf16.gmra.mrb[36].mxu0 %v10381_v17  ;;  %v10452_v17 = vld [vmem:[%s15522_s1 + $0x460] sm:$0xff]  }
  0x6c   :  { %2533 = vmatmul.mubr.bf16.gmra.mrb[36].mxu1 %v10386_v21  ;;  %8406 = vmatpush3.bf16.msra.mxu0 %v10387_v22  ;;  %v10456_v21 = vld [vmem:[%s15522_s1 + $0x4a0] sm:$0xff]   ;;  %v10457_v22 = vld [vmem:[%s15522_s1 + $0x468] sm:$0xff]  }
  0x6d   :  { %8446 = vmatpush3.bf16.msra.mxu1 %v10388_v23  ;;  %8407 = vmatprep.subr.bf16.mxu0 %v10389_v24  ;;  %v10458_v23 = vld [vmem:[%s15522_s1 + $0x4e8] sm:$0xff]  }
  0x6e   :  { %8447 = vmatprep.subr.bf16.mxu1 %v10390_v25  ;;  %2476 = vmatprep.mubr.bf16.mxu0 %v10393_v28  ;;  %v10459_v24 = vld [vmem:[%s15522_s1 + $0x428] sm:$0xff]  }
  0x6f   :  { %2540 = vmatprep.mubr.bf16.mxu1 %v10396_v30  ;;  %v10460_v25 = vld [vmem:[%s15522_s1 + $0x4a8] sm:$0xff]  }
  0x70   :  { %8408 = vmatpush3.bf16.msra.mxu0 %v10391_v26  ;;  %v499_v26 = vld [vmem:[%s15523_s0 + $0x288] sm:$0x11] }
  0x71   :  { %8448 = vmatpush3.bf16.msra.mxu1 %v10392_v27  ;;  %8409 = vmatprep.subr.bf16.mxu0 %v10398_v31  ;;  %v500_v27 = vld [vmem:[%s15523_s0 + $0x290] sm:$0x11]  ;;  %v7344_v28 = vcombine.high %v499_v26, %v499_v26 }
  0x72   :  { %8449 = vmatprep.subr.bf16.mxu1 %v10399_v32  ;;  %v7346_v30 = vcombine.high %v500_v27, %v500_v27  ;;  %v10464_v31 = vld [vmem:[%s15522_s1 + $0x470] sm:$0xff]   ;;  %v7345_v32 = vcombine.low %v500_v27, %v500_v27 }
  0x73   :  { %2477 = vmatmul.mubr.bf16.gmra.mrb[40].mxu0 %v10395_v29  ;;  %v7343_v29 = vcombine.low %v499_v26, %v499_v26  ;;  %v10527_v26 = vld [vmem:[%s15523_s0 + $0x50] ss:$100 sps:$4 sm:$0xff]  }
  0x74   :  { %2541 = vmatmul.mubr.bf16.gmra.mrb[40].mxu1 %v10400_v33  ;;  %8410 = vmatpush3.bf16.msra.mxu0 %v10401_v34  ;;  %v10465_v33 = vld [vmem:[%s15522_s1 + $0x4f0] sm:$0xff]  }
  0x75   :  { %8450 = vmatpush3.bf16.msra.mxu1 %v10402_v35  ;;  %8411 = vmatprep.subr.bf16.mxu0 %v10403_v36  ;;  %v10467_v34 = vld [vmem:[%s15522_s1 + $0x430] sm:$0xff]   ;;  %v10469_v36 = vld [vmem:[%s15522_s1 + $0x478] sm:$0xff]  }
  0x76   :  { %8451 = vmatprep.subr.bf16.mxu1 %v10404_v37  ;;  %2484 = vmatprep.mubr.bf16.mxu0 %v7340_v42  ;;  %v10468_v35 = vld [vmem:[%s15522_s1 + $0x4b0] sm:$0xff]   ;;  %v10470_v37 = vld [vmem:[%s15522_s1 + $0x4f8] sm:$0xff]   ;;  %v10476_v42 = vld [vmem:[%s15523_s0 + $0x48] ss:$100 sps:$4 sm:$0xff]  }
  0x77   :  { %2548 = vmatprep.mubr.bf16.mxu1 %v7342_v44  ;;  %v10479_v44 = vld [vmem:[%s15522_s1 + $0x540] sm:$0xff]   ;;  %v10529_v27 = vld [vmem:[%s15523_s0 + $0x54] ss:$100 sps:$4 sm:$0xff]  }
  0x78   :  { %8412 = vmatpush3.bf16.msra.mxu0 %v10405_v38  ;;  %v10471_v38 = vld [vmem:[%s15522_s1 + $0x438] sm:$0xff]  }
  0x79   :  { %8452 = vmatpush3.bf16.msra.mxu1 %v10406_v39  ;;  %8413 = vmatprep.subr.bf16.mxu0 %v10410_v45  ;;  %v10472_v39 = vld [vmem:[%s15522_s1 + $0x4b8] sm:$0xff]   ;;  %v10480_v45 = vld [vmem:[%s15522_s1 + $0x5c0] sm:$0xff]  }
  0x7a   :  { %8453 = vmatprep.subr.bf16.mxu1 %v10411_v47  ;;  %v10482_v47 = vld [vmem:[%s15522_s1 + $0x580] sm:$0xff]  }
  0x7b   :  { %2485 = vmatmul.mubr.bf16.gmra.mrb[44].mxu0 %v7339_v43  ;;  %v10478_v43 = vld [vmem:[%s15523_s0 + $0x4c] ss:$100 sps:$4 sm:$0xff]  }
  0x7c   :  { %2549 = vmatmul.mubr.bf16.gmra.mrb[44].mxu1 %v7341_v46  ;;  %8414 = vmatpush3.bf16.msra.mxu0 %v10413_v48  ;;  %v10481_v46 = vld [vmem:[%s15522_s1 + $0x500] sm:$0xff]   ;;  %v10483_v48 = vld [vmem:[%s15522_s1 + $0x548] sm:$0xff]  }
  0x7d   :  { %8454 = vmatpush3.bf16.msra.mxu1 %v10414_v49  ;;  %8415 = vmatprep.subr.bf16.mxu0 %v10415_v50  ;;  %v10484_v49 = vld [vmem:[%s15522_s1 + $0x5c8] sm:$0xff]  }
  0x7e   :  { %8455 = vmatprep.subr.bf16.mxu1 %v10416_v51  ;;  %2588 = vmatprep.mubr.bf16.mxu0 %v10421_v55  ;;  %v10485_v50 = vld [vmem:[%s15522_s1 + $0x508] sm:$0xff]   ;;  %v10492_v55 = vld [vmem:[%s15522_s1 + $0x550] sm:$0xff]  }
  0x7f   :  { %2652 = vmatprep.mubr.bf16.mxu1 %v10424_v57  ;;  %v10486_v51 = vld [vmem:[%s15522_s1 + $0x588] sm:$0xff]   ;;  %v10494_v57 = vld [vmem:[%s15523_s0 + $0x110] ss:$100 sps:$4 sm:$0xff]  }
  0x80   :  { %8416 = vmatpush3.bf16.msra.mxu0 %v10417_v52  ;;  %v10487_v52 = vld [vmem:[%s15523_s0 + $0x10c] ss:$100 sps:$4 sm:$0xff]  }
  0x81   :  { %8456 = vmatpush3.bf16.msra.mxu1 %v10418_v53  ;;  %8481 = vmatprep.subr.bf16.mxu0 %v10425_v58  ;;  %v10489_v53 = vld [vmem:[%s15523_s0 + $0x108] ss:$100 sps:$4 sm:$0xff]   ;;  %v10495_v58 = vld [vmem:[%s15522_s1 + $0x510] sm:$0xff]  }
  0x82   :  { %8521 = vmatprep.subr.bf16.mxu1 %v10426_v59  ;;  %v10496_v59 = vld [vmem:[%s15522_s1 + $0x590] sm:$0xff]  }
  0x83   :  { %2589 = vmatmul.mubr.bf16.vlgmr.msra.gmra.mrb[48].mxu0 %v10419_v54  ;;  %v10490_v54 = vld [vmem:[%s15523_s0 + $0x114] ss:$100 sps:$4 sm:$0xff]  }
  0x84   :  { %2653 = vmatmul.mubr.bf16.vlgmr.msra.gmra.mrb[48].mxu1 %v10422_v56  ;;  %8482 = vmatpush3.bf16.msra.mxu0 %v10427_v60  ;;  %v10493_v56 = vld [vmem:[%s15522_s1 + $0x5d0] sm:$0xff]   ;;  %v10497_v60 = vld [vmem:[%s15522_s1 + $0x558] sm:$0xff]  }
  0x85   :  { %8522 = vmatpush3.bf16.msra.mxu1 %v10428_v61  ;;  %8483 = vmatprep.subr.bf16.mxu0 %v10429_v62  ;;  %v10498_v61 = vld [vmem:[%s15522_s1 + $0x5d8] sm:$0xff]  }
  0x86   :  { %8523 = vmatprep.subr.bf16.mxu1 %v10430_v63  ;;  %2596 = vmatprep.mubr.bf16.mxu0 %v10433_v2  ;;  %v10499_v62 = vld [vmem:[%s15522_s1 + $0x518] sm:$0xff]  }
  0x87   :  { %2660 = vmatprep.mubr.bf16.mxu1 %v10436_v4  ;;  %v10500_v63 = vld [vmem:[%s15522_s1 + $0x598] sm:$0xff]   ;;  %v10507_v4 = vld [vmem:[%s15522_s1 + $0x5e0] sm:$0xff]  }
  0x88   :  { %8484 = vmatpush3.bf16.msra.mxu0 %v10431_v0  ;;  %v10501_v0 = vld [vmem:[%s15523_s0 + $0x1d4] ss:$100 sps:$4 sm:$0xff]   ;;  %v10504_v2 = vld [vmem:[%s15523_s0 + $0x1dc] ss:$100 sps:$4 sm:$0xff]  }
  0x89   :  { %8524 = vmatpush3.bf16.msra.mxu1 %v10432_v1  ;;  %8485 = vmatprep.subr.bf16.mxu0 %v10438_v5  ;;  %v10503_v1 = vld [vmem:[%s15523_s0 + $0x1d0] ss:$100 sps:$4 sm:$0xff]   ;;  %v10508_v5 = vld [vmem:[%s15523_s0 + $0x1d8] ss:$100 sps:$4 sm:$0xff]  }
  0x8a   :  { %8525 = vmatprep.subr.bf16.mxu1 %v10439_v6  ;;  %v10509_v6 = vld [vmem:[%s15522_s1 + $0x520] sm:$0xff]  }
  0x8b   :  { %2597 = vmatmul.mubr.bf16.gmra.mrb[52].mxu0 %v10435_v3  ;;  %v10506_v3 = vld [vmem:[%s15522_s1 + $0x560] sm:$0xff]  }
  0x8c   :  { %2661 = vmatmul.mubr.bf16.gmra.mrb[52].mxu1 %v10440_v7  ;;  %8486 = vmatpush3.bf16.msra.mxu0 %v10441_v8  ;;  %v10510_v7 = vld [vmem:[%s15522_s1 + $0x5a0] sm:$0xff]   ;;  %v10511_v8 = vld [vmem:[%s15522_s1 + $0x568] sm:$0xff]  }
  0x8d   :  { %8526 = vmatpush3.bf16.msra.mxu1 %v10442_v9  ;;  %8487 = vmatprep.subr.bf16.mxu0 %v10443_v10  ;;  %v10512_v9 = vld [vmem:[%s15522_s1 + $0x5e8] sm:$0xff]  }
  0x8e   :  { %8527 = vmatprep.subr.bf16.mxu1 %v10444_v11  ;;  %2604 = vmatprep.mubr.bf16.mxu0 %v10447_v14  ;;  %v10513_v10 = vld [vmem:[%s15522_s1 + $0x528] sm:$0xff]  }
  0x8f   :  { %2668 = vmatprep.mubr.bf16.mxu1 %v10450_v16  ;;  %v10514_v11 = vld [vmem:[%s15522_s1 + $0x5a8] sm:$0xff]  }
  0x90   :  { %8488 = vmatpush3.bf16.msra.mxu0 %v10445_v12  ;;  %v501_v12 = vld [vmem:[%s15523_s0 + $0x298] sm:$0x11] }
  0x91   :  { %8528 = vmatpush3.bf16.msra.mxu1 %v10446_v13  ;;  %8489 = vmatprep.subr.bf16.mxu0 %v10452_v17  ;;  %v7348_v13 = vcombine.high %v501_v12, %v501_v12  ;;  %v7347_v14 = vcombine.low %v501_v12, %v501_v12  ;;  %v10518_v17 = vld [vmem:[%s15522_s1 + $0x570] sm:$0xff]   ;;  %v10557_v12 = vld [vmem:[%s15523_s0 + $0x60] ss:$100 sps:$4 sm:$0xff]  }
  0x92   :  { %8529 = vmatprep.subr.bf16.mxu1 %v10453_v18 }
  0x93   :  { %2605 = vmatmul.mubr.bf16.gmra.mrb[56].mxu0 %v10449_v15  ;;  %v502_v15 = vld [vmem:[%s15523_s0 + $0x2a0] sm:$0x11] }
  0x94   :  { %2669 = vmatmul.mubr.bf16.gmra.mrb[56].mxu1 %v10454_v19  ;;  %8490 = vmatpush3.bf16.msra.mxu0 %v10455_v20  ;;  %v7350_v16 = vcombine.high %v502_v15, %v502_v15  ;;  %v7349_v18 = vcombine.low %v502_v15, %v502_v15  ;;  %v10519_v19 = vld [vmem:[%s15522_s1 + $0x5f0] sm:$0xff]   ;;  %v10980_v15 = vld [vmem:[%s15522_s1 + $0x28] sm:$0xff]  }
  0x95   :  { %8530 = vmatpush3.bf16.msra.mxu1 %v10456_v21  ;;  %8491 = vmatprep.subr.bf16.mxu0 %v10457_v22  ;;  %v10521_v20 = vld [vmem:[%s15522_s1 + $0x530] sm:$0xff]   ;;  %v10523_v22 = vld [vmem:[%s15522_s1 + $0x578] sm:$0xff]  }
  0x96   :  { %8531 = vmatprep.subr.bf16.mxu1 %v10458_v23  ;;  %2612 = vmatprep.mubr.bf16.mxu0 %v7344_v28  ;;  %v10522_v21 = vld [vmem:[%s15522_s1 + $0x5b0] sm:$0xff]   ;;  %v10524_v23 = vld [vmem:[%s15522_s1 + $0x5f8] sm:$0xff]  }
  0x97   :  { %2676 = vmatprep.mubr.bf16.mxu1 %v7346_v30  ;;  %v10530_v28 = vld [vmem:[%s15523_s0 + $0x58] ss:$100 sps:$4 sm:$0xff]   ;;  %v10533_v30 = vld [vmem:[%s15522_s1 + $0x600] sm:$0xff]  }
  0x98   :  { %8492 = vmatpush3.bf16.msra.mxu0 %v10459_v24  ;;  %v10525_v24 = vld [vmem:[%s15522_s1 + $0x538] sm:$0xff]  }
  0x99   :  { %8532 = vmatpush3.bf16.msra.mxu1 %v10460_v25  ;;  %8493 = vmatprep.subr.bf16.mxu0 %v10464_v31  ;;  %v10526_v25 = vld [vmem:[%s15522_s1 + $0x5b8] sm:$0xff]   ;;  %v10969_v31 = vld [vmem:[%s15522_s1 + $0x40] sm:$0xff]  }
  0x9a   :  { %8533 = vmatprep.subr.bf16.mxu1 %v10465_v33  ;;  %v10535_v33 = vld [vmem:[%s15523_s0 + $0x11c] ss:$100 sps:$4 sm:$0xff]  }
  0x9b   :  { %2613 = vmatmul.mubr.bf16.gmra.mrb[60].mxu0 %v7343_v29  ;;  %v10532_v29 = vld [vmem:[%s15523_s0 + $0x5c] ss:$100 sps:$4 sm:$0xff]  }
  0x9c   :  { %2677 = vmatmul.mubr.bf16.gmra.mrb[60].mxu1 %v7345_v32  ;;  %8494 = vmatpush3.bf16.msra.mxu0 %v10467_v34  ;;  %v10534_v32 = vld [vmem:[%s15522_s1 + $0x608] sm:$0xff]   ;;  %v10970_v34 = vld [vmem:[%s15522_s1] sm:$0xff]  }
  0x9d   :  { %8534 = vmatpush3.bf16.msra.mxu1 %v10468_v35  ;;  %8495 = vmatprep.subr.bf16.mxu0 %v10469_v36  ;;  %v10971_v35 = vld [vmem:[%s15522_s1 + $0x48] sm:$0xff]  }
  0x9e   :  { %8535 = vmatprep.subr.bf16.mxu1 %v10470_v37  ;;  %2716 = vmatprep.mubr.bf16.mxu0 %v10475_v41  ;;  %v10538_v36 = vld [vmem:[%s15523_s0 + $0x124] ss:$100 sps:$4 sm:$0xff]   ;;  %v10537_v37 = vld [vmem:[%s15523_s0 + $0x118] ss:$100 sps:$4 sm:$0xff]  }
  0x9f   :  { %2780 = vmatprep.mubr.bf16.mxu1 %v10478_v43  ;;  %v10542_v41 = vld [vmem:[%s15522_s1 + $0x618] sm:$0xff]   ;;  %v10973_v43 = vld [vmem:[%s15522_s1 + $0x50] sm:$0xff]  }
  0xa0   :  { %8496 = vmatpush3.bf16.msra.mxu0 %v10471_v38  ;;  %v10540_v38 = vld [vmem:[%s15522_s1 + $0x610] sm:$0xff]  }
  0xa1   :  { %8536 = vmatpush3.bf16.msra.mxu1 %v10472_v39  ;;  %8561 = vmatprep.subr.bf16.mxu0 %v10479_v44  ;;  %v10541_v39 = vld [vmem:[%s15523_s0 + $0x120] ss:$100 sps:$4 sm:$0xff]   ;;  %v10546_v44 = vld [vmem:[%s15523_s0 + $0x1ec] ss:$100 sps:$4 sm:$0xff]  }
  0xa2   :  { %8601 = vmatprep.subr.bf16.mxu1 %v10480_v45 }
  0xa3   :  { %2717 = vmatmul.mubr.bf16.vlgmr.msra.gmra.mrb[64].mxu0 %v10473_v40  ;;  %v10972_v40 = vld [vmem:[%s15522_s1 + $0x8] sm:$0xff]  }
  0xa4   :  { %2781 = vmatmul.mubr.bf16.vlgmr.msra.gmra.mrb[64].mxu1 %v10476_v42  ;;  %8562 = vmatpush3.bf16.msra.mxu0 %v10481_v46  ;;  %v10543_v42 = vld [vmem:[%s15523_s0 + $0x1e4] ss:$100 sps:$4 sm:$0xff]   ;;  %v10974_v46 = vld [vmem:[%s15522_s1 + $0x10] sm:$0xff]  }
  0xa5   :  { %8602 = vmatpush3.bf16.msra.mxu1 %v10482_v47  ;;  %8563 = vmatprep.subr.bf16.mxu0 %v10483_v48  ;;  %v10545_v47 = vld [vmem:[%s15523_s0 + $0x1e0] ss:$100 sps:$4 sm:$0xff]   ;;  %v503_v48 = vld [vmem:[%s15523_s0 + $0x2a8] sm:$0x11] }
  0xa6   :  { %8603 = vmatprep.subr.bf16.mxu1 %v10484_v49  ;;  %2724 = vmatprep.mubr.bf16.mxu0 %v10487_v52  ;;  %v10549_v52 = vld [vmem:[%s15523_s0 + $0x1e8] ss:$100 sps:$4 sm:$0xff]  }
  0xa7   :  { %2788 = vmatprep.mubr.bf16.mxu1 %v10490_v54 }
  0xa8   :  { %8564 = vmatpush3.bf16.msra.mxu0 %v10485_v50  ;;  %v10975_v50 = vld [vmem:[%s15522_s1 + $0x58] sm:$0xff]  }
  0xa9   :  { %8604 = vmatpush3.bf16.msra.mxu1 %v10486_v51  ;;  %8565 = vmatprep.subr.bf16.mxu0 %v10492_v55  ;;  %v10548_v51 = vld [vmem:[%s15522_s1 + $0x620] sm:$0xff]  }
  0xaa   :  { %8605 = vmatprep.subr.bf16.mxu1 %v10493_v56  ;;  %v7352_v56 = vcombine.high %v503_v48, %v503_v48 }
  0xab   :  { %2725 = vmatmul.mubr.bf16.gmra.mrb[68].mxu0 %v10489_v53 }
  0xac   :  { %2789 = vmatmul.mubr.bf16.gmra.mrb[68].mxu1 %v10494_v57  ;;  %8566 = vmatpush3.bf16.msra.mxu0 %v10495_v58  ;;  %v504_v57 = vld [vmem:[%s15523_s0 + $0x2b0] sm:$0x11] }
  0xad   :  { %8606 = vmatpush3.bf16.msra.mxu1 %v10496_v59  ;;  %8567 = vmatprep.subr.bf16.mxu0 %v10497_v60  ;;  %v10976_v59 = vld [vmem:[%s15522_s1 + $0x18] sm:$0xff]   ;;  %v10977_v60 = vld [vmem:[%s15522_s1 + $0x60] sm:$0xff]  }
  0xae   :  { %8607 = vmatprep.subr.bf16.mxu1 %v10498_v61  ;;  %2732 = vmatprep.mubr.bf16.mxu0 %v10501_v0  ;;  %v10550_v61 = vld [vmem:[%s15522_s1 + $0x628] sm:$0xff]  }
  0xaf   :  { %2796 = vmatprep.mubr.bf16.mxu1 %v10504_v2 }
  0xb0   :  { %8568 = vmatpush3.bf16.msra.mxu0 %v10499_v62 }
  0xb1   :  { %8608 = vmatpush3.bf16.msra.mxu1 %v10500_v63  ;;  %8569 = vmatprep.subr.bf16.mxu0 %v10506_v3  ;;  %v10978_v3 = vld [vmem:[%s15522_s1 + $0x20] sm:$0xff]  }
  0xb2   :  { %8609 = vmatprep.subr.bf16.mxu1 %v10507_v4 }
  0xb3   :  { %2733 = vmatmul.mubr.bf16.gmra.mrb[72].mxu0 %v10503_v1  ;;  %v7354_v1 = vcombine.high %v504_v57, %v504_v57 }
  0xb4   :  { %2797 = vmatmul.mubr.bf16.gmra.mrb[72].mxu1 %v10508_v5  ;;  %8570 = vmatpush3.bf16.msra.mxu0 %v10509_v6  ;;  %v10979_v5 = vld [vmem:[%s15522_s1 + $0x68] sm:$0xff]   ;;  %v10554_v6 = vld [vmem:[%s15522_s1 + $0x630] sm:$0xff]  }
  0xb5   :  { %8610 = vmatpush3.bf16.msra.mxu1 %v10510_v7  ;;  %8571 = vmatprep.subr.bf16.mxu0 %v10511_v8 }
  0xb6   :  { %8611 = vmatprep.subr.bf16.mxu1 %v10512_v9  ;;  %2740 = vmatprep.mubr.bf16.mxu0 %v7348_v13  ;;  %v7351_v9 = vcombine.low %v503_v48, %v503_v48 }
  0xb7   :  { %2804 = vmatprep.mubr.bf16.mxu1 %v7350_v16 }
  0xb8   :  { %8572 = vmatpush3.bf16.msra.mxu0 %v10513_v10 }
  0xb9   :  { %8612 = vmatpush3.bf16.msra.mxu1 %v10514_v11  ;;  %8573 = vmatprep.subr.bf16.mxu0 %v10518_v17  ;;  %v7353_v11 = vcombine.low %v504_v57, %v504_v57  ;;  %v10563_v57 = vld [vmem:[%s15523_s0 + $0x2b8] ss:$0 sps:$4 sm:$0x11]  }
  0xba   :  { %8613 = vmatprep.subr.bf16.mxu1 %v10519_v19 }
  0xbb   :  { %2741 = vmatmul.mubr.bf16.gmra.mrb[76].mxu0 %v7347_v14 }
  0xbc   :  { %2805 = vmatmul.mubr.bf16.gmra.mrb[76].mxu1 %v7349_v18  ;;  %8574 = vmatpush3.bf16.msra.mxu0 %v10521_v20  ;;  %v10981_v20 = vld [vmem:[%s15522_s1 + $0x70] sm:$0xff]  }
  0xbd   :  { %8614 = vmatpush3.bf16.msra.mxu1 %v10522_v21  ;;  %8575 = vmatprep.subr.bf16.mxu0 %v10523_v22  ;;  %v10556_v21 = vld [vmem:[%s15522_s1 + $0x638] sm:$0xff]  }
  0xbe   :  { %8615 = vmatprep.subr.bf16.mxu1 %v10524_v23  ;;  %2844 = vmatprep.mubr.bf16.mxu0 %v10529_v27 }
  0xbf   :  { %2908 = vmatprep.mubr.bf16.mxu1 %v10532_v29 }
  0xc0   :  { %8576 = vmatpush3.bf16.msra.mxu0 %v10525_v24 }
  0xc1   :  { %8616 = vmatpush3.bf16.msra.mxu1 %v10526_v25  ;;  %10129 = vmatprep.subr.bf16.mxu0 %v10533_v30  ;;  %v10561_v25 = vld [vmem:[%s15523_s0 + $0x2c0] ss:$100 sps:$4 sm:$0xff]  }
  0xc2   :  { %8653 = vmatprep.subr.bf16.mxu1 %v10969_v31  ;;  %v10983_v31 = vld [vmem:[%s15522_s1 + $0x78] sm:$0xff]  }
  0xc3   :  { %2845 = vmatmul.mubr.bf16.vlgmr.msra.gmra.mrb[80].mxu0 %v10527_v26 }
  0xc4   :  { %2909 = vmatmul.mubr.bf16.vlgmr.msra.gmra.mrb[80].mxu1 %v10530_v28  ;;  %10130 = vmatpush3.bf16.msra.mxu0 %v10533_v30  ;;  %v10982_v30 = vld [vmem:[%s15522_s1 + $0x30] sm:$0xff]  }
  0xc5   :  { %8654 = vmatpush3.bf16.msra.mxu1 %v10970_v34  ;;  %10131 = vmatprep.subr.bf16.mxu0 %v10534_v32  ;;  %v10559_v34 = vld [vmem:[%s15523_s0 + $0x2bc] ss:$100 sps:$4 sm:$0xff]  }
  0xc6   :  { %8655 = vmatprep.subr.bf16.mxu1 %v10971_v35  ;;  %2852 = vmatprep.mubr.bf16.mxu0 %v10535_v33  ;;  %v10558_v33 = vld [vmem:[%s15523_s0 + $0x128] ss:$100 sps:$4 sm:$0xff]  }
  0xc7   :  { %2916 = vmatprep.mubr.bf16.mxu1 %v10538_v36  ;;  %v10984_v36 = vld [vmem:[%s15522_s1 + $0x38] sm:$0xff]  }
  0xc8   :  { %10132 = vmatpush3.bf16.msra.mxu0 %v10534_v32 }
  0xc9   :  { %8656 = vmatpush3.bf16.msra.mxu1 %v10972_v40  ;;  %10133 = vmatprep.subr.bf16.mxu0 %v10540_v38  ;;  %v10986_v40 = vld [vmem:[%s15522_s1 + $0x140] sm:$0xff]  }
  0xca   :  { %8657 = vmatprep.subr.bf16.mxu1 %v10973_v43 }
  0xcb   :  { %2853 = vmatmul.mubr.bf16.gmra.mrb[84].mxu0 %v10537_v37 }
  0xcc   :  { %2917 = vmatmul.mubr.bf16.gmra.mrb[84].mxu1 %v10541_v39  ;;  %2860 = vmatprep.mubr.bf16.mxu0 %v10543_v42  ;;  %v10985_v39 = vld [vmem:[%s15522_s1 + $0xc0] sm:$0xff]  }
  0xcd   :  { %10134 = vmatpush3.bf16.msra.mxu0 %v10540_v38  ;;  %8658 = vmatpush3.bf16.msra.mxu1 %v10974_v46 }
  0xce   :  { %10135 = vmatprep.subr.bf16.mxu0 %v10542_v41  ;;  %8659 = vmatprep.subr.bf16.mxu1 %v10975_v50 }
  0xcf   :  { %2924 = vmatprep.mubr.bf16.mxu1 %v10546_v44 }
  0xd1   :  { %10136 = vmatpush3.bf16.msra.mxu0 %v10542_v41  ;;  %8660 = vmatpush3.bf16.msra.mxu1 %v10976_v59  ;;  %v10562_v41 = vld [vmem:[%s15523_s0 + $0x1f0] ss:$100 sps:$4 sm:$0xff]   ;;  %v10566_v59 = vld [vmem:[%s15523_s0 + $0x384] ss:$100 sps:$4 sm:$0xff]  }
  0xd2   :  { %10137 = vmatprep.subr.bf16.mxu0 %v10548_v51  ;;  %8661 = vmatprep.subr.bf16.mxu1 %v10977_v60  ;;  %v10991_v60 = vld [vmem:[%s15522_s1 + $0x88] sm:$0xff]  }
  0xd3   :  { %2861 = vmatmul.mubr.bf16.gmra.mrb[88].mxu0 %v10545_v47 }
  0xd4   :  { %2925 = vmatmul.mubr.bf16.gmra.mrb[88].mxu1 %v10549_v52  ;;  %2868 = vmatprep.mubr.bf16.mxu0 %v7352_v56  ;;  %v10988_v52 = vld [vmem:[%s15522_s1 + $0x100] sm:$0xff]   ;;  %v10990_v56 = vld [vmem:[%s15522_s1 + $0x148] sm:$0xff]  }
  0xd5   :  { %10138 = vmatpush3.bf16.msra.mxu0 %v10548_v51  ;;  %8662 = vmatpush3.bf16.msra.mxu1 %v10978_v3  ;;  %v10987_v51 = vld [vmem:[%s15522_s1 + $0x80] sm:$0xff]  }
  0xd6   :  { %10139 = vmatprep.subr.bf16.mxu0 %v10550_v61  ;;  %8663 = vmatprep.subr.bf16.mxu1 %v10979_v5 }
  0xd7   :  { %2932 = vmatprep.mubr.bf16.mxu1 %v7354_v1  ;;  %v10567_v1 = vld [vmem:[%s15523_s0 + $0x450] ss:$100 sps:$4 sm:$0xff]  }
  0xd9   :  { %10140 = vmatpush3.bf16.msra.mxu0 %v10550_v61  ;;  %8664 = vmatpush3.bf16.msra.mxu1 %v10980_v15  ;;  %v10992_v61 = vld [vmem:[%s15522_s1 + $0x108] sm:$0xff]  }
  0xda   :  { %10141 = vmatprep.subr.bf16.mxu0 %v10554_v6  ;;  %8665 = vmatprep.subr.bf16.mxu1 %v10981_v20  ;;  %v7634_v20 = vld [vmem:[%s15523_s0 + $0x514] sm:$0x11] }
  0xdb   :  { %2869 = vmatmul.mubr.bf16.gmra.mrb[92].mxu0 %v7351_v9 }
  0xdc   :  { %2933 = vmatmul.mubr.bf16.gmra.mrb[92].mxu1 %v7353_v11  ;;  %10145 = vmatprep.mubr.bf16.mxu0 %v10557_v12 }
  0xdd   :  { %10142 = vmatpush3.bf16.msra.mxu0 %v10554_v6  ;;  %8666 = vmatpush3.bf16.msra.mxu1 %v10982_v30 }
  0xde   :  { %10143 = vmatprep.subr.bf16.mxu0 %v10556_v21  ;;  %8667 = vmatprep.subr.bf16.mxu1 %v10983_v31 }
  0xdf   :  { %3594 = vmatprep.mubr.bf16.mxu1 %v10561_v25  ;;  %v7723_v25 = vcombine.high %v7634_v20, %v7634_v20 }
  0xe1   :  { %10144 = vmatpush3.bf16.msra.mxu0 %v10556_v21  ;;  %8668 = vmatpush3.bf16.msra.mxu1 %v10984_v36  ;;  %v10999_v21 = vld [vmem:[%s15522_s1 + $0x98] sm:$0xff]  }
  0xe2   :  { %8693 = vmatprep.subr.bf16.mxu0 %v10985_v39  ;;  %8733 = vmatprep.subr.bf16.mxu1 %v10986_v40 }
  0xe4   :  { %10146 = vmatmul.mubr.bf16.vlgmr.msra.gmra.mrb[96].mxu0 %v10558_v33  ;;  %3595 = vmatmul.mubr.bf16.vlgmr.msra.gmra.mrb[96].mxu1 %v10559_v34  ;;  %v11005_v33 = vld [vmem:[%s15522_s1 + $0xe8] sm:$0xff]  }
  0xe5   :  { %8694 = vmatpush3.bf16.msra.mxu0 %v10987_v51  ;;  %8734 = vmatpush3.bf16.msra.mxu1 %v10988_v52  ;;  %v11006_v34 = vld [vmem:[%s15522_s1 + $0x168] sm:$0xff]   ;;  %v10577_v51 = vld [vmem:[%s15523_s0 + $0x2d0] ss:$100 sps:$4 sm:$0xff]  }
  0xe6   :  { %8735 = vmatprep.subr.bf16.mxu1 %v10990_v56  ;;  %10149 = vmatprep.mubr.bf16.mxu0 %v10562_v41  ;;  %v7722_v41 = vcombine.low %v7634_v20, %v7634_v20  ;;  %v11014_v56 = vld [vmem:[%s15522_s1 + $0x178] sm:$0xff]   ;;  %v11019_v20 = vld [vmem:[%s15522_s1 + $0x180] sm:$0xff]  }
  0xe9   :  { %8736 = vmatpush3.bf16.msra.mxu1 %v10992_v61 }
  0xec   :  { %10150 = vmatmul.mubr.bf16.gmra.mrb[100].mxu0 %v10563_v57  ;;  %v10572_v57 = vld [vmem:[%s15523_s0 + $0x2c4] ss:$100 sps:$4 sm:$0xff]  }
  0xf6   :  { %v8177_v45 = vpop.f32.mrb[0].mxu0 }
  0xf7   :  { %v8217_v49 = vpop.f32.mrb[0].mxu1  ;;  %v8178_v53 = vpop.f32.mrb[1].mxu0 }
  0xf8   :  { %v8179_v54 = vadd.f32 %v8178_v53, %v8177_v45  ;;  %v8218_v55 = vpop.f32.mrb[1].mxu1  ;;  %v8180_v63 = vpop.f32.mrb[2].mxu0  ;;  %v10564_v45 = vld [vmem:[%s15523_s0 + $0x388] ss:$100 sps:$4 sm:$0xff]  }
  0xf9   :  { %v8219_v58 = vadd.f32 %v8218_v55, %v8217_v49  ;;  %v8220_v0 = vpop.f32.mrb[2].mxu1  ;;  %v8181_v2 = vpop.f32.mrb[3].mxu0  ;;  %v10989_v55 = vld [vmem:[%s15522_s1 + $0xc8] sm:$0xff]   ;;  %3602 = vmatprep.mubr.bf16.mxu1 %v10564_v45 }
  0xfa   :  { %v8182_v4 = vadd.f32 %v8181_v2, %v8180_v63  ;;  %v8221_v7 = vpop.f32.mrb[3].mxu1  ;;  %8695 = vmatprep.subr.bf16.mxu0 %v10989_v55  ;;  %v10993_v63 = vld [vmem:[%s15522_s1 + $0xd0] sm:$0xff]   ;;  %v10574_v2 = vld [vmem:[%s15523_s0 + $0x2c8] ss:$100 sps:$4 sm:$0xff]   ;;  %3603 = vmatmul.mubr.bf16.gmra.mrb[100].mxu1 %v10566_v59 }
  0xfb   :  { %v12462_v62 = vadd.f32 %v8219_v58, %v8179_v54  ;;  %v8222_v10 = vadd.f32 %v8221_v7, %v8220_v0  ;;  %8696 = vmatpush3.bf16.msra.mxu0 %v10991_v60  ;;  %v10994_v0 = vld [vmem:[%s15522_s1 + $0x150] sm:$0xff]   ;;  %3610 = vmatprep.mubr.bf16.mxu1 %v10567_v1  ;;  %v11007_v45 = vld [vmem:[%s15522_s1 + $0xa8] sm:$0xff]  }
  0xfc   :  { %8697 = vmatprep.subr.bf16.mxu0 %v10993_v63  ;;  %8737 = vmatprep.subr.bf16.mxu1 %v10994_v0  ;;  %v10995_v7 = vld [vmem:[%s15522_s1 + $0x90] sm:$0xff]  }
  0xfd   :  { %v12479_v16 = vadd.f32 %v8222_v10, %v8182_v4  ;;  %3658 = vmatprep.mubr.bf16.mxu0 %v10574_v2  ;;  %v11012_v55 = vld [vmem:[%s15522_s1 + $0x130] sm:$0xff]   ;;  %v11015_v2 = vld [vmem:[%s15522_s1 + $0xb8] sm:$0xff]  }
  0xfe   :  { %v8183_v8 = vpop.f32.mrb[4].mxu0  ;;  %v10575_v59 = vld [vmem:[%s15523_s0 + $0x2cc] ss:$100 sps:$4 sm:$0xff]  }
  0xff   :  { %v8223_v13 = vpop.f32.mrb[4].mxu1  ;;  %v8184_v14 = vpop.f32.mrb[5].mxu0  ;;  %8698 = vmatpush3.bf16.msra.mxu0 %v10995_v7  ;;  %v11018_v7 = vld [vmem:[%s15522_s1 + $0x240] sm:$0xff]  }
 0x100   :  { %v8185_v17 = vadd.f32 %v8184_v14, %v8183_v8  ;;  %v8224_v18 = vpop.f32.mrb[5].mxu1  ;;  %v8186_v19 = vpop.f32.mrb[6].mxu0  ;;  %v10996_v8 = vld [vmem:[%s15522_s1 + $0x110] sm:$0xff]   ;;  %v10998_v14 = vld [vmem:[%s15522_s1 + $0x158] sm:$0xff]  }
 0x101   :  { %v8225_v22 = vadd.f32 %v8224_v18, %v8223_v13  ;;  %v8226_v23 = vpop.f32.mrb[6].mxu1  ;;  %v8187_v24 = vpop.f32.mrb[7].mxu0  ;;  %8738 = vmatpush3.bf16.msra.mxu1 %v10996_v8  ;;  %v10997_v13 = vld [vmem:[%s15522_s1 + $0xd8] sm:$0xff]   ;;  %v10578_v8 = vld [vmem:[%s15523_s0 + $0x390] ss:$100 sps:$4 sm:$0xff]  }
 0x102   :  { %v8188_v26 = vadd.f32 %v8187_v24, %v8186_v19  ;;  %v8227_v27 = vpop.f32.mrb[7].mxu1  ;;  %8699 = vmatprep.subr.bf16.mxu0 %v10997_v13  ;;  %8739 = vmatprep.subr.bf16.mxu1 %v10998_v14  ;;  %v10569_v19 = vld [vmem:[%s15523_s0 + $0x44c] ss:$100 sps:$4 sm:$0xff]   ;;  %v11002_v24 = vld [vmem:[%s15522_s1 + $0x160] sm:$0xff]   ;;  %v10581_v13 = vld [vmem:[%s15523_s0 + $0x398] ss:$100 sps:$4 sm:$0xff]  }
 0x103   :  { %v12490_v28 = vadd.f32 %v8225_v22, %v8185_v17  ;;  %v8228_v29 = vadd.f32 %v8227_v27, %v8226_v23  ;;  %8700 = vmatpush3.bf16.msra.mxu0 %v10999_v21  ;;  %v11000_v22 = vld [vmem:[%s15522_s1 + $0x118] sm:$0xff]   ;;  %v11001_v23 = vld [vmem:[%s15522_s1 + $0xe0] sm:$0xff]   ;;  %3611 = vmatmul.mubr.bf16.gmra.mrb[104].mxu1 %v10569_v19  ;;  %v11021_v21 = vld [vmem:[%s15522_s1 + $0x1c8] sm:$0xff]  }
 0x104   :  { %8701 = vmatprep.subr.bf16.mxu0 %v11001_v23  ;;  %v11003_v27 = vld [vmem:[%s15522_s1 + $0xa0] sm:$0xff]   ;;  %3618 = vmatprep.mubr.bf16.mxu1 %v7723_v25  ;;  %v10583_v23 = vld [vmem:[%s15523_s0 + $0x394] ss:$100 sps:$4 sm:$0xff]  }
 0x105   :  { %v12498_v32 = vadd.f32 %v8228_v29, %v8188_v26  ;;  %8740 = vmatpush3.bf16.msra.mxu1 %v11000_v22  ;;  %v11004_v29 = vld [vmem:[%s15522_s1 + $0x120] sm:$0xff]   ;;  %v10580_v22 = vld [vmem:[%s15523_s0 + $0x38c] ss:$100 sps:$4 sm:$0xff]  }
 0x106   :  { %v8189_v35 = vpop.f32.mrb[8].mxu0  ;;  %8741 = vmatprep.subr.bf16.mxu1 %v11002_v24 }
 0x107   :  { %v8229_v37 = vpop.f32.mrb[8].mxu1  ;;  %v8190_v38 = vpop.f32.mrb[9].mxu0  ;;  %8702 = vmatpush3.bf16.msra.mxu0 %v11003_v27  ;;  %v11024_v27 = vld [vmem:[%s15522_s1 + $0x208] sm:$0xff]  }
 0x108   :  { %v8191_v42 = vadd.f32 %v8190_v38, %v8189_v35  ;;  %v8230_v43 = vpop.f32.mrb[9].mxu1  ;;  %v8192_v44 = vpop.f32.mrb[10].mxu0  ;;  %8703 = vmatprep.subr.bf16.mxu0 %v11005_v33  ;;  %v10584_v33 = vld [vmem:[%s15523_s0 + $0x458] ss:$100 sps:$4 sm:$0xff]  }
 0x109   :  { %v8231_v46 = vadd.f32 %v8230_v43, %v8229_v37  ;;  %v8232_v47 = vpop.f32.mrb[10].mxu1  ;;  %v8193_v48 = vpop.f32.mrb[11].mxu0  ;;  %8742 = vmatpush3.bf16.msra.mxu1 %v11004_v29 }
 0x10a   :  { %v8194_v49 = vadd.f32 %v8193_v48, %v8192_v44  ;;  %v8233_v50 = vpop.f32.mrb[11].mxu1  ;;  %8743 = vmatprep.subr.bf16.mxu1 %v11006_v34  ;;  %v11009_v48 = vld [vmem:[%s15522_s1 + $0xf0] sm:$0xff]  }
 0x10b   :  { %v12527_v53 = vadd.f32 %v8231_v46, %v8191_v42  ;;  %v8234_v54 = vadd.f32 %v8233_v50, %v8232_v47  ;;  %8704 = vmatpush3.bf16.msra.mxu0 %v11007_v45  ;;  %v11008_v46 = vld [vmem:[%s15522_s1 + $0x128] sm:$0xff]   ;;  %3619 = vmatmul.mubr.bf16.gmra.mrb[108].mxu1 %v7722_v41 }
 0x10c   :  { %8705 = vmatprep.subr.bf16.mxu0 %v11009_v48  ;;  %3722 = vmatprep.mubr.bf16.mxu1 %v10577_v51  ;;  %v10589_v48 = vld [vmem:[%s15523_s0 + $0x45c] ss:$100 sps:$4 sm:$0xff]  }
 0x10d   :  { %v12538_v58 = vadd.f32 %v8234_v54, %v8194_v49  ;;  %8744 = vmatpush3.bf16.msra.mxu1 %v11008_v46  ;;  %v11011_v54 = vld [vmem:[%s15522_s1 + $0xb0] sm:$0xff]   ;;  %v11029_v46 = vld [vmem:[%s15522_s1 + $0x1d8] sm:$0xff]  }
 0x10e   :  { %v8195_v3 = vpop.f32.mrb[12].mxu0 }
 0x10f   :  { %v8235_v4 = vpop.f32.mrb[12].mxu1  ;;  %v8196_v5 = vpop.f32.mrb[13].mxu0  ;;  %8706 = vmatpush3.bf16.msra.mxu0 %v11011_v54 }
 0x110   :  { %v8236_v6 = vpop.f32.mrb[13].mxu1  ;;  %v8197_v9 = vadd.f32 %v8196_v5, %v8195_v3  ;;  %v8198_v11 = vpop.f32.mrb[14].mxu0  ;;  %v11016_v3 = vld [vmem:[%s15522_s1 + $0x138] sm:$0xff]  }
 0x111   :  { %v8237_v10 = vadd.f32 %v8236_v6, %v8235_v4  ;;  %v8238_v12 = vpop.f32.mrb[14].mxu1  ;;  %v8199_v15 = vpop.f32.mrb[15].mxu0  ;;  %v11017_v6 = vld [vmem:[%s15522_s1 + $0x1c0] sm:$0xff]  }
 0x112   :  { %v8239_v17 = vpop.f32.mrb[15].mxu1 }
 0x113   :  { %v12573_v18 = vadd.f32 %v8237_v10, %v8197_v9 }
 0x116   :  { %v8257_v26 = vpop.f32.mrb[16].mxu0 }
 0x117   :  { %v8258_v30 = vpop.f32.mrb[17].mxu0  ;;  %v8297_v31 = vpop.f32.mrb[16].mxu1 }
 0x118   :  { %v8259_v35 = vadd.f32 %v8258_v30, %v8257_v26  ;;  %v8260_v36 = vpop.f32.mrb[18].mxu0  ;;  %v8298_v37 = vpop.f32.mrb[17].mxu1  ;;  %v11023_v26 = vld [vmem:[%s15522_s1 + $0x188] sm:$0xff]   ;;  %v11025_v30 = vld [vmem:[%s15522_s1 + $0x1d0] sm:$0xff]  }
 0x119   :  { %v8261_v38 = vpop.f32.mrb[19].mxu0  ;;  %v8299_v39 = vadd.f32 %v8298_v37, %v8297_v31  ;;  %v8300_v40 = vpop.f32.mrb[18].mxu1  ;;  %v11026_v31 = vld [vmem:[%s15522_s1 + $0x250] sm:$0xff]  }
 0x11a   :  { %v2335_v42 = vadd.f32 %v8259_v35, %v12462_v62  ;;  %v8262_v43 = vadd.f32 %v8261_v38, %v8260_v36  ;;  %v8301_v44 = vpop.f32.mrb[19].mxu1  ;;  %v11010_v62 = vld [vmem:[%s15522_s1 + $0x170] sm:$0xff]   ;;  %v10587_v36 = vld [vmem:[%s15523_s0 + $0x460] ss:$100 sps:$4 sm:$0xff]  }
 0x11b   :  { %v8302_v47 = vadd.f32 %v8301_v44, %v8300_v40  ;;  %8745 = vmatprep.subr.bf16.mxu1 %v11010_v62  ;;  %v7635_v62 = vld [vmem:[%s15523_s0 + $0x51c] sm:$0x11] }
 0x11c   :  { %v2338_v49 = vadd.f32 %v8262_v43, %v12479_v16  ;;  %v12619_v50 = vadd.f32 %v8299_v39, %v2335_v42  ;;  %8746 = vmatpush3.bf16.msra.mxu1 %v11012_v55  ;;  %v11013_v16 = vld [vmem:[%s15522_s1 + $0xf8] sm:$0xff]   ;;  %v11027_v42 = vld [vmem:[%s15522_s1 + $0x190] sm:$0xff]  }
 0x11d   :  { %8707 = vmatprep.subr.bf16.mxu0 %v11013_v16  ;;  %8747 = vmatprep.subr.bf16.mxu1 %v11014_v56  ;;  %v11028_v43 = vld [vmem:[%s15522_s1 + $0x210] sm:$0xff]   ;;  %v11031_v56 = vld [vmem:[%s15522_s1 + $0x198] sm:$0xff]  }
 0x11e   :  { %v12624_v52 = vadd.f32 %v8302_v47, %v2338_v49  ;;  %v8263_v60 = vpop.f32.mrb[20].mxu0  ;;  %8708 = vmatpush3.bf16.msra.mxu0 %v11015_v2  ;;  %v10586_v47 = vld [vmem:[%s15523_s0 + $0x454] ss:$100 sps:$4 sm:$0xff]   ;;  %v7636_v49 = vld [vmem:[%s15523_s0 + $0x524] sm:$0x11] }
 0x11f   :  { %v8264_v61 = vpop.f32.mrb[21].mxu0  ;;  %v8303_v1 = vpop.f32.mrb[20].mxu1  ;;  %8773 = vmatprep.subr.bf16.mxu0 %v11017_v6  ;;  %v11035_v2 = vld [vmem:[%s15522_s1 + $0x1a0] sm:$0xff]  }
 0x120   :  { %v8265_v63 = vadd.f32 %v8264_v61, %v8263_v60  ;;  %v8266_v0 = vpop.f32.mrb[22].mxu0  ;;  %8748 = vmatpush3.bf16.msra.mxu1 %v11016_v3  ;;  %v8304_v5 = vpop.f32.mrb[21].mxu1  ;;  %v11034_v60 = vld [vmem:[%s15522_s1 + $0x260] sm:$0xff]   ;;  %v7725_v61 = vcombine.high %v7635_v62, %v7635_v62 }
 0x121   :  { %v8267_v4 = vpop.f32.mrb[23].mxu0  ;;  %8813 = vmatprep.subr.bf16.mxu1 %v11018_v7  ;;  %v8305_v11 = vadd.f32 %v8304_v5, %v8303_v1  ;;  %v8306_v12 = vpop.f32.mrb[22].mxu1  ;;  %3659 = vmatmul.mubr.bf16.vlgmr.msra.gmra.mrb[104].mxu0 %v10572_v57  ;;  %v11032_v57 = vld [vmem:[%s15522_s1 + $0x218] sm:$0xff]   ;;  %v11036_v3 = vld [vmem:[%s15522_s1 + $0x220] sm:$0xff]   ;;  %v11037_v7 = vld [vmem:[%s15522_s1 + $0x1e8] sm:$0xff]  }
 0x122   :  { %v2343_v9 = vadd.f32 %v8265_v63, %v12490_v28  ;;  %v8268_v10 = vadd.f32 %v8267_v4, %v8266_v0  ;;  %v8307_v14 = vpop.f32.mrb[23].mxu1  ;;  %8774 = vmatpush3.bf16.msra.mxu0 %v11019_v20  ;;  %v11020_v28 = vld [vmem:[%s15522_s1 + $0x200] sm:$0xff]   ;;  %3666 = vmatprep.mubr.bf16.mxu0 %v10578_v8  ;;  %v7727_v63 = vcombine.high %v7636_v49, %v7636_v49  ;;  %v11038_v8 = vld [vmem:[%s15522_s1 + $0x268] sm:$0xff]  }
 0x123   :  { %3723 = vmatmul.mubr.bf16.vlgmr.msra.gmra.mrb[112].mxu1 %v10575_v59  ;;  %v8308_v19 = vadd.f32 %v8307_v14, %v8306_v12  ;;  %8775 = vmatprep.subr.bf16.mxu0 %v11021_v21  ;;  %v7724_v14 = vcombine.low %v7635_v62, %v7635_v62  ;;  %v11039_v20 = vld [vmem:[%s15522_s1 + $0x1a8] sm:$0xff]   ;;  %v10596_v21 = vld [vmem:[%s15523_s0 + $0x2d8] ss:$100 sps:$4 sm:$0xff]  }
 0x124   :  { %v2346_v15 = vadd.f32 %v8268_v10, %v12498_v32  ;;  %v12664_v17 = vadd.f32 %v8305_v11, %v2343_v9  ;;  %8814 = vmatpush3.bf16.msra.mxu1 %v11020_v28  ;;  %v11022_v32 = vld [vmem:[%s15522_s1 + $0x248] sm:$0xff]   ;;  %3730 = vmatprep.mubr.bf16.mxu1 %v10581_v13 }
 0x125   :  { %8815 = vmatprep.subr.bf16.mxu1 %v11022_v32  ;;  %v11040_v28 = vld [vmem:[%s15522_s1 + $0x228] sm:$0xff]  }
 0x126   :  { %v12684_v24 = vadd.f32 %v8308_v19, %v2346_v15  ;;  %v8269_v25 = vpop.f32.mrb[24].mxu0  ;;  %8776 = vmatpush3.bf16.msra.mxu0 %v11023_v26  ;;  %v7726_v15 = vcombine.low %v7636_v49, %v7636_v49  ;;  %v11043_v26 = vld [vmem:[%s15522_s1 + $0x1b0] sm:$0xff]  }
 0x127   :  { %v8270_v29 = vpop.f32.mrb[25].mxu0  ;;  %8777 = vmatprep.subr.bf16.mxu0 %v11025_v30  ;;  %v8309_v37 = vpop.f32.mrb[24].mxu1 }
 0x128   :  { %8816 = vmatpush3.bf16.msra.mxu1 %v11024_v27  ;;  %v8271_v34 = vadd.f32 %v8270_v29, %v8269_v25  ;;  %v8272_v35 = vpop.f32.mrb[26].mxu0  ;;  %v8310_v41 = vpop.f32.mrb[25].mxu1  ;;  %v11044_v27 = vld [vmem:[%s15522_s1 + $0x230] sm:$0xff]  }
 0x129   :  { %8817 = vmatprep.subr.bf16.mxu1 %v11026_v31  ;;  %v8273_v38 = vpop.f32.mrb[27].mxu0  ;;  %3667 = vmatmul.mubr.bf16.gmra.mrb[108].mxu0 %v10580_v22  ;;  %v8311_v44 = vadd.f32 %v8310_v41, %v8309_v37  ;;  %v8312_v45 = vpop.f32.mrb[26].mxu1  ;;  %v11041_v22 = vld [vmem:[%s15522_s1 + $0x1f0] sm:$0xff]   ;;  %v11045_v31 = vld [vmem:[%s15522_s1 + $0x1f8] sm:$0xff]  }
 0x12a   :  { %v2351_v39 = vadd.f32 %v8271_v34, %v12527_v53  ;;  %v8274_v40 = vadd.f32 %v8273_v38, %v8272_v35  ;;  %8778 = vmatpush3.bf16.msra.mxu0 %v11027_v42  ;;  %v11030_v53 = vld [vmem:[%s15522_s1 + $0x258] sm:$0xff]   ;;  %v8313_v54 = vpop.f32.mrb[27].mxu1  ;;  %3674 = vmatprep.mubr.bf16.mxu0 %v10584_v33 }
 0x12b   :  { %3731 = vmatmul.mubr.bf16.gmra.mrb[116].mxu1 %v10583_v23  ;;  %8779 = vmatprep.subr.bf16.mxu0 %v11029_v46  ;;  %v8314_v16 = vadd.f32 %v8313_v54, %v8312_v45  ;;  %v11042_v23 = vld [vmem:[%s15522_s1 + $0x270] sm:$0xff]   ;;  %v11046_v33 = vld [vmem:[%s15522_s1 + $0x278] sm:$0xff]  }
 0x12c   :  { %8818 = vmatpush3.bf16.msra.mxu1 %v11028_v43  ;;  %v2354_v51 = vadd.f32 %v8274_v40, %v12538_v58  ;;  %3738 = vmatprep.mubr.bf16.mxu1 %v10587_v36  ;;  %v12730_v55 = vadd.f32 %v8311_v44, %v2351_v39  ;;  %v11033_v58 = vld [vmem:[%s15522_s1 + $0x1e0] sm:$0xff]   ;;  %v10594_v34 = vld [vmem:[%s15523_s0 + $0x2d4] ss:$100 sps:$4 sm:$0xff]  }
 0x12d   :  { %8819 = vmatprep.subr.bf16.mxu1 %v11030_v53  ;;  %v10597_v35 = vld [vmem:[%s15523_s0 + $0x2dc] ss:$100 sps:$4 sm:$0xff]  }
 0x12e   :  { %8780 = vmatpush3.bf16.msra.mxu0 %v11031_v56  ;;  %v12738_v59 = vadd.f32 %v8314_v16, %v2354_v51  ;;  %v8275_v0 = vpop.f32.mrb[28].mxu0  ;;  %v11047_v45 = vld [vmem:[%s15522_s1 + $0x1b8] sm:$0xff]   ;;  %v10603_v51 = vld [vmem:[%s15523_s0 + $0x3a8] ss:$100 sps:$4 sm:$0xff]   ;;  %v11051_v16 = vld [vmem:[%s15522_s1 + $0x280] sm:$0xff]  }
 0x12f   :  { %8781 = vmatprep.subr.bf16.mxu0 %v11033_v58  ;;  %v8276_v1 = vpop.f32.mrb[29].mxu0  ;;  %v8315_v6 = vpop.f32.mrb[28].mxu1  ;;  %v11048_v46 = vld [vmem:[%s15522_s1 + $0x238] sm:$0xff]   ;;  %v11052_v56 = vld [vmem:[%s15522_s1 + $0x300] sm:$0xff]  }
 0x130   :  { %8820 = vmatpush3.bf16.msra.mxu1 %v11032_v57  ;;  %v8277_v4 = vadd.f32 %v8276_v1, %v8275_v0  ;;  %v8278_v5 = vpop.f32.mrb[30].mxu0  ;;  %v8316_v10 = vpop.f32.mrb[29].mxu1  ;;  %v11054_v57 = vld [vmem:[%s15522_s1 + $0x348] sm:$0xff]   ;;  %v10602_v58 = vld [vmem:[%s15523_s0 + $0x39c] ss:$100 sps:$4 sm:$0xff]  }
 0x131   :  { %8821 = vmatprep.subr.bf16.mxu1 %v11034_v60  ;;  %3675 = vmatmul.mubr.bf16.gmra.mrb[112].mxu0 %v10586_v47  ;;  %v8279_v9 = vpop.f32.mrb[31].mxu0  ;;  %v8317_v12 = vadd.f32 %v8316_v10, %v8315_v6  ;;  %v8318_v13 = vpop.f32.mrb[30].mxu1  ;;  %v11049_v47 = vld [vmem:[%s15522_s1 + $0x2c0] sm:$0xff]  }
 0x132   :  { %8782 = vmatpush3.bf16.msra.mxu0 %v11035_v2  ;;  %3682 = vmatprep.mubr.bf16.mxu0 %v7725_v61  ;;  %v2359_v11 = vadd.f32 %v8277_v4, %v12573_v18  ;;  %v8319_v19 = vpop.f32.mrb[31].mxu1  ;;  %v10599_v18 = vld [vmem:[%s15523_s0 + $0x2e0] ss:$100 sps:$4 sm:$0xff]   ;;  %v11055_v2 = vld [vmem:[%s15522_s1 + $0x288] sm:$0xff]   ;;  %v10609_v9 = vld [vmem:[%s15523_s0 + $0x470] ss:$100 sps:$4 sm:$0xff]  }
 0x133   :  { %3739 = vmatmul.mubr.bf16.gmra.mrb[120].mxu1 %v10589_v48  ;;  %8783 = vmatprep.subr.bf16.mxu0 %v11037_v7  ;;  %v10600_v48 = vld [vmem:[%s15523_s0 + $0x3a0] ss:$100 sps:$4 sm:$0xff]   ;;  %v10606_v4 = vld [vmem:[%s15523_s0 + $0x468] ss:$100 sps:$4 sm:$0xff]   ;;  %v11057_v7 = vld [vmem:[%s15522_s1 + $0x2d0] sm:$0xff]  }
 0x134   :  { %8822 = vmatpush3.bf16.msra.mxu1 %v11036_v3  ;;  %3746 = vmatprep.mubr.bf16.mxu1 %v7727_v63  ;;  %v12771_v32 = vadd.f32 %v8317_v12, %v2359_v11  ;;  %v10605_v60 = vld [vmem:[%s15523_s0 + $0x3a4] ss:$100 sps:$4 sm:$0xff]  }
 0x135   :  { %8823 = vmatprep.subr.bf16.mxu1 %v11038_v8  ;;  %v11056_v3 = vld [vmem:[%s15522_s1 + $0x308] sm:$0xff]   ;;  %v11058_v8 = vld [vmem:[%s15522_s1 + $0x350] sm:$0xff]  }
 0x136   :  { %8784 = vmatpush3.bf16.msra.mxu0 %v11039_v20  ;;  %v8337_v25 = vpop.f32.mrb[32].mxu0  ;;  %v11059_v20 = vld [vmem:[%s15522_s1 + $0x290] sm:$0xff]  }
 0x137   :  { %8785 = vmatprep.subr.bf16.mxu0 %v11041_v22  ;;  %v8338_v29 = vpop.f32.mrb[33].mxu0  ;;  %v8377_v30 = vpop.f32.mrb[32].mxu1  ;;  %v10608_v22 = vld [vmem:[%s15523_s0 + $0x464] ss:$100 sps:$4 sm:$0xff]  }
 0x138   :  { %8824 = vmatpush3.bf16.msra.mxu1 %v11040_v28  ;;  %v8339_v36 = vadd.f32 %v8338_v29, %v8337_v25  ;;  %v8340_v37 = vpop.f32.mrb[34].mxu0  ;;  %v8378_v38 = vpop.f32.mrb[33].mxu1  ;;  %v11060_v28 = vld [vmem:[%s15522_s1 + $0x310] sm:$0xff]   ;;  %v11063_v29 = vld [vmem:[%s15522_s1 + $0x298] sm:$0xff]  }
 0x139   :  { %8825 = vmatprep.subr.bf16.mxu1 %v11042_v23  ;;  %3683 = vmatmul.mubr.bf16.gmra.mrb[116].mxu0 %v7724_v14  ;;  %v8341_v39 = vpop.f32.mrb[35].mxu0  ;;  %v8379_v40 = vadd.f32 %v8378_v38, %v8377_v30  ;;  %v8380_v41 = vpop.f32.mrb[34].mxu1  ;;  %v10611_v23 = vld [vmem:[%s15523_s0 + $0x46c] ss:$100 sps:$4 sm:$0xff]   ;;  %v11064_v30 = vld [vmem:[%s15522_s1 + $0x318] sm:$0xff]  }
 0x13a   :  { %8786 = vmatpush3.bf16.msra.mxu0 %v11043_v26  ;;  %3786 = vmatprep.mubr.bf16.mxu0 %v10596_v21  ;;  %v2463_v42 = vadd.f32 %v8339_v36, %v12619_v50  ;;  %v8342_v43 = vadd.f32 %v8341_v39, %v8340_v37  ;;  %v8381_v44 = vpop.f32.mrb[35].mxu1  ;;  %v11050_v50 = vld [vmem:[%s15522_s1 + $0x340] sm:$0xff]   ;;  %v7637_v25 = vld [vmem:[%s15523_s0 + $0x52c] sm:$0x11]  ;;  %v7638_v26 = vld [vmem:[%s15523_s0 + $0x534] sm:$0x11] }
 0x13b   :  { %3747 = vmatmul.mubr.bf16.gmra.mrb[124].mxu1 %v7726_v15  ;;  %8787 = vmatprep.subr.bf16.mxu0 %v11045_v31  ;;  %v8382_v53 = vadd.f32 %v8381_v44, %v8380_v41  ;;  %v7729_v36 = vcombine.high %v7637_v25, %v7637_v25  ;;  %v7731_v37 = vcombine.high %v7638_v26, %v7638_v26 }
 0x13c   :  { %8826 = vmatpush3.bf16.msra.mxu1 %v11044_v27  ;;  %3850 = vmatprep.mubr.bf16.mxu1 %v10599_v18  ;;  %v2466_v62 = vadd.f32 %v8342_v43, %v12624_v52  ;;  %v12814_v49 = vadd.f32 %v8379_v40, %v2463_v42  ;;  %v11053_v52 = vld [vmem:[%s15522_s1 + $0x2c8] sm:$0xff]   ;;  %v11061_v18 = vld [vmem:[%s15522_s1 + $0x2d8] sm:$0xff]   ;;  %v11067_v42 = vld [vmem:[%s15522_s1 + $0x2a0] sm:$0xff]  }
 0x13d   :  { %8827 = vmatprep.subr.bf16.mxu1 %v11046_v33  ;;  %v11065_v33 = vld [vmem:[%s15522_s1 + $0x2e0] sm:$0xff]  }
 0x13e   :  { %8788 = vmatpush3.bf16.msra.mxu0 %v11047_v45  ;;  %v12819_v54 = vadd.f32 %v8382_v53, %v2466_v62  ;;  %v8343_v61 = vpop.f32.mrb[36].mxu0  ;;  %v11068_v43 = vld [vmem:[%s15522_s1 + $0x320] sm:$0xff]   ;;  %v11069_v53 = vld [vmem:[%s15522_s1 + $0x2e8] sm:$0xff]  }
 0x13f   :  { %8853 = vmatprep.subr.bf16.mxu0 %v11049_v47  ;;  %v8344_v63 = vpop.f32.mrb[37].mxu0  ;;  %v8383_v5 = vpop.f32.mrb[36].mxu1  ;;  %v11070_v47 = vld [vmem:[%s15522_s1 + $0x368] sm:$0xff]  }
 0x140   :  { %8828 = vmatpush3.bf16.msra.mxu1 %v11048_v46  ;;  %v8345_v0 = vadd.f32 %v8344_v63, %v8343_v61  ;;  %v8346_v1 = vpop.f32.mrb[38].mxu0  ;;  %v8384_v12 = vpop.f32.mrb[37].mxu1  ;;  %v11073_v61 = vld [vmem:[%s15522_s1 + $0x2f0] sm:$0xff]  }
 0x141   :  { %8893 = vmatprep.subr.bf16.mxu1 %v11050_v50  ;;  %3787 = vmatmul.mubr.bf16.vlgmr.msra.gmra.mrb[120].mxu0 %v10594_v34  ;;  %v8347_v6 = vpop.f32.mrb[39].mxu0  ;;  %v8385_v13 = vadd.f32 %v8384_v12, %v8383_v5  ;;  %v8386_v14 = vpop.f32.mrb[38].mxu1  ;;  %v11066_v34 = vld [vmem:[%s15522_s1 + $0x360] sm:$0xff]   ;;  %v11074_v63 = vld [vmem:[%s15522_s1 + $0x370] sm:$0xff]  }
 0x142   :  { %8854 = vmatpush3.bf16.msra.mxu0 %v11051_v16  ;;  %3794 = vmatprep.mubr.bf16.mxu0 %v10600_v48  ;;  %v2471_v10 = vadd.f32 %v8345_v0, %v12664_v17  ;;  %v8348_v11 = vadd.f32 %v8347_v6, %v8346_v1  ;;  %v8387_v19 = vpop.f32.mrb[39].mxu1  ;;  %v7730_v16 = vcombine.low %v7638_v26, %v7638_v26  ;;  %v11077_v6 = vld [vmem:[%s15522_s1 + $0x2f8] sm:$0xff]   ;;  %v11084_v26 = vld [vmem:[%s15522_s1 + $0x400] sm:$0xff]  }
 0x143   :  { %3851 = vmatmul.mubr.bf16.vlgmr.msra.gmra.mrb[128].mxu1 %v10597_v35  ;;  %8855 = vmatprep.subr.bf16.mxu0 %v11053_v52  ;;  %v8388_v21 = vadd.f32 %v8387_v19, %v8386_v14 }
 0x144   :  { %8894 = vmatpush3.bf16.msra.mxu1 %v11052_v56  ;;  %3858 = vmatprep.mubr.bf16.mxu1 %v10603_v51  ;;  %v2474_v15 = vadd.f32 %v8348_v11, %v12684_v24  ;;  %v12865_v17 = vadd.f32 %v8385_v13, %v2471_v10  ;;  %v11062_v24 = vld [vmem:[%s15522_s1 + $0x358] sm:$0xff]  }
 0x145   :  { %8895 = vmatprep.subr.bf16.mxu1 %v11054_v57  ;;  %v11071_v57 = vld [vmem:[%s15522_s1 + $0x2a8] sm:$0xff]  }
 0x146   :  { %8856 = vmatpush3.bf16.msra.mxu0 %v11055_v2  ;;  %v12885_v27 = vadd.f32 %v8388_v21, %v2474_v15  ;;  %v8349_v31 = vpop.f32.mrb[40].mxu0  ;;  %v11075_v2 = vld [vmem:[%s15522_s1 + $0x2b0] sm:$0xff]   ;;  %v11080_v21 = vld [vmem:[%s15522_s1 + $0x338] sm:$0xff]  }
 0x147   :  { %8857 = vmatprep.subr.bf16.mxu0 %v11057_v7  ;;  %v8350_v35 = vpop.f32.mrb[41].mxu0  ;;  %v8389_v40 = vpop.f32.mrb[40].mxu1  ;;  %v11078_v7 = vld [vmem:[%s15522_s1 + $0x378] sm:$0xff]  }
 0x148   :  { %8896 = vmatpush3.bf16.msra.mxu1 %v11056_v3  ;;  %v8351_v38 = vadd.f32 %v8350_v35, %v8349_v31  ;;  %v8352_v39 = vpop.f32.mrb[42].mxu0  ;;  %v8390_v46 = vpop.f32.mrb[41].mxu1  ;;  %v11076_v3 = vld [vmem:[%s15522_s1 + $0x330] sm:$0xff]   ;;  %v11086_v31 = vld [vmem:[%s15522_s1 + $0x448] sm:$0xff]  }
 0x149   :  { %8897 = vmatprep.subr.bf16.mxu1 %v11058_v8  ;;  %3795 = vmatmul.mubr.bf16.gmra.mrb[124].mxu0 %v10602_v58  ;;  %v8353_v41 = vpop.f32.mrb[43].mxu0  ;;  %v8391_v50 = vadd.f32 %v8390_v46, %v8389_v40  ;;  %v8392_v48 = vpop.f32.mrb[42].mxu1  ;;  %v11072_v58 = vld [vmem:[%s15522_s1 + $0x328] sm:$0xff]  }
 0x14a   :  { %8858 = vmatpush3.bf16.msra.mxu0 %v11059_v20  ;;  %3802 = vmatprep.mubr.bf16.mxu0 %v10606_v4  ;;  %v2479_v44 = vadd.f32 %v8351_v38, %v12730_v55  ;;  %v8354_v45 = vadd.f32 %v8353_v41, %v8352_v39  ;;  %v8393_v51 = vpop.f32.mrb[43].mxu1  ;;  %v7728_v55 = vcombine.low %v7637_v25, %v7637_v25  ;;  %v10616_v8 = vld [vmem:[%s15523_s0 + $0x2e4] ss:$100 sps:$4 sm:$0xff]   ;;  %v10624_v38 = vld [vmem:[%s15523_s0 + $0x3ac] ss:$100 sps:$4 sm:$0xff]  }
 0x14b   :  { %3859 = vmatmul.mubr.bf16.gmra.mrb[132].mxu1 %v10605_v60  ;;  %8859 = vmatprep.subr.bf16.mxu0 %v11061_v18  ;;  %v8394_v52 = vadd.f32 %v8393_v51, %v8392_v48  ;;  %v10621_v60 = vld [vmem:[%s15523_s0 + $0x2f0] ss:$100 sps:$4 sm:$0xff]   ;;  %v11081_v18 = vld [vmem:[%s15522_s1 + $0x3c0] sm:$0xff]  }
 0x14c   :  { %8898 = vmatpush3.bf16.msra.mxu1 %v11060_v28  ;;  %3866 = vmatprep.mubr.bf16.mxu1 %v10609_v9  ;;  %v2482_v62 = vadd.f32 %v8354_v45, %v12738_v59  ;;  %v12913_v56 = vadd.f32 %v8391_v50, %v2479_v44  ;;  %v10618_v59 = vld [vmem:[%s15523_s0 + $0x2e8] ss:$100 sps:$4 sm:$0xff]   ;;  %v11079_v28 = vld [vmem:[%s15522_s1 + $0x2b8] sm:$0xff]   ;;  %v11083_v25 = vld [vmem:[%s15522_s1 + $0x380] sm:$0xff]  }
 0x14d   :  { %8899 = vmatprep.subr.bf16.mxu1 %v11062_v24  ;;  %v10619_v9 = vld [vmem:[%s15523_s0 + $0x2ec] ss:$100 sps:$4 sm:$0xff]   ;;  %v10627_v39 = vld [vmem:[%s15523_s0 + $0x3b4] ss:$100 sps:$4 sm:$0xff]  }
 0x14e   :  { %8860 = vmatpush3.bf16.msra.mxu0 %v11063_v29  ;;  %v12933_v0 = vadd.f32 %v8394_v52, %v2482_v62  ;;  %v8355_v1 = vpop.f32.mrb[44].mxu0  ;;  %v10622_v24 = vld [vmem:[%s15523_s0 + $0x3b0] ss:$100 sps:$4 sm:$0xff]   ;;  %v11088_v44 = vld [vmem:[%s15522_s1 + $0x408] sm:$0xff]   ;;  %v10628_v62 = vld [vmem:[%s15523_s0 + $0x478] ss:$100 sps:$4 sm:$0xff]  }
 0x14f   :  { %8861 = vmatprep.subr.bf16.mxu0 %v11065_v33  ;;  %v8356_v4 = vpop.f32.mrb[45].mxu0  ;;  %v8395_v5 = vpop.f32.mrb[44].mxu1  ;;  %v11090_v50 = vld [vmem:[%s15522_s1 + $0x450] sm:$0xff]  }
 0x150   :  { %8900 = vmatpush3.bf16.msra.mxu1 %v11064_v30  ;;  %v8357_v10 = vadd.f32 %v8356_v4, %v8355_v1  ;;  %v8358_v11 = vpop.f32.mrb[46].mxu0  ;;  %v8396_v12 = vpop.f32.mrb[45].mxu1  ;;  %v11085_v30 = vld [vmem:[%s15522_s1 + $0x3c8] sm:$0xff]   ;;  %v11092_v52 = vld [vmem:[%s15522_s1 + $0x410] sm:$0xff]   ;;  %v11096_v4 = vld [vmem:[%s15522_s1 + $0x418] sm:$0xff]  }
 0x151   :  { %8901 = vmatprep.subr.bf16.mxu1 %v11066_v34  ;;  %3803 = vmatmul.mubr.bf16.gmra.mrb[128].mxu0 %v10608_v22  ;;  %v8359_v13 = vpop.f32.mrb[47].mxu0  ;;  %v8397_v14 = vadd.f32 %v8396_v12, %v8395_v5  ;;  %v8398_v15 = vpop.f32.mrb[46].mxu1  ;;  %v7640_v1 = vld [vmem:[%s15523_s0 + $0x544] sm:$0x11] }
 0x152   :  { %8862 = vmatpush3.bf16.msra.mxu0 %v11067_v42  ;;  %3810 = vmatprep.mubr.bf16.mxu0 %v7729_v36  ;;  %v2487_v19 = vadd.f32 %v8357_v10, %v12771_v32  ;;  %v8399_v20 = vpop.f32.mrb[47].mxu1  ;;  %v11082_v32 = vld [vmem:[%s15522_s1 + $0x440] sm:$0xff]   ;;  %v7735_v12 = vcombine.high %v7640_v1, %v7640_v1 }
 0x153   :  { %3867 = vmatmul.mubr.bf16.gmra.mrb[136].mxu1 %v10611_v23  ;;  %8863 = vmatprep.subr.bf16.mxu0 %v11069_v53  ;;  %v10625_v23 = vld [vmem:[%s15523_s0 + $0x3b8] ss:$100 sps:$4 sm:$0xff]  }
 0x154   :  { %8902 = vmatpush3.bf16.msra.mxu1 %v11068_v43  ;;  %3874 = vmatprep.mubr.bf16.mxu1 %v7731_v37  ;;  %v12969_v22 = vadd.f32 %v8397_v14, %v2487_v19  ;;  %v11087_v43 = vld [vmem:[%s15522_s1 + $0x388] sm:$0xff]  }
 0x155   :  { %8903 = vmatprep.subr.bf16.mxu1 %v11070_v47  ;;  %v11089_v47 = vld [vmem:[%s15522_s1 + $0x3d0] sm:$0xff]  }
 0x156   :  { %8864 = vmatpush3.bf16.msra.mxu0 %v11071_v57  ;;  %v8417_v29 = vpop.f32.mrb[48].mxu0 }
 0x157   :  { %8865 = vmatprep.subr.bf16.mxu0 %v11073_v61  ;;  %v8418_v33 = vpop.f32.mrb[49].mxu0  ;;  %v8457_v34 = vpop.f32.mrb[48].mxu1 }
 0x158   :  { %8904 = vmatpush3.bf16.msra.mxu1 %v11072_v58  ;;  %v8419_v35 = vadd.f32 %v8418_v33, %v8417_v29  ;;  %v8420_v36 = vpop.f32.mrb[50].mxu0  ;;  %v8458_v37 = vpop.f32.mrb[49].mxu1  ;;  %v11094_v58 = vld [vmem:[%s15522_s1 + $0x458] sm:$0xff]   ;;  %v7734_v29 = vcombine.low %v7640_v1, %v7640_v1  ;;  %v11105_v33 = vld [vmem:[%s15522_s1 + $0x3f0] sm:$0xff]   ;;  %v10647_v1 = vld [vmem:[%s15523_s0 + $0x3c8] ss:$100 sps:$4 sm:$0xff]  }
 0x159   :  { %8905 = vmatprep.subr.bf16.mxu1 %v11074_v63  ;;  %3811 = vmatmul.mubr.bf16.gmra.mrb[132].mxu0 %v7728_v55  ;;  %v8421_v40 = vpop.f32.mrb[51].mxu0  ;;  %v8459_v41 = vadd.f32 %v8458_v37, %v8457_v34  ;;  %v8460_v42 = vpop.f32.mrb[50].mxu1  ;;  %v7639_v63 = vld [vmem:[%s15523_s0 + $0x53c] sm:$0x11]  ;;  %v11106_v34 = vld [vmem:[%s15522_s1 + $0x470] sm:$0xff]  }
 0x15a   :  { %8866 = vmatpush3.bf16.msra.mxu0 %v11075_v2  ;;  %3914 = vmatprep.mubr.bf16.mxu0 %v10618_v59  ;;  %v2591_v45 = vadd.f32 %v8419_v35, %v12814_v49  ;;  %v8422_v46 = vadd.f32 %v8421_v40, %v8420_v36  ;;  %v8461_v53 = vpop.f32.mrb[51].mxu1  ;;  %v10631_v49 = vld [vmem:[%s15523_s0 + $0x480] ss:$100 sps:$4 sm:$0xff]   ;;  %v10630_v59 = vld [vmem:[%s15523_s0 + $0x474] ss:$100 sps:$4 sm:$0xff]   ;;  %v7733_v11 = vcombine.high %v7639_v63, %v7639_v63 }
 0x15b   :  { %3875 = vmatmul.mubr.bf16.gmra.mrb[140].mxu1 %v7730_v16  ;;  %8867 = vmatprep.subr.bf16.mxu0 %v11077_v6  ;;  %v8462_v48 = vadd.f32 %v8461_v53, %v8460_v42  ;;  %v11091_v16 = vld [vmem:[%s15522_s1 + $0x390] sm:$0xff]   ;;  %v10640_v36 = vld [vmem:[%s15523_s0 + $0x2f8] ss:$100 sps:$4 sm:$0xff]   ;;  %v10643_v37 = vld [vmem:[%s15523_s0 + $0x300] ss:$100 sps:$4 sm:$0xff]  }
 0x15c   :  { %8906 = vmatpush3.bf16.msra.mxu1 %v11076_v3  ;;  %3978 = vmatprep.mubr.bf16.mxu1 %v10621_v60  ;;  %v2594_v51 = vadd.f32 %v8422_v46, %v12819_v54  ;;  %v13012_v55 = vadd.f32 %v8459_v41, %v2591_v45  ;;  %v11093_v54 = vld [vmem:[%s15522_s1 + $0x3d8] sm:$0xff]   ;;  %v11107_v42 = vld [vmem:[%s15522_s1 + $0x3b0] sm:$0xff]  }
 0x15d   :  { %8907 = vmatprep.subr.bf16.mxu1 %v11078_v7  ;;  %v10633_v60 = vld [vmem:[%s15523_s0 + $0x47c] ss:$100 sps:$4 sm:$0xff]  }
 0x15e   :  { %8868 = vmatpush3.bf16.msra.mxu0 %v11079_v28  ;;  %v13020_v57 = vadd.f32 %v8462_v48, %v2594_v51  ;;  %v8423_v61 = vpop.f32.mrb[52].mxu0  ;;  %v11095_v3 = vld [vmem:[%s15522_s1 + $0x398] sm:$0xff]   ;;  %v11097_v7 = vld [vmem:[%s15522_s1 + $0x3e0] sm:$0xff]  }
 0x15f   :  { %8933 = vmatprep.subr.bf16.mxu0 %v11081_v18  ;;  %v8424_v2 = vpop.f32.mrb[53].mxu0  ;;  %v11099_v28 = vld [vmem:[%s15522_s1 + $0x3a0] sm:$0xff]   ;;  %v11109_v46 = vld [vmem:[%s15522_s1 + $0x3f8] sm:$0xff]  }
 0x160   :  { %8908 = vmatpush3.bf16.msra.mxu1 %v11080_v21  ;;  %v8425_v5 = vadd.f32 %v8424_v2, %v8423_v61  ;;  %v8426_v6 = vpop.f32.mrb[54].mxu0  ;;  %v11100_v21 = vld [vmem:[%s15522_s1 + $0x420] sm:$0xff]   ;;  %v11110_v53 = vld [vmem:[%s15522_s1 + $0x478] sm:$0xff]  }
 0x161   :  { %8973 = vmatprep.subr.bf16.mxu1 %v11082_v32  ;;  %3915 = vmatmul.mubr.bf16.vlgmr.msra.gmra.mrb[136].mxu0 %v10616_v8  ;;  %v11098_v8 = vld [vmem:[%s15522_s1 + $0x460] sm:$0xff]   ;;  %v8427_v10 = vpop.f32.mrb[55].mxu0  ;;  %v10638_v51 = vld [vmem:[%s15523_s0 + $0x2f4] ss:$100 sps:$4 sm:$0xff]  }
 0x162   :  { %8934 = vmatpush3.bf16.msra.mxu0 %v11083_v25  ;;  %3922 = vmatprep.mubr.bf16.mxu0 %v10622_v24  ;;  %v2599_v13 = vadd.f32 %v8425_v5, %v12865_v17  ;;  %v8428_v14 = vadd.f32 %v8427_v10, %v8426_v6  ;;  %v11101_v17 = vld [vmem:[%s15522_s1 + $0x3e8] sm:$0xff]   ;;  %v11115_v2 = vld [vmem:[%s15522_s1 + $0x480] sm:$0xff]  }
 0x163   :  { %3979 = vmatmul.mubr.bf16.vlgmr.msra.gmra.mrb[144].mxu1 %v10619_v9  ;;  %8935 = vmatprep.subr.bf16.mxu0 %v11085_v30  ;;  %v8463_v9 = vpop.f32.mrb[52].mxu1  ;;  %v11102_v24 = vld [vmem:[%s15522_s1 + $0x468] sm:$0xff]  }
 0x164   :  { %8974 = vmatpush3.bf16.msra.mxu1 %v11084_v26  ;;  %3986 = vmatprep.mubr.bf16.mxu1 %v10625_v23  ;;  %v8464_v15 = vpop.f32.mrb[53].mxu1  ;;  %v2602_v18 = vadd.f32 %v8428_v14, %v12885_v27  ;;  %v7732_v26 = vcombine.low %v7639_v63, %v7639_v63  ;;  %v11103_v27 = vld [vmem:[%s15522_s1 + $0x3a8] sm:$0xff]   ;;  %v10644_v63 = vld [vmem:[%s15523_s0 + $0x3c0] ss:$100 sps:$4 sm:$0xff]  }
 0x165   :  { %8975 = vmatprep.subr.bf16.mxu1 %v11086_v31  ;;  %v8465_v19 = vadd.f32 %v8464_v15, %v8463_v9  ;;  %v8466_v20 = vpop.f32.mrb[54].mxu1  ;;  %v11104_v31 = vld [vmem:[%s15522_s1 + $0x428] sm:$0xff]  }
 0x166   :  { %8936 = vmatpush3.bf16.msra.mxu0 %v11087_v43  ;;  %v8467_v32 = vpop.f32.mrb[55].mxu1  ;;  %v8429_v35 = vpop.f32.mrb[56].mxu0  ;;  %v11108_v43 = vld [vmem:[%s15522_s1 + $0x430] sm:$0xff]   ;;  %v11117_v5 = vld [vmem:[%s15522_s1 + $0x4c8] sm:$0xff]  }
 0x167   :  { %8937 = vmatprep.subr.bf16.mxu0 %v11089_v47  ;;  %v13066_v23 = vadd.f32 %v8465_v19, %v2599_v13  ;;  %v8468_v25 = vadd.f32 %v8467_v32, %v8466_v20  ;;  %v8469_v41 = vpop.f32.mrb[56].mxu1  ;;  %v11118_v6 = vld [vmem:[%s15522_s1 + $0x548] sm:$0xff]   ;;  %v11121_v32 = vld [vmem:[%s15522_s1 + $0x4d0] sm:$0xff]  }
 0x168   :  { %8976 = vmatpush3.bf16.msra.mxu1 %v11088_v44  ;;  %v8470_v45 = vpop.f32.mrb[57].mxu1  ;;  %v10649_v13 = vld [vmem:[%s15523_s0 + $0x3c4] ss:$100 sps:$4 sm:$0xff]  }
 0x169   :  { %8977 = vmatprep.subr.bf16.mxu1 %v11090_v50  ;;  %3923 = vmatmul.mubr.bf16.gmra.mrb[140].mxu0 %v10624_v38  ;;  %v13068_v30 = vadd.f32 %v8468_v25, %v2602_v18  ;;  %v8430_v38 = vpop.f32.mrb[57].mxu0  ;;  %v8471_v48 = vadd.f32 %v8470_v45, %v8469_v41  ;;  %v11119_v20 = vld [vmem:[%s15522_s1 + $0x488] sm:$0xff]  }
 0x16a   :  { %8938 = vmatpush3.bf16.msra.mxu0 %v11091_v16  ;;  %3930 = vmatprep.mubr.bf16.mxu0 %v10628_v62  ;;  %v8432_v40 = vpop.f32.mrb[58].mxu0  ;;  %v8472_v62 = vpop.f32.mrb[58].mxu1  ;;  %v10641_v16 = vld [vmem:[%s15523_s0 + $0x2fc] ss:$100 sps:$4 sm:$0xff]   ;;  %v10650_v25 = vld [vmem:[%s15523_s0 + $0x488] ss:$100 sps:$4 sm:$0xff]  }
 0x16b   :  { %3987 = vmatmul.mubr.bf16.gmra.mrb[148].mxu1 %v10627_v39  ;;  %8939 = vmatprep.subr.bf16.mxu0 %v11093_v54  ;;  %v8431_v39 = vadd.f32 %v8430_v38, %v8429_v35  ;;  %v8433_v44 = vpop.f32.mrb[59].mxu0  ;;  %v10655_v35 = vld [vmem:[%s15523_s0 + $0x48c] ss:$100 sps:$4 sm:$0xff]  }
 0x16c   :  { %8978 = vmatpush3.bf16.msra.mxu1 %v11092_v52  ;;  %3994 = vmatprep.mubr.bf16.mxu1 %v10631_v49  ;;  %v8434_v50 = vadd.f32 %v8433_v44, %v8432_v40  ;;  %v8473_v49 = vpop.f32.mrb[59].mxu1  ;;  %v7641_v41 = vld [vmem:[%s15523_s0 + $0x54c] sm:$0x11]  ;;  %v11128_v44 = vld [vmem:[%s15522_s1 + $0x518] sm:$0xff]  }
 0x16d   :  { %8979 = vmatprep.subr.bf16.mxu1 %v11094_v58  ;;  %v2607_v47 = vadd.f32 %v8431_v39, %v12913_v56  ;;  %v8474_v58 = vadd.f32 %v8473_v49, %v8472_v62  ;;  %v11111_v56 = vld [vmem:[%s15522_s1 + $0x3b8] sm:$0xff]  }
 0x16e   :  { %8940 = vmatpush3.bf16.msra.mxu0 %v11095_v3  ;;  %v2610_v52 = vadd.f32 %v8434_v50, %v12933_v0  ;;  %v11114_v0 = vld [vmem:[%s15522_s1 + $0x540] sm:$0xff]  }
 0x16f   :  { %8941 = vmatprep.subr.bf16.mxu0 %v11097_v7  ;;  %v13108_v54 = vadd.f32 %v8471_v48, %v2607_v47  ;;  %v11116_v3 = vld [vmem:[%s15522_s1 + $0x500] sm:$0xff]  }
 0x170   :  { %8980 = vmatpush3.bf16.msra.mxu1 %v11096_v4  ;;  %v13122_v61 = vadd.f32 %v8474_v58, %v2610_v52  ;;  %v8435_v4 = vpop.f32.mrb[60].mxu0  ;;  %v11129_v47 = vld [vmem:[%s15522_s1 + $0x4e0] sm:$0xff]  }
 0x171   :  { %8981 = vmatprep.subr.bf16.mxu1 %v11098_v8  ;;  %3931 = vmatmul.mubr.bf16.gmra.mrb[144].mxu0 %v10630_v59  ;;  %v11112_v59 = vld [vmem:[%s15522_s1 + $0x438] sm:$0xff]   ;;  %v8436_v7 = vpop.f32.mrb[61].mxu0  ;;  %v8475_v8 = vpop.f32.mrb[60].mxu1  ;;  %v11130_v50 = vld [vmem:[%s15522_s1 + $0x560] sm:$0xff]  }
 0x172   :  { %8942 = vmatpush3.bf16.msra.mxu0 %v11099_v28  ;;  %3938 = vmatprep.mubr.bf16.mxu0 %v7733_v11  ;;  %v8437_v9 = vadd.f32 %v8436_v7, %v8435_v4  ;;  %v8438_v10 = vpop.f32.mrb[62].mxu0  ;;  %v8476_v11 = vpop.f32.mrb[61].mxu1  ;;  %v11120_v28 = vld [vmem:[%s15522_s1 + $0x508] sm:$0xff]   ;;  %v11138_v7 = vld [vmem:[%s15522_s1 + $0x570] sm:$0xff]  }
 0x173   :  { %3995 = vmatmul.mubr.bf16.gmra.mrb[152].mxu1 %v10633_v60  ;;  %8943 = vmatprep.subr.bf16.mxu0 %v11101_v17  ;;  %v11113_v60 = vld [vmem:[%s15522_s1 + $0x4c0] sm:$0xff]   ;;  %v8439_v14 = vpop.f32.mrb[63].mxu0  ;;  %v8477_v15 = vadd.f32 %v8476_v11, %v8475_v8  ;;  %v8478_v19 = vpop.f32.mrb[62].mxu1  ;;  %v11122_v17 = vld [vmem:[%s15522_s1 + $0x550] sm:$0xff]   ;;  %v11136_v4 = vld [vmem:[%s15522_s1 + $0x528] sm:$0xff]  }
 0x174   :  { %8982 = vmatpush3.bf16.msra.mxu1 %v11100_v21  ;;  %4002 = vmatprep.mubr.bf16.mxu1 %v7735_v12  ;;  %v10646_v12 = vld [vmem:[%s15523_s0 + $0x3bc] ss:$100 sps:$4 sm:$0xff]   ;;  %v2615_v21 = vadd.f32 %v8437_v9, %v12969_v22  ;;  %v8479_v18 = vpop.f32.mrb[63].mxu1  ;;  %v10653_v22 = vld [vmem:[%s15523_s0 + $0x490] ss:$100 sps:$4 sm:$0xff]  }
 0x175   :  { %8983 = vmatprep.subr.bf16.mxu1 %v11102_v24  ;;  %v10665_v14 = vld [vmem:[%s15523_s0 + $0x310] ss:$100 sps:$4 sm:$0xff]  }
 0x176   :  { %8944 = vmatpush3.bf16.msra.mxu0 %v11103_v27  ;;  %v13161_v24 = vadd.f32 %v8477_v15, %v2615_v21  ;;  %v11125_v27 = vld [vmem:[%s15522_s1 + $0x4d8] sm:$0xff]   ;;  %v11139_v21 = vld [vmem:[%s15522_s1 + $0x4b0] sm:$0xff]  }
 0x177   :  { %8945 = vmatprep.subr.bf16.mxu0 %v11105_v33  ;;  %v8497_v33 = vpop.f32.mrb[64].mxu0  ;;  %v11140_v18 = vld [vmem:[%s15522_s1 + $0x530] sm:$0xff]  }
 0x178   :  { %8984 = vmatpush3.bf16.msra.mxu1 %v11104_v31  ;;  %v11126_v31 = vld [vmem:[%s15522_s1 + $0x558] sm:$0xff]  }
 0x179   :  { %8985 = vmatprep.subr.bf16.mxu1 %v11106_v34  ;;  %3939 = vmatmul.mubr.bf16.gmra.mrb[148].mxu0 %v7732_v26  ;;  %v11123_v26 = vld [vmem:[%s15522_s1 + $0x490] sm:$0xff]   ;;  %v10652_v34 = vld [vmem:[%s15523_s0 + $0x484] ss:$100 sps:$4 sm:$0xff]  }
 0x17a   :  { %8946 = vmatpush3.bf16.msra.mxu0 %v11107_v42  ;;  %4042 = vmatprep.mubr.bf16.mxu0 %v10640_v36  ;;  %v8498_v36 = vpop.f32.mrb[65].mxu0  ;;  %v7642_v42 = vld [vmem:[%s15523_s0 + $0x554] sm:$0x11] }
 0x17b   :  { %4003 = vmatmul.mubr.bf16.gmra.mrb[156].mxu1 %v7734_v29  ;;  %8947 = vmatprep.subr.bf16.mxu0 %v11109_v46  ;;  %v11124_v29 = vld [vmem:[%s15522_s1 + $0x510] sm:$0xff]   ;;  %v8499_v38 = vadd.f32 %v8498_v36, %v8497_v33  ;;  %v8500_v39 = vpop.f32.mrb[66].mxu0  ;;  %v7739_v52 = vcombine.high %v7642_v42, %v7642_v42  ;;  %v11143_v33 = vld [vmem:[%s15522_s1 + $0x4b8] sm:$0xff]  }
 0x17c   :  { %8986 = vmatpush3.bf16.msra.mxu1 %v11108_v43  ;;  %4106 = vmatprep.mubr.bf16.mxu1 %v10643_v37  ;;  %v8537_v37 = vpop.f32.mrb[64].mxu1  ;;  %v11127_v43 = vld [vmem:[%s15522_s1 + $0x498] sm:$0xff]   ;;  %v8501_v45 = vpop.f32.mrb[67].mxu0 }
 0x17d   :  { %8987 = vmatprep.subr.bf16.mxu1 %v11110_v53  ;;  %v8538_v40 = vpop.f32.mrb[65].mxu1  ;;  %v2719_v48 = vadd.f32 %v8499_v38, %v13012_v55  ;;  %v8502_v62 = vadd.f32 %v8501_v45, %v8500_v39  ;;  %v11132_v55 = vld [vmem:[%s15522_s1 + $0x520] sm:$0xff]   ;;  %v10666_v38 = vld [vmem:[%s15523_s0 + $0x3d0] ss:$100 sps:$4 sm:$0xff]   ;;  %v10669_v39 = vld [vmem:[%s15523_s0 + $0x3d8] ss:$100 sps:$4 sm:$0xff]  }
 0x17e   :  { %8948 = vmatpush3.bf16.msra.mxu0 %v11111_v56  ;;  %v8539_v46 = vadd.f32 %v8538_v40, %v8537_v37  ;;  %v8540_v53 = vpop.f32.mrb[66].mxu1 }
 0x17f   :  { %9013 = vmatprep.subr.bf16.mxu0 %v11113_v60  ;;  %v8541_v49 = vpop.f32.mrb[67].mxu1  ;;  %v2722_v58 = vadd.f32 %v8502_v62, %v13020_v57  ;;  %v11133_v60 = vld [vmem:[%s15522_s1 + $0x4e8] sm:$0xff]  }
 0x180   :  { %8988 = vmatpush3.bf16.msra.mxu1 %v11112_v59  ;;  %v13207_v56 = vadd.f32 %v8539_v46, %v2719_v48  ;;  %v11131_v59 = vld [vmem:[%s15522_s1 + $0x4a0] sm:$0xff]   ;;  %v11134_v57 = vld [vmem:[%s15522_s1 + $0x568] sm:$0xff]   ;;  %v8543_v10 = vpop.f32.mrb[68].mxu1 }
 0x181   :  { %9053 = vmatprep.subr.bf16.mxu1 %v11114_v0  ;;  %4043 = vmatmul.mubr.bf16.vlgmr.msra.gmra.mrb[152].mxu0 %v10638_v51  ;;  %v7737_v51 = vcombine.high %v7641_v41, %v7641_v41  ;;  %v11148_v46 = vld [vmem:[%s15522_s1 + $0x5c8] sm:$0xff]  }
 0x182   :  { %9014 = vmatpush3.bf16.msra.mxu0 %v11115_v2  ;;  %4050 = vmatprep.mubr.bf16.mxu0 %v10644_v63  ;;  %v7736_v63 = vcombine.low %v7641_v41, %v7641_v41  ;;  %v8503_v2 = vpop.f32.mrb[68].mxu0 }
 0x183   :  { %4107 = vmatmul.mubr.bf16.vlgmr.msra.gmra.mrb[160].mxu1 %v10641_v16  ;;  %9015 = vmatprep.subr.bf16.mxu0 %v11117_v5  ;;  %v8542_v16 = vadd.f32 %v8541_v49, %v8540_v53  ;;  %v8504_v5 = vpop.f32.mrb[69].mxu0  ;;  %v11149_v53 = vld [vmem:[%s15522_s1 + $0x608] sm:$0xff]  }
 0x184   :  { %9054 = vmatpush3.bf16.msra.mxu1 %v11116_v3  ;;  %4114 = vmatprep.mubr.bf16.mxu1 %v10647_v1  ;;  %v7738_v1 = vcombine.low %v7642_v42, %v7642_v42  ;;  %v11135_v3 = vld [vmem:[%s15522_s1 + $0x4a8] sm:$0xff]   ;;  %v8505_v8 = vadd.f32 %v8504_v5, %v8503_v2  ;;  %v8506_v9 = vpop.f32.mrb[70].mxu0  ;;  %v11147_v42 = vld [vmem:[%s15522_s1 + $0x580] sm:$0xff]   ;;  %v11155_v5 = vld [vmem:[%s15522_s1 + $0x618] sm:$0xff]  }
 0x185   :  { %9055 = vmatprep.subr.bf16.mxu1 %v11118_v6  ;;  %v13221_v0 = vadd.f32 %v8542_v16, %v2722_v58  ;;  %v11137_v6 = vld [vmem:[%s15522_s1 + $0x4f0] sm:$0xff]   ;;  %v8507_v11 = vpop.f32.mrb[71].mxu0 }
 0x186   :  { %9016 = vmatpush3.bf16.msra.mxu0 %v11119_v20  ;;  %v2727_v15 = vadd.f32 %v8505_v8, %v13066_v23  ;;  %v8508_v19 = vadd.f32 %v8507_v11, %v8506_v9  ;;  %v11142_v23 = vld [vmem:[%s15522_s1 + $0x578] sm:$0xff]   ;;  %v8509_v36 = vpop.f32.mrb[72].mxu0 }
 0x187   :  { %9017 = vmatprep.subr.bf16.mxu0 %v11121_v32  ;;  %v8510_v37 = vpop.f32.mrb[73].mxu0  ;;  %v10671_v16 = vld [vmem:[%s15523_s0 + $0x3d4] ss:$100 sps:$4 sm:$0xff]  }
 0x188   :  { %9056 = vmatpush3.bf16.msra.mxu1 %v11120_v28  ;;  %v8511_v40 = vadd.f32 %v8510_v37, %v8509_v36  ;;  %v8512_v41 = vpop.f32.mrb[74].mxu0  ;;  %v10674_v9 = vld [vmem:[%s15523_s0 + $0x494] ss:$100 sps:$4 sm:$0xff]  }
 0x189   :  { %9057 = vmatprep.subr.bf16.mxu1 %v11122_v17  ;;  %4051 = vmatmul.mubr.bf16.gmra.mrb[156].mxu0 %v10646_v12  ;;  %v8544_v12 = vpop.f32.mrb[69].mxu1  ;;  %v11141_v17 = vld [vmem:[%s15522_s1 + $0x4f8] sm:$0xff]  }
 0x18a   :  { %9018 = vmatpush3.bf16.msra.mxu0 %v11123_v26  ;;  %4058 = vmatprep.mubr.bf16.mxu0 %v10650_v25  ;;  %v8545_v20 = vadd.f32 %v8544_v12, %v8543_v10  ;;  %v8546_v28 = vpop.f32.mrb[70].mxu1  ;;  %v2730_v25 = vadd.f32 %v8508_v19, %v13068_v30  ;;  %v11144_v30 = vld [vmem:[%s15522_s1 + $0x538] sm:$0xff]   ;;  %v2735_v45 = vadd.f32 %v8511_v40, %v13108_v54  ;;  %v10668_v54 = vld [vmem:[%s15523_s0 + $0x3cc] ss:$100 sps:$4 sm:$0xff]  }
 0x18b   :  { %4115 = vmatmul.mubr.bf16.gmra.mrb[164].mxu1 %v10649_v13  ;;  %9019 = vmatprep.subr.bf16.mxu0 %v11125_v27  ;;  %v10662_v13 = vld [vmem:[%s15523_s0 + $0x308] ss:$100 sps:$4 sm:$0xff]   ;;  %v8547_v32 = vpop.f32.mrb[71].mxu1  ;;  %v10677_v10 = vld [vmem:[%s15523_s0 + $0x49c] ss:$100 sps:$4 sm:$0xff]  }
 0x18c   :  { %9058 = vmatpush3.bf16.msra.mxu1 %v11124_v29  ;;  %4122 = vmatprep.mubr.bf16.mxu1 %v10653_v22  ;;  %v13255_v22 = vadd.f32 %v8545_v20, %v2727_v15  ;;  %v8548_v26 = vadd.f32 %v8547_v32, %v8546_v28  ;;  %v10660_v29 = vld [vmem:[%s15523_s0 + $0x304] ss:$100 sps:$4 sm:$0xff]   ;;  %v11156_v19 = vld [vmem:[%s15522_s1 + $0x598] sm:$0xff]  }
 0x18d   :  { %9059 = vmatprep.subr.bf16.mxu1 %v11126_v31  ;;  %v10663_v31 = vld [vmem:[%s15523_s0 + $0x30c] ss:$100 sps:$4 sm:$0xff]  }
 0x18e   :  { %9020 = vmatpush3.bf16.msra.mxu0 %v11127_v43  ;;  %v13260_v27 = vadd.f32 %v8548_v26, %v2730_v25  ;;  %v8549_v43 = vpop.f32.mrb[72].mxu1  ;;  %v11159_v25 = vld [vmem:[%s15522_s1 + $0x5a0] sm:$0xff]  }
 0x18f   :  { %9021 = vmatprep.subr.bf16.mxu0 %v11129_v47 }
 0x190   :  { %9060 = vmatpush3.bf16.msra.mxu1 %v11128_v44  ;;  %v8513_v44 = vpop.f32.mrb[75].mxu0 }
 0x191   :  { %9061 = vmatprep.subr.bf16.mxu1 %v11130_v50  ;;  %4059 = vmatmul.mubr.bf16.gmra.mrb[160].mxu0 %v10652_v34  ;;  %v11145_v34 = vld [vmem:[%s15522_s1 + $0x5c0] sm:$0xff]   ;;  %v8514_v47 = vadd.f32 %v8513_v44, %v8512_v41  ;;  %v8550_v50 = vpop.f32.mrb[73].mxu1  ;;  %v8515_v2 = vpop.f32.mrb[76].mxu0 }
 0x192   :  { %9022 = vmatpush3.bf16.msra.mxu0 %v11131_v59  ;;  %4066 = vmatprep.mubr.bf16.mxu0 %v7737_v51  ;;  %v8551_v48 = vadd.f32 %v8550_v50, %v8549_v43  ;;  %v8552_v62 = vpop.f32.mrb[74].mxu1  ;;  %v10684_v50 = vld [vmem:[%s15523_s0 + $0x318] ss:$100 sps:$4 sm:$0xff]  }
 0x193   :  { %4123 = vmatmul.mubr.bf16.gmra.mrb[168].mxu1 %v10655_v35  ;;  %9023 = vmatprep.subr.bf16.mxu0 %v11133_v60  ;;  %v11146_v35 = vld [vmem:[%s15522_s1 + $0x600] sm:$0xff]   ;;  %v2738_v49 = vadd.f32 %v8514_v47, %v13122_v61  ;;  %v8553_v51 = vpop.f32.mrb[75].mxu1  ;;  %v11151_v61 = vld [vmem:[%s15522_s1 + $0x5d0] sm:$0xff]  }
 0x194   :  { %9062 = vmatpush3.bf16.msra.mxu1 %v11132_v55  ;;  %4130 = vmatprep.mubr.bf16.mxu1 %v7739_v52  ;;  %v11150_v52 = vld [vmem:[%s15522_s1 + $0x588] sm:$0xff]   ;;  %v13303_v58 = vadd.f32 %v8551_v48, %v2735_v45  ;;  %v8554_v59 = vadd.f32 %v8553_v51, %v8552_v62  ;;  %v11152_v55 = vld [vmem:[%s15522_s1 + $0x610] sm:$0xff]   ;;  %v8555_v8 = vpop.f32.mrb[76].mxu1 }
 0x195   :  { %9063 = vmatprep.subr.bf16.mxu1 %v11134_v57  ;;  %v10672_v57 = vld [vmem:[%s15523_s0 + $0x498] ss:$100 sps:$4 sm:$0xff]   ;;  %v8556_v12 = vpop.f32.mrb[77].mxu1 }
 0x196   :  { %9024 = vmatpush3.bf16.msra.mxu0 %v11135_v3  ;;  %v13311_v60 = vadd.f32 %v8554_v59, %v2738_v49  ;;  %v8516_v3 = vpop.f32.mrb[77].mxu0  ;;  %v8557_v20 = vadd.f32 %v8556_v12, %v8555_v8  ;;  %v8558_v28 = vpop.f32.mrb[78].mxu1  ;;  %v11165_v49 = vld [vmem:[%s15522_s1 + $0x5b0] sm:$0xff]   ;;  %v10687_v12 = vld [vmem:[%s15523_s0 + $0x3e0] ss:$100 sps:$4 sm:$0xff]  }
 0x197   :  { %9025 = vmatprep.subr.bf16.mxu0 %v11137_v6  ;;  %v8517_v6 = vadd.f32 %v8516_v3, %v8515_v2  ;;  %v8559_v32 = vpop.f32.mrb[79].mxu1  ;;  %v11168_v2 = vld [vmem:[%s15522_s1 + $0x5b8] sm:$0xff]   ;;  %v11173_v28 = vld [vmem:[%s15522_s1 + $0x48] sm:$0xff]  }
 0x198   :  { %9064 = vmatpush3.bf16.msra.mxu1 %v11136_v4  ;;  %v11154_v4 = vld [vmem:[%s15522_s1 + $0x5d8] sm:$0xff]  }
 0x199   :  { %9065 = vmatprep.subr.bf16.mxu1 %v11138_v7  ;;  %4067 = vmatmul.mubr.bf16.gmra.mrb[164].mxu0 %v7736_v63  ;;  %v10675_v63 = vld [vmem:[%s15523_s0 + $0x4a0] ss:$100 sps:$4 sm:$0xff]   ;;  %v8518_v7 = vpop.f32.mrb[78].mxu0  ;;  %v2743_v15 = vadd.f32 %v8517_v6, %v13161_v24 }
 0x19a   :  { %9026 = vmatpush3.bf16.msra.mxu0 %v11139_v21  ;;  %4170 = vmatprep.mubr.bf16.mxu0 %v10662_v13  ;;  %v8519_v11 = vpop.f32.mrb[79].mxu0  ;;  %v7643_v13 = vld [vmem:[%s15523_s0 + $0x55c] sm:$0x11] }
 0x19b   :  { %4131 = vmatmul.mubr.bf16.gmra.mrb[172].mxu1 %v7738_v1  ;;  %9027 = vmatprep.subr.bf16.mxu0 %v11141_v17  ;;  %v11153_v1 = vld [vmem:[%s15522_s1 + $0x590] sm:$0xff]   ;;  %v11157_v21 = vld [vmem:[%s15522_s1 + $0x5e0] sm:$0xff]   ;;  %v13350_v24 = vadd.f32 %v8557_v20, %v2743_v15  ;;  %v7741_v17 = vcombine.high %v7643_v13, %v7643_v13  ;;  %v8577_v26 = vpop.f32.mrb[80].mxu0  ;;  %v7740_v37 = vcombine.low %v7643_v13, %v7643_v13 }
 0x19c   :  { %9066 = vmatpush3.bf16.msra.mxu1 %v11140_v18  ;;  %4234 = vmatprep.mubr.bf16.mxu1 %v10665_v14  ;;  %v7644_v14 = vld [vmem:[%s15523_s0 + $0x564] sm:$0x11] }
 0x19d   :  { %9067 = vmatprep.subr.bf16.mxu1 %v11142_v23  ;;  %v11158_v18 = vld [vmem:[%s15522_s1 + $0x620] sm:$0xff]   ;;  %v7743_v23 = vcombine.high %v7644_v14, %v7644_v14 }
 0x19e   :  { %9028 = vmatpush3.bf16.msra.mxu0 %v11143_v33  ;;  %v8578_v33 = vpop.f32.mrb[81].mxu0  ;;  %v11171_v15 = vld [vmem:[%s15522_s1] sm:$0xff]  }
 0x19f   :  { %9093 = vmatprep.subr.bf16.mxu0 %v11145_v34  ;;  %v8579_v34 = vadd.f32 %v8578_v33, %v8577_v26  ;;  %v11176_v33 = vld [vmem:[%s15522_s1 + $0x88] sm:$0xff]  }
 0x1a0   :  { %9068 = vmatpush3.bf16.msra.mxu1 %v11144_v30  ;;  %v8617_v30 = vpop.f32.mrb[80].mxu1 }
 0x1a1   :  { %10153 = vmatprep.subr.bf16.mxu1 %v11146_v35  ;;  %4171 = vmatmul.mubr.bf16.vlgmr.msra.gmra.mrb[168].mxu0 %v10660_v29  ;;  %v11160_v29 = vld [vmem:[%s15522_s1 + $0x5e8] sm:$0xff]   ;;  %v8618_v36 = vpop.f32.mrb[81].mxu1  ;;  %v2847_v43 = vadd.f32 %v8579_v34, %v13207_v56  ;;  %v10685_v56 = vld [vmem:[%s15523_s0 + $0x31c] ss:$100 sps:$4 sm:$0xff]  }
 0x1a2   :  { %9094 = vmatpush3.bf16.msra.mxu0 %v11147_v42  ;;  %4178 = vmatprep.mubr.bf16.mxu0 %v10666_v38  ;;  %v7742_v38 = vcombine.low %v7644_v14, %v7644_v14  ;;  %v8619_v41 = vadd.f32 %v8618_v36, %v8617_v30  ;;  %v8620_v42 = vpop.f32.mrb[82].mxu1 }
 0x1a3   :  { %4235 = vmatmul.mubr.bf16.vlgmr.msra.gmra.mrb[176].mxu1 %v10663_v31  ;;  %9095 = vmatprep.subr.bf16.mxu0 %v11148_v46  ;;  %v11161_v31 = vld [vmem:[%s15522_s1 + $0x628] sm:$0xff]   ;;  %v8621_v45 = vpop.f32.mrb[83].mxu1  ;;  %v11163_v46 = vld [vmem:[%s15522_s1 + $0x5f0] sm:$0xff]  }
 0x1a4   :  { %10154 = vmatpush3.bf16.msra.mxu1 %v11146_v35  ;;  %4242 = vmatprep.mubr.bf16.mxu1 %v10669_v39  ;;  %v8580_v35 = vpop.f32.mrb[82].mxu0  ;;  %v11162_v39 = vld [vmem:[%s15522_s1 + $0x5a8] sm:$0xff]   ;;  %v8622_v47 = vadd.f32 %v8621_v45, %v8620_v42  ;;  %v13378_v62 = vadd.f32 %v8619_v41, %v2847_v43  ;;  %v8623_v59 = vpop.f32.mrb[84].mxu1  ;;  %v11179_v45 = vld [vmem:[%s15522_s1 + $0x10] sm:$0xff]  }
 0x1a5   :  { %10155 = vmatprep.subr.bf16.mxu1 %v11149_v53  ;;  %v8581_v40 = vpop.f32.mrb[83].mxu0  ;;  %v10690_v42 = vld [vmem:[%s15523_s0 + $0x4a8] ss:$100 sps:$4 sm:$0xff]  }
 0x1a6   :  { %9096 = vmatpush3.bf16.msra.mxu0 %v11150_v52  ;;  %v8582_v44 = vadd.f32 %v8581_v40, %v8580_v35  ;;  %v8583_v51 = vpop.f32.mrb[84].mxu0  ;;  %v11178_v40 = vld [vmem:[%s15522_s1 + $0xd0] sm:$0xff]  }
 0x1a7   :  { %9097 = vmatprep.subr.bf16.mxu0 %v11151_v61  ;;  %v8584_v52 = vpop.f32.mrb[85].mxu0 }
 0x1a8   :  { %10156 = vmatpush3.bf16.msra.mxu1 %v11149_v53  ;;  %v11164_v53 = vld [vmem:[%s15522_s1 + $0x630] sm:$0xff]   ;;  %v2850_v48 = vadd.f32 %v8582_v44, %v13221_v0  ;;  %v11167_v0 = vld [vmem:[%s15522_s1 + $0x638] sm:$0xff]   ;;  %v8585_v61 = vadd.f32 %v8584_v52, %v8583_v51 }
 0x1a9   :  { %10157 = vmatprep.subr.bf16.mxu1 %v11152_v55  ;;  %4179 = vmatmul.mubr.bf16.gmra.mrb[172].mxu0 %v10668_v54  ;;  %v11166_v54 = vld [vmem:[%s15522_s1 + $0x5f8] sm:$0xff]   ;;  %v7645_v52 = vld [vmem:[%s15523_s0 + $0x56c] sm:$0x11] }
 0x1aa   :  { %9098 = vmatpush3.bf16.msra.mxu0 %v11153_v1  ;;  %4186 = vmatprep.mubr.bf16.mxu0 %v10672_v57  ;;  %v8624_v57 = vpop.f32.mrb[85].mxu1  ;;  %v10686_v1 = vld [vmem:[%s15523_s0 + $0x3e4] ss:$100 sps:$4 sm:$0xff]   ;;  %v2855_v6 = vadd.f32 %v8585_v61, %v13255_v22  ;;  %v10693_v22 = vld [vmem:[%s15523_s0 + $0x4ac] ss:$100 sps:$4 sm:$0xff]   ;;  %v11184_v61 = vld [vmem:[%s15522_s1 + $0x98] sm:$0xff]  }
 0x1ab   :  { %4243 = vmatmul.mubr.bf16.gmra.mrb[180].mxu1 %v10671_v16  ;;  %9099 = vmatprep.subr.bf16.mxu0 %v11154_v4  ;;  %v13389_v16 = vadd.f32 %v8622_v47, %v2850_v48  ;;  %v8625_v4 = vadd.f32 %v8624_v57, %v8623_v59  ;;  %v11181_v47 = vld [vmem:[%s15522_s1 + $0x58] sm:$0xff]  }
 0x1ac   :  { %10158 = vmatpush3.bf16.msra.mxu1 %v11152_v55  ;;  %4250 = vmatprep.mubr.bf16.mxu1 %v10675_v63  ;;  %v8586_v55 = vpop.f32.mrb[86].mxu0  ;;  %v10682_v63 = vld [vmem:[%s15523_s0 + $0x314] ss:$100 sps:$4 sm:$0xff]  }
 0x1ad   :  { %10159 = vmatprep.subr.bf16.mxu1 %v11155_v5  ;;  %v8587_v3 = vpop.f32.mrb[87].mxu0  ;;  %v13414_v14 = vadd.f32 %v8625_v4, %v2855_v6  ;;  %v11183_v59 = vld [vmem:[%s15522_s1 + $0x18] sm:$0xff]  }
 0x1ae   :  { %9100 = vmatpush3.bf16.msra.mxu0 %v11156_v19  ;;  %v8588_v7 = vadd.f32 %v8587_v3, %v8586_v55  ;;  %v11172_v19 = vld [vmem:[%s15522_s1 + $0x80] sm:$0xff]   ;;  %v8589_v20 = vpop.f32.mrb[88].mxu0 }
 0x1af   :  { %9101 = vmatprep.subr.bf16.mxu0 %v11157_v21  ;;  %v11186_v3 = vld [vmem:[%s15522_s1 + $0xe0] sm:$0xff]  }
 0x1b0   :  { %10160 = vmatpush3.bf16.msra.mxu1 %v11155_v5  ;;  %v8626_v5 = vpop.f32.mrb[86].mxu1  ;;  %v2858_v13 = vadd.f32 %v8588_v7, %v13260_v27  ;;  %v11174_v27 = vld [vmem:[%s15522_s1 + $0xc8] sm:$0xff]   ;;  %v11187_v7 = vld [vmem:[%s15522_s1 + $0x20] sm:$0xff]  }
 0x1b1   :  { %10161 = vmatprep.subr.bf16.mxu1 %v11158_v18  ;;  %4187 = vmatmul.mubr.bf16.gmra.mrb[176].mxu0 %v10674_v9  ;;  %v8627_v8 = vpop.f32.mrb[87].mxu1  ;;  %v11169_v9 = vld [vmem:[%s15522_s1 + $0x40] sm:$0xff]  }
 0x1b2   :  { %9102 = vmatpush3.bf16.msra.mxu0 %v11159_v25  ;;  %4194 = vmatprep.mubr.bf16.mxu0 %v7741_v17  ;;  %v8628_v11 = vadd.f32 %v8627_v8, %v8626_v5  ;;  %v8629_v32 = vpop.f32.mrb[88].mxu1  ;;  %v10689_v17 = vld [vmem:[%s15523_s0 + $0x3dc] ss:$100 sps:$4 sm:$0xff]   ;;  %v7745_v5 = vcombine.high %v7645_v52, %v7645_v52  ;;  %v11189_v8 = vld [vmem:[%s15522_s1 + $0x68] sm:$0xff]  }
 0x1b3   :  { %4251 = vmatmul.mubr.bf16.gmra.mrb[184].mxu1 %v10677_v10  ;;  %9103 = vmatprep.subr.bf16.mxu0 %v11160_v29  ;;  %v11170_v10 = vld [vmem:[%s15522_s1 + $0xc0] sm:$0xff]   ;;  %v8630_v26 = vpop.f32.mrb[89].mxu1  ;;  %v10694_v29 = vld [vmem:[%s15523_s0 + $0x574] ss:$0 sps:$4 sm:$0x11]  }
 0x1b4   :  { %10162 = vmatpush3.bf16.msra.mxu1 %v11158_v18  ;;  %4258 = vmatprep.mubr.bf16.mxu1 %v7743_v23  ;;  %v13428_v21 = vadd.f32 %v8628_v11, %v2858_v13  ;;  %v8590_v18 = vpop.f32.mrb[89].mxu0  ;;  %v8631_v34 = vadd.f32 %v8630_v26, %v8629_v32  ;;  %v8632_v35 = vpop.f32.mrb[90].mxu1  ;;  %v7744_v13 = vcombine.low %v7645_v52, %v7645_v52  ;;  %v11206_v52 = vld [vmem:[%s15522_s1 + $0x1c8] sm:$0xff]  }
 0x1b5   :  { %10163 = vmatprep.subr.bf16.mxu1 %v11161_v31  ;;  %v8591_v23 = vadd.f32 %v8590_v18, %v8589_v20  ;;  %v8592_v25 = vpop.f32.mrb[90].mxu0 }
 0x1b6   :  { %9104 = vmatpush3.bf16.msra.mxu0 %v11162_v39  ;;  %v8593_v30 = vpop.f32.mrb[91].mxu0  ;;  %v11177_v39 = vld [vmem:[%s15522_s1 + $0x50] sm:$0xff]  }
 0x1b7   :  { %9105 = vmatprep.subr.bf16.mxu0 %v11163_v46  ;;  %v2863_v36 = vadd.f32 %v8591_v23, %v13303_v58  ;;  %v10702_v58 = vld [vmem:[%s15523_s0 + $0x584] ss:$100 sps:$4 sm:$0xff]   ;;  %v11180_v46 = vld [vmem:[%s15522_s1 + $0x90] sm:$0xff]  }
 0x1b8   :  { %10164 = vmatpush3.bf16.msra.mxu1 %v11161_v31  ;;  %v11175_v31 = vld [vmem:[%s15522_s1 + $0x8] sm:$0xff]   ;;  %v11194_v23 = vld [vmem:[%s15522_s1 + $0xf0] sm:$0xff]  }
 0x1b9   :  { %10165 = vmatprep.subr.bf16.mxu1 %v11164_v53  ;;  %4195 = vmatmul.mubr.bf16.gmra.mrb[180].mxu0 %v7740_v37  ;;  %v8594_v37 = vadd.f32 %v8593_v30, %v8592_v25  ;;  %v13456_v44 = vadd.f32 %v8631_v34, %v2863_v36  ;;  %v11198_v30 = vld [vmem:[%s15522_s1 + $0xf8] sm:$0xff]  }
 0x1ba   :  { %9106 = vmatpush3.bf16.msra.mxu0 %v11165_v49  ;;  %4298 = vmatprep.mubr.bf16.mxu0 %v10684_v50 }
 0x1bb   :  { %4259 = vmatmul.mubr.bf16.gmra.mrb[188].mxu1 %v7742_v38  ;;  %9107 = vmatprep.subr.bf16.mxu0 %v11166_v54  ;;  %v8633_v38 = vpop.f32.mrb[91].mxu1  ;;  %v2866_v43 = vadd.f32 %v8594_v37, %v13311_v60  ;;  %v11182_v60 = vld [vmem:[%s15522_s1 + $0xd8] sm:$0xff]  }
 0x1bc   :  { %10166 = vmatpush3.bf16.msra.mxu1 %v11164_v53  ;;  %10169 = vmatprep.mubr.bf16.mxu1 %v10685_v56  ;;  %v8634_v41 = vadd.f32 %v8633_v38, %v8632_v35  ;;  %v8595_v53 = vpop.f32.mrb[92].mxu0  ;;  %v8635_v48 = vpop.f32.mrb[92].mxu1  ;;  %v10697_v38 = vld [vmem:[%s15523_s0 + $0x578] ss:$100 sps:$4 sm:$0xff]  }
 0x1bd   :  { %10167 = vmatprep.subr.bf16.mxu1 %v11167_v0  ;;  %v8596_v56 = vpop.f32.mrb[93].mxu0  ;;  %v8636_v54 = vpop.f32.mrb[93].mxu1 }
 0x1be   :  { %9108 = vmatpush3.bf16.msra.mxu0 %v11168_v2  ;;  %v13470_v50 = vadd.f32 %v8634_v41, %v2866_v43  ;;  %v8597_v49 = vadd.f32 %v8596_v56, %v8595_v53  ;;  %v8598_v51 = vpop.f32.mrb[94].mxu0  ;;  %v8637_v57 = vadd.f32 %v8636_v54, %v8635_v48  ;;  %v11185_v2 = vld [vmem:[%s15522_s1 + $0x60] sm:$0xff]   ;;  %v11200_v43 = vld [vmem:[%s15522_s1 + $0xb8] sm:$0xff]  }
 0x1bf   :  { %9145 = vmatprep.subr.bf16.mxu0 %v11169_v9  ;;  %v8599_v55 = vpop.f32.mrb[95].mxu0  ;;  %v11190_v9 = vld [vmem:[%s15522_s1 + $0xe8] sm:$0xff]   ;;  %v11203_v54 = vld [vmem:[%s15522_s1 + $0x100] sm:$0xff]  }
 0x1c0   :  { %10168 = vmatpush3.bf16.msra.mxu1 %v11167_v0  ;;  %v10692_v0 = vld [vmem:[%s15523_s0 + $0x4a4] ss:$100 sps:$4 sm:$0xff]  }
 0x1c1   :  { %9185 = vmatprep.subr.bf16.mxu1 %v11170_v10  ;;  %4299 = vmatmul.mubr.bf16.vlgmr.msra.gmra.mrb[184].mxu0 %v10682_v63  ;;  %v8638_v63 = vpop.f32.mrb[94].mxu1  ;;  %v10147_v10 = vpop.f32.mrb[96].mxu0  ;;  %v10703_v48 = vld [vmem:[%s15523_s0 + $0x644] ss:$100 sps:$4 sm:$0xff]  }
 0x1c2   :  { %9146 = vmatpush3.bf16.msra.mxu0 %v11171_v15  ;;  %4306 = vmatprep.mubr.bf16.mxu0 %v10687_v12  ;;  %v8639_v4 = vpop.f32.mrb[95].mxu1  ;;  %v13504_v12 = vadd.f32 %v10147_v10, %v13414_v14  ;;  %v10708_v55 = vld [vmem:[%s15523_s0 + $0x648] ss:$100 sps:$4 sm:$0xff]   ;;  %v11212_v10 = vld [vmem:[%s15522_s1 + $0x190] sm:$0xff]  }
 0x1c3   :  { %10170 = vmatmul.mubr.bf16.vlgmr.msra.gmra.mrb[192].mxu1 %v10686_v1  ;;  %9147 = vmatprep.subr.bf16.mxu0 %v11173_v28  ;;  %v2871_v1 = vadd.f32 %v8597_v49, %v13350_v24  ;;  %v11188_v24 = vld [vmem:[%s15522_s1 + $0xa0] sm:$0xff]   ;;  %v8669_v11 = vpop.f32.mrb[96].mxu1  ;;  %v11191_v28 = vld [vmem:[%s15522_s1 + $0x28] sm:$0xff]   ;;  %v11209_v4 = vld [vmem:[%s15522_s1 + $0x150] sm:$0xff]  }
 0x1c4   :  { %9186 = vmatpush3.bf16.msra.mxu1 %v11172_v19  ;;  %10173 = vmatprep.mubr.bf16.mxu1 %v10693_v22  ;;  %v2974_v22 = vpop.f32.mrb[97].mxu0  ;;  %v8670_v15 = vpop.f32.mrb[97].mxu1  ;;  %v10705_v49 = vld [vmem:[%s15523_s0 + $0x64c] ss:$100 sps:$4 sm:$0xff]  }
 0x1c5   :  { %9187 = vmatprep.subr.bf16.mxu1 %v11174_v27  ;;  %v2935_v6 = vadd.f32 %v8637_v57, %v2871_v1  ;;  %v13507_v19 = vadd.f32 %v2974_v22, %v13378_v62  ;;  %v10148_v20 = vpop.f32.mrb[98].mxu0  ;;  %v11192_v27 = vld [vmem:[%s15522_s1 + $0xa8] sm:$0xff]   ;;  %v13515_v18 = vadd.f32 %v8670_v15, %v8669_v11  ;;  %v8672_v14 = vpop.f32.mrb[98].mxu1  ;;  %v11193_v62 = vld [vmem:[%s15522_s1 + $0x70] sm:$0xff]   ;;  %v11213_v11 = vld [vmem:[%s15522_s1 + $0x158] sm:$0xff]  }
 0x1c6   :  { %9148 = vmatpush3.bf16.msra.mxu0 %v11175_v31  ;;  %v13518_v32 = vadd.f32 %v10148_v20, %v13428_v21  ;;  %v8673_v25 = vpop.f32.mrb[99].mxu1  ;;  %v10699_v21 = vld [vmem:[%s15523_s0 + $0x57c] ss:$100 sps:$4 sm:$0xff]   ;;  %v11195_v31 = vld [vmem:[%s15522_s1 + $0x30] sm:$0xff]   ;;  %v11207_v63 = vld [vmem:[%s15522_s1 + $0x108] sm:$0xff]  }
 0x1c7   :  { %9149 = vmatprep.subr.bf16.mxu0 %v11177_v39  ;;  %v10700_v39 = vld [vmem:[%s15523_s0 + $0x580] ss:$100 sps:$4 sm:$0xff]   ;;  %v11208_v1 = vld [vmem:[%s15522_s1 + $0x188] sm:$0xff]   ;;  %v11214_v22 = vld [vmem:[%s15522_s1 + $0x1d8] sm:$0xff]  }
 0x1c8   :  { %9188 = vmatpush3.bf16.msra.mxu1 %v11176_v33  ;;  %v11196_v33 = vld [vmem:[%s15522_s1 + $0xb0] sm:$0xff]  }
 0x1c9   :  { %9189 = vmatprep.subr.bf16.mxu1 %v11178_v40  ;;  %4307 = vmatmul.mubr.bf16.gmra.mrb[188].mxu0 %v10689_v17  ;;  %v2977_v17 = vpop.f32.mrb[99].mxu0  ;;  %v10714_v15 = vld [vmem:[%s15523_s0 + $0x710] ss:$100 sps:$4 sm:$0xff]  }
 0x1ca   :  { %9150 = vmatpush3.bf16.msra.mxu0 %v11179_v45  ;;  %4314 = vmatprep.mubr.bf16.mxu0 %v10690_v42  ;;  %v13527_v26 = vadd.f32 %v2977_v17, %v13389_v16  ;;  %v11197_v16 = vld [vmem:[%s15522_s1 + $0x78] sm:$0xff]   ;;  %v10151_v34 = vpop.f32.mrb[100].mxu0 }
 0x1cb   :  { %10174 = vmatmul.mubr.bf16.gmra.mrb[196].mxu1 %v10694_v29  ;;  %9151 = vmatprep.subr.bf16.mxu0 %v11181_v47  ;;  %v13532_v29 = vadd.f32 %v8673_v25, %v8672_v14  ;;  %v13546_v36 = vadd.f32 %v10151_v34, %v2935_v6  ;;  %v2990_v37 = vpop.f32.mrb[101].mxu0  ;;  %v11202_v47 = vld [vmem:[%s15522_s1 + $0x1c0] sm:$0xff]   ;;  %v7826_v14 = vld [vmem:[%s15523_s0 + $0x7d8] sm:$0x11] }
 0x1cc   :  { %9190 = vmatpush3.bf16.msra.mxu1 %v11180_v46  ;;  %5055 = vmatprep.mubr.bf16.mxu1 %v10702_v58  ;;  %v13555_v41 = vadd.f32 %v2990_v37, %v13456_v44  ;;  %v10152_v42 = vpop.f32.mrb[102].mxu0  ;;  %v11199_v58 = vld [vmem:[%s15522_s1 + $0x38] sm:$0xff]   ;;  %v11201_v44 = vld [vmem:[%s15522_s1 + $0x140] sm:$0xff]   ;;  %v11221_v37 = vld [vmem:[%s15522_s1 + $0x168] sm:$0xff]  }
 0x1cd   :  { %9191 = vmatprep.subr.bf16.mxu1 %v11182_v60  ;;  %v8675_v35 = vpop.f32.mrb[100].mxu1  ;;  %v2993_v53 = vpop.f32.mrb[103].mxu0  ;;  %v11215_v17 = vld [vmem:[%s15522_s1 + $0x118] sm:$0xff]   ;;  %v11219_v34 = vld [vmem:[%s15522_s1 + $0x120] sm:$0xff]  }
 0x1ce   :  { %9152 = vmatpush3.bf16.msra.mxu0 %v11183_v59  ;;  %v8676_v40 = vpop.f32.mrb[101].mxu1  ;;  %v13572_v56 = vadd.f32 %v2993_v53, %v13470_v50  ;;  %v11204_v50 = vld [vmem:[%s15522_s1 + $0x180] sm:$0xff]  }
 0x1cf   :  { %9153 = vmatprep.subr.bf16.mxu0 %v11185_v2  ;;  %v13563_v45 = vadd.f32 %v8676_v40, %v8675_v35  ;;  %v8678_v46 = vpop.f32.mrb[102].mxu1  ;;  %v11220_v35 = vld [vmem:[%s15522_s1 + $0x1a0] sm:$0xff]  }
 0x1d0   :  { %9192 = vmatpush3.bf16.msra.mxu1 %v11184_v61  ;;  %v8679_v60 = vpop.f32.mrb[103].mxu1  ;;  %v10707_v61 = vld [vmem:[%s15523_s0 + $0x640] ss:$100 sps:$4 sm:$0xff]  }
 0x1d1   :  { %9193 = vmatprep.subr.bf16.mxu1 %v11186_v3  ;;  %4315 = vmatmul.mubr.bf16.gmra.mrb[192].mxu0 %v10692_v0  ;;  %v13580_v51 = vadd.f32 %v8679_v60, %v8678_v46  ;;  %v11205_v0 = vld [vmem:[%s15522_s1 + $0x148] sm:$0xff]   ;;  %v7915_v46 = vcombine.low %v7826_v14, %v7826_v14 }
 0x1d2   :  { %9154 = vmatpush3.bf16.msra.mxu0 %v11187_v7  ;;  %4322 = vmatprep.mubr.bf16.mxu0 %v7745_v5  ;;  %v11210_v5 = vld [vmem:[%s15522_s1 + $0x1d0] sm:$0xff]  }
 0x1d3   :  { %9155 = vmatprep.subr.bf16.mxu0 %v11189_v8  ;;  %v10709_v7 = vld [vmem:[%s15523_s0 + $0x70c] ss:$100 sps:$4 sm:$0xff]  }
 0x1d4   :  { %9194 = vmatpush3.bf16.msra.mxu1 %v11188_v24  ;;  %v10711_v24 = vld [vmem:[%s15523_s0 + $0x714] ss:$100 sps:$4 sm:$0xff]  }
 0x1d5   :  { %9195 = vmatprep.subr.bf16.mxu1 %v11190_v9  ;;  %v11211_v9 = vld [vmem:[%s15522_s1 + $0x110] sm:$0xff]  }
 0x1d6   :  { %9156 = vmatpush3.bf16.msra.mxu0 %v11191_v28  ;;  %v8681_v59 = vpop.f32.mrb[104].mxu1 }
 0x1d7   :  { %9157 = vmatprep.subr.bf16.mxu0 %v11193_v62  ;;  %v8682_v57 = vpop.f32.mrb[105].mxu1  ;;  %v11216_v62 = vld [vmem:[%s15522_s1 + $0x198] sm:$0xff]  }
 0x1d8   :  { %9196 = vmatpush3.bf16.msra.mxu1 %v11192_v27  ;;  %v13606_v2 = vadd.f32 %v8682_v57, %v8681_v59  ;;  %v8684_v3 = vpop.f32.mrb[106].mxu1  ;;  %v7825_v27 = vld [vmem:[%s15523_s0 + $0x7d0] sm:$0x11] }
 0x1d9   :  { %9197 = vmatprep.subr.bf16.mxu1 %v11194_v23  ;;  %4323 = vmatmul.mubr.bf16.gmra.mrb[196].mxu0 %v7744_v13  ;;  %v8685_v6 = vpop.f32.mrb[107].mxu1  ;;  %v10713_v13 = vld [vmem:[%s15523_s0 + $0x708] ss:$100 sps:$4 sm:$0xff]  }
 0x1da   :  { %9158 = vmatpush3.bf16.msra.mxu0 %v11195_v31  ;;  %4991 = vmatprep.mubr.bf16.mxu0 %v10699_v21  ;;  %v13620_v8 = vadd.f32 %v8685_v6, %v8684_v3  ;;  %v11217_v21 = vld [vmem:[%s15522_s1 + $0x160] sm:$0xff]   ;;  %v10721_v57 = vld [vmem:[%s15523_s0 + $0x58c] ss:$100 sps:$4 sm:$0xff]  }
 0x1db   :  { %9159 = vmatprep.subr.bf16.mxu0 %v11197_v16  ;;  %v11218_v31 = vld [vmem:[%s15522_s1 + $0x1e0] sm:$0xff]   ;;  %v7914_v16 = vcombine.high %v7825_v27, %v7825_v27 }
 0x1dc   :  { %9198 = vmatpush3.bf16.msra.mxu1 %v11196_v33 }
 0x1dd   :  { %9199 = vmatprep.subr.bf16.mxu1 %v11198_v30  ;;  %v7916_v30 = vcombine.high %v7826_v14, %v7826_v14  ;;  %v11232_v14 = vld [vmem:[%s15522_s1 + $0x1b8] sm:$0xff]  }
 0x1de   :  { %9160 = vmatpush3.bf16.msra.mxu0 %v11199_v58  ;;  %v8687_v20 = vpop.f32.mrb[108].mxu1 }
 0x1df   :  { %9225 = vmatprep.subr.bf16.mxu0 %v11201_v44  ;;  %v8688_v28 = vpop.f32.mrb[109].mxu1 }
 0x1e0   :  { %9200 = vmatpush3.bf16.msra.mxu1 %v11200_v43  ;;  %v13652_v23 = vadd.f32 %v8688_v28, %v8687_v20  ;;  %v8690_v25 = vpop.f32.mrb[110].mxu1  ;;  %v7913_v43 = vcombine.low %v7825_v27, %v7825_v27  ;;  %v11231_v20 = vld [vmem:[%s15522_s1 + $0x138] sm:$0xff]  }
 0x1e1   :  { %9265 = vmatprep.subr.bf16.mxu1 %v11202_v47  ;;  %4992 = vmatmul.mubr.bf16.vlgmr.msra.gmra.mrb[200].mxu0 %v10697_v38  ;;  %v8691_v33 = vpop.f32.mrb[111].mxu1  ;;  %v11222_v38 = vld [vmem:[%s15522_s1 + $0x1e8] sm:$0xff]   ;;  %v11233_v25 = vld [vmem:[%s15522_s1 + $0x240] sm:$0xff]  }
 0x1e2   :  { %9226 = vmatpush3.bf16.msra.mxu0 %v11203_v54  ;;  %4999 = vmatprep.mubr.bf16.mxu0 %v10703_v48  ;;  %v11223_v47 = vld [vmem:[%s15522_s1 + $0x128] sm:$0xff]  }
 0x1e3   :  { %5056 = vmatmul.mubr.bf16.vlgmr.msra.gmra.mrb[200].mxu1 %v10700_v39  ;;  %9227 = vmatprep.subr.bf16.mxu0 %v11205_v0  ;;  %v11225_v0 = vld [vmem:[%s15522_s1 + $0x170] sm:$0xff]  }
 0x1e4   :  { %9266 = vmatpush3.bf16.msra.mxu1 %v11204_v50  ;;  %5063 = vmatprep.mubr.bf16.mxu1 %v10705_v49  ;;  %v11224_v49 = vld [vmem:[%s15522_s1 + $0x1a8] sm:$0xff]  }
 0x1e5   :  { %9267 = vmatprep.subr.bf16.mxu1 %v11206_v52  ;;  %v11226_v52 = vld [vmem:[%s15522_s1 + $0x1f0] sm:$0xff]  }
 0x1e6   :  { %9228 = vmatpush3.bf16.msra.mxu0 %v11207_v63  ;;  %v10724_v63 = vld [vmem:[%s15523_s0 + $0x594] ss:$100 sps:$4 sm:$0xff]  }
 0x1e7   :  { %9229 = vmatprep.subr.bf16.mxu0 %v11209_v4  ;;  %v11228_v4 = vld [vmem:[%s15522_s1 + $0x1b0] sm:$0xff]  }
 0x1e8   :  { %9268 = vmatpush3.bf16.msra.mxu1 %v11208_v1 }
 0x1e9   :  { %9269 = vmatprep.subr.bf16.mxu1 %v11210_v5  ;;  %5000 = vmatmul.mubr.bf16.gmra.mrb[204].mxu0 %v10707_v61  ;;  %v11229_v5 = vld [vmem:[%s15522_s1 + $0x178] sm:$0xff]  }
 0x1ea   :  { %9230 = vmatpush3.bf16.msra.mxu0 %v11211_v9  ;;  %5007 = vmatprep.mubr.bf16.mxu0 %v10709_v7 }
 0x1eb   :  { %5064 = vmatmul.mubr.bf16.gmra.mrb[204].mxu1 %v10708_v55  ;;  %9231 = vmatprep.subr.bf16.mxu0 %v11213_v11  ;;  %v10719_v11 = vld [vmem:[%s15523_s0 + $0x588] ss:$100 sps:$4 sm:$0xff]  }
 0x1ec   :  { %9270 = vmatpush3.bf16.msra.mxu1 %v11212_v10  ;;  %5071 = vmatprep.mubr.bf16.mxu1 %v10711_v24 }
 0x1ed   :  { %9271 = vmatprep.subr.bf16.mxu1 %v11214_v22  ;;  %v10722_v22 = vld [vmem:[%s15523_s0 + $0x590] ss:$100 sps:$4 sm:$0xff]  }
 0x1ee   :  { %9232 = vmatpush3.bf16.msra.mxu0 %v11215_v17 }
 0x1ef   :  { %9233 = vmatprep.subr.bf16.mxu0 %v11217_v21  ;;  %v11234_v21 = vld [vmem:[%s15522_s1 + $0x2c0] sm:$0xff]  }
 0x1f0   :  { %9272 = vmatpush3.bf16.msra.mxu1 %v11216_v62 }
 0x1f1   :  { %9273 = vmatprep.subr.bf16.mxu1 %v11218_v31  ;;  %5008 = vmatmul.mubr.bf16.gmra.mrb[208].mxu0 %v10713_v13 }
 0x1f2   :  { %9234 = vmatpush3.bf16.msra.mxu0 %v11219_v34  ;;  %5015 = vmatprep.mubr.bf16.mxu0 %v7914_v16  ;;  %v10728_v34 = vld [vmem:[%s15523_s0 + $0x65c] ss:$100 sps:$4 sm:$0xff]  }
 0x1f3   :  { %5072 = vmatmul.mubr.bf16.gmra.mrb[208].mxu1 %v10714_v15  ;;  %9235 = vmatprep.subr.bf16.mxu0 %v11221_v37 }
 0x1f4   :  { %9274 = vmatpush3.bf16.msra.mxu1 %v11220_v35  ;;  %v8709_v39 = vpop.f32.mrb[104].mxu0  ;;  %5079 = vmatprep.mubr.bf16.mxu1 %v7916_v30  ;;  %v10725_v30 = vld [vmem:[%s15523_s0 + $0x654] ss:$100 sps:$4 sm:$0xff]  }
 0x1f5   :  { %9275 = vmatprep.subr.bf16.mxu1 %v11222_v38  ;;  %v8710_v42 = vpop.f32.mrb[105].mxu0  ;;  %v11236_v38 = vld [vmem:[%s15522_s1 + $0x280] sm:$0xff]  }
 0x1f6   :  { %v8749_v40 = vpop.f32.mrb[112].mxu1  ;;  %v8711_v53 = vadd.f32 %v8710_v42, %v8709_v39  ;;  %v8712_v44 = vpop.f32.mrb[106].mxu0  ;;  %9236 = vmatpush3.bf16.msra.mxu0 %v11223_v47  ;;  %v11237_v39 = vld [vmem:[%s15522_s1 + $0x248] sm:$0xff]  }
 0x1f7   :  { %v8750_v58 = vpop.f32.mrb[113].mxu1  ;;  %v8713_v54 = vpop.f32.mrb[107].mxu0  ;;  %9237 = vmatprep.subr.bf16.mxu0 %v11225_v0 }
 0x1f8   :  { %v8751_v60 = vadd.f32 %v8750_v58, %v8749_v40  ;;  %v8752_v48 = vpop.f32.mrb[114].mxu1  ;;  %9276 = vmatpush3.bf16.msra.mxu1 %v11224_v49  ;;  %v3661_v59 = vadd.f32 %v8711_v53, %v13515_v18  ;;  %v8714_v61 = vadd.f32 %v8713_v54, %v8712_v44  ;;  %v11227_v18 = vld [vmem:[%s15522_s1 + $0x130] sm:$0xff]   ;;  %v10730_v44 = vld [vmem:[%s15523_s0 + $0x658] ss:$100 sps:$4 sm:$0xff]  }
 0x1f9   :  { %v8753_v50 = vpop.f32.mrb[115].mxu1  ;;  %9277 = vmatprep.subr.bf16.mxu1 %v11226_v52  ;;  %5016 = vmatmul.mubr.bf16.gmra.mrb[212].mxu0 %v7913_v43  ;;  %v10727_v53 = vld [vmem:[%s15523_s0 + $0x650] ss:$100 sps:$4 sm:$0xff]  }
 0x1fa   :  { %v8754_v55 = vadd.f32 %v8753_v50, %v8752_v48  ;;  %v3664_v1 = vadd.f32 %v8714_v61, %v13532_v29  ;;  %v13692_v3 = vadd.f32 %v8751_v60, %v3661_v59  ;;  %9238 = vmatpush3.bf16.msra.mxu0 %v11227_v18  ;;  %v11230_v29 = vld [vmem:[%s15522_s1 + $0x1f8] sm:$0xff]   ;;  %5119 = vmatprep.mubr.bf16.mxu0 %v10721_v57  ;;  %v11239_v48 = vld [vmem:[%s15522_s1 + $0x208] sm:$0xff]   ;;  %v11241_v59 = vld [vmem:[%s15522_s1 + $0x250] sm:$0xff]  }
 0x1fb   :  { %5080 = vmatmul.mubr.bf16.gmra.mrb[212].mxu1 %v7915_v46  ;;  %9239 = vmatprep.subr.bf16.mxu0 %v11229_v5  ;;  %v11240_v50 = vld [vmem:[%s15522_s1 + $0x288] sm:$0xff]   ;;  %v11242_v61 = vld [vmem:[%s15522_s1 + $0x2d0] sm:$0xff]  }
 0x1fc   :  { %9278 = vmatpush3.bf16.msra.mxu1 %v11228_v4  ;;  %v13706_v6 = vadd.f32 %v8754_v55, %v3664_v1  ;;  %v8715_v7 = vpop.f32.mrb[108].mxu0  ;;  %5183 = vmatprep.mubr.bf16.mxu1 %v10724_v63  ;;  %v10731_v1 = vld [vmem:[%s15523_s0 + $0x71c] ss:$100 sps:$4 sm:$0xff]   ;;  %v10734_v18 = vld [vmem:[%s15523_s0 + $0x724] ss:$100 sps:$4 sm:$0xff]  }
 0x1fd   :  { %9279 = vmatprep.subr.bf16.mxu1 %v11230_v29  ;;  %v8716_v9 = vpop.f32.mrb[109].mxu0  ;;  %v11244_v29 = vld [vmem:[%s15522_s1 + $0x290] sm:$0xff]  }
 0x1fe   :  { %v8755_v24 = vpop.f32.mrb[116].mxu1  ;;  %v8717_v13 = vadd.f32 %v8716_v9, %v8715_v7  ;;  %v8718_v15 = vpop.f32.mrb[110].mxu0  ;;  %9240 = vmatpush3.bf16.msra.mxu0 %v11231_v20  ;;  %v11245_v7 = vld [vmem:[%s15522_s1 + $0x258] sm:$0xff]   ;;  %v7827_v20 = vld [vmem:[%s15523_s0 + $0x7e0] sm:$0x11] }
 0x1ff   :  { %v8756_v10 = vpop.f32.mrb[117].mxu1  ;;  %v8719_v17 = vpop.f32.mrb[111].mxu0  ;;  %9305 = vmatprep.subr.bf16.mxu0 %v11233_v25  ;;  %v11248_v25 = vld [vmem:[%s15522_s1 + $0x298] sm:$0xff]  }
 0x200   :  { %v8757_v28 = vadd.f32 %v8756_v10, %v8755_v24  ;;  %v8758_v27 = vpop.f32.mrb[118].mxu1  ;;  %9280 = vmatpush3.bf16.msra.mxu1 %v11232_v14  ;;  %v3669_v31 = vadd.f32 %v8717_v13, %v13563_v45  ;;  %v8720_v33 = vadd.f32 %v8719_v17, %v8718_v15  ;;  %v11235_v45 = vld [vmem:[%s15522_s1 + $0x200] sm:$0xff]   ;;  %v11247_v17 = vld [vmem:[%s15522_s1 + $0x218] sm:$0xff]  }
 0x201   :  { %v8759_v62 = vpop.f32.mrb[119].mxu1  ;;  %9345 = vmatprep.subr.bf16.mxu1 %v11234_v21  ;;  %5120 = vmatmul.mubr.bf16.vlgmr.msra.gmra.mrb[216].mxu0 %v10719_v11  ;;  %v10733_v11 = vld [vmem:[%s15523_s0 + $0x718] ss:$100 sps:$4 sm:$0xff]  }
 0x202   :  { %v8760_v16 = vadd.f32 %v8759_v62, %v8758_v27  ;;  %v3672_v35 = vadd.f32 %v8720_v33, %v13580_v51  ;;  %v13734_v37 = vadd.f32 %v8757_v28, %v3669_v31  ;;  %9306 = vmatpush3.bf16.msra.mxu0 %v11235_v45  ;;  %v11238_v51 = vld [vmem:[%s15522_s1 + $0x2c8] sm:$0xff]   ;;  %5127 = vmatprep.mubr.bf16.mxu0 %v10725_v30  ;;  %v11249_v33 = vld [vmem:[%s15522_s1 + $0x260] sm:$0xff]  }
 0x203   :  { %5184 = vmatmul.mubr.bf16.vlgmr.msra.gmra.mrb[216].mxu1 %v10722_v22  ;;  %9307 = vmatprep.subr.bf16.mxu0 %v11237_v39  ;;  %v10736_v22 = vld [vmem:[%s15523_s0 + $0x720] ss:$100 sps:$4 sm:$0xff]   ;;  %v7828_v28 = vld [vmem:[%s15523_s0 + $0x7e8] sm:$0x11] }
 0x204   :  { %9346 = vmatpush3.bf16.msra.mxu1 %v11236_v38  ;;  %v13748_v40 = vadd.f32 %v8760_v16, %v3672_v35  ;;  %v8721_v42 = vpop.f32.mrb[112].mxu0  ;;  %5191 = vmatprep.mubr.bf16.mxu1 %v10728_v34  ;;  %v11250_v16 = vld [vmem:[%s15522_s1 + $0x2e0] sm:$0xff]   ;;  %v7918_v35 = vcombine.high %v7827_v20, %v7827_v20  ;;  %v7920_v45 = vcombine.high %v7828_v28, %v7828_v28 }
 0x205   :  { %9347 = vmatprep.subr.bf16.mxu1 %v11238_v51  ;;  %v8722_v43 = vpop.f32.mrb[113].mxu0  ;;  %v11251_v39 = vld [vmem:[%s15522_s1 + $0x220] sm:$0xff]  }
 0x206   :  { %v8761_v58 = vpop.f32.mrb[120].mxu1  ;;  %v8723_v47 = vadd.f32 %v8722_v43, %v8721_v42  ;;  %v8724_v60 = vpop.f32.mrb[114].mxu0  ;;  %9308 = vmatpush3.bf16.msra.mxu0 %v11239_v48  ;;  %v11252_v51 = vld [vmem:[%s15522_s1 + $0x2a0] sm:$0xff]   ;;  %v11254_v42 = vld [vmem:[%s15522_s1 + $0x2e8] sm:$0xff]  }
 0x207   :  { %v8762_v46 = vpop.f32.mrb[121].mxu1  ;;  %v8725_v0 = vpop.f32.mrb[115].mxu0  ;;  %9309 = vmatprep.subr.bf16.mxu0 %v11241_v59 }
 0x208   :  { %v8763_v49 = vadd.f32 %v8762_v46, %v8761_v58  ;;  %v8764_v54 = vpop.f32.mrb[122].mxu1  ;;  %9348 = vmatpush3.bf16.msra.mxu1 %v11240_v50  ;;  %v3677_v55 = vadd.f32 %v8723_v47, %v13606_v2  ;;  %v8726_v57 = vadd.f32 %v8725_v0, %v8724_v60  ;;  %v11243_v2 = vld [vmem:[%s15522_s1 + $0x210] sm:$0xff]   ;;  %v7919_v47 = vcombine.low %v7828_v28, %v7828_v28  ;;  %v11256_v0 = vld [vmem:[%s15522_s1 + $0x2a8] sm:$0xff]  }
 0x209   :  { %v8765_v52 = vpop.f32.mrb[123].mxu1  ;;  %9349 = vmatprep.subr.bf16.mxu1 %v11242_v61  ;;  %5128 = vmatmul.mubr.bf16.gmra.mrb[220].mxu0 %v10727_v53  ;;  %v11257_v61 = vld [vmem:[%s15522_s1 + $0x270] sm:$0xff]  }
 0x20a   :  { %v8766_v63 = vadd.f32 %v8765_v52, %v8764_v54  ;;  %v3680_v4 = vadd.f32 %v8726_v57, %v13620_v8  ;;  %v13776_v5 = vadd.f32 %v8763_v49, %v3677_v55  ;;  %9310 = vmatpush3.bf16.msra.mxu0 %v11243_v2  ;;  %v11246_v8 = vld [vmem:[%s15522_s1 + $0x2d8] sm:$0xff]   ;;  %5135 = vmatprep.mubr.bf16.mxu0 %v10731_v1  ;;  %v11255_v49 = vld [vmem:[%s15522_s1 + $0x228] sm:$0xff]   ;;  %v11258_v55 = vld [vmem:[%s15522_s1 + $0x2f0] sm:$0xff]  }
 0x20b   :  { %5192 = vmatmul.mubr.bf16.gmra.mrb[220].mxu1 %v10730_v44  ;;  %9311 = vmatprep.subr.bf16.mxu0 %v11245_v7  ;;  %v7917_v44 = vcombine.low %v7827_v20, %v7827_v20  ;;  %v11260_v7 = vld [vmem:[%s15522_s1 + $0x2b0] sm:$0xff]   ;;  %v10744_v20 = vld [vmem:[%s15523_s0 + $0x5a0] ss:$100 sps:$4 sm:$0xff]  }
 0x20c   :  { %9350 = vmatpush3.bf16.msra.mxu1 %v11244_v29  ;;  %v13790_v24 = vadd.f32 %v8766_v63, %v3680_v4  ;;  %v8727_v9 = vpop.f32.mrb[116].mxu0  ;;  %5199 = vmatprep.mubr.bf16.mxu1 %v10734_v18  ;;  %v10743_v18 = vld [vmem:[%s15523_s0 + $0x59c] ss:$100 sps:$4 sm:$0xff]   ;;  %v10746_v4 = vld [vmem:[%s15523_s0 + $0x5a4] ss:$100 sps:$4 sm:$0xff]  }
 0x20d   :  { %9351 = vmatprep.subr.bf16.mxu1 %v11246_v8  ;;  %v8728_v13 = vpop.f32.mrb[117].mxu0  ;;  %v11261_v8 = vld [vmem:[%s15522_s1 + $0x278] sm:$0xff]  }
 0x20e   :  { %v8767_v10 = vpop.f32.mrb[124].mxu1  ;;  %v8729_v27 = vadd.f32 %v8728_v13, %v8727_v9  ;;  %v8730_v14 = vpop.f32.mrb[118].mxu0  ;;  %9312 = vmatpush3.bf16.msra.mxu0 %v11247_v17 }
 0x20f   :  { %v8768_v15 = vpop.f32.mrb[125].mxu1  ;;  %v8731_v31 = vpop.f32.mrb[119].mxu0  ;;  %9313 = vmatprep.subr.bf16.mxu0 %v11249_v33  ;;  %v11263_v14 = vld [vmem:[%s15522_s1 + $0x238] sm:$0xff]   ;;  %v11265_v33 = vld [vmem:[%s15522_s1 + $0x340] sm:$0xff]  }
 0x210   :  { %v8769_v62 = vadd.f32 %v8768_v15, %v8767_v10  ;;  %9352 = vmatpush3.bf16.msra.mxu1 %v11248_v25  ;;  %v8770_v21 = vpop.f32.mrb[126].mxu1  ;;  %v3685_v34 = vadd.f32 %v8729_v27, %v13652_v23  ;;  %v11253_v23 = vld [vmem:[%s15522_s1 + $0x268] sm:$0xff]   ;;  %v10741_v15 = vld [vmem:[%s15523_s0 + $0x598] ss:$100 sps:$4 sm:$0xff]  }
 0x211   :  { %9353 = vmatprep.subr.bf16.mxu1 %v11250_v16  ;;  %v8771_v30 = vpop.f32.mrb[127].mxu1  ;;  %5136 = vmatmul.mubr.bf16.gmra.mrb[224].mxu0 %v10733_v11  ;;  %v11264_v25 = vld [vmem:[%s15522_s1 + $0x2b8] sm:$0xff]   ;;  %v11266_v16 = vld [vmem:[%s15522_s1 + $0x3c0] sm:$0xff]  }
 0x212   :  { %v13817_v38 = vadd.f32 %v8769_v62, %v3685_v34  ;;  %9314 = vmatpush3.bf16.msra.mxu0 %v11251_v39  ;;  %5143 = vmatprep.mubr.bf16.mxu0 %v7918_v35  ;;  %v10750_v39 = vld [vmem:[%s15523_s0 + $0x66c] ss:$100 sps:$4 sm:$0xff]  }
 0x213   :  { %5200 = vmatmul.mubr.bf16.gmra.mrb[224].mxu1 %v10736_v22  ;;  %9315 = vmatprep.subr.bf16.mxu0 %v11253_v23 }
 0x214   :  { %9354 = vmatpush3.bf16.msra.mxu1 %v11252_v51  ;;  %v8789_v58 = vpop.f32.mrb[120].mxu0  ;;  %5207 = vmatprep.mubr.bf16.mxu1 %v7920_v45  ;;  %v10747_v45 = vld [vmem:[%s15523_s0 + $0x664] ss:$100 sps:$4 sm:$0xff]  }
 0x215   :  { %9355 = vmatprep.subr.bf16.mxu1 %v11254_v42  ;;  %v8790_v46 = vpop.f32.mrb[121].mxu0  ;;  %v11268_v42 = vld [vmem:[%s15522_s1 + $0x380] sm:$0xff]  }
 0x216   :  { %v8829_v43 = vpop.f32.mrb[128].mxu1  ;;  %v8791_v60 = vadd.f32 %v8790_v46, %v8789_v58  ;;  %v8792_v48 = vpop.f32.mrb[122].mxu0  ;;  %9316 = vmatpush3.bf16.msra.mxu0 %v11255_v49  ;;  %v11269_v58 = vld [vmem:[%s15522_s1 + $0x348] sm:$0xff]  }
 0x217   :  { %v8830_v53 = vpop.f32.mrb[129].mxu1  ;;  %v8793_v52 = vpop.f32.mrb[123].mxu0  ;;  %9317 = vmatprep.subr.bf16.mxu0 %v11257_v61 }
 0x218   :  { %v8831_v54 = vadd.f32 %v8830_v53, %v8829_v43  ;;  %v8832_v50 = vpop.f32.mrb[130].mxu1  ;;  %9356 = vmatpush3.bf16.msra.mxu1 %v11256_v0  ;;  %v3789_v57 = vadd.f32 %v8791_v60, %v13692_v3  ;;  %v8794_v63 = vadd.f32 %v8793_v52, %v8792_v48  ;;  %v11259_v3 = vld [vmem:[%s15522_s1 + $0x230] sm:$0xff]   ;;  %v10749_v60 = vld [vmem:[%s15523_s0 + $0x660] ss:$100 sps:$4 sm:$0xff]   ;;  %v10752_v48 = vld [vmem:[%s15523_s0 + $0x668] ss:$100 sps:$4 sm:$0xff]  }
 0x219   :  { %v8833_v59 = vpop.f32.mrb[131].mxu1  ;;  %9357 = vmatprep.subr.bf16.mxu1 %v11258_v55  ;;  %5144 = vmatmul.mubr.bf16.gmra.mrb[228].mxu0 %v7917_v44 }
 0x21a   :  { %v8834_v1 = vadd.f32 %v8833_v59, %v8832_v50  ;;  %v3792_v2 = vadd.f32 %v8794_v63, %v13706_v6  ;;  %v13851_v29 = vadd.f32 %v8831_v54, %v3789_v57  ;;  %9318 = vmatpush3.bf16.msra.mxu0 %v11259_v3  ;;  %v11262_v6 = vld [vmem:[%s15522_s1 + $0x2f8] sm:$0xff]   ;;  %5247 = vmatprep.mubr.bf16.mxu0 %v10743_v18  ;;  %v11271_v50 = vld [vmem:[%s15522_s1 + $0x308] sm:$0xff]   ;;  %v11273_v57 = vld [vmem:[%s15522_s1 + $0x350] sm:$0xff]  }
 0x21b   :  { %5208 = vmatmul.mubr.bf16.gmra.mrb[228].mxu1 %v7919_v47  ;;  %9319 = vmatprep.subr.bf16.mxu0 %v11261_v8  ;;  %v11272_v59 = vld [vmem:[%s15522_s1 + $0x388] sm:$0xff]   ;;  %v11274_v63 = vld [vmem:[%s15522_s1 + $0x3d0] sm:$0xff]  }
 0x21c   :  { %9358 = vmatpush3.bf16.msra.mxu1 %v11260_v7  ;;  %v13865_v9 = vadd.f32 %v8834_v1, %v3792_v2  ;;  %v8795_v10 = vpop.f32.mrb[124].mxu0  ;;  %5311 = vmatprep.mubr.bf16.mxu1 %v10746_v4  ;;  %v10753_v2 = vld [vmem:[%s15523_s0 + $0x72c] ss:$100 sps:$4 sm:$0xff]   ;;  %v10756_v3 = vld [vmem:[%s15523_s0 + $0x734] ss:$100 sps:$4 sm:$0xff]  }
 0x21d   :  { %9359 = vmatprep.subr.bf16.mxu1 %v11262_v6  ;;  %v8796_v22 = vpop.f32.mrb[125].mxu0  ;;  %v11275_v8 = vld [vmem:[%s15522_s1 + $0x310] sm:$0xff]  }
 0x21e   :  { %v8835_v11 = vpop.f32.mrb[132].mxu1  ;;  %v8797_v28 = vadd.f32 %v8796_v22, %v8795_v10  ;;  %v8798_v27 = vpop.f32.mrb[126].mxu0  ;;  %9320 = vmatpush3.bf16.msra.mxu0 %v11263_v14  ;;  %v11277_v10 = vld [vmem:[%s15522_s1 + $0x358] sm:$0xff]   ;;  %v7829_v14 = vld [vmem:[%s15523_s0 + $0x7f0] sm:$0x11] }
 0x21f   :  { %v8836_v13 = vpop.f32.mrb[133].mxu1  ;;  %v8799_v21 = vpop.f32.mrb[127].mxu0  ;;  %9385 = vmatprep.subr.bf16.mxu0 %v11265_v33  ;;  %v11280_v33 = vld [vmem:[%s15522_s1 + $0x398] sm:$0xff]  }
 0x220   :  { %v8837_v17 = vadd.f32 %v8836_v13, %v8835_v11  ;;  %v8838_v62 = vpop.f32.mrb[134].mxu1  ;;  %9360 = vmatpush3.bf16.msra.mxu1 %v11264_v25  ;;  %v3797_v30 = vadd.f32 %v8797_v28, %v13734_v37  ;;  %v8800_v34 = vadd.f32 %v8799_v21, %v8798_v27  ;;  %v11267_v37 = vld [vmem:[%s15522_s1 + $0x300] sm:$0xff]   ;;  %v10755_v13 = vld [vmem:[%s15523_s0 + $0x728] ss:$100 sps:$4 sm:$0xff]   ;;  %v11279_v21 = vld [vmem:[%s15522_s1 + $0x318] sm:$0xff]  }
 0x221   :  { %v8839_v31 = vpop.f32.mrb[135].mxu1  ;;  %9425 = vmatprep.subr.bf16.mxu1 %v11266_v16  ;;  %5248 = vmatmul.mubr.bf16.vlgmr.msra.gmra.mrb[232].mxu0 %v10741_v15  ;;  %v10758_v15 = vld [vmem:[%s15523_s0 + $0x730] ss:$100 sps:$4 sm:$0xff]  }
 0x222   :  { %v8840_v35 = vadd.f32 %v8839_v31, %v8838_v62  ;;  %v3800_v51 = vadd.f32 %v8800_v34, %v13748_v40  ;;  %v13893_v23 = vadd.f32 %v8837_v17, %v3797_v30  ;;  %9386 = vmatpush3.bf16.msra.mxu0 %v11267_v37  ;;  %v11270_v40 = vld [vmem:[%s15522_s1 + $0x3c8] sm:$0xff]   ;;  %5255 = vmatprep.mubr.bf16.mxu0 %v10747_v45  ;;  %v7830_v17 = vld [vmem:[%s15523_s0 + $0x7f8] sm:$0x11]  ;;  %v11281_v34 = vld [vmem:[%s15522_s1 + $0x360] sm:$0xff]  }
 0x223   :  { %5312 = vmatmul.mubr.bf16.vlgmr.msra.gmra.mrb[232].mxu1 %v10744_v20  ;;  %9387 = vmatprep.subr.bf16.mxu0 %v11269_v58  ;;  %v7924_v37 = vcombine.high %v7830_v17, %v7830_v17  ;;  %v11284_v58 = vld [vmem:[%s15522_s1 + $0x3a0] sm:$0xff]  }
 0x224   :  { %9426 = vmatpush3.bf16.msra.mxu1 %v11268_v42  ;;  %v13907_v43 = vadd.f32 %v8840_v35, %v3800_v51  ;;  %v8801_v46 = vpop.f32.mrb[128].mxu0  ;;  %5319 = vmatprep.mubr.bf16.mxu1 %v10750_v39  ;;  %v11282_v35 = vld [vmem:[%s15522_s1 + $0x3e0] sm:$0xff]   ;;  %v7922_v51 = vcombine.high %v7829_v14, %v7829_v14 }
 0x225   :  { %9427 = vmatprep.subr.bf16.mxu1 %v11270_v40  ;;  %v8802_v44 = vpop.f32.mrb[129].mxu0  ;;  %v11283_v42 = vld [vmem:[%s15522_s1 + $0x320] sm:$0xff]  }
 0x226   :  { %v8841_v53 = vpop.f32.mrb[136].mxu1  ;;  %v8803_v49 = vadd.f32 %v8802_v44, %v8801_v46  ;;  %v8804_v54 = vpop.f32.mrb[130].mxu0  ;;  %9388 = vmatpush3.bf16.msra.mxu0 %v11271_v50  ;;  %v11286_v46 = vld [vmem:[%s15522_s1 + $0x3e8] sm:$0xff]  }
 0x227   :  { %v8842_v47 = vpop.f32.mrb[137].mxu1  ;;  %v8805_v61 = vpop.f32.mrb[131].mxu0  ;;  %9389 = vmatprep.subr.bf16.mxu0 %v11273_v57 }
 0x228   :  { %v8843_v0 = vadd.f32 %v8842_v47, %v8841_v53  ;;  %v8844_v52 = vpop.f32.mrb[138].mxu1  ;;  %9428 = vmatpush3.bf16.msra.mxu1 %v11272_v59  ;;  %v3805_v1 = vadd.f32 %v8803_v49, %v13776_v5  ;;  %v8806_v18 = vadd.f32 %v8805_v61, %v8804_v54  ;;  %v11276_v5 = vld [vmem:[%s15522_s1 + $0x390] sm:$0xff]   ;;  %v7923_v49 = vcombine.low %v7830_v17, %v7830_v17  ;;  %v11288_v61 = vld [vmem:[%s15522_s1 + $0x3a8] sm:$0xff]  }
 0x229   :  { %v8845_v55 = vpop.f32.mrb[139].mxu1  ;;  %9429 = vmatprep.subr.bf16.mxu1 %v11274_v63  ;;  %5256 = vmatmul.mubr.bf16.gmra.mrb[236].mxu0 %v10749_v60  ;;  %v11289_v63 = vld [vmem:[%s15522_s1 + $0x370] sm:$0xff]  }
 0x22a   :  { %v8846_v4 = vadd.f32 %v8845_v55, %v8844_v52  ;;  %v3808_v7 = vadd.f32 %v8806_v18, %v13790_v24  ;;  %9390 = vmatpush3.bf16.msra.mxu0 %v11275_v8  ;;  %v13941_v6 = vadd.f32 %v8843_v0, %v3805_v1  ;;  %v11278_v24 = vld [vmem:[%s15522_s1 + $0x3d8] sm:$0xff]   ;;  %5263 = vmatprep.mubr.bf16.mxu0 %v10753_v2  ;;  %v11287_v0 = vld [vmem:[%s15522_s1 + $0x328] sm:$0xff]   ;;  %v11290_v1 = vld [vmem:[%s15522_s1 + $0x3f0] sm:$0xff]  }
 0x22b   :  { %5320 = vmatmul.mubr.bf16.gmra.mrb[236].mxu1 %v10752_v48  ;;  %9391 = vmatprep.subr.bf16.mxu0 %v11277_v10  ;;  %v7921_v48 = vcombine.low %v7829_v14, %v7829_v14  ;;  %v11291_v10 = vld [vmem:[%s15522_s1 + $0x330] sm:$0xff]  }
 0x22c   :  { %9430 = vmatpush3.bf16.msra.mxu1 %v11276_v5  ;;  %v8807_v11 = vpop.f32.mrb[132].mxu0  ;;  %5327 = vmatprep.mubr.bf16.mxu1 %v10756_v3  ;;  %v13955_v20 = vadd.f32 %v8846_v4, %v3808_v7  ;;  %v10765_v3 = vld [vmem:[%s15523_s0 + $0x5ac] ss:$100 sps:$4 sm:$0xff]   ;;  %v10768_v7 = vld [vmem:[%s15523_s0 + $0x5b4] ss:$100 sps:$4 sm:$0xff]  }
 0x22d   :  { %9431 = vmatprep.subr.bf16.mxu1 %v11278_v24  ;;  %v8808_v28 = vpop.f32.mrb[133].mxu0  ;;  %v11293_v24 = vld [vmem:[%s15522_s1 + $0x378] sm:$0xff]   ;;  %v10766_v14 = vld [vmem:[%s15523_s0 + $0x5b0] ss:$100 sps:$4 sm:$0xff]  }
 0x22e   :  { %v8847_v22 = vpop.f32.mrb[140].mxu1  ;;  %v8809_v62 = vadd.f32 %v8808_v28, %v8807_v11  ;;  %v8810_v25 = vpop.f32.mrb[134].mxu0  ;;  %9392 = vmatpush3.bf16.msra.mxu0 %v11279_v21  ;;  %v11294_v11 = vld [vmem:[%s15522_s1 + $0x3f8] sm:$0xff]  }
 0x22f   :  { %v8848_v27 = vpop.f32.mrb[141].mxu1  ;;  %v8811_v30 = vpop.f32.mrb[135].mxu0  ;;  %9393 = vmatprep.subr.bf16.mxu0 %v11281_v34  ;;  %v11295_v25 = vld [vmem:[%s15522_s1 + $0x338] sm:$0xff]   ;;  %v11297_v34 = vld [vmem:[%s15522_s1 + $0x440] sm:$0xff]  }
 0x230   :  { %v8849_v31 = vadd.f32 %v8848_v27, %v8847_v22  ;;  %9432 = vmatpush3.bf16.msra.mxu1 %v11280_v33  ;;  %v8850_v16 = vpop.f32.mrb[142].mxu1  ;;  %v3813_v39 = vadd.f32 %v8809_v62, %v13817_v38  ;;  %v11285_v38 = vld [vmem:[%s15522_s1 + $0x368] sm:$0xff]   ;;  %v11296_v33 = vld [vmem:[%s15522_s1 + $0x3b8] sm:$0xff]  }
 0x231   :  { %9433 = vmatprep.subr.bf16.mxu1 %v11282_v35  ;;  %v8851_v45 = vpop.f32.mrb[143].mxu1  ;;  %5264 = vmatmul.mubr.bf16.gmra.mrb[240].mxu0 %v10755_v13  ;;  %v10763_v27 = vld [vmem:[%s15523_s0 + $0x5a8] ss:$100 sps:$4 sm:$0xff]   ;;  %v11298_v35 = vld [vmem:[%s15522_s1 + $0x4c0] sm:$0xff]  }
 0x232   :  { %9394 = vmatpush3.bf16.msra.mxu0 %v11283_v42  ;;  %v13982_v40 = vadd.f32 %v8849_v31, %v3813_v39  ;;  %5271 = vmatprep.mubr.bf16.mxu0 %v7922_v51  ;;  %v10772_v42 = vld [vmem:[%s15523_s0 + $0x67c] ss:$100 sps:$4 sm:$0xff]  }
 0x233   :  { %5328 = vmatmul.mubr.bf16.gmra.mrb[240].mxu1 %v10758_v15  ;;  %9395 = vmatprep.subr.bf16.mxu0 %v11285_v38 }
 0x234   :  { %9434 = vmatpush3.bf16.msra.mxu1 %v11284_v58  ;;  %v8869_v53 = vpop.f32.mrb[136].mxu0  ;;  %5335 = vmatprep.mubr.bf16.mxu1 %v7924_v37  ;;  %v10769_v37 = vld [vmem:[%s15523_s0 + $0x674] ss:$100 sps:$4 sm:$0xff]  }
 0x235   :  { %9435 = vmatprep.subr.bf16.mxu1 %v11286_v46  ;;  %v8870_v47 = vpop.f32.mrb[137].mxu0  ;;  %v11299_v46 = vld [vmem:[%s15522_s1 + $0x400] sm:$0xff]  }
 0x236   :  { %v8909_v44 = vpop.f32.mrb[144].mxu1  ;;  %v8871_v54 = vadd.f32 %v8870_v47, %v8869_v53  ;;  %v8872_v50 = vpop.f32.mrb[138].mxu0  ;;  %9396 = vmatpush3.bf16.msra.mxu0 %v11287_v0  ;;  %v11301_v53 = vld [vmem:[%s15522_s1 + $0x448] sm:$0xff]  }
 0x237   :  { %v8910_v60 = vpop.f32.mrb[145].mxu1  ;;  %v8873_v55 = vpop.f32.mrb[139].mxu0  ;;  %9397 = vmatprep.subr.bf16.mxu0 %v11289_v63 }
 0x238   :  { %v8911_v52 = vadd.f32 %v8910_v60, %v8909_v44  ;;  %v8912_v59 = vpop.f32.mrb[146].mxu1  ;;  %9436 = vmatpush3.bf16.msra.mxu1 %v11288_v61  ;;  %v8874_v18 = vadd.f32 %v8873_v55, %v8872_v50  ;;  %v3917_v4 = vadd.f32 %v8871_v54, %v13851_v29  ;;  %v11292_v29 = vld [vmem:[%s15522_s1 + $0x3b0] sm:$0xff]   ;;  %v11302_v44 = vld [vmem:[%s15522_s1 + $0x4c8] sm:$0xff]   ;;  %v10774_v50 = vld [vmem:[%s15523_s0 + $0x678] ss:$100 sps:$4 sm:$0xff]  }
 0x239   :  { %v8913_v57 = vpop.f32.mrb[147].mxu1  ;;  %9437 = vmatprep.subr.bf16.mxu1 %v11290_v1  ;;  %5272 = vmatmul.mubr.bf16.gmra.mrb[244].mxu0 %v7921_v48  ;;  %v10771_v54 = vld [vmem:[%s15523_s0 + $0x670] ss:$100 sps:$4 sm:$0xff]  }
 0x23a   :  { %v8914_v2 = vadd.f32 %v8913_v57, %v8912_v59  ;;  %v14009_v8 = vadd.f32 %v8911_v52, %v3917_v4  ;;  %v3920_v5 = vadd.f32 %v8874_v18, %v13865_v9  ;;  %9398 = vmatpush3.bf16.msra.mxu0 %v11291_v10  ;;  %5375 = vmatprep.mubr.bf16.mxu0 %v10765_v3  ;;  %v11303_v59 = vld [vmem:[%s15522_s1 + $0x408] sm:$0xff]   ;;  %v11305_v18 = vld [vmem:[%s15522_s1 + $0x450] sm:$0xff]  }
 0x23b   :  { %5336 = vmatmul.mubr.bf16.gmra.mrb[244].mxu1 %v7923_v49  ;;  %9399 = vmatprep.subr.bf16.mxu0 %v11293_v24  ;;  %v11304_v57 = vld [vmem:[%s15522_s1 + $0x488] sm:$0xff]   ;;  %v11306_v4 = vld [vmem:[%s15522_s1 + $0x4d0] sm:$0xff]  }
 0x23c   :  { %9438 = vmatpush3.bf16.msra.mxu1 %v11292_v29  ;;  %v14024_v9 = vadd.f32 %v8914_v2, %v3920_v5  ;;  %v8875_v22 = vpop.f32.mrb[140].mxu0  ;;  %5439 = vmatprep.mubr.bf16.mxu1 %v10768_v7  ;;  %v10777_v5 = vld [vmem:[%s15523_s0 + $0x73c] ss:$100 sps:$4 sm:$0xff]   ;;  %v10780_v10 = vld [vmem:[%s15523_s0 + $0x744] ss:$100 sps:$4 sm:$0xff]  }
 0x23d   :  { %9439 = vmatprep.subr.bf16.mxu1 %v11294_v11  ;;  %v8876_v15 = vpop.f32.mrb[141].mxu0  ;;  %v11308_v11 = vld [vmem:[%s15522_s1 + $0x490] sm:$0xff]  }
 0x23e   :  { %v8915_v13 = vpop.f32.mrb[148].mxu1  ;;  %v8877_v17 = vadd.f32 %v8876_v15, %v8875_v22  ;;  %v8878_v62 = vpop.f32.mrb[142].mxu0  ;;  %9400 = vmatpush3.bf16.msra.mxu0 %v11295_v25  ;;  %v11309_v22 = vld [vmem:[%s15522_s1 + $0x458] sm:$0xff]   ;;  %v7831_v25 = vld [vmem:[%s15523_s0 + $0x800] sm:$0x11] }
 0x23f   :  { %v8916_v28 = vpop.f32.mrb[149].mxu1  ;;  %v8879_v16 = vpop.f32.mrb[143].mxu0  ;;  %9465 = vmatprep.subr.bf16.mxu0 %v11297_v34  ;;  %v11312_v34 = vld [vmem:[%s15522_s1 + $0x498] sm:$0xff]  }
 0x240   :  { %v8917_v21 = vadd.f32 %v8916_v28, %v8915_v13  ;;  %v8918_v31 = vpop.f32.mrb[150].mxu1  ;;  %9440 = vmatpush3.bf16.msra.mxu1 %v11296_v33  ;;  %v8880_v45 = vadd.f32 %v8879_v16, %v8878_v62  ;;  %v3925_v39 = vadd.f32 %v8877_v17, %v13893_v23  ;;  %v11300_v23 = vld [vmem:[%s15522_s1 + $0x480] sm:$0xff]   ;;  %v11311_v16 = vld [vmem:[%s15522_s1 + $0x418] sm:$0xff]  }
 0x241   :  { %v8919_v30 = vpop.f32.mrb[151].mxu1  ;;  %9505 = vmatprep.subr.bf16.mxu1 %v11298_v35  ;;  %5376 = vmatmul.mubr.bf16.vlgmr.msra.gmra.mrb[248].mxu0 %v10763_v27  ;;  %v10775_v27 = vld [vmem:[%s15523_s0 + $0x738] ss:$100 sps:$4 sm:$0xff]  }
 0x242   :  { %v8920_v51 = vadd.f32 %v8919_v30, %v8918_v31  ;;  %v14051_v58 = vadd.f32 %v8917_v21, %v3925_v39  ;;  %v3928_v38 = vadd.f32 %v8880_v45, %v13907_v43  ;;  %9466 = vmatpush3.bf16.msra.mxu0 %v11299_v46  ;;  %5383 = vmatprep.mubr.bf16.mxu0 %v10769_v37  ;;  %v7832_v21 = vld [vmem:[%s15523_s0 + $0x808] sm:$0x11]  ;;  %v11313_v39 = vld [vmem:[%s15522_s1 + $0x460] sm:$0xff]  }
 0x243   :  { %5440 = vmatmul.mubr.bf16.vlgmr.msra.gmra.mrb[248].mxu1 %v10766_v14  ;;  %9467 = vmatprep.subr.bf16.mxu0 %v11301_v53  ;;  %v10778_v14 = vld [vmem:[%s15523_s0 + $0x740] ss:$100 sps:$4 sm:$0xff]   ;;  %v7928_v46 = vcombine.high %v7832_v21, %v7832_v21 }
 0x244   :  { %9506 = vmatpush3.bf16.msra.mxu1 %v11300_v23  ;;  %v14066_v43 = vadd.f32 %v8920_v51, %v3928_v38  ;;  %v8881_v47 = vpop.f32.mrb[144].mxu0  ;;  %5447 = vmatprep.mubr.bf16.mxu1 %v10772_v42  ;;  %v11314_v51 = vld [vmem:[%s15522_s1 + $0x4e0] sm:$0xff]   ;;  %v7926_v38 = vcombine.high %v7831_v25, %v7831_v25 }
 0x245   :  { %9507 = vmatprep.subr.bf16.mxu1 %v11302_v44  ;;  %v8882_v48 = vpop.f32.mrb[145].mxu0  ;;  %v11315_v53 = vld [vmem:[%s15522_s1 + $0x420] sm:$0xff]  }
 0x246   :  { %v8921_v60 = vpop.f32.mrb[152].mxu1  ;;  %v8883_v0 = vadd.f32 %v8882_v48, %v8881_v47  ;;  %v8884_v52 = vpop.f32.mrb[146].mxu0  ;;  %9468 = vmatpush3.bf16.msra.mxu0 %v11303_v59  ;;  %v11316_v44 = vld [vmem:[%s15522_s1 + $0x4a0] sm:$0xff]   ;;  %v11318_v47 = vld [vmem:[%s15522_s1 + $0x4e8] sm:$0xff]  }
 0x247   :  { %v8922_v49 = vpop.f32.mrb[153].mxu1  ;;  %v8885_v63 = vpop.f32.mrb[147].mxu0  ;;  %9469 = vmatprep.subr.bf16.mxu0 %v11305_v18 }
 0x248   :  { %v8923_v61 = vadd.f32 %v8922_v49, %v8921_v60  ;;  %v8924_v55 = vpop.f32.mrb[154].mxu1  ;;  %9508 = vmatpush3.bf16.msra.mxu1 %v11304_v57  ;;  %v3933_v2 = vadd.f32 %v8883_v0, %v13941_v6  ;;  %v8886_v3 = vadd.f32 %v8885_v63, %v8884_v52  ;;  %v11307_v6 = vld [vmem:[%s15522_s1 + $0x410] sm:$0xff]   ;;  %v7927_v0 = vcombine.low %v7832_v21, %v7832_v21  ;;  %v11320_v63 = vld [vmem:[%s15522_s1 + $0x4a8] sm:$0xff]  }
 0x249   :  { %v8925_v1 = vpop.f32.mrb[155].mxu1  ;;  %9509 = vmatprep.subr.bf16.mxu1 %v11306_v4  ;;  %5384 = vmatmul.mubr.bf16.gmra.mrb[252].mxu0 %v10771_v54  ;;  %v11321_v4 = vld [vmem:[%s15522_s1 + $0x470] sm:$0xff]  }
 0x24a   :  { %v8926_v7 = vadd.f32 %v8925_v1, %v8924_v55  ;;  %v3936_v29 = vadd.f32 %v8886_v3, %v13955_v20  ;;  %v14094_v24 = vadd.f32 %v8923_v61, %v3933_v2  ;;  %9470 = vmatpush3.bf16.msra.mxu0 %v11307_v6  ;;  %v11310_v20 = vld [vmem:[%s15522_s1 + $0x4d8] sm:$0xff]   ;;  %5391 = vmatprep.mubr.bf16.mxu0 %v10777_v5  ;;  %v11319_v61 = vld [vmem:[%s15522_s1 + $0x428] sm:$0xff]   ;;  %v11322_v2 = vld [vmem:[%s15522_s1 + $0x4f0] sm:$0xff]  }
 0x24b   :  { %5448 = vmatmul.mubr.bf16.gmra.mrb[252].mxu1 %v10774_v50  ;;  %9471 = vmatprep.subr.bf16.mxu0 %v11309_v22  ;;  %v7925_v50 = vcombine.low %v7831_v25, %v7831_v25  ;;  %v11324_v22 = vld [vmem:[%s15522_s1 + $0x4b0] sm:$0xff]   ;;  %v10788_v25 = vld [vmem:[%s15523_s0 + $0x5c0] ss:$100 sps:$4 sm:$0xff]  }
 0x24c   :  { %9510 = vmatpush3.bf16.msra.mxu1 %v11308_v11  ;;  %v14108_v13 = vadd.f32 %v8926_v7, %v3936_v29  ;;  %v8887_v15 = vpop.f32.mrb[148].mxu0  ;;  %5455 = vmatprep.mubr.bf16.mxu1 %v10780_v10  ;;  %v10787_v10 = vld [vmem:[%s15523_s0 + $0x5bc] ss:$100 sps:$4 sm:$0xff]   ;;  %v10790_v29 = vld [vmem:[%s15523_s0 + $0x5c4] ss:$100 sps:$4 sm:$0xff]  }
 0x24d   :  { %9511 = vmatprep.subr.bf16.mxu1 %v11310_v20  ;;  %v8888_v17 = vpop.f32.mrb[149].mxu0  ;;  %v11325_v20 = vld [vmem:[%s15522_s1 + $0x478] sm:$0xff]  }
 0x24e   :  { %v8927_v28 = vpop.f32.mrb[156].mxu1  ;;  %v8889_v31 = vadd.f32 %v8888_v17, %v8887_v15  ;;  %v8890_v33 = vpop.f32.mrb[150].mxu0  ;;  %9472 = vmatpush3.bf16.msra.mxu0 %v11311_v16 }
 0x24f   :  { %v8928_v62 = vpop.f32.mrb[157].mxu1  ;;  %v8891_v45 = vpop.f32.mrb[151].mxu0  ;;  %9473 = vmatprep.subr.bf16.mxu0 %v11313_v39  ;;  %v11327_v33 = vld [vmem:[%s15522_s1 + $0x438] sm:$0xff]   ;;  %v11329_v39 = vld [vmem:[%s15522_s1 + $0x540] sm:$0xff]  }
 0x250   :  { %v8929_v30 = vadd.f32 %v8928_v62, %v8927_v28  ;;  %9512 = vmatpush3.bf16.msra.mxu1 %v11312_v34  ;;  %v8930_v35 = vpop.f32.mrb[158].mxu1  ;;  %v3941_v42 = vadd.f32 %v8889_v31, %v13982_v40  ;;  %v11317_v40 = vld [vmem:[%s15522_s1 + $0x468] sm:$0xff]   ;;  %v10785_v62 = vld [vmem:[%s15523_s0 + $0x5b8] ss:$100 sps:$4 sm:$0xff]  }
 0x251   :  { %9513 = vmatprep.subr.bf16.mxu1 %v11314_v51  ;;  %v8931_v37 = vpop.f32.mrb[159].mxu1  ;;  %5392 = vmatmul.mubr.bf16.gmra.mrb[0].mxu0 %v10775_v27  ;;  %v11328_v34 = vld [vmem:[%s15522_s1 + $0x4b8] sm:$0xff]   ;;  %v11330_v51 = vld [vmem:[%s15522_s1 + $0x5c0] sm:$0xff]  }
 0x252   :  { %v14135_v23 = vadd.f32 %v8929_v30, %v3941_v42  ;;  %9474 = vmatpush3.bf16.msra.mxu0 %v11315_v53  ;;  %5399 = vmatprep.mubr.bf16.mxu0 %v7926_v38  ;;  %v10796_v53 = vld [vmem:[%s15523_s0 + $0x68c] ss:$100 sps:$4 sm:$0xff]  }
 0x253   :  { %5456 = vmatmul.mubr.bf16.gmra.mrb[0].mxu1 %v10778_v14  ;;  %9475 = vmatprep.subr.bf16.mxu0 %v11317_v40 }
 0x254   :  { %9514 = vmatpush3.bf16.msra.mxu1 %v11316_v44  ;;  %v8949_v60 = vpop.f32.mrb[152].mxu0  ;;  %5463 = vmatprep.mubr.bf16.mxu1 %v7928_v46  ;;  %v10793_v46 = vld [vmem:[%s15523_s0 + $0x684] ss:$100 sps:$4 sm:$0xff]  }
 0x255   :  { %9515 = vmatprep.subr.bf16.mxu1 %v11318_v47  ;;  %v8950_v49 = vpop.f32.mrb[153].mxu0  ;;  %v11332_v47 = vld [vmem:[%s15522_s1 + $0x580] sm:$0xff]  }
 0x256   :  { %v8989_v48 = vpop.f32.mrb[160].mxu1  ;;  %v8951_v52 = vadd.f32 %v8950_v49, %v8949_v60  ;;  %v8952_v59 = vpop.f32.mrb[154].mxu0  ;;  %9476 = vmatpush3.bf16.msra.mxu0 %v11319_v61  ;;  %v11333_v60 = vld [vmem:[%s15522_s1 + $0x548] sm:$0xff]  }
 0x257   :  { %v8990_v54 = vpop.f32.mrb[161].mxu1  ;;  %v8953_v1 = vpop.f32.mrb[155].mxu0  ;;  %9477 = vmatprep.subr.bf16.mxu0 %v11321_v4 }
 0x258   :  { %v8991_v55 = vadd.f32 %v8990_v54, %v8989_v48  ;;  %v8992_v57 = vpop.f32.mrb[162].mxu1  ;;  %9516 = vmatpush3.bf16.msra.mxu1 %v11320_v63  ;;  %v4045_v3 = vadd.f32 %v8951_v52, %v14009_v8  ;;  %v8954_v7 = vadd.f32 %v8953_v1, %v8952_v59  ;;  %v11323_v8 = vld [vmem:[%s15522_s1 + $0x430] sm:$0xff]   ;;  %v10791_v52 = vld [vmem:[%s15523_s0 + $0x680] ss:$100 sps:$4 sm:$0xff]   ;;  %v10794_v59 = vld [vmem:[%s15523_s0 + $0x688] ss:$100 sps:$4 sm:$0xff]  }
 0x259   :  { %v8993_v18 = vpop.f32.mrb[163].mxu1  ;;  %9517 = vmatprep.subr.bf16.mxu1 %v11322_v2  ;;  %5400 = vmatmul.mubr.bf16.gmra.mrb[4].mxu0 %v7925_v50 }
 0x25a   :  { %v8994_v5 = vadd.f32 %v8993_v18, %v8992_v57  ;;  %v4048_v6 = vadd.f32 %v8954_v7, %v14024_v9  ;;  %v14169_v11 = vadd.f32 %v8991_v55, %v4045_v3  ;;  %9478 = vmatpush3.bf16.msra.mxu0 %v11323_v8  ;;  %v11326_v9 = vld [vmem:[%s15522_s1 + $0x4f8] sm:$0xff]   ;;  %5503 = vmatprep.mubr.bf16.mxu0 %v10787_v10  ;;  %v11335_v57 = vld [vmem:[%s15522_s1 + $0x508] sm:$0xff]   ;;  %v11337_v3 = vld [vmem:[%s15522_s1 + $0x550] sm:$0xff]  }
 0x25b   :  { %5464 = vmatmul.mubr.bf16.gmra.mrb[4].mxu1 %v7927_v0  ;;  %9479 = vmatprep.subr.bf16.mxu0 %v11325_v20  ;;  %v11336_v18 = vld [vmem:[%s15522_s1 + $0x588] sm:$0xff]   ;;  %v11338_v7 = vld [vmem:[%s15522_s1 + $0x5d0] sm:$0xff]  }
 0x25c   :  { %9518 = vmatpush3.bf16.msra.mxu1 %v11324_v22  ;;  %v14183_v15 = vadd.f32 %v8994_v5, %v4048_v6  ;;  %v8955_v28 = vpop.f32.mrb[156].mxu0  ;;  %5567 = vmatprep.mubr.bf16.mxu1 %v10790_v29  ;;  %v10799_v6 = vld [vmem:[%s15523_s0 + $0x74c] ss:$100 sps:$4 sm:$0xff]   ;;  %v10802_v8 = vld [vmem:[%s15523_s0 + $0x754] ss:$100 sps:$4 sm:$0xff]  }
 0x25d   :  { %9519 = vmatprep.subr.bf16.mxu1 %v11326_v9  ;;  %v8956_v14 = vpop.f32.mrb[157].mxu0  ;;  %v11340_v9 = vld [vmem:[%s15522_s1 + $0x590] sm:$0xff]  }
 0x25e   :  { %v8995_v27 = vpop.f32.mrb[164].mxu1  ;;  %v8957_v21 = vadd.f32 %v8956_v14, %v8955_v28  ;;  %v8958_v31 = vpop.f32.mrb[158].mxu0  ;;  %9480 = vmatpush3.bf16.msra.mxu0 %v11327_v33  ;;  %v11341_v28 = vld [vmem:[%s15522_s1 + $0x558] sm:$0xff]   ;;  %v7833_v33 = vld [vmem:[%s15523_s0 + $0x810] sm:$0x11] }
 0x25f   :  { %v8996_v17 = vpop.f32.mrb[165].mxu1  ;;  %v8959_v35 = vpop.f32.mrb[159].mxu0  ;;  %9545 = vmatprep.subr.bf16.mxu0 %v11329_v39  ;;  %v11344_v39 = vld [vmem:[%s15522_s1 + $0x598] sm:$0xff]  }
 0x260   :  { %v8997_v16 = vadd.f32 %v8996_v17, %v8995_v27  ;;  %v8998_v30 = vpop.f32.mrb[166].mxu1  ;;  %9520 = vmatpush3.bf16.msra.mxu1 %v11328_v34  ;;  %v4053_v37 = vadd.f32 %v8957_v21, %v14051_v58  ;;  %v8960_v42 = vadd.f32 %v8959_v35, %v8958_v31  ;;  %v11331_v58 = vld [vmem:[%s15522_s1 + $0x500] sm:$0xff]   ;;  %v11343_v35 = vld [vmem:[%s15522_s1 + $0x518] sm:$0xff]  }
 0x261   :  { %v8999_v45 = vpop.f32.mrb[167].mxu1  ;;  %9585 = vmatprep.subr.bf16.mxu1 %v11330_v51  ;;  %5504 = vmatmul.mubr.bf16.vlgmr.msra.gmra.mrb[8].mxu0 %v10785_v62  ;;  %v10797_v62 = vld [vmem:[%s15523_s0 + $0x748] ss:$100 sps:$4 sm:$0xff]  }
 0x262   :  { %v9000_v38 = vadd.f32 %v8999_v45, %v8998_v30  ;;  %v4056_v44 = vadd.f32 %v8960_v42, %v14066_v43  ;;  %v14211_v40 = vadd.f32 %v8997_v16, %v4053_v37  ;;  %9546 = vmatpush3.bf16.msra.mxu0 %v11331_v58  ;;  %v11334_v43 = vld [vmem:[%s15522_s1 + $0x5c8] sm:$0xff]   ;;  %5511 = vmatprep.mubr.bf16.mxu0 %v10793_v46  ;;  %v7834_v16 = vld [vmem:[%s15523_s0 + $0x818] sm:$0x11]  ;;  %v11345_v42 = vld [vmem:[%s15522_s1 + $0x560] sm:$0xff]  }
 0x263   :  { %5568 = vmatmul.mubr.bf16.vlgmr.msra.gmra.mrb[8].mxu1 %v10788_v25  ;;  %9547 = vmatprep.subr.bf16.mxu0 %v11333_v60  ;;  %v10800_v25 = vld [vmem:[%s15523_s0 + $0x750] ss:$100 sps:$4 sm:$0xff]   ;;  %v7932_v58 = vcombine.high %v7834_v16, %v7834_v16  ;;  %v11347_v60 = vld [vmem:[%s15522_s1 + $0x520] sm:$0xff]  }
 0x264   :  { %9586 = vmatpush3.bf16.msra.mxu1 %v11332_v47  ;;  %v14225_v48 = vadd.f32 %v9000_v38, %v4056_v44  ;;  %v8961_v49 = vpop.f32.mrb[160].mxu0  ;;  %5575 = vmatprep.mubr.bf16.mxu1 %v10796_v53  ;;  %v11346_v38 = vld [vmem:[%s15522_s1 + $0x5e0] sm:$0xff]   ;;  %v7930_v44 = vcombine.high %v7833_v33, %v7833_v33 }
 0x265   :  { %9587 = vmatprep.subr.bf16.mxu1 %v11334_v43  ;;  %v8962_v50 = vpop.f32.mrb[161].mxu0  ;;  %v11348_v43 = vld [vmem:[%s15522_s1 + $0x5a0] sm:$0xff]  }
 0x266   :  { %v9001_v54 = vpop.f32.mrb[168].mxu1  ;;  %v8963_v61 = vadd.f32 %v8962_v50, %v8961_v49  ;;  %v8964_v55 = vpop.f32.mrb[162].mxu0  ;;  %9548 = vmatpush3.bf16.msra.mxu0 %v11335_v57  ;;  %v11350_v49 = vld [vmem:[%s15522_s1 + $0x5e8] sm:$0xff]  }
 0x267   :  { %v9002_v0 = vpop.f32.mrb[169].mxu1  ;;  %v8965_v4 = vpop.f32.mrb[163].mxu0  ;;  %9549 = vmatprep.subr.bf16.mxu0 %v11337_v3 }
 0x268   :  { %v9003_v63 = vadd.f32 %v9002_v0, %v9001_v54  ;;  %v9004_v1 = vpop.f32.mrb[170].mxu1  ;;  %9588 = vmatpush3.bf16.msra.mxu1 %v11336_v18  ;;  %v4061_v5 = vadd.f32 %v8963_v61, %v14094_v24  ;;  %v8966_v10 = vadd.f32 %v8965_v4, %v8964_v55  ;;  %v11339_v24 = vld [vmem:[%s15522_s1 + $0x510] sm:$0xff]   ;;  %v7931_v61 = vcombine.low %v7834_v16, %v7834_v16  ;;  %v11352_v4 = vld [vmem:[%s15522_s1 + $0x5a8] sm:$0xff]  }
 0x269   :  { %v9005_v2 = vpop.f32.mrb[171].mxu1  ;;  %9589 = vmatprep.subr.bf16.mxu1 %v11338_v7  ;;  %5512 = vmatmul.mubr.bf16.gmra.mrb[12].mxu0 %v10791_v52  ;;  %v11353_v7 = vld [vmem:[%s15522_s1 + $0x570] sm:$0xff]  }
 0x26a   :  { %v9006_v29 = vadd.f32 %v9005_v2, %v9004_v1  ;;  %v4064_v22 = vadd.f32 %v8966_v10, %v14108_v13  ;;  %v14253_v20 = vadd.f32 %v9003_v63, %v4061_v5  ;;  %9550 = vmatpush3.bf16.msra.mxu0 %v11339_v24  ;;  %v11342_v13 = vld [vmem:[%s15522_s1 + $0x5d8] sm:$0xff]   ;;  %5519 = vmatprep.mubr.bf16.mxu0 %v10799_v6  ;;  %v11351_v63 = vld [vmem:[%s15522_s1 + $0x528] sm:$0xff]   ;;  %v11354_v5 = vld [vmem:[%s15522_s1 + $0x5f0] sm:$0xff]  }
 0x26b   :  { %5576 = vmatmul.mubr.bf16.gmra.mrb[12].mxu1 %v10794_v59  ;;  %9551 = vmatprep.subr.bf16.mxu0 %v11341_v28  ;;  %v7929_v59 = vcombine.low %v7833_v33, %v7833_v33  ;;  %v11356_v28 = vld [vmem:[%s15522_s1 + $0x5b0] sm:$0xff]  }
 0x26c   :  { %9590 = vmatpush3.bf16.msra.mxu1 %v11340_v9  ;;  %v14267_v27 = vadd.f32 %v9006_v29, %v4064_v22  ;;  %v8967_v14 = vpop.f32.mrb[164].mxu0  ;;  %5583 = vmatprep.mubr.bf16.mxu1 %v10802_v8  ;;  %v10809_v8 = vld [vmem:[%s15523_s0 + $0x5cc] ss:$100 sps:$4 sm:$0xff]   ;;  %v10812_v22 = vld [vmem:[%s15523_s0 + $0x5d4] ss:$100 sps:$4 sm:$0xff]  }
 0x26d   :  { %9591 = vmatprep.subr.bf16.mxu1 %v11342_v13  ;;  %v8968_v21 = vpop.f32.mrb[165].mxu0  ;;  %v11357_v13 = vld [vmem:[%s15522_s1 + $0x578] sm:$0xff]   ;;  %v10810_v33 = vld [vmem:[%s15523_s0 + $0x5d0] ss:$100 sps:$4 sm:$0xff]  }
 0x26e   :  { %v9007_v17 = vpop.f32.mrb[172].mxu1  ;;  %v8969_v30 = vadd.f32 %v8968_v21, %v8967_v14  ;;  %v8970_v34 = vpop.f32.mrb[166].mxu0  ;;  %9552 = vmatpush3.bf16.msra.mxu0 %v11343_v35 }
 0x26f   :  { %v9008_v31 = vpop.f32.mrb[173].mxu1  ;;  %v8971_v37 = vpop.f32.mrb[167].mxu0  ;;  %9553 = vmatprep.subr.bf16.mxu0 %v11345_v42  ;;  %v11359_v34 = vld [vmem:[%s15522_s1 + $0x538] sm:$0xff]   ;;  %v11361_v42 = vld [vmem:[%s15522_s1 + $0x600] sm:$0xff]  }
 0x270   :  { %v9009_v45 = vadd.f32 %v9008_v31, %v9007_v17  ;;  %9592 = vmatpush3.bf16.msra.mxu1 %v11344_v39  ;;  %v9010_v51 = vpop.f32.mrb[174].mxu1  ;;  %v4069_v53 = vadd.f32 %v8969_v30, %v14135_v23  ;;  %v11349_v23 = vld [vmem:[%s15522_s1 + $0x568] sm:$0xff]   ;;  %v11360_v39 = vld [vmem:[%s15522_s1 + $0x5b8] sm:$0xff]  }
 0x271   :  { %9593 = vmatprep.subr.bf16.mxu1 %v11346_v38  ;;  %v9011_v46 = vpop.f32.mrb[175].mxu1  ;;  %5520 = vmatmul.mubr.bf16.gmra.mrb[16].mxu0 %v10797_v62  ;;  %v10807_v31 = vld [vmem:[%s15523_s0 + $0x5c8] ss:$100 sps:$4 sm:$0xff]   ;;  %v11362_v38 = vld [vmem:[%s15522_s1 + $0x40] sm:$0xff]  }
 0x272   :  { %v14294_v47 = vadd.f32 %v9009_v45, %v4069_v53  ;;  %9554 = vmatpush3.bf16.msra.mxu0 %v11347_v60  ;;  %5527 = vmatprep.mubr.bf16.mxu0 %v7930_v44  ;;  %v10818_v60 = vld [vmem:[%s15523_s0 + $0x69c] ss:$100 sps:$4 sm:$0xff]  }
 0x273   :  { %5584 = vmatmul.mubr.bf16.gmra.mrb[16].mxu1 %v10800_v25  ;;  %9555 = vmatprep.subr.bf16.mxu0 %v11349_v23 }
 0x274   :  { %9594 = vmatpush3.bf16.msra.mxu1 %v11348_v43  ;;  %v9029_v54 = vpop.f32.mrb[168].mxu0  ;;  %5591 = vmatprep.mubr.bf16.mxu1 %v7932_v58  ;;  %v10815_v58 = vld [vmem:[%s15523_s0 + $0x694] ss:$100 sps:$4 sm:$0xff]  }
 0x275   :  { %9595 = vmatprep.subr.bf16.mxu1 %v11350_v49  ;;  %v9030_v0 = vpop.f32.mrb[169].mxu0  ;;  %v11364_v49 = vld [vmem:[%s15522_s1 + $0x608] sm:$0xff]  }
 0x276   :  { %v9069_v50 = vpop.f32.mrb[176].mxu1  ;;  %v9031_v55 = vadd.f32 %v9030_v0, %v9029_v54  ;;  %v9032_v57 = vpop.f32.mrb[170].mxu0  ;;  %9556 = vmatpush3.bf16.msra.mxu0 %v11351_v63  ;;  %v11365_v54 = vld [vmem:[%s15522_s1 + $0x48] sm:$0xff]  }
 0x277   :  { %v9070_v52 = vpop.f32.mrb[177].mxu1  ;;  %v9033_v2 = vpop.f32.mrb[171].mxu0  ;;  %9557 = vmatprep.subr.bf16.mxu0 %v11353_v7  ;;  %v11367_v7 = vld [vmem:[%s15522_s1 + $0x610] sm:$0xff]  }
 0x278   :  { %v9071_v1 = vadd.f32 %v9070_v52, %v9069_v50  ;;  %v9072_v18 = vpop.f32.mrb[178].mxu1  ;;  %9596 = vmatpush3.bf16.msra.mxu1 %v11352_v4  ;;  %v4173_v10 = vadd.f32 %v9031_v55, %v14169_v11  ;;  %v9034_v29 = vadd.f32 %v9033_v2, %v9032_v57  ;;  %v11355_v11 = vld [vmem:[%s15522_s1 + $0x530] sm:$0xff]   ;;  %v10816_v55 = vld [vmem:[%s15523_s0 + $0x698] ss:$100 sps:$4 sm:$0xff]   ;;  %v11366_v4 = vld [vmem:[%s15522_s1 + $0x8] sm:$0xff]  }
 0x279   :  { %v9073_v3 = vpop.f32.mrb[179].mxu1  ;;  %9597 = vmatprep.subr.bf16.mxu1 %v11354_v5  ;;  %5528 = vmatmul.mubr.bf16.gmra.mrb[20].mxu0 %v7929_v59  ;;  %v11368_v5 = vld [vmem:[%s15522_s1 + $0x50] sm:$0xff]  }
 0x27a   :  { %v9074_v6 = vadd.f32 %v9073_v3, %v9072_v18  ;;  %v4176_v24 = vadd.f32 %v9034_v29, %v14183_v15  ;;  %v14328_v9 = vadd.f32 %v9071_v1, %v4173_v10  ;;  %9558 = vmatpush3.bf16.msra.mxu0 %v11355_v11  ;;  %v11358_v15 = vld [vmem:[%s15522_s1 + $0x5f8] sm:$0xff]   ;;  %5631 = vmatprep.mubr.bf16.mxu0 %v10809_v8 }
 0x27b   :  { %5592 = vmatmul.mubr.bf16.gmra.mrb[20].mxu1 %v7931_v61  ;;  %9559 = vmatprep.subr.bf16.mxu0 %v11357_v13  ;;  %v10813_v61 = vld [vmem:[%s15523_s0 + $0x690] ss:$100 sps:$4 sm:$0xff]   ;;  %v10821_v8 = vld [vmem:[%s15523_s0 + $0x75c] ss:$100 sps:$4 sm:$0xff]  }
 0x27c   :  { %9598 = vmatpush3.bf16.msra.mxu1 %v11356_v28  ;;  %v14342_v14 = vadd.f32 %v9074_v6, %v4176_v24  ;;  %v9035_v17 = vpop.f32.mrb[172].mxu0  ;;  %5695 = vmatprep.mubr.bf16.mxu1 %v10812_v22  ;;  %v10824_v22 = vld [vmem:[%s15523_s0 + $0x764] ss:$100 sps:$4 sm:$0xff]   ;;  %v11370_v28 = vld [vmem:[%s15522_s1 + $0x618] sm:$0xff]  }
 0x27d   :  { %9599 = vmatprep.subr.bf16.mxu1 %v11358_v15  ;;  %v9036_v25 = vpop.f32.mrb[173].mxu0  ;;  %v11371_v13 = vld [vmem:[%s15522_s1 + $0x58] sm:$0xff]  }
 0x27e   :  { %v9075_v62 = vpop.f32.mrb[180].mxu1  ;;  %v9037_v16 = vadd.f32 %v9036_v25, %v9035_v17  ;;  %v9038_v30 = vpop.f32.mrb[174].mxu0  ;;  %9560 = vmatpush3.bf16.msra.mxu0 %v11359_v34  ;;  %v10822_v25 = vld [vmem:[%s15523_s0 + $0x760] ss:$100 sps:$4 sm:$0xff]  }
 0x27f   :  { %v9076_v21 = vpop.f32.mrb[181].mxu1  ;;  %v9039_v51 = vpop.f32.mrb[175].mxu0  ;;  %10177 = vmatprep.subr.bf16.mxu0 %v11361_v42 }
 0x280   :  { %v9077_v35 = vadd.f32 %v9076_v21, %v9075_v62  ;;  %v9078_v45 = vpop.f32.mrb[182].mxu1  ;;  %9600 = vmatpush3.bf16.msra.mxu1 %v11360_v39  ;;  %v4181_v46 = vadd.f32 %v9037_v16, %v14211_v40  ;;  %v9040_v53 = vadd.f32 %v9039_v51, %v9038_v30  ;;  %v11363_v40 = vld [vmem:[%s15522_s1] sm:$0xff]   ;;  %v10819_v62 = vld [vmem:[%s15523_s0 + $0x758] ss:$100 sps:$4 sm:$0xff]   ;;  %v7836_v16 = vld [vmem:[%s15523_s0 + $0x828] sm:$0x11] }
 0x281   :  { %v9079_v37 = vpop.f32.mrb[183].mxu1  ;;  %9637 = vmatprep.subr.bf16.mxu1 %v11362_v38  ;;  %5632 = vmatmul.mubr.bf16.vlgmr.msra.gmra.mrb[24].mxu0 %v10807_v31 }
 0x282   :  { %v9080_v44 = vadd.f32 %v9079_v37, %v9078_v45  ;;  %v4184_v43 = vadd.f32 %v9040_v53, %v14225_v48  ;;  %v14370_v23 = vadd.f32 %v9077_v35, %v4181_v46  ;;  %10178 = vmatpush3.bf16.msra.mxu0 %v11361_v42  ;;  %5639 = vmatprep.mubr.bf16.mxu0 %v10815_v58  ;;  %v11372_v45 = vld [vmem:[%s15522_s1 + $0x18] sm:$0xff]   ;;  %v11373_v37 = vld [vmem:[%s15522_s1 + $0x620] sm:$0xff]  }
 0x283   :  { %5696 = vmatmul.mubr.bf16.vlgmr.msra.gmra.mrb[24].mxu1 %v10810_v33  ;;  %10179 = vmatprep.subr.bf16.mxu0 %v11364_v49  ;;  %v7835_v33 = vld [vmem:[%s15523_s0 + $0x820] sm:$0x11] }
 0x284   :  { %9638 = vmatpush3.bf16.msra.mxu1 %v11363_v40  ;;  %v14381_v50 = vadd.f32 %v9080_v44, %v4184_v43  ;;  %v9041_v48 = vpop.f32.mrb[176].mxu0  ;;  %5703 = vmatprep.mubr.bf16.mxu1 %v10818_v60  ;;  %v11374_v42 = vld [vmem:[%s15522_s1 + $0x60] sm:$0xff]   ;;  %v7934_v53 = vcombine.high %v7835_v33, %v7835_v33  ;;  %v7936_v44 = vcombine.high %v7836_v16, %v7836_v16  ;;  %v11376_v43 = vld [vmem:[%s15522_s1 + $0x628] sm:$0xff]  }
 0x285   :  { %9639 = vmatprep.subr.bf16.mxu1 %v11365_v54  ;;  %v9042_v52 = vpop.f32.mrb[177].mxu0  ;;  %v11375_v60 = vld [vmem:[%s15522_s1 + $0x20] sm:$0xff]  }
 0x286   :  { %v9081_v0 = vpop.f32.mrb[184].mxu1  ;;  %v9043_v57 = vadd.f32 %v9042_v52, %v9041_v48  ;;  %v9044_v63 = vpop.f32.mrb[178].mxu0  ;;  %10180 = vmatpush3.bf16.msra.mxu0 %v11364_v49  ;;  %v7933_v48 = vcombine.low %v7835_v33, %v7835_v33  ;;  %v7935_v52 = vcombine.low %v7836_v16, %v7836_v16 }
 0x287   :  { %v9082_v59 = vpop.f32.mrb[185].mxu1  ;;  %v9045_v2 = vpop.f32.mrb[179].mxu0  ;;  %10181 = vmatprep.subr.bf16.mxu0 %v11367_v7 }
 0x288   :  { %v9083_v1 = vadd.f32 %v9082_v59, %v9081_v0  ;;  %v9084_v18 = vpop.f32.mrb[186].mxu1  ;;  %9640 = vmatpush3.bf16.msra.mxu1 %v11366_v4  ;;  %v4189_v10 = vadd.f32 %v9043_v57, %v14253_v20  ;;  %v9046_v29 = vadd.f32 %v9045_v2, %v9044_v63  ;;  %v11369_v20 = vld [vmem:[%s15522_s1 + $0x10] sm:$0xff]  }
 0x289   :  { %v9085_v3 = vpop.f32.mrb[187].mxu1  ;;  %9641 = vmatprep.subr.bf16.mxu1 %v11368_v5  ;;  %5640 = vmatmul.mubr.bf16.gmra.mrb[28].mxu0 %v10813_v61  ;;  %v11380_v4 = vld [vmem:[%s15522_s1 + $0x70] sm:$0xff]   ;;  %v10833_v5 = vld [vmem:[%s15523_s0 + $0x838] ss:$100 sps:$4 sm:$0xff]  }
 0x28a   :  { %v9086_v6 = vadd.f32 %v9085_v3, %v9084_v18  ;;  %v4192_v24 = vadd.f32 %v9046_v29, %v14267_v27  ;;  %v14406_v11 = vadd.f32 %v9083_v1, %v4189_v10  ;;  %10182 = vmatpush3.bf16.msra.mxu0 %v11367_v7  ;;  %5647 = vmatprep.mubr.bf16.mxu0 %v10821_v8  ;;  %v11379_v1 = vld [vmem:[%s15522_s1 + $0x630] sm:$0xff]   ;;  %v10829_v7 = vld [vmem:[%s15523_s0 + $0x5d8] ss:$100 sps:$4 sm:$0xff]  }
 0x28b   :  { %5704 = vmatmul.mubr.bf16.gmra.mrb[28].mxu1 %v10816_v55  ;;  %10183 = vmatprep.subr.bf16.mxu0 %v11370_v28  ;;  %v11378_v55 = vld [vmem:[%s15522_s1 + $0x28] sm:$0xff]   ;;  %v11383_v8 = vld [vmem:[%s15522_s1 + $0x78] sm:$0xff]  }
 0x28c   :  { %9642 = vmatpush3.bf16.msra.mxu1 %v11369_v20  ;;  %v14417_v15 = vadd.f32 %v9086_v6, %v4192_v24  ;;  %v9047_v27 = vpop.f32.mrb[180].mxu0  ;;  %5711 = vmatprep.mubr.bf16.mxu1 %v10824_v22  ;;  %v11381_v6 = vld [vmem:[%s15522_s1 + $0x30] sm:$0xff]  }
 0x28d   :  { %9643 = vmatprep.subr.bf16.mxu1 %v11371_v13  ;;  %v9048_v21 = vpop.f32.mrb[181].mxu0  ;;  %v10830_v13 = vld [vmem:[%s15523_s0 + $0x6a0] ss:$100 sps:$4 sm:$0xff]  }
 0x28e   :  { %v9087_v17 = vpop.f32.mrb[188].mxu1  ;;  %v9049_v30 = vadd.f32 %v9048_v21, %v9047_v27  ;;  %v9050_v34 = vpop.f32.mrb[182].mxu0  ;;  %10184 = vmatpush3.bf16.msra.mxu0 %v11370_v28  ;;  %v10831_v27 = vld [vmem:[%s15523_s0 + $0x834] ss:$100 sps:$4 sm:$0xff]  }
 0x28f   :  { %v9088_v31 = vpop.f32.mrb[189].mxu1  ;;  %v9051_v51 = vpop.f32.mrb[183].mxu0  ;;  %10185 = vmatprep.subr.bf16.mxu0 %v11373_v37  ;;  %v11386_v34 = vld [vmem:[%s15522_s1 + $0x140] sm:$0xff]  }
 0x290   :  { %v9089_v35 = vadd.f32 %v9088_v31, %v9087_v17  ;;  %9644 = vmatpush3.bf16.msra.mxu1 %v11372_v45  ;;  %v9090_v39 = vpop.f32.mrb[190].mxu1  ;;  %v4197_v46 = vadd.f32 %v9049_v30, %v14294_v47  ;;  %v11377_v47 = vld [vmem:[%s15522_s1 + $0x68] sm:$0xff]   ;;  %v11384_v31 = vld [vmem:[%s15522_s1 + $0x38] sm:$0xff]   ;;  %v11385_v30 = vld [vmem:[%s15522_s1 + $0xc0] sm:$0xff]  }
 0x291   :  { %9645 = vmatprep.subr.bf16.mxu1 %v11374_v42  ;;  %v9091_v38 = vpop.f32.mrb[191].mxu1  ;;  %5648 = vmatmul.mubr.bf16.gmra.mrb[32].mxu0 %v10819_v62  ;;  %v10834_v51 = vld [vmem:[%s15523_s0 + $0x768] ss:$100 sps:$4 sm:$0xff]  }
 0x292   :  { %v14441_v58 = vadd.f32 %v9089_v35, %v4197_v46  ;;  %10186 = vmatpush3.bf16.msra.mxu0 %v11373_v37  ;;  %5655 = vmatprep.mubr.bf16.mxu0 %v7934_v53  ;;  %v10838_v37 = vld [vmem:[%s15523_s0 + $0x900] ss:$100 sps:$4 sm:$0xff]   ;;  %v11389_v53 = vld [vmem:[%s15522_s1 + $0xc8] sm:$0xff]  }
 0x293   :  { %5712 = vmatmul.mubr.bf16.gmra.mrb[32].mxu1 %v10822_v25  ;;  %10187 = vmatprep.subr.bf16.mxu0 %v11376_v43  ;;  %v11388_v46 = vld [vmem:[%s15522_s1 + $0x100] sm:$0xff]  }
 0x294   :  { %9646 = vmatpush3.bf16.msra.mxu1 %v11375_v60  ;;  %v9109_v40 = vpop.f32.mrb[184].mxu0  ;;  %5719 = vmatprep.mubr.bf16.mxu1 %v7936_v44  ;;  %v11390_v44 = vld [vmem:[%s15522_s1 + $0x148] sm:$0xff]  }
 0x295   :  { %9647 = vmatprep.subr.bf16.mxu1 %v11377_v47  ;;  %v9110_v54 = vpop.f32.mrb[185].mxu0 }
 0x296   :  { %v14452_v49 = vpop.f32.mrb[192].mxu1  ;;  %v9111_v59 = vadd.f32 %v9110_v54, %v9109_v40  ;;  %v9112_v61 = vpop.f32.mrb[186].mxu0  ;;  %10188 = vmatpush3.bf16.msra.mxu0 %v11376_v43  ;;  %v10835_v40 = vld [vmem:[%s15523_s0 + $0x830] ss:$0 sps:$4 sm:$0x11]  }
 0x297   :  { %v4364_v0 = vpop.f32.mrb[193].mxu1  ;;  %v9113_v63 = vpop.f32.mrb[187].mxu0  ;;  %10189 = vmatprep.subr.bf16.mxu0 %v11379_v1 }
 0x298   :  { %9648 = vmatpush3.bf16.msra.mxu1 %v11378_v55  ;;  %v10172_v57 = vpop.f32.mrb[194].mxu1  ;;  %v9114_v2 = vadd.f32 %v9113_v63, %v9112_v61  ;;  %v4301_v3 = vadd.f32 %v9111_v59, %v14328_v9  ;;  %v11382_v9 = vld [vmem:[%s15522_s1 + $0x638] sm:$0xff]   ;;  %v11393_v55 = vld [vmem:[%s15522_s1 + $0xd0] sm:$0xff]  }
 0x299   :  { %v4367_v18 = vpop.f32.mrb[195].mxu1  ;;  %9649 = vmatprep.subr.bf16.mxu1 %v11380_v4  ;;  %5656 = vmatmul.mubr.bf16.gmra.mrb[36].mxu0 %v7933_v48  ;;  %v10846_v4 = vld [vmem:[%s15523_s0 + $0x840] ss:$100 sps:$4 sm:$0xff]  }
 0x29a   :  { %v14470_v10 = vadd.f32 %v4364_v0, %v4301_v3  ;;  %10190 = vmatpush3.bf16.msra.mxu0 %v11379_v1  ;;  %v4304_v29 = vadd.f32 %v9114_v2, %v14342_v14  ;;  %10193 = vmatprep.mubr.bf16.mxu0 %v10829_v7  ;;  %v11391_v0 = vld [vmem:[%s15522_s1 + $0x88] sm:$0xff]   ;;  %v11395_v3 = vld [vmem:[%s15522_s1 + $0x90] sm:$0xff]  }
 0x29b   :  { %5720 = vmatmul.mubr.bf16.gmra.mrb[36].mxu1 %v7935_v52  ;;  %10191 = vmatprep.subr.bf16.mxu0 %v11382_v9  ;;  %v11392_v52 = vld [vmem:[%s15522_s1 + $0x108] sm:$0xff]  }
 0x29c   :  { %9650 = vmatpush3.bf16.msra.mxu1 %v11381_v6  ;;  %v4394_v22 = vmax.f32 %v13507_v19, %v14470_v10  ;;  %v14484_v24 = vadd.f32 %v4367_v18, %v4304_v29  ;;  %v9115_v14 = vpop.f32.mrb[188].mxu0  ;;  %6388 = vmatprep.mubr.bf16.mxu1 %v10833_v5  ;;  %v10841_v18 = vld [vmem:[%s15523_s0 + $0x9c8] ss:$100 sps:$4 sm:$0xff]   ;;  %v11397_v5 = vld [vmem:[%s15522_s1 + $0xd8] sm:$0xff]  }
 0x29d   :  { %9651 = vmatprep.subr.bf16.mxu1 %v11383_v8  ;;  %v9116_v28 = vpop.f32.mrb[189].mxu0  ;;  %v11398_v29 = vld [vmem:[%s15522_s1 + $0x158] sm:$0xff]  }
 0x29e   :  { %v14486_v20 = vpop.f32.mrb[196].mxu1  ;;  %v4395_v62 = vmax.f32 %v13527_v26, %v14484_v24  ;;  %v9117_v25 = vadd.f32 %v9116_v28, %v9115_v14  ;;  %v9118_v21 = vpop.f32.mrb[190].mxu0  ;;  %10192 = vmatpush3.bf16.msra.mxu0 %v11382_v9  ;;  %v10839_v14 = vld [vmem:[%s15523_s0 + $0x9c4] ss:$100 sps:$4 sm:$0xff]   ;;  %v8016_v28 = vld [vmem:[%s15523_s0 + $0xa8c] sm:$0x11] }
 0x29f   :  { %v4380_v17 = vpop.f32.mrb[197].mxu1  ;;  %v9119_v16 = vpop.f32.mrb[191].mxu0  ;;  %9677 = vmatprep.subr.bf16.mxu0 %v11385_v30 }
 0x2a0   :  { %9652 = vmatpush3.bf16.msra.mxu1 %v11384_v31  ;;  %v10176_v33 = vpop.f32.mrb[198].mxu1  ;;  %v4309_v45 = vadd.f32 %v9117_v25, %v14370_v23  ;;  %v9120_v39 = vadd.f32 %v9119_v16, %v9118_v21  ;;  %v11387_v23 = vld [vmem:[%s15522_s1 + $0x80] sm:$0xff]   ;;  %v11399_v25 = vld [vmem:[%s15522_s1 + $0x98] sm:$0xff]  }
 0x2a1   :  { %9717 = vmatprep.subr.bf16.mxu1 %v11386_v34  ;;  %v4383_v35 = vpop.f32.mrb[199].mxu1  ;;  %10194 = vmatmul.mubr.bf16.vlgmr.msra.gmra.mrb[40].mxu0 %v10830_v13  ;;  %v11400_v21 = vld [vmem:[%s15522_s1 + $0x118] sm:$0xff]   ;;  %v11401_v33 = vld [vmem:[%s15522_s1 + $0xe0] sm:$0xff]   ;;  %v8105_v34 = vcombine.high %v8016_v28, %v8016_v28 }
 0x2a2   :  { %v14513_v42 = vadd.f32 %v14452_v49, %v4309_v45  ;;  %v4312_v38 = vadd.f32 %v9120_v39, %v14381_v50  ;;  %9678 = vmatpush3.bf16.msra.mxu0 %v11387_v23  ;;  %10197 = vmatprep.mubr.bf16.mxu0 %v10834_v51  ;;  %v10836_v49 = vld [vmem:[%s15523_s0 + $0x8fc] ss:$100 sps:$4 sm:$0xff]   ;;  %v11405_v51 = vld [vmem:[%s15522_s1 + $0xe8] sm:$0xff]  }
 0x2a3   :  { %6389 = vmatmul.mubr.bf16.vlgmr.msra.gmra.mrb[40].mxu1 %v10831_v27  ;;  %9679 = vmatprep.subr.bf16.mxu0 %v11389_v53  ;;  %v11402_v16 = vld [vmem:[%s15522_s1 + $0x160] sm:$0xff]   ;;  %v8104_v53 = vcombine.low %v8016_v28, %v8016_v28 }
 0x2a4   :  { %9718 = vmatpush3.bf16.msra.mxu1 %v11388_v46  ;;  %v14528_v50 = vadd.f32 %v10172_v57, %v4312_v38  ;;  %v9121_v60 = vpop.f32.mrb[192].mxu0  ;;  %6396 = vmatprep.mubr.bf16.mxu1 %v10838_v37  ;;  %v4396_v43 = vmax.f32 %v13504_v12, %v14513_v42  ;;  %v11394_v57 = vld [vmem:[%s15522_s1 + $0x150] sm:$0xff]   ;;  %v11403_v45 = vld [vmem:[%s15522_s1 + $0xa0] sm:$0xff]  }
 0x2a5   :  { %9719 = vmatprep.subr.bf16.mxu1 %v11390_v44  ;;  %v9122_v47 = vpop.f32.mrb[193].mxu0  ;;  %v11404_v39 = vld [vmem:[%s15522_s1 + $0x120] sm:$0xff]  }
 0x2a6   :  { %v9123_v54 = vadd.f32 %v9122_v47, %v9121_v60  ;;  %v9124_v48 = vpop.f32.mrb[194].mxu0  ;;  %9680 = vmatpush3.bf16.msra.mxu0 %v11391_v0  ;;  %v4397_v59 = vmax.f32 %v13518_v32, %v14528_v50  ;;  %v10847_v28 = vld [vmem:[%s15523_s0 + $0x844] ss:$100 sps:$4 sm:$0xff]  }
 0x2a7   :  { %v9125_v61 = vpop.f32.mrb[195].mxu0  ;;  %9681 = vmatprep.subr.bf16.mxu0 %v11393_v55 }
 0x2a8   :  { %9720 = vmatpush3.bf16.msra.mxu1 %v11392_v52  ;;  %v9126_v63 = vadd.f32 %v9125_v61, %v9124_v48  ;;  %v4317_v1 = vadd.f32 %v9123_v54, %v14406_v11  ;;  %v11396_v11 = vld [vmem:[%s15522_s1 + $0x110] sm:$0xff]   ;;  %v11408_v54 = vld [vmem:[%s15522_s1 + $0x128] sm:$0xff]  }
 0x2a9   :  { %9721 = vmatprep.subr.bf16.mxu1 %v11394_v57  ;;  %10198 = vmatmul.mubr.bf16.gmra.mrb[44].mxu0 %v10835_v40  ;;  %v11409_v52 = vld [vmem:[%s15522_s1 + $0xf0] sm:$0xff]  }
 0x2aa   :  { %v14559_v2 = vadd.f32 %v4380_v17, %v4317_v1  ;;  %9682 = vmatpush3.bf16.msra.mxu0 %v11395_v3  ;;  %v4320_v7 = vadd.f32 %v9126_v63, %v14417_v15  ;;  %6452 = vmatprep.mubr.bf16.mxu0 %v10846_v4  ;;  %v11410_v61 = vld [vmem:[%s15522_s1 + $0x170] sm:$0xff]   ;;  %v10849_v1 = vld [vmem:[%s15523_s0 + $0x848] ss:$100 sps:$4 sm:$0xff]  }
 0x2ab   :  { %6397 = vmatmul.mubr.bf16.gmra.mrb[44].mxu1 %v10836_v49  ;;  %9683 = vmatprep.subr.bf16.mxu0 %v11397_v5  ;;  %v11407_v49 = vld [vmem:[%s15522_s1 + $0xa8] sm:$0xff]   ;;  %v11411_v4 = vld [vmem:[%s15522_s1 + $0xb0] sm:$0xff]  }
 0x2ac   :  { %9722 = vmatpush3.bf16.msra.mxu1 %v11396_v11  ;;  %v4398_v6 = vmax.f32 %v13555_v41, %v14559_v2  ;;  %v14576_v9 = vadd.f32 %v4383_v35, %v4320_v7  ;;  %v9127_v15 = vpop.f32.mrb[196].mxu0  ;;  %6404 = vmatprep.mubr.bf16.mxu1 %v10841_v18  ;;  %v11412_v3 = vld [vmem:[%s15522_s1 + $0x130] sm:$0xff]   ;;  %v11413_v7 = vld [vmem:[%s15522_s1 + $0xf8] sm:$0xff]  }
 0x2ad   :  { %9723 = vmatprep.subr.bf16.mxu1 %v11398_v29  ;;  %v9128_v8 = vpop.f32.mrb[197].mxu0  ;;  %v11414_v11 = vld [vmem:[%s15522_s1 + $0x178] sm:$0xff]  }
 0x2ae   :  { %v4399_v13 = vmax.f32 %v13572_v56, %v14576_v9  ;;  %v9129_v27 = vadd.f32 %v9128_v8, %v9127_v15  ;;  %v9130_v17 = vpop.f32.mrb[198].mxu0  ;;  %9684 = vmatpush3.bf16.msra.mxu0 %v11399_v25 }
 0x2af   :  { %v9131_v31 = vpop.f32.mrb[199].mxu0  ;;  %9685 = vmatprep.subr.bf16.mxu0 %v11401_v33  ;;  %v11416_v33 = vld [vmem:[%s15522_s1 + $0x138] sm:$0xff]  }
 0x2b0   :  { %9724 = vmatpush3.bf16.msra.mxu1 %v11400_v21  ;;  %v4325_v30 = vadd.f32 %v9129_v27, %v14441_v58  ;;  %v11406_v58 = vld [vmem:[%s15522_s1 + $0x168] sm:$0xff]   ;;  %v11415_v31 = vld [vmem:[%s15522_s1 + $0xb8] sm:$0xff]  }
 0x2b1   :  { %9725 = vmatprep.subr.bf16.mxu1 %v11402_v16 }
 0x2b2   :  { %v14600_v35 = vadd.f32 %v14486_v20, %v4325_v30  ;;  %9686 = vmatpush3.bf16.msra.mxu0 %v11403_v45  ;;  %v11418_v45 = vld [vmem:[%s15522_s1 + $0x240] sm:$0xff]  }
 0x2b3   :  { %6405 = vmatmul.mubr.bf16.gmra.mrb[48].mxu1 %v10839_v14  ;;  %9687 = vmatprep.subr.bf16.mxu0 %v11405_v51  ;;  %v10844_v14 = vld [vmem:[%s15523_s0 + $0x83c] ss:$100 sps:$4 sm:$0xff]  }
 0x2b4   :  { %9726 = vmatpush3.bf16.msra.mxu1 %v11404_v39  ;;  %v9161_v20 = vpop.f32.mrb[200].mxu0  ;;  %6412 = vmatprep.mubr.bf16.mxu1 %v8105_v34  ;;  %v4400_v38 = vmax.f32 %v13546_v36, %v14600_v35  ;;  %v11417_v34 = vld [vmem:[%s15522_s1 + $0x1c0] sm:$0xff]  }
 0x2b5   :  { %9727 = vmatprep.subr.bf16.mxu1 %v11406_v58  ;;  %v9162_v23 = vpop.f32.mrb[201].mxu0 }
 0x2b6   :  { %v9201_v37 = vpop.f32.mrb[200].mxu1  ;;  %v9163_v44 = vadd.f32 %v9162_v23, %v9161_v20  ;;  %v9164_v47 = vpop.f32.mrb[202].mxu0  ;;  %9688 = vmatpush3.bf16.msra.mxu0 %v11407_v49  ;;  %v10852_v20 = vld [vmem:[%s15523_s0 + $0x908] ss:$100 sps:$4 sm:$0xff]  }
 0x2b7   :  { %v9202_v46 = vpop.f32.mrb[201].mxu1  ;;  %v9165_v48 = vpop.f32.mrb[203].mxu0  ;;  %9689 = vmatprep.subr.bf16.mxu0 %v11409_v52 }
 0x2b8   :  { %v9203_v60 = vadd.f32 %v9202_v46, %v9201_v37  ;;  %v9204_v40 = vpop.f32.mrb[202].mxu1  ;;  %9728 = vmatpush3.bf16.msra.mxu1 %v11408_v54  ;;  %v9166_v57 = vadd.f32 %v9165_v48, %v9164_v47  ;;  %v10855_v37 = vld [vmem:[%s15523_s0 + $0x910] ss:$100 sps:$4 sm:$0xff]   ;;  %v11419_v46 = vld [vmem:[%s15522_s1 + $0x180] sm:$0xff]  }
 0x2b9   :  { %v9205_v0 = vpop.f32.mrb[203].mxu1  ;;  %9729 = vmatprep.subr.bf16.mxu1 %v11410_v61  ;;  %v10850_v48 = vld [vmem:[%s15523_s0 + $0x904] ss:$100 sps:$4 sm:$0xff]  }
 0x2ba   :  { %v14628_v55 = vadd.f32 %v9203_v60, %v9163_v44  ;;  %v9206_v63 = vadd.f32 %v9205_v0, %v9204_v40  ;;  %9690 = vmatpush3.bf16.msra.mxu0 %v11411_v4  ;;  %v11421_v44 = vld [vmem:[%s15522_s1 + $0x1c8] sm:$0xff]  }
 0x2bb   :  { %6413 = vmatmul.mubr.bf16.gmra.mrb[52].mxu1 %v8104_v53  ;;  %9691 = vmatprep.subr.bf16.mxu0 %v11413_v7  ;;  %v11420_v53 = vld [vmem:[%s15522_s1 + $0x200] sm:$0xff]   ;;  %v11422_v60 = vld [vmem:[%s15522_s1 + $0x248] sm:$0xff]  }
 0x2bc   :  { %v14633_v18 = vadd.f32 %v9206_v63, %v9166_v57  ;;  %9730 = vmatpush3.bf16.msra.mxu1 %v11412_v3  ;;  %v9167_v5 = vpop.f32.mrb[204].mxu0  ;;  %6516 = vmatprep.mubr.bf16.mxu1 %v10849_v1  ;;  %v10853_v0 = vld [vmem:[%s15523_s0 + $0x90c] ss:$100 sps:$4 sm:$0xff]  }
 0x2bd   :  { %9731 = vmatprep.subr.bf16.mxu1 %v11414_v11  ;;  %v9168_v15 = vpop.f32.mrb[205].mxu0  ;;  %v11423_v1 = vld [vmem:[%s15522_s1 + $0x188] sm:$0xff]   ;;  %v11425_v11 = vld [vmem:[%s15522_s1 + $0x1d0] sm:$0xff]  }
 0x2be   :  { %v9207_v29 = vpop.f32.mrb[204].mxu1  ;;  %v9169_v27 = vadd.f32 %v9168_v15, %v9167_v5  ;;  %v9170_v25 = vpop.f32.mrb[206].mxu0  ;;  %9692 = vmatpush3.bf16.msra.mxu0 %v11415_v31  ;;  %v11424_v4 = vld [vmem:[%s15522_s1 + $0x208] sm:$0xff]   ;;  %v11426_v5 = vld [vmem:[%s15522_s1 + $0x250] sm:$0xff]   ;;  %v11430_v31 = vld [vmem:[%s15522_s1 + $0x258] sm:$0xff]  }
 0x2bf   :  { %v9208_v8 = vpop.f32.mrb[205].mxu1  ;;  %v9171_v16 = vpop.f32.mrb[207].mxu0  ;;  %9757 = vmatprep.subr.bf16.mxu0 %v11417_v34  ;;  %v10859_v34 = vld [vmem:[%s15523_s0 + $0x9d4] ss:$100 sps:$4 sm:$0xff]  }
 0x2c0   :  { %v9209_v17 = vadd.f32 %v9208_v8, %v9207_v29  ;;  %v9210_v21 = vpop.f32.mrb[206].mxu1  ;;  %9732 = vmatpush3.bf16.msra.mxu1 %v11416_v33  ;;  %v9172_v51 = vadd.f32 %v9171_v16, %v9170_v25  ;;  %v11428_v25 = vld [vmem:[%s15522_s1 + $0x210] sm:$0xff]  }
 0x2c1   :  { %v9211_v30 = vpop.f32.mrb[207].mxu1  ;;  %9797 = vmatprep.subr.bf16.mxu1 %v11418_v45  ;;  %6453 = vmatmul.mubr.bf16.vlgmr.msra.gmra.mrb[48].mxu0 %v10844_v14  ;;  %v10858_v14 = vld [vmem:[%s15523_s0 + $0x9d0] ss:$100 sps:$4 sm:$0xff]  }
 0x2c2   :  { %v14665_v39 = vadd.f32 %v9209_v17, %v9169_v27  ;;  %v9212_v58 = vadd.f32 %v9211_v30, %v9210_v21  ;;  %9758 = vmatpush3.bf16.msra.mxu0 %v11419_v46  ;;  %6460 = vmatprep.mubr.bf16.mxu0 %v10852_v20  ;;  %v11427_v17 = vld [vmem:[%s15522_s1 + $0x190] sm:$0xff]   ;;  %v11429_v21 = vld [vmem:[%s15522_s1 + $0x1d8] sm:$0xff]  }
 0x2c3   :  { %6517 = vmatmul.mubr.bf16.vlgmr.msra.gmra.mrb[56].mxu1 %v10847_v28  ;;  %9759 = vmatprep.subr.bf16.mxu0 %v11421_v44  ;;  %v10861_v28 = vld [vmem:[%s15523_s0 + $0x9d8] ss:$100 sps:$4 sm:$0xff]   ;;  %v10856_v30 = vld [vmem:[%s15523_s0 + $0x9cc] ss:$100 sps:$4 sm:$0xff]  }
 0x2c4   :  { %v14673_v23 = vadd.f32 %v9212_v58, %v9172_v51  ;;  %9798 = vmatpush3.bf16.msra.mxu1 %v11420_v53  ;;  %v9173_v47 = vpop.f32.mrb[208].mxu0  ;;  %6524 = vmatprep.mubr.bf16.mxu1 %v10855_v37  ;;  %v8017_v58 = vld [vmem:[%s15523_s0 + $0xa94] sm:$0x11]  ;;  %v8018_v20 = vld [vmem:[%s15523_s0 + $0xa9c] sm:$0x11] }
 0x2c5   :  { %9799 = vmatprep.subr.bf16.mxu1 %v11422_v60  ;;  %v9174_v49 = vpop.f32.mrb[209].mxu0  ;;  %v11431_v44 = vld [vmem:[%s15522_s1 + $0x198] sm:$0xff]  }
 0x2c6   :  { %v9213_v40 = vpop.f32.mrb[208].mxu1  ;;  %v9175_v52 = vadd.f32 %v9174_v49, %v9173_v47  ;;  %v9176_v57 = vpop.f32.mrb[210].mxu0  ;;  %9760 = vmatpush3.bf16.msra.mxu0 %v11423_v1  ;;  %v11432_v60 = vld [vmem:[%s15522_s1 + $0x218] sm:$0xff]   ;;  %v11433_v49 = vld [vmem:[%s15522_s1 + $0x1e0] sm:$0xff]   ;;  %v11437_v1 = vld [vmem:[%s15522_s1 + $0x1e8] sm:$0xff]  }
 0x2c7   :  { %v9214_v54 = vpop.f32.mrb[209].mxu1  ;;  %v9177_v3 = vpop.f32.mrb[211].mxu0  ;;  %9761 = vmatprep.subr.bf16.mxu0 %v11425_v11 }
 0x2c8   :  { %v9215_v61 = vadd.f32 %v9214_v54, %v9213_v40  ;;  %v9216_v63 = vpop.f32.mrb[210].mxu1  ;;  %9800 = vmatpush3.bf16.msra.mxu1 %v11424_v4  ;;  %v9178_v15 = vadd.f32 %v9177_v3, %v9176_v57  ;;  %v11434_v54 = vld [vmem:[%s15522_s1 + $0x260] sm:$0xff]   ;;  %v11438_v4 = vld [vmem:[%s15522_s1 + $0x268] sm:$0xff]  }
 0x2c9   :  { %v9217_v7 = vpop.f32.mrb[211].mxu1  ;;  %9801 = vmatprep.subr.bf16.mxu1 %v11426_v5  ;;  %6461 = vmatmul.mubr.bf16.gmra.mrb[52].mxu0 %v10850_v48  ;;  %v11435_v57 = vld [vmem:[%s15522_s1 + $0x1a0] sm:$0xff]  }
 0x2ca   :  { %v14705_v29 = vadd.f32 %v9215_v61, %v9175_v52  ;;  %v9218_v8 = vadd.f32 %v9217_v7, %v9216_v63  ;;  %9762 = vmatpush3.bf16.msra.mxu0 %v11427_v17  ;;  %6468 = vmatprep.mubr.bf16.mxu0 %v10858_v14  ;;  %v8107_v52 = vcombine.high %v8017_v58, %v8017_v58  ;;  %v11436_v63 = vld [vmem:[%s15522_s1 + $0x220] sm:$0xff]   ;;  %v11439_v17 = vld [vmem:[%s15522_s1 + $0x1a8] sm:$0xff]  }
 0x2cb   :  { %6525 = vmatmul.mubr.bf16.gmra.mrb[60].mxu1 %v10853_v0  ;;  %9763 = vmatprep.subr.bf16.mxu0 %v11429_v21  ;;  %v8109_v61 = vcombine.high %v8018_v20, %v8018_v20 }
 0x2cc   :  { %v14713_v27 = vadd.f32 %v9218_v8, %v9178_v15  ;;  %9802 = vmatpush3.bf16.msra.mxu1 %v11428_v25  ;;  %v9179_v33 = vpop.f32.mrb[212].mxu0  ;;  %6532 = vmatprep.mubr.bf16.mxu1 %v10861_v28  ;;  %v8106_v15 = vcombine.low %v8017_v58, %v8017_v58  ;;  %v8108_v8 = vcombine.low %v8018_v20, %v8018_v20  ;;  %v10868_v20 = vld [vmem:[%s15523_s0 + $0x850] ss:$100 sps:$4 sm:$0xff]  }
 0x2cd   :  { %9803 = vmatprep.subr.bf16.mxu1 %v11430_v31  ;;  %v9180_v45 = vpop.f32.mrb[213].mxu0  ;;  %v11440_v31 = vld [vmem:[%s15522_s1 + $0x228] sm:$0xff]  }
 0x2ce   :  { %v9219_v16 = vpop.f32.mrb[212].mxu1  ;;  %v9181_v37 = vadd.f32 %v9180_v45, %v9179_v33  ;;  %v9182_v53 = vpop.f32.mrb[214].mxu0  ;;  %9764 = vmatpush3.bf16.msra.mxu0 %v11431_v44  ;;  %v11444_v44 = vld [vmem:[%s15522_s1 + $0x230] sm:$0xff]  }
 0x2cf   :  { %v9220_v51 = vpop.f32.mrb[213].mxu1  ;;  %v9183_v40 = vpop.f32.mrb[215].mxu0  ;;  %9765 = vmatprep.subr.bf16.mxu0 %v11433_v49 }
 0x2d0   :  { %v9221_v46 = vadd.f32 %v9220_v51, %v9219_v16  ;;  %9804 = vmatpush3.bf16.msra.mxu1 %v11432_v60  ;;  %v9222_v47 = vpop.f32.mrb[214].mxu1  ;;  %v11445_v60 = vld [vmem:[%s15522_s1 + $0x1f8] sm:$0xff]  }
 0x2d1   :  { %9805 = vmatprep.subr.bf16.mxu1 %v11434_v54  ;;  %v9223_v48 = vpop.f32.mrb[215].mxu1  ;;  %6469 = vmatmul.mubr.bf16.gmra.mrb[56].mxu0 %v10856_v30  ;;  %v11441_v30 = vld [vmem:[%s15522_s1 + $0x1f0] sm:$0xff]  }
 0x2d2   :  { %v14751_v0 = vadd.f32 %v9221_v46, %v9181_v37  ;;  %9766 = vmatpush3.bf16.msra.mxu0 %v11435_v57  ;;  %6476 = vmatprep.mubr.bf16.mxu0 %v8107_v52  ;;  %v10871_v37 = vld [vmem:[%s15523_s0 + $0x858] ss:$100 sps:$4 sm:$0xff]   ;;  %v10866_v52 = vld [vmem:[%s15523_s0 + $0x84c] ss:$100 sps:$4 sm:$0xff]  }
 0x2d3   :  { %6533 = vmatmul.mubr.bf16.gmra.mrb[64].mxu1 %v10859_v34  ;;  %9767 = vmatprep.subr.bf16.mxu0 %v11437_v1  ;;  %v11442_v34 = vld [vmem:[%s15522_s1 + $0x270] sm:$0xff]   ;;  %v11447_v1 = vld [vmem:[%s15522_s1 + $0x1b8] sm:$0xff]  }
 0x2d4   :  { %9806 = vmatpush3.bf16.msra.mxu1 %v11436_v63  ;;  %v9241_v3 = vpop.f32.mrb[216].mxu0  ;;  %6540 = vmatprep.mubr.bf16.mxu1 %v8109_v61  ;;  %v10869_v61 = vld [vmem:[%s15523_s0 + $0x854] ss:$100 sps:$4 sm:$0xff]  }
 0x2d5   :  { %9807 = vmatprep.subr.bf16.mxu1 %v11438_v4  ;;  %v9242_v11 = vpop.f32.mrb[217].mxu0 }
 0x2d6   :  { %v9281_v7 = vpop.f32.mrb[216].mxu1  ;;  %v9243_v14 = vadd.f32 %v9242_v11, %v9241_v3  ;;  %v9244_v28 = vpop.f32.mrb[218].mxu0  ;;  %9768 = vmatpush3.bf16.msra.mxu0 %v11439_v17 }
 0x2d7   :  { %v9282_v5 = vpop.f32.mrb[217].mxu1  ;;  %v9245_v33 = vpop.f32.mrb[219].mxu0  ;;  %9769 = vmatprep.subr.bf16.mxu0 %v11441_v30  ;;  %v11453_v30 = vld [vmem:[%s15522_s1 + $0x2c8] sm:$0xff]  }
 0x2d8   :  { %v9283_v25 = vadd.f32 %v9282_v5, %v9281_v7  ;;  %v9284_v21 = vpop.f32.mrb[218].mxu1  ;;  %9808 = vmatpush3.bf16.msra.mxu1 %v11440_v31  ;;  %v5122_v45 = vadd.f32 %v9243_v14, %v14628_v55  ;;  %v9246_v51 = vadd.f32 %v9245_v33, %v9244_v28  ;;  %v11443_v55 = vld [vmem:[%s15522_s1 + $0x1b0] sm:$0xff]   ;;  %v11448_v7 = vld [vmem:[%s15522_s1 + $0x238] sm:$0xff]  }
 0x2d9   :  { %v9285_v16 = vpop.f32.mrb[219].mxu1  ;;  %9809 = vmatprep.subr.bf16.mxu1 %v11442_v34  ;;  %6477 = vmatmul.mubr.bf16.gmra.mrb[60].mxu0 %v8106_v15  ;;  %v11449_v15 = vld [vmem:[%s15522_s1 + $0x2c0] sm:$0xff]  }
 0x2da   :  { %v9286_v58 = vadd.f32 %v9285_v16, %v9284_v21  ;;  %v5125_v46 = vadd.f32 %v9246_v51, %v14633_v18  ;;  %v14785_v53 = vadd.f32 %v9283_v25, %v5122_v45  ;;  %9770 = vmatpush3.bf16.msra.mxu0 %v11443_v55  ;;  %v11446_v18 = vld [vmem:[%s15522_s1 + $0x278] sm:$0xff]   ;;  %6580 = vmatprep.mubr.bf16.mxu0 %v10868_v20  ;;  %v10877_v21 = vld [vmem:[%s15523_s0 + $0x920] ss:$100 sps:$4 sm:$0xff]  }
 0x2db   :  { %6541 = vmatmul.mubr.bf16.gmra.mrb[68].mxu1 %v8108_v8  ;;  %9771 = vmatprep.subr.bf16.mxu0 %v11445_v60  ;;  %v11450_v8 = vld [vmem:[%s15522_s1 + $0x340] sm:$0xff]   ;;  %v10874_v25 = vld [vmem:[%s15523_s0 + $0x918] ss:$100 sps:$4 sm:$0xff]   ;;  %v11455_v60 = vld [vmem:[%s15522_s1 + $0x288] sm:$0xff]  }
 0x2dc   :  { %9810 = vmatpush3.bf16.msra.mxu1 %v11444_v44  ;;  %v14799_v47 = vadd.f32 %v9286_v58, %v5125_v46  ;;  %v9247_v40 = vpop.f32.mrb[220].mxu0  ;;  %6644 = vmatprep.mubr.bf16.mxu1 %v10871_v37  ;;  %v11452_v16 = vld [vmem:[%s15522_s1 + $0x300] sm:$0xff]   ;;  %v10872_v37 = vld [vmem:[%s15523_s0 + $0x914] ss:$100 sps:$4 sm:$0xff]  }
 0x2dd   :  { %9811 = vmatprep.subr.bf16.mxu1 %v11446_v18  ;;  %v9248_v54 = vpop.f32.mrb[221].mxu0  ;;  %v10875_v46 = vld [vmem:[%s15523_s0 + $0x91c] ss:$100 sps:$4 sm:$0xff]  }
 0x2de   :  { %v9287_v49 = vpop.f32.mrb[220].mxu1  ;;  %v9249_v57 = vadd.f32 %v9248_v54, %v9247_v40  ;;  %v9250_v63 = vpop.f32.mrb[222].mxu0  ;;  %9772 = vmatpush3.bf16.msra.mxu0 %v11447_v1 }
 0x2df   :  { %v9288_v48 = vpop.f32.mrb[221].mxu1  ;;  %v9251_v11 = vpop.f32.mrb[223].mxu0  ;;  %9837 = vmatprep.subr.bf16.mxu0 %v11449_v15  ;;  %v11461_v15 = vld [vmem:[%s15522_s1 + $0x2d8] sm:$0xff]  }
 0x2e0   :  { %v9289_v4 = vadd.f32 %v9288_v48, %v9287_v49  ;;  %v9290_v3 = vpop.f32.mrb[222].mxu1  ;;  %9812 = vmatpush3.bf16.msra.mxu1 %v11448_v7  ;;  %v5130_v14 = vadd.f32 %v9249_v57, %v14665_v39  ;;  %v9252_v28 = vadd.f32 %v9251_v11, %v9250_v63  ;;  %v11451_v39 = vld [vmem:[%s15522_s1 + $0x280] sm:$0xff]   ;;  %v11456_v49 = vld [vmem:[%s15522_s1 + $0x308] sm:$0xff]  }
 0x2e1   :  { %v9291_v5 = vpop.f32.mrb[223].mxu1  ;;  %9877 = vmatprep.subr.bf16.mxu1 %v11450_v8  ;;  %6581 = vmatmul.mubr.bf16.vlgmr.msra.gmra.mrb[64].mxu0 %v10866_v52  ;;  %v11457_v52 = vld [vmem:[%s15522_s1 + $0x2d0] sm:$0xff]  }
 0x2e2   :  { %v9292_v17 = vadd.f32 %v9291_v5, %v9290_v3  ;;  %v5133_v31 = vadd.f32 %v9252_v28, %v14673_v23  ;;  %v14827_v33 = vadd.f32 %v9289_v4, %v5130_v14  ;;  %9838 = vmatpush3.bf16.msra.mxu0 %v11451_v39  ;;  %v11454_v23 = vld [vmem:[%s15522_s1 + $0x348] sm:$0xff]   ;;  %6588 = vmatprep.mubr.bf16.mxu0 %v10874_v25  ;;  %v10880_v4 = vld [vmem:[%s15523_s0 + $0x9e0] ss:$100 sps:$4 sm:$0xff]   ;;  %v11460_v5 = vld [vmem:[%s15522_s1 + $0x310] sm:$0xff]  }
 0x2e3   :  { %6645 = vmatmul.mubr.bf16.vlgmr.msra.gmra.mrb[72].mxu1 %v10869_v61  ;;  %9839 = vmatprep.subr.bf16.mxu0 %v11453_v30  ;;  %v11458_v61 = vld [vmem:[%s15522_s1 + $0x350] sm:$0xff]   ;;  %v10883_v3 = vld [vmem:[%s15523_s0 + $0x9e8] ss:$100 sps:$4 sm:$0xff]  }
 0x2e4   :  { %9878 = vmatpush3.bf16.msra.mxu1 %v11452_v16  ;;  %v14841_v34 = vadd.f32 %v9292_v17, %v5133_v31  ;;  %v9253_v45 = vpop.f32.mrb[224].mxu0  ;;  %6652 = vmatprep.mubr.bf16.mxu1 %v10877_v21  ;;  %v10878_v17 = vld [vmem:[%s15523_s0 + $0x9dc] ss:$100 sps:$4 sm:$0xff]   ;;  %v10881_v25 = vld [vmem:[%s15523_s0 + $0x9e4] ss:$100 sps:$4 sm:$0xff]  }
 0x2e5   :  { %9879 = vmatprep.subr.bf16.mxu1 %v11454_v23  ;;  %v9254_v58 = vpop.f32.mrb[225].mxu0  ;;  %v8019_v39 = vld [vmem:[%s15523_s0 + $0xaa4] sm:$0x11]  ;;  %v8020_v16 = vld [vmem:[%s15523_s0 + $0xaac] sm:$0x11] }
 0x2e6   :  { %v9293_v51 = vpop.f32.mrb[224].mxu1  ;;  %v9255_v55 = vadd.f32 %v9254_v58, %v9253_v45  ;;  %v9256_v44 = vpop.f32.mrb[226].mxu0  ;;  %9840 = vmatpush3.bf16.msra.mxu0 %v11455_v60  ;;  %v11463_v45 = vld [vmem:[%s15522_s1 + $0x298] sm:$0xff]  }
 0x2e7   :  { %v9294_v20 = vpop.f32.mrb[225].mxu1  ;;  %v9257_v54 = vpop.f32.mrb[227].mxu0  ;;  %9841 = vmatprep.subr.bf16.mxu0 %v11457_v52  ;;  %v11464_v58 = vld [vmem:[%s15522_s1 + $0x318] sm:$0xff]   ;;  %v11470_v52 = vld [vmem:[%s15522_s1 + $0x368] sm:$0xff]  }
 0x2e8   :  { %v9295_v18 = vadd.f32 %v9294_v20, %v9293_v51  ;;  %v9296_v40 = vpop.f32.mrb[226].mxu1  ;;  %9880 = vmatpush3.bf16.msra.mxu1 %v11456_v49  ;;  %v5138_v57 = vadd.f32 %v9255_v55, %v14705_v29  ;;  %v9258_v63 = vadd.f32 %v9257_v54, %v9256_v44  ;;  %v11459_v29 = vld [vmem:[%s15522_s1 + $0x290] sm:$0xff]   ;;  %v11466_v55 = vld [vmem:[%s15522_s1 + $0x360] sm:$0xff]  }
 0x2e9   :  { %v9297_v48 = vpop.f32.mrb[227].mxu1  ;;  %9881 = vmatprep.subr.bf16.mxu1 %v11458_v61  ;;  %6589 = vmatmul.mubr.bf16.gmra.mrb[68].mxu0 %v10872_v37  ;;  %v11467_v54 = vld [vmem:[%s15522_s1 + $0x2a0] sm:$0xff]  }
 0x2ea   :  { %v9298_v1 = vadd.f32 %v9297_v48, %v9296_v40  ;;  %v5141_v7 = vadd.f32 %v9258_v63, %v14713_v27  ;;  %v14869_v11 = vadd.f32 %v9295_v18, %v5138_v57  ;;  %9842 = vmatpush3.bf16.msra.mxu0 %v11459_v29  ;;  %v11462_v27 = vld [vmem:[%s15522_s1 + $0x358] sm:$0xff]   ;;  %6596 = vmatprep.mubr.bf16.mxu0 %v10880_v4  ;;  %v11468_v48 = vld [vmem:[%s15522_s1 + $0x320] sm:$0xff]  }
 0x2eb   :  { %6653 = vmatmul.mubr.bf16.gmra.mrb[76].mxu1 %v10875_v46  ;;  %9843 = vmatprep.subr.bf16.mxu0 %v11461_v15  ;;  %v11465_v46 = vld [vmem:[%s15522_s1 + $0x2e0] sm:$0xff]   ;;  %v8111_v18 = vcombine.high %v8019_v39, %v8019_v39  ;;  %v8113_v40 = vcombine.high %v8020_v16, %v8020_v16  ;;  %v8110_v4 = vcombine.low %v8019_v39, %v8019_v39 }
 0x2ec   :  { %9882 = vmatpush3.bf16.msra.mxu1 %v11460_v5  ;;  %v14883_v8 = vadd.f32 %v9298_v1, %v5141_v7  ;;  %v9259_v14 = vpop.f32.mrb[228].mxu0  ;;  %6660 = vmatprep.mubr.bf16.mxu1 %v10883_v3  ;;  %v8112_v3 = vcombine.low %v8020_v16, %v8020_v16  ;;  %v11471_v5 = vld [vmem:[%s15522_s1 + $0x2a8] sm:$0xff]  }
 0x2ed   :  { %9883 = vmatprep.subr.bf16.mxu1 %v11462_v27  ;;  %v9260_v21 = vpop.f32.mrb[229].mxu0 }
 0x2ee   :  { %v9299_v28 = vpop.f32.mrb[228].mxu1  ;;  %v9261_v30 = vadd.f32 %v9260_v21, %v9259_v14  ;;  %v9262_v23 = vpop.f32.mrb[230].mxu0  ;;  %9844 = vmatpush3.bf16.msra.mxu0 %v11463_v45  ;;  %v11472_v14 = vld [vmem:[%s15522_s1 + $0x328] sm:$0xff]   ;;  %v11474_v21 = vld [vmem:[%s15522_s1 + $0x370] sm:$0xff]  }
 0x2ef   :  { %v9300_v31 = vpop.f32.mrb[229].mxu1  ;;  %v9263_v37 = vpop.f32.mrb[231].mxu0  ;;  %9845 = vmatprep.subr.bf16.mxu0 %v11465_v46  ;;  %v10893_v23 = vld [vmem:[%s15523_s0 + $0x868] ss:$100 sps:$4 sm:$0xff]  }
 0x2f0   :  { %v9301_v51 = vadd.f32 %v9300_v31, %v9299_v28  ;;  %9884 = vmatpush3.bf16.msra.mxu1 %v11464_v58  ;;  %v9302_v20 = vpop.f32.mrb[230].mxu1  ;;  %v5146_v60 = vadd.f32 %v9261_v30, %v14751_v0  ;;  %v11469_v0 = vld [vmem:[%s15522_s1 + $0x2e8] sm:$0xff]   ;;  %v10890_v30 = vld [vmem:[%s15523_s0 + $0x860] ss:$100 sps:$4 sm:$0xff]   ;;  %v11476_v58 = vld [vmem:[%s15522_s1 + $0x330] sm:$0xff]  }
 0x2f1   :  { %9885 = vmatprep.subr.bf16.mxu1 %v11466_v55  ;;  %v9303_v44 = vpop.f32.mrb[231].mxu1  ;;  %6597 = vmatmul.mubr.bf16.gmra.mrb[72].mxu0 %v10878_v17  ;;  %v11477_v20 = vld [vmem:[%s15522_s1 + $0x2f8] sm:$0xff]  }
 0x2f2   :  { %v14910_v49 = vadd.f32 %v9301_v51, %v5146_v60  ;;  %9846 = vmatpush3.bf16.msra.mxu0 %v11467_v54  ;;  %6604 = vmatprep.mubr.bf16.mxu0 %v8111_v18  ;;  %v10888_v18 = vld [vmem:[%s15523_s0 + $0x85c] ss:$100 sps:$4 sm:$0xff]  }
 0x2f3   :  { %6661 = vmatmul.mubr.bf16.gmra.mrb[80].mxu1 %v10881_v25  ;;  %9847 = vmatprep.subr.bf16.mxu0 %v11469_v0  ;;  %v11473_v25 = vld [vmem:[%s15522_s1 + $0x2f0] sm:$0xff]   ;;  %v11479_v0 = vld [vmem:[%s15522_s1 + $0x2b8] sm:$0xff]  }
 0x2f4   :  { %9886 = vmatpush3.bf16.msra.mxu1 %v11468_v48  ;;  %v9321_v61 = vpop.f32.mrb[232].mxu0  ;;  %6668 = vmatprep.mubr.bf16.mxu1 %v8113_v40  ;;  %v10891_v40 = vld [vmem:[%s15523_s0 + $0x864] ss:$100 sps:$4 sm:$0xff]  }
 0x2f5   :  { %9887 = vmatprep.subr.bf16.mxu1 %v11470_v52  ;;  %v9322_v63 = vpop.f32.mrb[233].mxu0 }
 0x2f6   :  { %v9361_v57 = vpop.f32.mrb[232].mxu1  ;;  %v9323_v7 = vadd.f32 %v9322_v63, %v9321_v61  ;;  %v9324_v29 = vpop.f32.mrb[234].mxu0  ;;  %9848 = vmatpush3.bf16.msra.mxu0 %v11471_v5 }
 0x2f7   :  { %v9362_v1 = vpop.f32.mrb[233].mxu1  ;;  %v9325_v28 = vpop.f32.mrb[235].mxu0  ;;  %9849 = vmatprep.subr.bf16.mxu0 %v11473_v25  ;;  %v11485_v25 = vld [vmem:[%s15522_s1 + $0x3c8] sm:$0xff]  }
 0x2f8   :  { %v9363_v15 = vadd.f32 %v9362_v1, %v9361_v57  ;;  %v9364_v27 = vpop.f32.mrb[234].mxu1  ;;  %9888 = vmatpush3.bf16.msra.mxu1 %v11472_v14  ;;  %v5250_v31 = vadd.f32 %v9323_v7, %v14785_v53  ;;  %v9326_v39 = vadd.f32 %v9325_v28, %v9324_v29  ;;  %v11475_v53 = vld [vmem:[%s15522_s1 + $0x2b0] sm:$0xff]   ;;  %v11480_v57 = vld [vmem:[%s15522_s1 + $0x338] sm:$0xff]  }
 0x2f9   :  { %v9365_v17 = vpop.f32.mrb[235].mxu1  ;;  %9889 = vmatprep.subr.bf16.mxu1 %v11474_v21  ;;  %6605 = vmatmul.mubr.bf16.gmra.mrb[76].mxu0 %v8110_v4  ;;  %v11481_v4 = vld [vmem:[%s15522_s1 + $0x3c0] sm:$0xff]  }
 0x2fa   :  { %v9366_v16 = vadd.f32 %v9365_v17, %v9364_v27  ;;  %v5253_v45 = vadd.f32 %v9326_v39, %v14799_v47  ;;  %v14944_v51 = vadd.f32 %v9363_v15, %v5250_v31  ;;  %9850 = vmatpush3.bf16.msra.mxu0 %v11475_v53  ;;  %v11478_v47 = vld [vmem:[%s15522_s1 + $0x378] sm:$0xff]   ;;  %6708 = vmatprep.mubr.bf16.mxu0 %v10890_v30  ;;  %v10896_v15 = vld [vmem:[%s15523_s0 + $0x928] ss:$100 sps:$4 sm:$0xff]   ;;  %v10899_v27 = vld [vmem:[%s15523_s0 + $0x930] ss:$100 sps:$4 sm:$0xff]  }
 0x2fb   :  { %6669 = vmatmul.mubr.bf16.gmra.mrb[84].mxu1 %v8112_v3  ;;  %9851 = vmatprep.subr.bf16.mxu0 %v11477_v20  ;;  %v11482_v3 = vld [vmem:[%s15522_s1 + $0x440] sm:$0xff]   ;;  %v11487_v20 = vld [vmem:[%s15522_s1 + $0x388] sm:$0xff]  }
 0x2fc   :  { %9890 = vmatpush3.bf16.msra.mxu1 %v11476_v58  ;;  %v14958_v37 = vadd.f32 %v9366_v16, %v5253_v45  ;;  %v9327_v46 = vpop.f32.mrb[236].mxu0  ;;  %6772 = vmatprep.mubr.bf16.mxu1 %v10893_v23  ;;  %v11484_v17 = vld [vmem:[%s15522_s1 + $0x400] sm:$0xff]   ;;  %v10897_v45 = vld [vmem:[%s15523_s0 + $0x92c] ss:$100 sps:$4 sm:$0xff]  }
 0x2fd   :  { %9891 = vmatprep.subr.bf16.mxu1 %v11478_v47  ;;  %v9328_v44 = vpop.f32.mrb[237].mxu0  ;;  %v10894_v23 = vld [vmem:[%s15523_s0 + $0x924] ss:$100 sps:$4 sm:$0xff]  }
 0x2fe   :  { %v9367_v55 = vpop.f32.mrb[236].mxu1  ;;  %v9329_v54 = vadd.f32 %v9328_v44, %v9327_v46  ;;  %v9330_v48 = vpop.f32.mrb[238].mxu0  ;;  %9852 = vmatpush3.bf16.msra.mxu0 %v11479_v0 }
 0x2ff   :  { %v9368_v60 = vpop.f32.mrb[237].mxu1  ;;  %v9331_v63 = vpop.f32.mrb[239].mxu0  ;;  %9917 = vmatprep.subr.bf16.mxu0 %v11481_v4  ;;  %v11493_v4 = vld [vmem:[%s15522_s1 + $0x3d8] sm:$0xff]  }
 0x300   :  { %v9369_v52 = vadd.f32 %v9368_v60, %v9367_v55  ;;  %v9370_v61 = vpop.f32.mrb[238].mxu1  ;;  %9892 = vmatpush3.bf16.msra.mxu1 %v11480_v57  ;;  %v5258_v7 = vadd.f32 %v9329_v54, %v14827_v33  ;;  %v9332_v29 = vadd.f32 %v9331_v63, %v9330_v48  ;;  %v11483_v33 = vld [vmem:[%s15522_s1 + $0x380] sm:$0xff]   ;;  %v11488_v55 = vld [vmem:[%s15522_s1 + $0x408] sm:$0xff]  }
 0x301   :  { %v9371_v1 = vpop.f32.mrb[239].mxu1  ;;  %9957 = vmatprep.subr.bf16.mxu1 %v11482_v3  ;;  %6709 = vmatmul.mubr.bf16.vlgmr.msra.gmra.mrb[80].mxu0 %v10888_v18  ;;  %v11489_v18 = vld [vmem:[%s15522_s1 + $0x3d0] sm:$0xff]  }
 0x302   :  { %v9372_v5 = vadd.f32 %v9371_v1, %v9370_v61  ;;  %v5261_v14 = vadd.f32 %v9332_v29, %v14841_v34  ;;  %v14986_v28 = vadd.f32 %v9369_v52, %v5258_v7  ;;  %9918 = vmatpush3.bf16.msra.mxu0 %v11483_v33  ;;  %v11486_v34 = vld [vmem:[%s15522_s1 + $0x448] sm:$0xff]   ;;  %6716 = vmatprep.mubr.bf16.mxu0 %v10896_v15  ;;  %v10902_v52 = vld [vmem:[%s15523_s0 + $0x9f0] ss:$100 sps:$4 sm:$0xff]   ;;  %v10905_v61 = vld [vmem:[%s15523_s0 + $0x9f8] ss:$100 sps:$4 sm:$0xff]  }
 0x303   :  { %6773 = vmatmul.mubr.bf16.vlgmr.msra.gmra.mrb[88].mxu1 %v10891_v40  ;;  %9919 = vmatprep.subr.bf16.mxu0 %v11485_v25  ;;  %v11490_v40 = vld [vmem:[%s15522_s1 + $0x450] sm:$0xff]  }
 0x304   :  { %9958 = vmatpush3.bf16.msra.mxu1 %v11484_v17  ;;  %v15000_v21 = vadd.f32 %v9372_v5, %v5261_v14  ;;  %v9333_v31 = vpop.f32.mrb[240].mxu0  ;;  %6780 = vmatprep.mubr.bf16.mxu1 %v10899_v27  ;;  %v11492_v1 = vld [vmem:[%s15522_s1 + $0x410] sm:$0xff]   ;;  %v8022_v17 = vld [vmem:[%s15523_s0 + $0xabc] sm:$0x11] }
 0x305   :  { %9959 = vmatprep.subr.bf16.mxu1 %v11486_v34  ;;  %v9334_v16 = vpop.f32.mrb[241].mxu0  ;;  %v10900_v5 = vld [vmem:[%s15523_s0 + $0x9ec] ss:$100 sps:$4 sm:$0xff]   ;;  %v10903_v15 = vld [vmem:[%s15523_s0 + $0x9f4] ss:$100 sps:$4 sm:$0xff]  }
 0x306   :  { %v9373_v39 = vpop.f32.mrb[240].mxu1  ;;  %v9335_v53 = vadd.f32 %v9334_v16, %v9333_v31  ;;  %v9336_v58 = vpop.f32.mrb[242].mxu0  ;;  %9920 = vmatpush3.bf16.msra.mxu0 %v11487_v20  ;;  %v8021_v33 = vld [vmem:[%s15523_s0 + $0xab4] sm:$0x11] }
 0x307   :  { %v9374_v30 = vpop.f32.mrb[241].mxu1  ;;  %v9337_v44 = vpop.f32.mrb[243].mxu0  ;;  %9921 = vmatprep.subr.bf16.mxu0 %v11489_v18  ;;  %v11495_v31 = vld [vmem:[%s15522_s1 + $0x398] sm:$0xff]   ;;  %v11502_v18 = vld [vmem:[%s15522_s1 + $0x468] sm:$0xff]  }
 0x308   :  { %v9375_v47 = vadd.f32 %v9374_v30, %v9373_v39  ;;  %v9376_v46 = vpop.f32.mrb[242].mxu1  ;;  %9960 = vmatpush3.bf16.msra.mxu1 %v11488_v55  ;;  %v5266_v54 = vadd.f32 %v9335_v53, %v14869_v11  ;;  %v9338_v48 = vadd.f32 %v9337_v44, %v9336_v58  ;;  %v11491_v11 = vld [vmem:[%s15522_s1 + $0x390] sm:$0xff]   ;;  %v11496_v16 = vld [vmem:[%s15522_s1 + $0x418] sm:$0xff]   ;;  %v11498_v53 = vld [vmem:[%s15522_s1 + $0x460] sm:$0xff]  }
 0x309   :  { %v9377_v60 = vpop.f32.mrb[243].mxu1  ;;  %9961 = vmatprep.subr.bf16.mxu1 %v11490_v40  ;;  %6717 = vmatmul.mubr.bf16.gmra.mrb[84].mxu0 %v10894_v23  ;;  %v11499_v44 = vld [vmem:[%s15522_s1 + $0x3a0] sm:$0xff]  }
 0x30a   :  { %v9378_v0 = vadd.f32 %v9377_v60, %v9376_v46  ;;  %v5269_v57 = vadd.f32 %v9338_v48, %v14883_v8  ;;  %v15028_v63 = vadd.f32 %v9375_v47, %v5266_v54  ;;  %9922 = vmatpush3.bf16.msra.mxu0 %v11491_v11  ;;  %v11494_v8 = vld [vmem:[%s15522_s1 + $0x458] sm:$0xff]   ;;  %6724 = vmatprep.mubr.bf16.mxu0 %v10902_v52  ;;  %v11500_v60 = vld [vmem:[%s15522_s1 + $0x420] sm:$0xff]  }
 0x30b   :  { %6781 = vmatmul.mubr.bf16.gmra.mrb[92].mxu1 %v10897_v45  ;;  %9923 = vmatprep.subr.bf16.mxu0 %v11493_v4  ;;  %v11497_v45 = vld [vmem:[%s15522_s1 + $0x3e0] sm:$0xff]   ;;  %v8115_v47 = vcombine.high %v8021_v33, %v8021_v33  ;;  %v8117_v46 = vcombine.high %v8022_v17, %v8022_v17  ;;  %v8114_v52 = vcombine.low %v8021_v33, %v8021_v33 }
 0x30c   :  { %9962 = vmatpush3.bf16.msra.mxu1 %v11492_v1  ;;  %v15042_v3 = vadd.f32 %v9378_v0, %v5269_v57  ;;  %v9339_v7 = vpop.f32.mrb[244].mxu0  ;;  %6788 = vmatprep.mubr.bf16.mxu1 %v10905_v61  ;;  %v8116_v61 = vcombine.low %v8022_v17, %v8022_v17  ;;  %v11503_v1 = vld [vmem:[%s15522_s1 + $0x3a8] sm:$0xff]  }
 0x30d   :  { %9963 = vmatprep.subr.bf16.mxu1 %v11494_v8  ;;  %v9340_v27 = vpop.f32.mrb[245].mxu0 }
 0x30e   :  { %v9379_v29 = vpop.f32.mrb[244].mxu1  ;;  %v9341_v25 = vadd.f32 %v9340_v27, %v9339_v7  ;;  %v9342_v34 = vpop.f32.mrb[246].mxu0  ;;  %9924 = vmatpush3.bf16.msra.mxu0 %v11495_v31  ;;  %v11504_v7 = vld [vmem:[%s15522_s1 + $0x428] sm:$0xff]   ;;  %v11506_v27 = vld [vmem:[%s15522_s1 + $0x470] sm:$0xff]  }
 0x30f   :  { %v9380_v14 = vpop.f32.mrb[245].mxu1  ;;  %v9343_v23 = vpop.f32.mrb[247].mxu0  ;;  %9925 = vmatprep.subr.bf16.mxu0 %v11497_v45  ;;  %v10915_v34 = vld [vmem:[%s15523_s0 + $0x878] ss:$100 sps:$4 sm:$0xff]  }
 0x310   :  { %v9381_v39 = vadd.f32 %v9380_v14, %v9379_v29  ;;  %9964 = vmatpush3.bf16.msra.mxu1 %v11496_v16  ;;  %v9382_v30 = vpop.f32.mrb[246].mxu1  ;;  %v5274_v20 = vadd.f32 %v9341_v25, %v14910_v49  ;;  %v11501_v49 = vld [vmem:[%s15522_s1 + $0x3e8] sm:$0xff]   ;;  %v10912_v25 = vld [vmem:[%s15523_s0 + $0x870] ss:$100 sps:$4 sm:$0xff]  }
 0x311   :  { %9965 = vmatprep.subr.bf16.mxu1 %v11498_v53  ;;  %v9383_v58 = vpop.f32.mrb[247].mxu1  ;;  %6725 = vmatmul.mubr.bf16.gmra.mrb[88].mxu0 %v10900_v5  ;;  %v11508_v16 = vld [vmem:[%s15522_s1 + $0x430] sm:$0xff]   ;;  %v11509_v30 = vld [vmem:[%s15522_s1 + $0x3f8] sm:$0xff]  }
 0x312   :  { %v15069_v55 = vadd.f32 %v9381_v39, %v5274_v20  ;;  %9926 = vmatpush3.bf16.msra.mxu0 %v11499_v44  ;;  %6732 = vmatprep.mubr.bf16.mxu0 %v8115_v47  ;;  %v10910_v47 = vld [vmem:[%s15523_s0 + $0x86c] ss:$100 sps:$4 sm:$0xff]  }
 0x313   :  { %6789 = vmatmul.mubr.bf16.gmra.mrb[96].mxu1 %v10903_v15  ;;  %9927 = vmatprep.subr.bf16.mxu0 %v11501_v49  ;;  %v11505_v15 = vld [vmem:[%s15522_s1 + $0x3f0] sm:$0xff]   ;;  %v11511_v49 = vld [vmem:[%s15522_s1 + $0x3b8] sm:$0xff]  }
 0x314   :  { %9966 = vmatpush3.bf16.msra.mxu1 %v11500_v60  ;;  %v9401_v40 = vpop.f32.mrb[248].mxu0  ;;  %6796 = vmatprep.mubr.bf16.mxu1 %v8117_v46  ;;  %v10913_v46 = vld [vmem:[%s15523_s0 + $0x874] ss:$100 sps:$4 sm:$0xff]  }
 0x315   :  { %9967 = vmatprep.subr.bf16.mxu1 %v11502_v18  ;;  %v9402_v48 = vpop.f32.mrb[249].mxu0 }
 0x316   :  { %v9441_v54 = vpop.f32.mrb[248].mxu1  ;;  %v9403_v57 = vadd.f32 %v9402_v48, %v9401_v40  ;;  %v9404_v11 = vpop.f32.mrb[250].mxu0  ;;  %9928 = vmatpush3.bf16.msra.mxu0 %v11503_v1 }
 0x317   :  { %v9442_v0 = vpop.f32.mrb[249].mxu1  ;;  %v9405_v29 = vpop.f32.mrb[251].mxu0  ;;  %9929 = vmatprep.subr.bf16.mxu0 %v11505_v15  ;;  %v11517_v15 = vld [vmem:[%s15522_s1 + $0x4c8] sm:$0xff]  }
 0x318   :  { %v9443_v4 = vadd.f32 %v9442_v0, %v9441_v54  ;;  %v9444_v8 = vpop.f32.mrb[250].mxu1  ;;  %9968 = vmatpush3.bf16.msra.mxu1 %v11504_v7  ;;  %v5378_v14 = vadd.f32 %v9403_v57, %v14944_v51  ;;  %v9406_v33 = vadd.f32 %v9405_v29, %v9404_v11  ;;  %v11507_v51 = vld [vmem:[%s15522_s1 + $0x3b0] sm:$0xff]   ;;  %v11512_v54 = vld [vmem:[%s15522_s1 + $0x438] sm:$0xff]  }
 0x319   :  { %v9445_v5 = vpop.f32.mrb[251].mxu1  ;;  %9969 = vmatprep.subr.bf16.mxu1 %v11506_v27  ;;  %6733 = vmatmul.mubr.bf16.gmra.mrb[92].mxu0 %v8114_v52  ;;  %v11513_v52 = vld [vmem:[%s15522_s1 + $0x4c0] sm:$0xff]  }
 0x31a   :  { %v9446_v17 = vadd.f32 %v9445_v5, %v9444_v8  ;;  %v5381_v31 = vadd.f32 %v9406_v33, %v14958_v37  ;;  %v15103_v39 = vadd.f32 %v9443_v4, %v5378_v14  ;;  %9930 = vmatpush3.bf16.msra.mxu0 %v11507_v51  ;;  %v11510_v37 = vld [vmem:[%s15522_s1 + $0x478] sm:$0xff]   ;;  %6836 = vmatprep.mubr.bf16.mxu0 %v10912_v25  ;;  %v10921_v8 = vld [vmem:[%s15523_s0 + $0x940] ss:$100 sps:$4 sm:$0xff]  }
 0x31b   :  { %6797 = vmatmul.mubr.bf16.gmra.mrb[100].mxu1 %v8116_v61  ;;  %9931 = vmatprep.subr.bf16.mxu0 %v11509_v30  ;;  %v11514_v61 = vld [vmem:[%s15522_s1 + $0x540] sm:$0xff]   ;;  %v10918_v4 = vld [vmem:[%s15523_s0 + $0x938] ss:$100 sps:$4 sm:$0xff]   ;;  %v11519_v30 = vld [vmem:[%s15522_s1 + $0x488] sm:$0xff]  }
 0x31c   :  { %9970 = vmatpush3.bf16.msra.mxu1 %v11508_v16  ;;  %v15117_v23 = vadd.f32 %v9446_v17, %v5381_v31  ;;  %v9407_v45 = vpop.f32.mrb[252].mxu0  ;;  %6900 = vmatprep.mubr.bf16.mxu1 %v10915_v34  ;;  %v11516_v5 = vld [vmem:[%s15522_s1 + $0x500] sm:$0xff]   ;;  %v10916_v34 = vld [vmem:[%s15523_s0 + $0x934] ss:$100 sps:$4 sm:$0xff]  }
 0x31d   :  { %9971 = vmatprep.subr.bf16.mxu1 %v11510_v37  ;;  %v9408_v58 = vpop.f32.mrb[253].mxu0  ;;  %v10919_v31 = vld [vmem:[%s15523_s0 + $0x93c] ss:$100 sps:$4 sm:$0xff]  }
 0x31e   :  { %v9447_v53 = vpop.f32.mrb[252].mxu1  ;;  %v9409_v44 = vadd.f32 %v9408_v58, %v9407_v45  ;;  %v9410_v60 = vpop.f32.mrb[254].mxu0  ;;  %9932 = vmatpush3.bf16.msra.mxu0 %v11511_v49 }
 0x31f   :  { %v9448_v20 = vpop.f32.mrb[253].mxu1  ;;  %v9411_v48 = vpop.f32.mrb[255].mxu0  ;;  %9997 = vmatprep.subr.bf16.mxu0 %v11513_v52  ;;  %v11525_v52 = vld [vmem:[%s15522_s1 + $0x4d8] sm:$0xff]  }
 0x320   :  { %v9449_v18 = vadd.f32 %v9448_v20, %v9447_v53  ;;  %v9450_v40 = vpop.f32.mrb[254].mxu1  ;;  %9972 = vmatpush3.bf16.msra.mxu1 %v11512_v54  ;;  %v5386_v57 = vadd.f32 %v9409_v44, %v14986_v28  ;;  %v9412_v11 = vadd.f32 %v9411_v48, %v9410_v60  ;;  %v11515_v28 = vld [vmem:[%s15522_s1 + $0x480] sm:$0xff]   ;;  %v11520_v53 = vld [vmem:[%s15522_s1 + $0x508] sm:$0xff]  }
 0x321   :  { %v9451_v0 = vpop.f32.mrb[255].mxu1  ;;  %10037 = vmatprep.subr.bf16.mxu1 %v11514_v61  ;;  %6837 = vmatmul.mubr.bf16.vlgmr.msra.gmra.mrb[96].mxu0 %v10910_v47  ;;  %v11521_v47 = vld [vmem:[%s15522_s1 + $0x4d0] sm:$0xff]  }
 0x322   :  { %v9452_v1 = vadd.f32 %v9451_v0, %v9450_v40  ;;  %v5389_v7 = vadd.f32 %v9412_v11, %v15000_v21  ;;  %v15145_v29 = vadd.f32 %v9449_v18, %v5386_v57  ;;  %9998 = vmatpush3.bf16.msra.mxu0 %v11515_v28  ;;  %v11518_v21 = vld [vmem:[%s15522_s1 + $0x548] sm:$0xff]   ;;  %6844 = vmatprep.mubr.bf16.mxu0 %v10918_v4  ;;  %v10924_v18 = vld [vmem:[%s15523_s0 + $0xa00] ss:$100 sps:$4 sm:$0xff]   ;;  %v11524_v0 = vld [vmem:[%s15522_s1 + $0x510] sm:$0xff]  }
 0x323   :  { %6901 = vmatmul.mubr.bf16.vlgmr.msra.gmra.mrb[104].mxu1 %v10913_v46  ;;  %9999 = vmatprep.subr.bf16.mxu0 %v11517_v15  ;;  %v11522_v46 = vld [vmem:[%s15522_s1 + $0x550] sm:$0xff]   ;;  %v10927_v40 = vld [vmem:[%s15523_s0 + $0xa08] ss:$100 sps:$4 sm:$0xff]  }
 0x324   :  { %10038 = vmatpush3.bf16.msra.mxu1 %v11516_v5  ;;  %v15159_v27 = vadd.f32 %v9452_v1, %v5389_v7  ;;  %v9413_v14 = vpop.f32.mrb[0].mxu0  ;;  %6908 = vmatprep.mubr.bf16.mxu1 %v10921_v8  ;;  %v10922_v1 = vld [vmem:[%s15523_s0 + $0x9fc] ss:$100 sps:$4 sm:$0xff]   ;;  %v10925_v4 = vld [vmem:[%s15523_s0 + $0xa04] ss:$100 sps:$4 sm:$0xff]  }
 0x325   :  { %10039 = vmatprep.subr.bf16.mxu1 %v11518_v21  ;;  %v9414_v17 = vpop.f32.mrb[1].mxu0  ;;  %v8023_v28 = vld [vmem:[%s15523_s0 + $0xac4] sm:$0x11]  ;;  %v8024_v5 = vld [vmem:[%s15523_s0 + $0xacc] sm:$0x11] }
 0x326   :  { %v9453_v33 = vpop.f32.mrb[0].mxu1  ;;  %v9415_v51 = vadd.f32 %v9414_v17, %v9413_v14  ;;  %v9416_v16 = vpop.f32.mrb[2].mxu0  ;;  %10000 = vmatpush3.bf16.msra.mxu0 %v11519_v30  ;;  %v11527_v14 = vld [vmem:[%s15522_s1 + $0x498] sm:$0xff]  }
 0x327   :  { %v9454_v25 = vpop.f32.mrb[1].mxu1  ;;  %v9417_v58 = vpop.f32.mrb[3].mxu0  ;;  %10001 = vmatprep.subr.bf16.mxu0 %v11521_v47  ;;  %v11528_v17 = vld [vmem:[%s15522_s1 + $0x518] sm:$0xff]   ;;  %v11534_v47 = vld [vmem:[%s15522_s1 + $0x568] sm:$0xff]  }
 0x328   :  { %v9455_v37 = vadd.f32 %v9454_v25, %v9453_v33  ;;  %v9456_v45 = vpop.f32.mrb[2].mxu1  ;;  %10040 = vmatpush3.bf16.msra.mxu1 %v11520_v53  ;;  %v5394_v44 = vadd.f32 %v9415_v51, %v15028_v63  ;;  %v9418_v60 = vadd.f32 %v9417_v58, %v9416_v16  ;;  %v11523_v63 = vld [vmem:[%s15522_s1 + $0x490] sm:$0xff]   ;;  %v11530_v51 = vld [vmem:[%s15522_s1 + $0x560] sm:$0xff]  }
 0x329   :  { %v9457_v20 = vpop.f32.mrb[3].mxu1  ;;  %10041 = vmatprep.subr.bf16.mxu1 %v11522_v46  ;;  %6845 = vmatmul.mubr.bf16.gmra.mrb[100].mxu0 %v10916_v34  ;;  %v11531_v58 = vld [vmem:[%s15522_s1 + $0x4a0] sm:$0xff]  }
 0x32a   :  { %v9458_v49 = vadd.f32 %v9457_v20, %v9456_v45  ;;  %v5397_v54 = vadd.f32 %v9418_v60, %v15042_v3  ;;  %v15187_v48 = vadd.f32 %v9455_v37, %v5394_v44  ;;  %10002 = vmatpush3.bf16.msra.mxu0 %v11523_v63  ;;  %v11526_v3 = vld [vmem:[%s15522_s1 + $0x558] sm:$0xff]   ;;  %6852 = vmatprep.mubr.bf16.mxu0 %v10924_v18  ;;  %v11532_v20 = vld [vmem:[%s15522_s1 + $0x520] sm:$0xff]  }
 0x32b   :  { %6909 = vmatmul.mubr.bf16.gmra.mrb[108].mxu1 %v10919_v31  ;;  %10003 = vmatprep.subr.bf16.mxu0 %v11525_v52  ;;  %v11529_v31 = vld [vmem:[%s15522_s1 + $0x4e0] sm:$0xff]   ;;  %v8119_v37 = vcombine.high %v8023_v28, %v8023_v28  ;;  %v8121_v45 = vcombine.high %v8024_v5, %v8024_v5  ;;  %v8118_v18 = vcombine.low %v8023_v28, %v8023_v28 }
 0x32c   :  { %10042 = vmatpush3.bf16.msra.mxu1 %v11524_v0  ;;  %v15201_v61 = vadd.f32 %v9458_v49, %v5397_v54  ;;  %v9419_v57 = vpop.f32.mrb[4].mxu0  ;;  %6916 = vmatprep.mubr.bf16.mxu1 %v10927_v40  ;;  %v8120_v40 = vcombine.low %v8024_v5, %v8024_v5  ;;  %v11535_v0 = vld [vmem:[%s15522_s1 + $0x4a8] sm:$0xff]  }
 0x32d   :  { %10043 = vmatprep.subr.bf16.mxu1 %v11526_v3  ;;  %v9420_v8 = vpop.f32.mrb[5].mxu0 }
 0x32e   :  { %v9459_v11 = vpop.f32.mrb[4].mxu1  ;;  %v9421_v15 = vadd.f32 %v9420_v8, %v9419_v57  ;;  %v9422_v21 = vpop.f32.mrb[6].mxu0  ;;  %10004 = vmatpush3.bf16.msra.mxu0 %v11527_v14  ;;  %v11536_v57 = vld [vmem:[%s15522_s1 + $0x528] sm:$0xff]   ;;  %v11538_v8 = vld [vmem:[%s15522_s1 + $0x570] sm:$0xff]  }
 0x32f   :  { %v9460_v7 = vpop.f32.mrb[5].mxu1  ;;  %v9423_v34 = vpop.f32.mrb[7].mxu0  ;;  %10005 = vmatprep.subr.bf16.mxu0 %v11529_v31  ;;  %v10937_v21 = vld [vmem:[%s15523_s0 + $0x888] ss:$100 sps:$4 sm:$0xff]  }
 0x330   :  { %v9461_v33 = vadd.f32 %v9460_v7, %v9459_v11  ;;  %10044 = vmatpush3.bf16.msra.mxu1 %v11528_v17  ;;  %v9462_v25 = vpop.f32.mrb[6].mxu1  ;;  %v5402_v30 = vadd.f32 %v9421_v15, %v15069_v55  ;;  %v11533_v55 = vld [vmem:[%s15522_s1 + $0x4e8] sm:$0xff]   ;;  %v10934_v15 = vld [vmem:[%s15523_s0 + $0x880] ss:$100 sps:$4 sm:$0xff]   ;;  %v11540_v17 = vld [vmem:[%s15522_s1 + $0x530] sm:$0xff]  }
 0x331   :  { %10045 = vmatprep.subr.bf16.mxu1 %v11530_v51  ;;  %v9463_v16 = vpop.f32.mrb[7].mxu1  ;;  %6853 = vmatmul.mubr.bf16.gmra.mrb[104].mxu0 %v10922_v1  ;;  %v11541_v25 = vld [vmem:[%s15522_s1 + $0x4f8] sm:$0xff]  }
 0x332   :  { %v15228_v53 = vadd.f32 %v9461_v33, %v5402_v30  ;;  %10006 = vmatpush3.bf16.msra.mxu0 %v11531_v58  ;;  %6860 = vmatprep.mubr.bf16.mxu0 %v8119_v37  ;;  %v10932_v37 = vld [vmem:[%s15523_s0 + $0x87c] ss:$100 sps:$4 sm:$0xff]  }
 0x333   :  { %6917 = vmatmul.mubr.bf16.gmra.mrb[112].mxu1 %v10925_v4  ;;  %10007 = vmatprep.subr.bf16.mxu0 %v11533_v55  ;;  %v11537_v4 = vld [vmem:[%s15522_s1 + $0x4f0] sm:$0xff]   ;;  %v11543_v55 = vld [vmem:[%s15522_s1 + $0x4b8] sm:$0xff]  }
 0x334   :  { %10046 = vmatpush3.bf16.msra.mxu1 %v11532_v20  ;;  %v9481_v46 = vpop.f32.mrb[8].mxu0  ;;  %6924 = vmatprep.mubr.bf16.mxu1 %v8121_v45  ;;  %v10935_v45 = vld [vmem:[%s15523_s0 + $0x884] ss:$100 sps:$4 sm:$0xff]  }
 0x335   :  { %10047 = vmatprep.subr.bf16.mxu1 %v11534_v47  ;;  %v9482_v60 = vpop.f32.mrb[9].mxu0 }
 0x336   :  { %v9521_v44 = vpop.f32.mrb[8].mxu1  ;;  %v9483_v54 = vadd.f32 %v9482_v60, %v9481_v46  ;;  %v9484_v63 = vpop.f32.mrb[10].mxu0  ;;  %10008 = vmatpush3.bf16.msra.mxu0 %v11535_v0 }
 0x337   :  { %v9522_v49 = vpop.f32.mrb[9].mxu1  ;;  %v9485_v11 = vpop.f32.mrb[11].mxu0  ;;  %10009 = vmatprep.subr.bf16.mxu0 %v11537_v4 }
 0x338   :  { %v9523_v52 = vadd.f32 %v9522_v49, %v9521_v44  ;;  %v9524_v3 = vpop.f32.mrb[10].mxu1  ;;  %10048 = vmatpush3.bf16.msra.mxu1 %v11536_v57  ;;  %v5506_v7 = vadd.f32 %v9483_v54, %v15103_v39  ;;  %v9486_v28 = vadd.f32 %v9485_v11, %v9484_v63  ;;  %v11539_v39 = vld [vmem:[%s15522_s1 + $0x4b0] sm:$0xff]   ;;  %v11544_v44 = vld [vmem:[%s15522_s1 + $0x538] sm:$0xff]   ;;  %v10940_v54 = vld [vmem:[%s15523_s0 + $0x948] ss:$100 sps:$4 sm:$0xff]  }
 0x339   :  { %v9525_v1 = vpop.f32.mrb[11].mxu1  ;;  %10049 = vmatprep.subr.bf16.mxu1 %v11538_v8  ;;  %6861 = vmatmul.mubr.bf16.gmra.mrb[108].mxu0 %v8118_v18  ;;  %v11545_v18 = vld [vmem:[%s15522_s1 + $0x5c0] sm:$0xff]  }
 0x33a   :  { %v9526_v5 = vadd.f32 %v9525_v1, %v9524_v3  ;;  %v5509_v14 = vadd.f32 %v9486_v28, %v15117_v23  ;;  %v15262_v33 = vadd.f32 %v9523_v52, %v5506_v7  ;;  %10010 = vmatpush3.bf16.msra.mxu0 %v11539_v39  ;;  %v11542_v23 = vld [vmem:[%s15522_s1 + $0x578] sm:$0xff]   ;;  %6964 = vmatprep.mubr.bf16.mxu0 %v10934_v15  ;;  %v10943_v3 = vld [vmem:[%s15523_s0 + $0x950] ss:$100 sps:$4 sm:$0xff]   ;;  %v11547_v1 = vld [vmem:[%s15522_s1 + $0x580] sm:$0xff]  }
 0x33b   :  { %6925 = vmatmul.mubr.bf16.gmra.mrb[116].mxu1 %v8120_v40  ;;  %10011 = vmatprep.subr.bf16.mxu0 %v11541_v25  ;;  %v11546_v40 = vld [vmem:[%s15522_s1 + $0x600] sm:$0xff]  }
 0x33c   :  { %10050 = vmatpush3.bf16.msra.mxu1 %v11540_v17  ;;  %v15276_v34 = vadd.f32 %v9526_v5, %v5509_v14  ;;  %v9487_v31 = vpop.f32.mrb[12].mxu0  ;;  %7028 = vmatprep.mubr.bf16.mxu1 %v10937_v21  ;;  %v10938_v15 = vld [vmem:[%s15523_s0 + $0x944] ss:$100 sps:$4 sm:$0xff]   ;;  %v10941_v21 = vld [vmem:[%s15523_s0 + $0x94c] ss:$100 sps:$4 sm:$0xff]  }
 0x33d   :  { %10051 = vmatprep.subr.bf16.mxu1 %v11542_v23  ;;  %v9488_v16 = vpop.f32.mrb[13].mxu0  ;;  %v11550_v17 = vld [vmem:[%s15522_s1 + $0x588] sm:$0xff]  }
 0x33e   :  { %v9527_v51 = vpop.f32.mrb[12].mxu1  ;;  %v9489_v58 = vadd.f32 %v9488_v16, %v9487_v31  ;;  %v9490_v20 = vpop.f32.mrb[14].mxu0  ;;  %10012 = vmatpush3.bf16.msra.mxu0 %v11543_v55  ;;  %v11551_v16 = vld [vmem:[%s15522_s1 + $0x5d0] sm:$0xff]   ;;  %v10949_v55 = vld [vmem:[%s15523_s0 + $0xa18] ss:$100 sps:$4 sm:$0xff]  }
 0x33f   :  { %v9528_v30 = vpop.f32.mrb[13].mxu1  ;;  %v9491_v60 = vpop.f32.mrb[15].mxu0  ;;  %10077 = vmatprep.subr.bf16.mxu0 %v11545_v18 }
 0x340   :  { %v9529_v47 = vadd.f32 %v9528_v30, %v9527_v51  ;;  %v9530_v46 = vpop.f32.mrb[14].mxu1  ;;  %10052 = vmatpush3.bf16.msra.mxu1 %v11544_v44  ;;  %v5514_v63 = vadd.f32 %v9489_v58, %v15145_v29  ;;  %v9492_v0 = vadd.f32 %v9491_v60, %v9490_v20  ;;  %v11548_v29 = vld [vmem:[%s15522_s1 + $0x5c8] sm:$0xff]   ;;  %v11552_v30 = vld [vmem:[%s15522_s1 + $0x610] sm:$0xff]  }
 0x341   :  { %v9531_v49 = vpop.f32.mrb[15].mxu1  ;;  %10201 = vmatprep.subr.bf16.mxu1 %v11546_v40  ;;  %6965 = vmatmul.mubr.bf16.vlgmr.msra.gmra.mrb[112].mxu0 %v10932_v37  ;;  %v10946_v37 = vld [vmem:[%s15523_s0 + $0xa10] ss:$100 sps:$4 sm:$0xff]  }
 0x342   :  { %v9532_v52 = vadd.f32 %v9531_v49, %v9530_v46  ;;  %v5517_v57 = vadd.f32 %v9492_v0, %v15159_v27  ;;  %v15304_v11 = vadd.f32 %v9529_v47, %v5514_v63  ;;  %10078 = vmatpush3.bf16.msra.mxu0 %v11547_v1  ;;  %6972 = vmatprep.mubr.bf16.mxu0 %v10940_v54  ;;  %v11549_v27 = vld [vmem:[%s15522_s1 + $0x608] sm:$0xff]   ;;  %v11553_v44 = vld [vmem:[%s15522_s1 + $0x590] sm:$0xff]  }
 0x343   :  { %7029 = vmatmul.mubr.bf16.vlgmr.msra.gmra.mrb[120].mxu1 %v10935_v45  ;;  %10079 = vmatprep.subr.bf16.mxu0 %v11548_v29  ;;  %v8025_v54 = vld [vmem:[%s15523_s0 + $0xad4] sm:$0x11] }
 0x344   :  { %10202 = vmatpush3.bf16.msra.mxu1 %v11546_v40  ;;  %v15312_v4 = vadd.f32 %v9532_v52, %v5517_v57  ;;  %v9493_v8 = vpop.f32.mrb[16].mxu0  ;;  %7036 = vmatprep.mubr.bf16.mxu1 %v10943_v3  ;;  %v11555_v40 = vld [vmem:[%s15522_s1 + $0x618] sm:$0xff]  }
 0x345   :  { %10203 = vmatprep.subr.bf16.mxu1 %v11549_v27  ;;  %v9494_v28 = vpop.f32.mrb[17].mxu0  ;;  %v10947_v52 = vld [vmem:[%s15523_s0 + $0xa14] ss:$100 sps:$4 sm:$0xff]   ;;  %v8026_v3 = vld [vmem:[%s15523_s0 + $0xadc] sm:$0x11] }
 0x346   :  { %v9533_v7 = vpop.f32.mrb[16].mxu1  ;;  %v9495_v14 = vadd.f32 %v9494_v28, %v9493_v8  ;;  %v9496_v39 = vpop.f32.mrb[18].mxu0  ;;  %10080 = vmatpush3.bf16.msra.mxu0 %v11550_v17  ;;  %v11556_v29 = vld [vmem:[%s15522_s1 + $0x598] sm:$0xff]   ;;  %v11557_v28 = vld [vmem:[%s15522_s1 + $0x5e0] sm:$0xff]  }
 0x347   :  { %v9534_v5 = vpop.f32.mrb[17].mxu1  ;;  %v9497_v31 = vpop.f32.mrb[19].mxu0  ;;  %10081 = vmatprep.subr.bf16.mxu0 %v11551_v16 }
 0x348   :  { %v9535_v25 = vadd.f32 %v9534_v5, %v9533_v7  ;;  %v9536_v23 = vpop.f32.mrb[18].mxu1  ;;  %10204 = vmatpush3.bf16.msra.mxu1 %v11549_v27  ;;  %v5522_v45 = vadd.f32 %v9495_v14, %v15187_v48  ;;  %v9498_v58 = vadd.f32 %v9497_v31, %v9496_v39  ;;  %v11554_v48 = vld [vmem:[%s15522_s1 + $0x5d8] sm:$0xff]   ;;  %v8125_v39 = vcombine.high %v8026_v3, %v8026_v3 }
 0x349   :  { %v9537_v51 = vpop.f32.mrb[19].mxu1  ;;  %10205 = vmatprep.subr.bf16.mxu1 %v11552_v30  ;;  %6973 = vmatmul.mubr.bf16.gmra.mrb[116].mxu0 %v10938_v15  ;;  %v11558_v15 = vld [vmem:[%s15522_s1 + $0x620] sm:$0xff]  }
 0x34a   :  { %v9538_v20 = vadd.f32 %v9537_v51, %v9536_v23  ;;  %v5525_v47 = vadd.f32 %v9498_v58, %v15201_v61  ;;  %v15340_v46 = vadd.f32 %v9535_v25, %v5522_v45  ;;  %10082 = vmatpush3.bf16.msra.mxu0 %v11553_v44  ;;  %6980 = vmatprep.mubr.bf16.mxu0 %v10946_v37  ;;  %v10944_v61 = vld [vmem:[%s15523_s0 + $0xa0c] ss:$100 sps:$4 sm:$0xff]   ;;  %v11559_v25 = vld [vmem:[%s15522_s1 + $0x5a0] sm:$0xff]  }
 0x34b   :  { %7037 = vmatmul.mubr.bf16.gmra.mrb[124].mxu1 %v10941_v21  ;;  %10083 = vmatprep.subr.bf16.mxu0 %v11554_v48  ;;  %v8123_v21 = vcombine.high %v8025_v54, %v8025_v54  ;;  %v11560_v23 = vld [vmem:[%s15522_s1 + $0x5e8] sm:$0xff]   ;;  %v8122_v37 = vcombine.low %v8025_v54, %v8025_v54  ;;  %v8124_v45 = vcombine.low %v8026_v3, %v8026_v3 }
 0x34c   :  { %10206 = vmatpush3.bf16.msra.mxu1 %v11552_v30  ;;  %v15348_v60 = vadd.f32 %v9538_v20, %v5525_v47  ;;  %v9499_v49 = vpop.f32.mrb[20].mxu0  ;;  %7044 = vmatprep.mubr.bf16.mxu1 %v10949_v55  ;;  %v11562_v55 = vld [vmem:[%s15522_s1 + $0x5a8] sm:$0xff]  }
 0x34d   :  { %10207 = vmatprep.subr.bf16.mxu1 %v11555_v40  ;;  %v9500_v63 = vpop.f32.mrb[21].mxu0 }
 0x34e   :  { %v9539_v18 = vpop.f32.mrb[20].mxu1  ;;  %v9501_v57 = vadd.f32 %v9500_v63, %v9499_v49  ;;  %v9502_v1 = vpop.f32.mrb[22].mxu0  ;;  %10084 = vmatpush3.bf16.msra.mxu0 %v11556_v29 }
 0x34f   :  { %v9540_v0 = vpop.f32.mrb[21].mxu1  ;;  %v9503_v27 = vpop.f32.mrb[23].mxu0  ;;  %10085 = vmatprep.subr.bf16.mxu0 %v11557_v28 }
 0x350   :  { %v9541_v8 = vadd.f32 %v9540_v0, %v9539_v18  ;;  %10208 = vmatpush3.bf16.msra.mxu1 %v11555_v40  ;;  %v9542_v7 = vpop.f32.mrb[22].mxu1  ;;  %v5530_v14 = vadd.f32 %v9501_v57, %v15228_v53  ;;  %v11561_v53 = vld [vmem:[%s15522_s1 + $0x628] sm:$0xff]   ;;  %v11563_v18 = vld [vmem:[%s15522_s1 + $0x5f0] sm:$0xff]  }
 0x351   :  { %v9543_v5 = vpop.f32.mrb[23].mxu1  ;;  %10209 = vmatprep.subr.bf16.mxu1 %v11558_v15  ;;  %6981 = vmatmul.mubr.bf16.gmra.mrb[120].mxu0 %v10944_v61  ;;  %v11564_v61 = vld [vmem:[%s15522_s1 + $0x630] sm:$0xff]  }
 0x352   :  { %v15375_v17 = vadd.f32 %v9541_v8, %v5530_v14  ;;  %10086 = vmatpush3.bf16.msra.mxu0 %v11559_v25  ;;  %6988 = vmatprep.mubr.bf16.mxu0 %v8123_v21  ;;  %v10956_v40 = vld [vmem:[%s15523_s0 + $0x890] ss:$100 sps:$4 sm:$0xff]  }
 0x353   :  { %7045 = vmatmul.mubr.bf16.gmra.mrb[128].mxu1 %v10947_v52  ;;  %10087 = vmatprep.subr.bf16.mxu0 %v11560_v23  ;;  %v10957_v52 = vld [vmem:[%s15523_s0 + $0x894] ss:$100 sps:$4 sm:$0xff]   ;;  %v10954_v5 = vld [vmem:[%s15523_s0 + $0x88c] ss:$100 sps:$4 sm:$0xff]  }
 0x354   :  { %10210 = vmatpush3.bf16.msra.mxu1 %v11558_v15  ;;  %v9561_v31 = vpop.f32.mrb[24].mxu0  ;;  %7052 = vmatprep.mubr.bf16.mxu1 %v8125_v39  ;;  %v11565_v57 = vld [vmem:[%s15522_s1 + $0x5b0] sm:$0xff]   ;;  %v10958_v15 = vld [vmem:[%s15523_s0 + $0x95c] ss:$100 sps:$4 sm:$0xff]  }
 0x355   :  { %10211 = vmatprep.subr.bf16.mxu1 %v11561_v53  ;;  %v9562_v16 = vpop.f32.mrb[25].mxu0  ;;  %v11568_v39 = vld [vmem:[%s15522_s1 + $0x5b8] sm:$0xff]  }
 0x356   :  { %v9601_v51 = vpop.f32.mrb[24].mxu1  ;;  %v9563_v58 = vadd.f32 %v9562_v16, %v9561_v31  ;;  %v9564_v20 = vpop.f32.mrb[26].mxu0  ;;  %10088 = vmatpush3.bf16.msra.mxu0 %v11562_v55  ;;  %v10961_v31 = vld [vmem:[%s15523_s0 + $0x958] ss:$100 sps:$4 sm:$0xff]  }
 0x357   :  { %v9602_v30 = vpop.f32.mrb[25].mxu1  ;;  %v9565_v48 = vpop.f32.mrb[27].mxu0  ;;  %10089 = vmatprep.subr.bf16.mxu0 %v11563_v18 }
 0x358   :  { %v9603_v47 = vadd.f32 %v9602_v30, %v9601_v51  ;;  %v9604_v44 = vpop.f32.mrb[26].mxu1  ;;  %10212 = vmatpush3.bf16.msra.mxu1 %v11561_v53  ;;  %v5634_v54 = vadd.f32 %v9563_v58, %v15262_v33  ;;  %v9566_v63 = vadd.f32 %v9565_v48, %v9564_v20  ;;  %v11566_v33 = vld [vmem:[%s15522_s1 + $0x5f8] sm:$0xff]   ;;  %v10965_v51 = vld [vmem:[%s15523_s0 + $0xa24] ss:$100 sps:$4 sm:$0xff]  }
 0x359   :  { %v9605_v49 = vpop.f32.mrb[27].mxu1  ;;  %10213 = vmatprep.subr.bf16.mxu1 %v11564_v61  ;;  %6989 = vmatmul.mubr.bf16.gmra.mrb[124].mxu0 %v8122_v37 }
 0x35a   :  { %v9606_v0 = vadd.f32 %v9605_v49, %v9604_v44  ;;  %v5637_v3 = vadd.f32 %v9566_v63, %v15276_v34  ;;  %10090 = vmatpush3.bf16.msra.mxu0 %v11565_v57  ;;  %v15406_v1 = vadd.f32 %v9603_v47, %v5634_v54  ;;  %7092 = vmatprep.mubr.bf16.mxu0 %v10956_v40  ;;  %v11567_v34 = vld [vmem:[%s15522_s1 + $0x638] sm:$0xff]   ;;  %v10964_v63 = vld [vmem:[%s15523_s0 + $0xa20] ss:$100 sps:$4 sm:$0xff]  }
 0x35b   :  { %7053 = vmatmul.mubr.bf16.gmra.mrb[132].mxu1 %v8124_v45  ;;  %10091 = vmatprep.subr.bf16.mxu0 %v11566_v33  ;;  %v10959_v44 = vld [vmem:[%s15523_s0 + $0x954] ss:$100 sps:$4 sm:$0xff]  }
 0x35c   :  { %10214 = vmatpush3.bf16.msra.mxu1 %v11564_v61  ;;  %v9567_v29 = vpop.f32.mrb[28].mxu0  ;;  %10217 = vmatprep.mubr.bf16.mxu1 %v10957_v52  ;;  %v15414_v7 = vadd.f32 %v9606_v0, %v5637_v3 }
 0x35d   :  { %10215 = vmatprep.subr.bf16.mxu1 %v11567_v34  ;;  %v9568_v27 = vpop.f32.mrb[29].mxu0 }
 0x35e   :  { %v9607_v8 = vpop.f32.mrb[28].mxu1  ;;  %v9569_v21 = vadd.f32 %v9568_v27, %v9567_v29  ;;  %v9570_v14 = vpop.f32.mrb[30].mxu0  ;;  %10092 = vmatpush3.bf16.msra.mxu0 %v11568_v39 }
 0x35f   :  { %v9608_v28 = vpop.f32.mrb[29].mxu1  ;;  %v9571_v53 = vpop.f32.mrb[31].mxu0 }
 0x360   :  { %v9609_v25 = vadd.f32 %v9608_v28, %v9607_v8  ;;  %v9610_v23 = vpop.f32.mrb[30].mxu1  ;;  %10216 = vmatpush3.bf16.msra.mxu1 %v11567_v34  ;;  %v5642_v30 = vadd.f32 %v9569_v21, %v15304_v11  ;;  %v9572_v37 = vadd.f32 %v9571_v53, %v9570_v14  ;;  %v10966_v11 = vld [vmem:[%s15523_s0 + $0xaec] ss:$0 sps:$4 sm:$0x11]   ;;  %v8027_v34 = vld [vmem:[%s15523_s0 + $0xae4] sm:$0x11] }
 0x361   :  { %v9611_v16 = vpop.f32.mrb[31].mxu1  ;;  %7093 = vmatmul.mubr.bf16.vlgmr.msra.gmra.mrb[128].mxu0 %v10954_v5 }
 0x362   :  { %v9612_v45 = vadd.f32 %v9611_v16, %v9610_v23  ;;  %v5645_v58 = vadd.f32 %v9572_v37, %v15312_v4  ;;  %7100 = vmatprep.mubr.bf16.mxu0 %v10961_v31  ;;  %v5706_v20 = vadd.f32 %v9609_v25, %v5642_v30  ;;  %v8127_v23 = vcombine.high %v8027_v34, %v8027_v34 }
 0x363   :  { %10218 = vmatmul.mubr.bf16.vlgmr.msra.gmra.mrb[136].mxu1 %v10958_v15 }
 0x364   :  { %10221 = vmatprep.mubr.bf16.mxu1 %v10965_v51  ;;  %v9573_v55 = vpop.f32.mrb[32].mxu0  ;;  %v5709_v48 = vadd.f32 %v9612_v45, %v5645_v58 }
 0x365   :  { %v9574_v49 = vpop.f32.mrb[33].mxu0 }
 0x366   :  { %v9613_v47 = vpop.f32.mrb[32].mxu1  ;;  %v9575_v61 = vadd.f32 %v9574_v49, %v9573_v55  ;;  %v9576_v40 = vpop.f32.mrb[34].mxu0  ;;  %v8126_v55 = vcombine.low %v8027_v34, %v8027_v34 }
 0x367   :  { %v9614_v18 = vpop.f32.mrb[33].mxu1  ;;  %v9577_v0 = vpop.f32.mrb[35].mxu0 }
 0x368   :  { %v9615_v54 = vadd.f32 %v9614_v18, %v9613_v47  ;;  %v9616_v4 = vpop.f32.mrb[34].mxu1  ;;  %v5650_v3 = vadd.f32 %v9575_v61, %v15340_v46  ;;  %v9578_v57 = vadd.f32 %v9577_v0, %v9576_v40  ;;  %v10962_v46 = vld [vmem:[%s15523_s0 + $0xa1c] ss:$100 sps:$4 sm:$0xff]  }
 0x369   :  { %v9617_v52 = vpop.f32.mrb[35].mxu1  ;;  %7101 = vmatmul.mubr.bf16.gmra.mrb[132].mxu0 %v10959_v44 }
 0x36a   :  { %v9618_v33 = vadd.f32 %v9617_v52, %v9616_v4  ;;  %v5653_v29 = vadd.f32 %v9578_v57, %v15348_v60  ;;  %7108 = vmatprep.mubr.bf16.mxu0 %v10964_v63  ;;  %v5714_v8 = vadd.f32 %v9615_v54, %v5650_v3 }
 0x36b   :  { %10222 = vmatmul.mubr.bf16.gmra.mrb[140].mxu1 %v10966_v11 }
 0x36c   :  { %v9579_v27 = vpop.f32.mrb[36].mxu0  ;;  %v5717_v5 = vadd.f32 %v9618_v33, %v5653_v29 }
 0x36d   :  { %v9580_v15 = vpop.f32.mrb[37].mxu0 }
 0x36e   :  { %v9619_v28 = vpop.f32.mrb[36].mxu1  ;;  %v9581_v14 = vadd.f32 %v9580_v15, %v9579_v27  ;;  %v9582_v39 = vpop.f32.mrb[38].mxu0 }
 0x36f   :  { %v9620_v21 = vpop.f32.mrb[37].mxu1  ;;  %v9583_v31 = vpop.f32.mrb[39].mxu0 }
 0x370   :  { %v9621_v25 = vadd.f32 %v9620_v21, %v9619_v28  ;;  %v9622_v60 = vpop.f32.mrb[38].mxu1  ;;  %v5658_v53 = vadd.f32 %v9581_v14, %v15375_v17 }
 0x371   :  { %v9623_v51 = vpop.f32.mrb[39].mxu1  ;;  %7109 = vmatmul.mubr.bf16.gmra.mrb[136].mxu0 %v10962_v46 }
 0x372   :  { %7116 = vmatprep.mubr.bf16.mxu0 %v8127_v23  ;;  %v5722_v16 = vadd.f32 %v9621_v25, %v5658_v53 }
 0x374   :  { %v10195_v30 = vpop.f32.mrb[40].mxu0 }
 0x375   :  { %v5770_v45 = vadd.f32 %v10195_v30, %v5706_v20  ;;  %v5761_v58 = vpop.f32.mrb[41].mxu0 }
 0x376   :  { %v9653_v37 = vpop.f32.mrb[40].mxu1  ;;  %v5762_v44 = vadd.f32 %v5761_v58, %v15406_v1  ;;  %v10196_v49 = vpop.f32.mrb[42].mxu0 }
 0x377   :  { %v9654_v47 = vpop.f32.mrb[41].mxu1  ;;  %v15455_v61 = vmax.f32 %v4396_v43, %v5770_v45  ;;  %v5773_v17 = vadd.f32 %v10196_v49, %v5709_v48  ;;  %v5764_v40 = vpop.f32.mrb[43].mxu0 }
 0x378   :  { %v9655_v18 = vadd.f32 %v9654_v47, %v9653_v37  ;;  %v9656_v11 = vpop.f32.mrb[42].mxu1  ;;  %v15460_v20 = vmax.f32 %v4394_v22, %v5762_v44  ;;  %v5765_v4 = vadd.f32 %v5764_v40, %v15414_v7 }
 0x379   :  { %v9657_v54 = vpop.f32.mrb[43].mxu1  ;;  %v15466_v1 = vmax.f32 %v4397_v59, %v5773_v17  ;;  %7117 = vmatmul.mubr.bf16.gmra.mrb[140].mxu0 %v8126_v55 }
 0x37a   :  { %v9658_v63 = vadd.f32 %v9657_v54, %v9656_v11  ;;  %v15471_v12 = vmax.f32 %v4395_v62, %v5765_v4 }
 0x37c   :  { %v10199_v42 = vpop.f32.mrb[44].mxu0 }
 0x37d   :  { %v5786_v48 = vadd.f32 %v10199_v42, %v5722_v16  ;;  %v5777_v19 = vpop.f32.mrb[45].mxu0 }
 0x37e   :  { %v9659_v43 = vpop.f32.mrb[44].mxu1  ;;  %v5778_v22 = vadd.f32 %v5777_v19, %v5714_v8  ;;  %v10200_v0 = vpop.f32.mrb[46].mxu0 }
 0x37f   :  { %v9660_v10 = vpop.f32.mrb[45].mxu1  ;;  %v15476_v32 = vmax.f32 %v4400_v38, %v5786_v48  ;;  %v5780_v50 = vpop.f32.mrb[47].mxu0 }
 0x380   :  { %v9661_v7 = vadd.f32 %v9660_v10, %v9659_v43  ;;  %v9662_v52 = vpop.f32.mrb[46].mxu1  ;;  %v15481_v26 = vmax.f32 %v4398_v6, %v5778_v22  ;;  %v5781_v24 = vadd.f32 %v5780_v50, %v5717_v5 }
 0x381   :  { %v9663_v59 = vpop.f32.mrb[47].mxu1 }
 0x382   :  { %v9664_v62 = vadd.f32 %v9663_v59, %v9662_v52  ;;  %v15486_v3 = vmax.f32 %v4399_v13, %v5781_v24 }
 0x386   :  { %v9665_v57 = vpop.f32.mrb[48].mxu1 }
 0x387   :  { %v9666_v33 = vpop.f32.mrb[49].mxu1 }
 0x388   :  { %v9667_v29 = vadd.f32 %v9666_v33, %v9665_v57  ;;  %v9668_v36 = vpop.f32.mrb[50].mxu1 }
 0x389   :  { %v9669_v35 = vpop.f32.mrb[51].mxu1 }
 0x38a   :  { %v9670_v38 = vadd.f32 %v9669_v35, %v9668_v36 }
 0x38e   :  { %v9671_v8 = vpop.f32.mrb[52].mxu1 }
 0x38f   :  { %v9672_v34 = vpop.f32.mrb[53].mxu1 }
 0x390   :  { %v9673_v27 = vadd.f32 %v9672_v34, %v9671_v8  ;;  %v9674_v28 = vpop.f32.mrb[54].mxu1 }
 0x391   :  { %v9675_v41 = vpop.f32.mrb[55].mxu1 }
 0x394   :  { %v9693_v2 = vpop.f32.mrb[48].mxu0 }
 0x395   :  { %v9694_v5 = vpop.f32.mrb[49].mxu0 }
 0x396   :  { %v9733_v6 = vpop.f32.mrb[56].mxu1  ;;  %v9695_v21 = vadd.f32 %v9694_v5, %v9693_v2  ;;  %v9696_v46 = vpop.f32.mrb[50].mxu0 }
 0x397   :  { %v9734_v15 = vpop.f32.mrb[57].mxu1  ;;  %v9697_v13 = vpop.f32.mrb[51].mxu0 }
 0x398   :  { %v9735_v56 = vadd.f32 %v9734_v15, %v9733_v6  ;;  %v9736_v9 = vpop.f32.mrb[58].mxu1  ;;  %v6455_v39 = vadd.f32 %v9695_v21, %v9655_v18  ;;  %v9698_v25 = vadd.f32 %v9697_v13, %v9696_v46 }
 0x399   :  { %v9737_v14 = vpop.f32.mrb[59].mxu1 }
 0x39a   :  { %v9738_v23 = vadd.f32 %v9737_v14, %v9736_v9  ;;  %v6458_v60 = vadd.f32 %v9698_v25, %v9658_v63  ;;  %v6519_v31 = vadd.f32 %v9735_v56, %v6455_v39 }
 0x39c   :  { %v6522_v51 = vadd.f32 %v9738_v23, %v6458_v60  ;;  %v9699_v53 = vpop.f32.mrb[52].mxu0 }
 0x39d   :  { %v9700_v30 = vpop.f32.mrb[53].mxu0 }
 0x39e   :  { %v9739_v16 = vpop.f32.mrb[60].mxu1  ;;  %v9701_v45 = vadd.f32 %v9700_v30, %v9699_v53  ;;  %v9702_v58 = vpop.f32.mrb[54].mxu0 }
 0x39f   :  { %v9740_v37 = vpop.f32.mrb[61].mxu1  ;;  %v9703_v44 = vpop.f32.mrb[55].mxu0 }
 0x3a0   :  { %v9741_v55 = vadd.f32 %v9740_v37, %v9739_v16  ;;  %v9742_v47 = vpop.f32.mrb[62].mxu1  ;;  %v6463_v11 = vadd.f32 %v9701_v45, %v9661_v7  ;;  %v9704_v17 = vadd.f32 %v9703_v44, %v9702_v58 }
 0x3a1   :  { %v9743_v49 = vpop.f32.mrb[63].mxu1 }
 0x3a2   :  { %v9744_v40 = vadd.f32 %v9743_v49, %v9742_v47  ;;  %v6466_v54 = vadd.f32 %v9704_v17, %v9664_v62  ;;  %v6527_v18 = vadd.f32 %v9741_v55, %v6463_v11 }
 0x3a4   :  { %v6530_v4 = vadd.f32 %v9744_v40, %v6466_v54  ;;  %v9705_v42 = vpop.f32.mrb[56].mxu0 }
 0x3a5   :  { %v9706_v43 = vpop.f32.mrb[57].mxu0 }
 0x3a6   :  { %v9745_v63 = vpop.f32.mrb[64].mxu1  ;;  %v9707_v19 = vadd.f32 %v9706_v43, %v9705_v42  ;;  %v9708_v10 = vpop.f32.mrb[58].mxu0 }
 0x3a7   :  { %v9746_v48 = vpop.f32.mrb[65].mxu1  ;;  %v9709_v52 = vpop.f32.mrb[59].mxu0 }
 0x3a8   :  { %v9747_v22 = vadd.f32 %v9746_v48, %v9745_v63  ;;  %v9748_v0 = vpop.f32.mrb[66].mxu1  ;;  %v6471_v59 = vadd.f32 %v9707_v19, %v9667_v29  ;;  %v9710_v24 = vadd.f32 %v9709_v52, %v9708_v10 }
 0x3a9   :  { %v9749_v50 = vpop.f32.mrb[67].mxu1 }
 0x3aa   :  { %v9750_v57 = vadd.f32 %v9749_v50, %v9748_v0  ;;  %v6474_v33 = vadd.f32 %v9710_v24, %v9670_v38  ;;  %v6535_v7 = vadd.f32 %v9747_v22, %v6471_v59 }
 0x3ac   :  { %v6538_v36 = vadd.f32 %v9750_v57, %v6474_v33  ;;  %v9711_v35 = vpop.f32.mrb[60].mxu0 }
 0x3ad   :  { %v9712_v8 = vpop.f32.mrb[61].mxu0 }
 0x3ae   :  { %v9751_v62 = vpop.f32.mrb[68].mxu1  ;;  %v9713_v28 = vadd.f32 %v9712_v8, %v9711_v35  ;;  %v9714_v41 = vpop.f32.mrb[62].mxu0 }
 0x3af   :  { %v9752_v34 = vpop.f32.mrb[69].mxu1  ;;  %v9715_v5 = vpop.f32.mrb[63].mxu0 }
 0x3b0   :  { %v9753_v2 = vadd.f32 %v9752_v34, %v9751_v62  ;;  %v9754_v6 = vpop.f32.mrb[70].mxu1  ;;  %v6479_v21 = vadd.f32 %v9713_v28, %v9673_v27 }
 0x3b1   :  { %v9755_v15 = vpop.f32.mrb[71].mxu1 }
 0x3b2   :  { %v6543_v46 = vadd.f32 %v9753_v2, %v6479_v21 }
 0x3b4   :  { %v9773_v56 = vpop.f32.mrb[64].mxu0 }
 0x3b5   :  { %v9774_v29 = vpop.f32.mrb[65].mxu0 }
 0x3b6   :  { %v9813_v9 = vpop.f32.mrb[72].mxu1  ;;  %v9775_v14 = vadd.f32 %v9774_v29, %v9773_v56  ;;  %v9776_v38 = vpop.f32.mrb[66].mxu0 }
 0x3b7   :  { %v9814_v13 = vpop.f32.mrb[73].mxu1  ;;  %v9777_v23 = vpop.f32.mrb[67].mxu0 }
 0x3b8   :  { %v9815_v39 = vadd.f32 %v9814_v13, %v9813_v9  ;;  %v9816_v25 = vpop.f32.mrb[74].mxu1  ;;  %v6583_v53 = vadd.f32 %v9775_v14, %v6519_v31  ;;  %v9778_v16 = vadd.f32 %v9777_v23, %v9776_v38 }
 0x3b9   :  { %v9817_v60 = vpop.f32.mrb[75].mxu1 }
 0x3ba   :  { %v9818_v30 = vadd.f32 %v9817_v60, %v9816_v25  ;;  %v6586_v37 = vadd.f32 %v9778_v16, %v6522_v51  ;;  %v6647_v45 = vadd.f32 %v9815_v39, %v6583_v53 }
 0x3bc   :  { %v6650_v58 = vadd.f32 %v9818_v30, %v6586_v37  ;;  %v9779_v55 = vpop.f32.mrb[68].mxu0 }
 0x3bd   :  { %v9780_v27 = vpop.f32.mrb[69].mxu0 }
 0x3be   :  { %v9819_v47 = vpop.f32.mrb[76].mxu1  ;;  %v9781_v49 = vadd.f32 %v9780_v27, %v9779_v55  ;;  %v9782_v11 = vpop.f32.mrb[70].mxu0 }
 0x3bf   :  { %v9820_v44 = vpop.f32.mrb[77].mxu1  ;;  %v9783_v54 = vpop.f32.mrb[71].mxu0 }
 0x3c0   :  { %v9821_v17 = vadd.f32 %v9820_v44, %v9819_v47  ;;  %v9822_v40 = vpop.f32.mrb[78].mxu1  ;;  %v6591_v63 = vadd.f32 %v9781_v49, %v6527_v18  ;;  %v9784_v43 = vadd.f32 %v9783_v54, %v9782_v11 }
 0x3c1   :  { %v9823_v42 = vpop.f32.mrb[79].mxu1 }
 0x3c2   :  { %v9824_v48 = vadd.f32 %v9823_v42, %v9822_v40  ;;  %v6594_v19 = vadd.f32 %v9784_v43, %v6530_v4  ;;  %v6655_v31 = vadd.f32 %v9821_v17, %v6591_v63 }
 0x3c4   :  { %v6658_v10 = vadd.f32 %v9824_v48, %v6594_v19  ;;  %v9785_v22 = vpop.f32.mrb[72].mxu0 }
 0x3c5   :  { %v9786_v0 = vpop.f32.mrb[73].mxu0 }
 0x3c6   :  { %v9825_v51 = vpop.f32.mrb[80].mxu1  ;;  %v9787_v50 = vadd.f32 %v9786_v0, %v9785_v22  ;;  %v9788_v59 = vpop.f32.mrb[74].mxu0 }
 0x3c7   :  { %v9826_v52 = vpop.f32.mrb[81].mxu1  ;;  %v9789_v33 = vpop.f32.mrb[75].mxu0 }
 0x3c8   :  { %v9827_v24 = vadd.f32 %v9826_v52, %v9825_v51  ;;  %v9828_v57 = vpop.f32.mrb[82].mxu1  ;;  %v6599_v62 = vadd.f32 %v9787_v50, %v6535_v7  ;;  %v9790_v8 = vadd.f32 %v9789_v33, %v9788_v59 }
 0x3c9   :  { %v9829_v35 = vpop.f32.mrb[83].mxu1 }
 0x3ca   :  { %v9830_v34 = vadd.f32 %v9829_v35, %v9828_v57  ;;  %v6602_v28 = vadd.f32 %v9790_v8, %v6538_v36  ;;  %v6663_v18 = vadd.f32 %v9827_v24, %v6599_v62 }
 0x3cc   :  { %v6666_v41 = vadd.f32 %v9830_v34, %v6602_v28  ;;  %v9791_v2 = vpop.f32.mrb[76].mxu0 }
 0x3cd   :  { %v9792_v6 = vpop.f32.mrb[77].mxu0 }
 0x3ce   :  { %v9831_v4 = vpop.f32.mrb[84].mxu1  ;;  %v9793_v15 = vadd.f32 %v9792_v6, %v9791_v2  ;;  %v9794_v21 = vpop.f32.mrb[78].mxu0 }
 0x3cf   :  { %v9832_v5 = vpop.f32.mrb[85].mxu1  ;;  %v9795_v29 = vpop.f32.mrb[79].mxu0 }
 0x3d0   :  { %v9833_v56 = vadd.f32 %v9832_v5, %v9831_v4  ;;  %v9834_v9 = vpop.f32.mrb[86].mxu1  ;;  %v6607_v14 = vadd.f32 %v9793_v15, %v6543_v46 }
 0x3d1   :  { %v9835_v13 = vpop.f32.mrb[87].mxu1 }
 0x3d2   :  { %v6671_v38 = vadd.f32 %v9833_v56, %v6607_v14 }
 0x3d4   :  { %v9853_v39 = vpop.f32.mrb[80].mxu0 }
 0x3d5   :  { %v9854_v7 = vpop.f32.mrb[81].mxu0 }
 0x3d6   :  { %v9893_v25 = vpop.f32.mrb[88].mxu1  ;;  %v9855_v60 = vadd.f32 %v9854_v7, %v9853_v39  ;;  %v9856_v36 = vpop.f32.mrb[82].mxu0 }
 0x3d7   :  { %v9894_v23 = vpop.f32.mrb[89].mxu1  ;;  %v9857_v30 = vpop.f32.mrb[83].mxu0 }
 0x3d8   :  { %v9895_v53 = vadd.f32 %v9894_v23, %v9893_v25  ;;  %v9896_v16 = vpop.f32.mrb[90].mxu1  ;;  %v6711_v55 = vadd.f32 %v9855_v60, %v6647_v45  ;;  %v9858_v47 = vadd.f32 %v9857_v30, %v9856_v36 }
 0x3d9   :  { %v9897_v37 = vpop.f32.mrb[91].mxu1 }
 0x3da   :  { %v9898_v27 = vadd.f32 %v9897_v37, %v9896_v16  ;;  %v6714_v44 = vadd.f32 %v9858_v47, %v6650_v58  ;;  %v6775_v49 = vadd.f32 %v9895_v53, %v6711_v55 }
 0x3dc   :  { %v6778_v11 = vadd.f32 %v9898_v27, %v6714_v44  ;;  %v9859_v17 = vpop.f32.mrb[84].mxu0 }
 0x3dd   :  { %v9860_v46 = vpop.f32.mrb[85].mxu0 }
 0x3de   :  { %v9899_v40 = vpop.f32.mrb[92].mxu1  ;;  %v9861_v42 = vadd.f32 %v9860_v46, %v9859_v17  ;;  %v9862_v63 = vpop.f32.mrb[86].mxu0 }
 0x3df   :  { %v9900_v54 = vpop.f32.mrb[93].mxu1  ;;  %v9863_v19 = vpop.f32.mrb[87].mxu0 }
 0x3e0   :  { %v9901_v43 = vadd.f32 %v9900_v54, %v9899_v40  ;;  %v9902_v48 = vpop.f32.mrb[94].mxu1  ;;  %v6719_v51 = vadd.f32 %v9861_v42, %v6655_v31  ;;  %v9864_v0 = vadd.f32 %v9863_v19, %v9862_v63 }
 0x3e1   :  { %v9903_v22 = vpop.f32.mrb[95].mxu1 }
 0x3e2   :  { %v9904_v52 = vadd.f32 %v9903_v22, %v9902_v48  ;;  %v6722_v50 = vadd.f32 %v9864_v0, %v6658_v10  ;;  %v6783_v45 = vadd.f32 %v9901_v43, %v6719_v51 }
 0x3e4   :  { %v6786_v59 = vadd.f32 %v9904_v52, %v6722_v50  ;;  %v9865_v24 = vpop.f32.mrb[88].mxu0 }
 0x3e5   :  { %v9866_v57 = vpop.f32.mrb[89].mxu0 }
 0x3e6   :  { %v9905_v58 = vpop.f32.mrb[96].mxu1  ;;  %v9867_v35 = vadd.f32 %v9866_v57, %v9865_v24  ;;  %v9868_v62 = vpop.f32.mrb[90].mxu0 }
 0x3e7   :  { %v9906_v33 = vpop.f32.mrb[97].mxu1  ;;  %v9869_v28 = vpop.f32.mrb[91].mxu0 }
 0x3e8   :  { %v9907_v8 = vadd.f32 %v9906_v33, %v9905_v58  ;;  %v9908_v34 = vpop.f32.mrb[98].mxu1  ;;  %v6727_v4 = vadd.f32 %v9867_v35, %v6663_v18  ;;  %v9870_v6 = vadd.f32 %v9869_v28, %v9868_v62 }
 0x3e9   :  { %v9909_v2 = vpop.f32.mrb[99].mxu1 }
 0x3ea   :  { %v9910_v5 = vadd.f32 %v9909_v2, %v9908_v34  ;;  %v6730_v15 = vadd.f32 %v9870_v6, %v6666_v41  ;;  %v6791_v31 = vadd.f32 %v9907_v8, %v6727_v4 }
 0x3ec   :  { %v6794_v21 = vadd.f32 %v9910_v5, %v6730_v15  ;;  %v9871_v56 = vpop.f32.mrb[92].mxu0 }
 0x3ed   :  { %v9872_v9 = vpop.f32.mrb[93].mxu0 }
 0x3ee   :  { %v9911_v10 = vpop.f32.mrb[100].mxu1  ;;  %v9873_v13 = vadd.f32 %v9872_v9, %v9871_v56  ;;  %v9874_v14 = vpop.f32.mrb[94].mxu0 }
 0x3ef   :  { %v9912_v29 = vpop.f32.mrb[101].mxu1  ;;  %v9875_v7 = vpop.f32.mrb[95].mxu0 }
 0x3f0   :  { %v9913_v39 = vadd.f32 %v9912_v29, %v9911_v10  ;;  %v9914_v25 = vpop.f32.mrb[102].mxu1  ;;  %v6735_v60 = vadd.f32 %v9873_v13, %v6671_v38 }
 0x3f1   :  { %v9915_v23 = vpop.f32.mrb[103].mxu1 }
 0x3f2   :  { %v6799_v36 = vadd.f32 %v9913_v39, %v6735_v60 }
 0x3f4   :  { %v9933_v53 = vpop.f32.mrb[96].mxu0 }
 0x3f5   :  { %v9934_v18 = vpop.f32.mrb[97].mxu0 }
 0x3f6   :  { %v9973_v16 = vpop.f32.mrb[104].mxu1  ;;  %v9935_v37 = vadd.f32 %v9934_v18, %v9933_v53  ;;  %v9936_v41 = vpop.f32.mrb[98].mxu0 }
 0x3f7   :  { %v9974_v30 = vpop.f32.mrb[105].mxu1  ;;  %v9937_v27 = vpop.f32.mrb[99].mxu0 }
 0x3f8   :  { %v9975_v55 = vadd.f32 %v9974_v30, %v9973_v16  ;;  %v9976_v47 = vpop.f32.mrb[106].mxu1  ;;  %v6839_v17 = vadd.f32 %v9935_v37, %v6775_v49  ;;  %v9938_v40 = vadd.f32 %v9937_v27, %v9936_v41 }
 0x3f9   :  { %v9977_v44 = vpop.f32.mrb[107].mxu1 }
 0x3fa   :  { %v9978_v46 = vadd.f32 %v9977_v44, %v9976_v47  ;;  %v6842_v54 = vadd.f32 %v9938_v40, %v6778_v11  ;;  %v6903_v42 = vadd.f32 %v9975_v55, %v6839_v17 }
 0x3fc   :  { %v6906_v63 = vadd.f32 %v9978_v46, %v6842_v54  ;;  %v9939_v43 = vpop.f32.mrb[100].mxu0 }
 0x3fd   :  { %v9940_v38 = vpop.f32.mrb[101].mxu0 }
 0x3fe   :  { %v9979_v48 = vpop.f32.mrb[108].mxu1  ;;  %v9941_v22 = vadd.f32 %v9940_v38, %v9939_v43  ;;  %v9942_v51 = vpop.f32.mrb[102].mxu0 }
 0x3ff   :  { %v9980_v19 = vpop.f32.mrb[109].mxu1  ;;  %v9943_v50 = vpop.f32.mrb[103].mxu0 }
 0x400   :  { %v9981_v0 = vadd.f32 %v9980_v19, %v9979_v48  ;;  %v9982_v52 = vpop.f32.mrb[110].mxu1  ;;  %v6847_v58 = vadd.f32 %v9941_v22, %v6783_v45  ;;  %v9944_v57 = vadd.f32 %v9943_v50, %v9942_v51 }
 0x401   :  { %v9983_v24 = vpop.f32.mrb[111].mxu1 }
 0x402   :  { %v9984_v33 = vadd.f32 %v9983_v24, %v9982_v52  ;;  %v6850_v35 = vadd.f32 %v9944_v57, %v6786_v59  ;;  %v6911_v49 = vadd.f32 %v9981_v0, %v6847_v58 }
 0x404   :  { %v6914_v62 = vadd.f32 %v9984_v33, %v6850_v35  ;;  %v9945_v8 = vpop.f32.mrb[104].mxu0 }
 0x405   :  { %v9946_v34 = vpop.f32.mrb[105].mxu0 }
 0x406   :  { %v9985_v11 = vpop.f32.mrb[112].mxu1  ;;  %v9947_v2 = vadd.f32 %v9946_v34, %v9945_v8  ;;  %v9948_v4 = vpop.f32.mrb[106].mxu0 }
 0x407   :  { %v9986_v28 = vpop.f32.mrb[113].mxu1  ;;  %v9949_v15 = vpop.f32.mrb[107].mxu0 }
 0x408   :  { %v9987_v6 = vadd.f32 %v9986_v28, %v9985_v11  ;;  %v9988_v5 = vpop.f32.mrb[114].mxu1  ;;  %v6855_v10 = vadd.f32 %v9947_v2, %v6791_v31  ;;  %v9950_v9 = vadd.f32 %v9949_v15, %v9948_v4 }
 0x409   :  { %v9989_v56 = vpop.f32.mrb[115].mxu1 }
 0x40a   :  { %v9990_v29 = vadd.f32 %v9989_v56, %v9988_v5  ;;  %v6858_v13 = vadd.f32 %v9950_v9, %v6794_v21  ;;  %v6919_v45 = vadd.f32 %v9987_v6, %v6855_v10 }
 0x40c   :  { %v6922_v14 = vadd.f32 %v9990_v29, %v6858_v13  ;;  %v9951_v39 = vpop.f32.mrb[108].mxu0 }
 0x40d   :  { %v9952_v25 = vpop.f32.mrb[109].mxu0 }
 0x40e   :  { %v9991_v59 = vpop.f32.mrb[116].mxu1  ;;  %v9953_v23 = vadd.f32 %v9952_v25, %v9951_v39  ;;  %v9954_v60 = vpop.f32.mrb[110].mxu0 }
 0x40f   :  { %v9992_v7 = vpop.f32.mrb[117].mxu1  ;;  %v9955_v18 = vpop.f32.mrb[111].mxu0 }
 0x410   :  { %v9993_v53 = vadd.f32 %v9992_v7, %v9991_v59  ;;  %v9994_v16 = vpop.f32.mrb[118].mxu1  ;;  %v6863_v37 = vadd.f32 %v9953_v23, %v6799_v36 }
 0x411   :  { %v9995_v30 = vpop.f32.mrb[119].mxu1 }
 0x412   :  { %v6927_v41 = vadd.f32 %v9993_v53, %v6863_v37 }
 0x414   :  { %v10013_v55 = vpop.f32.mrb[112].mxu0 }
 0x415   :  { %v10014_v31 = vpop.f32.mrb[113].mxu0 }
 0x416   :  { %v10053_v47 = vpop.f32.mrb[120].mxu1  ;;  %v10015_v44 = vadd.f32 %v10014_v31, %v10013_v55  ;;  %v10016_v21 = vpop.f32.mrb[114].mxu0 }
 0x417   :  { %v10054_v27 = vpop.f32.mrb[121].mxu1  ;;  %v10017_v46 = vpop.f32.mrb[115].mxu0 }
 0x418   :  { %v10055_v17 = vadd.f32 %v10054_v27, %v10053_v47  ;;  %v10056_v40 = vpop.f32.mrb[122].mxu1  ;;  %v6967_v43 = vadd.f32 %v10015_v44, %v6903_v42  ;;  %v10018_v48 = vadd.f32 %v10017_v46, %v10016_v21 }
 0x419   :  { %v10057_v54 = vpop.f32.mrb[123].mxu1 }
 0x41a   :  { %v10058_v38 = vadd.f32 %v10057_v54, %v10056_v40  ;;  %v6970_v19 = vadd.f32 %v10018_v48, %v6906_v63  ;;  %v7031_v22 = vadd.f32 %v10055_v17, %v6967_v43 }
 0x41c   :  { %v7034_v51 = vadd.f32 %v10058_v38, %v6970_v19  ;;  %v10019_v0 = vpop.f32.mrb[116].mxu0 }
 0x41d   :  { %v10020_v36 = vpop.f32.mrb[117].mxu0 }
 0x41e   :  { %v10059_v52 = vpop.f32.mrb[124].mxu1  ;;  %v10021_v24 = vadd.f32 %v10020_v36, %v10019_v0  ;;  %v10022_v58 = vpop.f32.mrb[118].mxu0 }
 0x41f   :  { %v10060_v50 = vpop.f32.mrb[125].mxu1  ;;  %v10023_v35 = vpop.f32.mrb[119].mxu0 }
 0x420   :  { %v10061_v57 = vadd.f32 %v10060_v50, %v10059_v52  ;;  %v10062_v33 = vpop.f32.mrb[126].mxu1  ;;  %v6975_v11 = vadd.f32 %v10021_v24, %v6911_v49  ;;  %v10024_v34 = vadd.f32 %v10023_v35, %v10022_v58  ;;  %v8129_v50 = vld [vmem:[%s15524_s2] ss:$0 sm:$0xff] }
 0x421   :  { %v10063_v8 = vpop.f32.mrb[127].mxu1 }
 0x422   :  { %v10064_v28 = vadd.f32 %v10063_v8, %v10062_v33  ;;  %v6978_v2 = vadd.f32 %v10024_v34, %v6914_v62  ;;  %v7039_v42 = vadd.f32 %v10061_v57, %v6975_v11 }
 0x424   :  { %v15488_v4 = vadd.f32 %v10064_v28, %v6978_v2  ;;  %v10025_v63 = vpop.f32.mrb[120].mxu0 }
 0x425   :  { %v10026_v5 = vpop.f32.mrb[121].mxu0 }
 0x426   :  { %v10065_v6 = vpop.f32.mrb[128].mxu1  ;;  %v10027_v56 = vadd.f32 %v10026_v5, %v10025_v63  ;;  %v10028_v10 = vpop.f32.mrb[122].mxu0 }
 0x427   :  { %v10066_v15 = vpop.f32.mrb[129].mxu1  ;;  %v10029_v13 = vpop.f32.mrb[123].mxu0 }
 0x428   :  { %v10067_v9 = vadd.f32 %v10066_v15, %v10065_v6  ;;  %v10068_v29 = vpop.f32.mrb[130].mxu1  ;;  %v6983_v59 = vadd.f32 %v10027_v56, %v6919_v45  ;;  %v10030_v25 = vadd.f32 %v10029_v13, %v10028_v10 }
 0x429   :  { %v10069_v39 = vpop.f32.mrb[131].mxu1 }
 0x42a   :  { %v10070_v7 = vadd.f32 %v10069_v39, %v10068_v29  ;;  %v6986_v49 = vadd.f32 %v10030_v25, %v6922_v14  ;;  %v15490_v23 = vadd.f32 %v10067_v9, %v6983_v59 }
 0x42c   :  { %v15492_v62 = vadd.f32 %v10070_v7, %v6986_v49  ;;  %v10031_v60 = vpop.f32.mrb[124].mxu0 }
 0x42d   :  { %v10032_v16 = vpop.f32.mrb[125].mxu0 }
 0x42e   :  { %v10071_v53 = vpop.f32.mrb[132].mxu1  ;;  %v10033_v30 = vadd.f32 %v10032_v16, %v10031_v60  ;;  %v10034_v37 = vpop.f32.mrb[126].mxu0 }
 0x42f   :  { %v10072_v18 = vpop.f32.mrb[133].mxu1  ;;  %v10035_v31 = vpop.f32.mrb[127].mxu0 }
 0x430   :  { %v10073_v55 = vadd.f32 %v10072_v18, %v10071_v53  ;;  %v10074_v47 = vpop.f32.mrb[134].mxu1  ;;  %v6991_v44 = vadd.f32 %v10033_v30, %v6927_v41 }
 0x431   :  { %v10075_v27 = vpop.f32.mrb[135].mxu1 }
 0x432   :  { %v15494_v21 = vadd.f32 %v10073_v55, %v6991_v44 }
 0x434   :  { %v10093_v45 = vpop.f32.mrb[128].mxu0 }
 0x435   :  { %v10094_v14 = vpop.f32.mrb[129].mxu0 }
 0x436   :  { %v10219_v17 = vpop.f32.mrb[136].mxu1  ;;  %v10095_v46 = vadd.f32 %v10094_v14, %v10093_v45  ;;  %v10096_v54 = vpop.f32.mrb[130].mxu0 }
 0x437   :  { %v7158_v40 = vpop.f32.mrb[137].mxu1  ;;  %v10097_v48 = vpop.f32.mrb[131].mxu0 }
 0x438   :  { %v10220_v43 = vpop.f32.mrb[138].mxu1  ;;  %v10098_v19 = vadd.f32 %v10097_v48, %v10096_v54  ;;  %v7095_v0 = vadd.f32 %v10095_v46, %v7031_v22 }
 0x439   :  { %v7161_v38 = vpop.f32.mrb[139].mxu1 }
 0x43a   :  { %v7159_v52 = vadd.f32 %v7158_v40, %v7095_v0  ;;  %v7098_v36 = vadd.f32 %v10098_v19, %v7034_v51 }
 0x43c   :  { %v7188_v41 = vmax.f32 %v15460_v20, %v7159_v52  ;;  %v7162_v24 = vadd.f32 %v7161_v38, %v7098_v36  ;;  %v10099_v58 = vpop.f32.mrb[132].mxu0 }
 0x43d   :  { %v10100_v33 = vpop.f32.mrb[133].mxu0 }
 0x43e   :  { %v10223_v57 = vpop.f32.mrb[140].mxu1  ;;  %v7202_v8 = vadd.f32 %v8129_v50, %v7188_v41  ;;  %v7189_v11 = vmax.f32 %v15471_v12, %v7162_v24  ;;  %v10101_v34 = vadd.f32 %v10100_v33, %v10099_v58  ;;  %v10102_v28 = vpop.f32.mrb[134].mxu0 }
 0x43f   :  { %v7174_v35 = vpop.f32.mrb[141].mxu1  ;;  %v10103_v22 = vpop.f32.mrb[135].mxu0 }
 0x440   :  { %v10224_v2 = vpop.f32.mrb[142].mxu1  ;;  %v7203_v51 = vadd.f32 %v8129_v50, %v7189_v11  ;;  %v7103_v6 = vadd.f32 %v10101_v34, %v7039_v42  ;;  %v10104_v5 = vadd.f32 %v10103_v22, %v10102_v28  ;;  %v7209_v15 = vmax.f32 %v7202_v8, 0.0 }
 0x441   :  { %v7177_v63 = vpop.f32.mrb[143].mxu1 }
 0x442   :  { %v7210_v56 = vmax.f32 %v7203_v51, 0.0  ;;  %v7167_v10 = vadd.f32 %v10219_v17, %v7103_v6  ;;  %v7106_v20 = vadd.f32 %v10104_v5, %v15488_v4 }
 0x444   :  { %v8147_v9 = vpack.c.bf16 %v7210_v56, %v7209_v15  ;;  %v7190_v29 = vmax.f32 %v15455_v61, %v7167_v10  ;;  %v7170_v13 = vadd.f32 %v10220_v43, %v7106_v20  ;;  %v10105_v39 = vpop.f32.mrb[136].mxu0 }
 0x445   :  { %v10106_v59 = vpop.f32.mrb[137].mxu0 }
 0x446   :  { %8148 = vst [vmem:[%s15525_s3] sm:$0xff] %v8147_v9   ;;  %v7204_v12 = vadd.f32 %v8129_v50, %v7190_v29  ;;  %v7191_v25 = vmax.f32 %v15466_v1, %v7170_v13  ;;  %v10107_v42 = vadd.f32 %v10106_v59, %v10105_v39  ;;  %v10108_v7 = vpop.f32.mrb[138].mxu0 }
 0x447   :  { %v10109_v49 = vpop.f32.mrb[139].mxu0 }
 0x448   :  { %v7205_v60 = vadd.f32 %v8129_v50, %v7191_v25  ;;  %v10110_v53 = vadd.f32 %v10109_v49, %v10108_v7  ;;  %v7111_v4 = vadd.f32 %v10107_v42, %v15490_v23  ;;  %v7211_v16 = vmax.f32 %v7204_v12, 0.0 }
 0x44a   :  { %v7212_v18 = vmax.f32 %v7205_v60, 0.0  ;;  %v7175_v61 = vadd.f32 %v7174_v35, %v7111_v4  ;;  %v7114_v30 = vadd.f32 %v10110_v53, %v15492_v62 }
 0x44c   :  { %v8152_v37 = vpack.c.bf16 %v7212_v18, %v7211_v16  ;;  %v7192_v55 = vmax.f32 %v15481_v26, %v7175_v61  ;;  %v7178_v47 = vadd.f32 %v7177_v63, %v7114_v30  ;;  %v10111_v31 = vpop.f32.mrb[140].mxu0 }
 0x44d   :  { %v10112_v27 = vpop.f32.mrb[141].mxu0 }
 0x44e   :  { %8159 = vst [vmem:[%s15525_s3 + $0x8] sm:$0xff] %v8152_v37   ;;  %v7206_v1 = vadd.f32 %v8129_v50, %v7192_v55  ;;  %v7193_v44 = vmax.f32 %v15486_v3, %v7178_v47  ;;  %v10113_v45 = vadd.f32 %v10112_v27, %v10111_v31  ;;  %v10114_v23 = vpop.f32.mrb[142].mxu0 }
 0x44f   :  { %v10115_v17 = vpop.f32.mrb[143].mxu0 }
 0x450   :  { %v7207_v14 = vadd.f32 %v8129_v50, %v7193_v44  ;;  %v7119_v40 = vadd.f32 %v10113_v45, %v15494_v21  ;;  %v7213_v62 = vmax.f32 %v7206_v1, 0.0 }
 0x452   :  { %v7214_v46 = vmax.f32 %v7207_v14, 0.0  ;;  %v7183_v54 = vadd.f32 %v10223_v57, %v7119_v40 }
 0x454   :  { %v8157_v26 = vpack.c.bf16 %v7214_v46, %v7213_v62  ;;  %v7194_v43 = vmax.f32 %v15476_v32, %v7183_v54 }
 0x456   :  { %8160 = vst [vmem:[%s15525_s3 + $0x10] sm:$0xff] %v8157_v26   ;;  %v7208_v48 = vadd.f32 %v8129_v50, %v7194_v43 }
 0x458   :  { %v7215_v38 = vmax.f32 %v7208_v48, 0.0 }
 0x45a   :  { %v8143_v19 = vpack.c.bf16 %v7215_v38, %v7215_v38 }
 0x45c   :  { %7251 = vst [vmem:[%s15525_s3 + $0x18] sm:$0x1] %v8143_v19 }

</bundles_post_ra>
